<compile_context>
chip_gen: v7x
topology: tpu7x:2x2x1
jax: 0.10.0
libtpu: 0.0.40
codegen_flags: <defaults>
</compile_context>

<pallas_src>
import functools

import jax
import jax.numpy as jnp
from jax.experimental import pallas as pl
from jax.experimental.pallas import tpu as pltpu

_VMEM_LIMIT = 32 * 1024 * 1024   # <= v7x's 64 MiB physical VMEM
_CONV_BATCH_TILE = 16            # images per conv grid step (VMEM-safe everywhere)
_NUM_CLASSES = 6
_HEAD_PAD = 128                  # pad the head to 128 lanes -> unmasked stores


def _full_spec(shape):
    return pl.BlockSpec(shape, lambda i: (0,) * len(shape))


# ---------------------------------------------------------------------------
# Pallas kernels
# ---------------------------------------------------------------------------
def _conv_bn_relu_pool_kernel(p_ref, w_ref, scale_ref, shift_ref, o_ref):
    """Fused conv(as matmul) + BN + ReLU + 2x2 maxpool for a tile of images.

    p_ref:       (4, R, K) bf16 -- im2col patches, one slab per 2x2 pool
                 position, R = batch_tile * pooled_OH*OW rows.
    w_ref:       (K, Cout) bf16
    scale/shift: (1, Cout) f32 folded BatchNorm (+conv bias)
    o_ref:       (R, Cout) bf16 pooled output.
    """
    w = w_ref[...]
    s = scale_ref[...]
    t = shift_ref[...]

    def branch(j):
        y = jnp.dot(p_ref[j], w, preferred_element_type=jnp.float32)
        return jnp.maximum(y * s + t, 0.0)

    pooled = jnp.maximum(jnp.maximum(branch(0), branch(1)),
                         jnp.maximum(branch(2), branch(3)))
    o_ref[...] = pooled.astype(o_ref.dtype)


def _fc_fused_kernel(x_ref, w1_ref, b1_ref, w2_ref, b2_ref, w3_ref, b3_ref,
                     emb_ref, out_ref):
    """fc1 -> (Dropout2d: identity in eval) -> fc2 (=emb) -> head (=logits)."""
    h = jnp.dot(x_ref[...], w1_ref[...],
                preferred_element_type=jnp.float32) + b1_ref[...]
    e = jnp.dot(h.astype(jnp.bfloat16), w2_ref[...],
                preferred_element_type=jnp.float32) + b2_ref[...]
    emb_ref[...] = e
    out_ref[...] = jnp.dot(e.astype(jnp.bfloat16), w3_ref[...],
                           preferred_element_type=jnp.float32) + b3_ref[...]


# ---------------------------------------------------------------------------
# Wrappers around pallas_call
# ---------------------------------------------------------------------------
def conv_bn_relu_pool(patches, w, scale, shift, *, batch_tile=_CONV_BATCH_TILE):
    """patches: (4, N, Mh, K) bf16 stacked by pool position -> (N, Mh, Cout)."""
    _, n, mh, k = patches.shape
    cout = w.shape[1]
    bt = max(1, min(batch_tile, n))
    n_pad = ((n + bt - 1) // bt) * bt
    if n_pad != n:
        patches = jnp.pad(patches, ((0, 0), (0, n_pad - n), (0, 0), (0, 0)))
    # Collapse (N_pad, Mh) -> rows on the host (contiguous => free) so the
    # kernel runs one big (bt*Mh, K) x (K, Cout) matmul per pool position
    # with no in-kernel relayout.
    patches = patches.reshape(4, n_pad * mh, k)
    rows = bt * mh

    flops = 2 * 4 * n_pad * mh * k * cout
    bytes_accessed = (patches.size * patches.dtype.itemsize
                      + w.size * w.dtype.itemsize
                      + (scale.size + shift.size) * 4
                      + n_pad * mh * cout * 2)

    out = pl.pallas_call(
        _conv_bn_relu_pool_kernel,
        grid=(n_pad // bt,),
        in_specs=[pl.BlockSpec((4, rows, k), lambda i: (0, i, 0)),
                  pl.BlockSpec((k, cout), lambda i: (0, 0)),
                  pl.BlockSpec((1, cout), lambda i: (0, 0)),
                  pl.BlockSpec((1, cout), lambda i: (0, 0))],
        out_specs=pl.BlockSpec((rows, cout), lambda i: (i, 0)),
        out_shape=jax.ShapeDtypeStruct((n_pad * mh, cout), jnp.bfloat16),
        compiler_params=pltpu.CompilerParams(
            dimension_semantics=("parallel",),
            vmem_limit_bytes=_VMEM_LIMIT),
        cost_estimate=pl.CostEstimate(flops=flops, transcendentals=0,
                                      bytes_accessed=bytes_accessed),
    )(patches, w, scale, shift)
    if n_pad != n:
        out = out[: n * mh]
    return out.reshape(n, mh, cout)


def fc_fused(x, w1, b1, w2, b2, w3, b3):
    m, k1 = x.shape
    n1, n2, n3 = w1.shape[1], w2.shape[1], w3.shape[1]

    flops = 2 * m * (k1 * n1 + n1 * n2 + n2 * n3)
    bytes_accessed = (x.size * x.dtype.itemsize
                      + sum(a.size * a.dtype.itemsize
                            for a in (w1, b1, w2, b2, w3, b3))
                      + m * (n2 + n3) * 4)

    return pl.pallas_call(
        _fc_fused_kernel,
        grid=(1,),
        in_specs=[_full_spec((m, k1)),
                  _full_spec((k1, n1)), _full_spec((1, n1)),
                  _full_spec((n1, n2)), _full_spec((1, n2)),
                  _full_spec((n2, n3)), _full_spec((1, n3))],
        out_specs=(_full_spec((m, n2)), _full_spec((m, n3))),
        out_shape=(jax.ShapeDtypeStruct((m, n2), jnp.float32),
                   jax.ShapeDtypeStruct((m, n3), jnp.float32)),
        compiler_params=pltpu.CompilerParams(vmem_limit_bytes=_VMEM_LIMIT),
        cost_estimate=pl.CostEstimate(flops=flops, transcendentals=0,
                                      bytes_accessed=bytes_accessed),
    )(x, w1, b1, w2, b2, w3, b3)


# ---------------------------------------------------------------------------
# Glue: pool-grouped im2col, BN folding, parameter prep, forward, reference
# ---------------------------------------------------------------------------
def im2col_pooled(x, kh, kw, padding):
    """x: (N, H, W, C) NHWC -> stacked patches (4, N, OHh*OWh, KH*KW*C), one
    slab per 2x2 pool-window position; column order [kh, kw, cin] (matching
    the conv weight reshaped via transpose(2, 3, 1, 0))."""
    n, h, w, c = x.shape
    if padding:
        x = jnp.pad(x, ((0, 0), (padding, padding), (padding, padding), (0, 0)))
    oh = h + 2 * padding - kh + 1
    ow = w + 2 * padding - kw + 1
    assert oh % 2 == 0 and ow % 2 == 0, "2x2 pool grouping needs even conv output"
    ohh, owh = oh // 2, ow // 2
    groups = []
    for di in range(2):
        for dj in range(2):
            cols = []
            for ki in range(kh):
                for kj in range(kw):
                    r0, c0 = di + ki, dj + kj
                    cols.append(x[:, r0:r0 + 2 * ohh:2, c0:c0 + 2 * owh:2, :])
            p = jnp.concatenate(cols, axis=-1)           # (N, OHh, OWh, KH*KW*C)
            groups.append(p.reshape(n, ohh * owh, kh * kw * c))
    return jnp.stack(groups, axis=0), (n, ohh, owh)


def fold_bn(gamma, beta, mean, var, conv_bias, eps=1e-5):
    # BN(conv(x) + b) = conv(x) * scale + shift  (inference mode, running stats)
    scale = gamma / jnp.sqrt(var + eps)
    shift = beta + (conv_bias - mean) * scale
    return (scale.reshape(1, -1).astype(jnp.float32),
            shift.reshape(1, -1).astype(jnp.float32))


def prepare_params(params, eps=1e-5):
    """One-time weight preprocessing (hoisted out of the per-call forward)."""
    w1 = params["conv1_w"].transpose(2, 3, 1, 0).reshape(3 * 3 * 3, 32)
    s1, t1 = fold_bn(params["bn1_gamma"], params["bn1_beta"],
                     params["bn1_mean"], params["bn1_var"],
                     params["conv1_b"], eps)
    w2 = params["conv2_w"].transpose(2, 3, 1, 0).reshape(32 * 3 * 3, 64)
    s2, t2 = fold_bn(params["bn2_gamma"], params["bn2_beta"],
                     params["bn2_mean"], params["bn2_var"],
                     params["conv2_b"], eps)

    # Fold torch's NCHW Flatten permutation into fc1's rows so the pooled
    # conv2 output (NHWC) feeds fc1 with a free reshape.  2304 = 64 * 6 * 6.
    cout, sp = 64, 6
    fc1_w = params["fc1_w"].reshape(512, cout, sp, sp)
    fc1_w = fc1_w.transpose(2, 3, 1, 0).reshape(sp * sp * cout, 512)

    # Pad the 6-class head to 128 output lanes (unmasked store); slice later.
    head_w = jnp.zeros((128, _HEAD_PAD), jnp.float32)
    head_w = head_w.at[:, :_NUM_CLASSES].set(params["head_w"].T)
    head_b = jnp.zeros((1, _HEAD_PAD), jnp.float32)
    head_b = head_b.at[:, :_NUM_CLASSES].set(params["head_b"].reshape(1, -1))

    return {
        "conv1_w": w1.astype(jnp.bfloat16), "bn1_scale": s1, "bn1_shift": t1,
        "conv2_w": w2.astype(jnp.bfloat16), "bn2_scale": s2, "bn2_shift": t2,
        "fc1_w": fc1_w.astype(jnp.bfloat16),
        "fc1_b": params["fc1_b"].reshape(1, -1).astype(jnp.float32),
        "fc2_w": params["fc2_w"].T.astype(jnp.bfloat16),
        "fc2_b": params["fc2_b"].reshape(1, -1).astype(jnp.float32),
        "head_w": head_w.astype(jnp.bfloat16),
        "head_b": head_b,
    }


def init_params(key):
    ks = jax.random.split(key, 10)

    def uni(k, shape, fan_in):
        bound = 1.0 / (fan_in ** 0.5)
        return jax.random.uniform(k, shape, jnp.float32, -bound, bound)

    return {
        # torch layouts: conv weight (Cout, Cin, KH, KW), linear weight (out, in)
        "conv1_w": uni(ks[0], (32, 3, 3, 3), 3 * 3 * 3),
        "conv1_b": uni(ks[1], (32,), 3 * 3 * 3),
        "bn1_gamma": jnp.ones((32,), jnp.float32),
        "bn1_beta": jnp.zeros((32,), jnp.float32),
        "bn1_mean": jnp.zeros((32,), jnp.float32),
        "bn1_var": jnp.ones((32,), jnp.float32),
        "conv2_w": uni(ks[2], (64, 32, 3, 3), 32 * 3 * 3),
        "conv2_b": uni(ks[3], (64,), 32 * 3 * 3),
        "bn2_gamma": jnp.ones((64,), jnp.float32),
        "bn2_beta": jnp.zeros((64,), jnp.float32),
        "bn2_mean": jnp.zeros((64,), jnp.float32),
        "bn2_var": jnp.ones((64,), jnp.float32),
        "fc1_w": uni(ks[4], (512, 2304), 2304),
        "fc1_b": uni(ks[5], (512,), 2304),
        "fc2_w": uni(ks[6], (128, 512), 512),
        "fc2_b": uni(ks[7], (128,), 512),
        "head_w": uni(ks[8], (6, 128), 128),
        "head_b": uni(ks[9], (6,), 128),
    }


def cnn_forward(prep, x_nchw):
    # NCHW (PyTorch) -> NHWC (kernel layout), bf16 MXU operands.
    x = jnp.transpose(x_nchw, (0, 2, 3, 1)).astype(jnp.bfloat16)

    # --- Conv2d(3, 32, k=3, pad=1) + BN(32) + ReLU + MaxPool2d(2, 2) ---
    p, (n, ohh, owh) = im2col_pooled(x, 3, 3, 1)
    y = conv_bn_relu_pool(p, prep["conv1_w"], prep["bn1_scale"], prep["bn1_shift"])
    y = y.reshape(n, ohh, owh, 32)                        # free reshape

    # --- Conv2d(32, 64, k=3, pad=0) + BN(64) + ReLU + MaxPool2d(2) ---
    p, (n, ohh, owh) = im2col_pooled(y, 3, 3, 0)
    y = conv_bn_relu_pool(p, prep["conv2_w"], prep["bn2_scale"], prep["bn2_shift"])

    # Flatten stays in NHWC order (free reshape); torch's NCHW-Flatten
    # permutation is already folded into fc1's rows in prepare_params.
    flat = y.reshape(n, ohh * owh * 64)                   # (N, 2304) bf16

    # fc1 -> Dropout2d(0.25, eval: identity) -> fc2 (embedding) -> head (logits)
    emb, logits_pad = fc_fused(flat, prep["fc1_w"], prep["fc1_b"],
                               prep["fc2_w"], prep["fc2_b"],
                               prep["head_w"], prep["head_b"])
    return emb, logits_pad[:, :_NUM_CLASSES]


def cnn_reference(params, x_nchw, eps=1e-5):
    """Pure-f32 XLA reference matching the PyTorch module (eval mode)."""
    def block(x, w, b, gamma, beta, mean, var, padding):
        y = jax.lax.conv_general_dilated(
            x, w, window_strides=(1, 1),
            padding=[(padding, padding), (padding, padding)],
            dimension_numbers=("NCHW", "OIHW", "NCHW"))
        y = y + b.reshape(1, -1, 1, 1)
        y = (y - mean.reshape(1, -1, 1, 1)) * jax.lax.rsqrt(
            var.reshape(1, -1, 1, 1) + eps)
        y = y * gamma.reshape(1, -1, 1, 1) + beta.reshape(1, -1, 1, 1)
        y = jnp.maximum(y, 0.0)
        return jax.lax.reduce_window(y, -jnp.inf, jax.lax.max,
                                     (1, 1, 2, 2), (1, 1, 2, 2), "VALID")

    x = x_nchw.astype(jnp.float32)
    y = block(x, params["conv1_w"], params["conv1_b"], params["bn1_gamma"],
              params["bn1_beta"], params["bn1_mean"], params["bn1_var"], 1)
    y = block(y, params["conv2_w"], params["conv2_b"], params["bn2_gamma"],
              params["bn2_beta"], params["bn2_mean"], params["bn2_var"], 0)
    flat = y.reshape(y.shape[0], -1)                      # torch Flatten: [c,h,w]
    h = flat @ params["fc1_w"].T + params["fc1_b"]        # Dropout2d: identity
    emb = h @ params["fc2_w"].T + params["fc2_b"]
    out = emb @ params["head_w"].T + params["head_b"]
    return emb, out


if __name__ == "__main__":
    key = jax.random.PRNGKey(0)
    pkey, xkey = jax.random.split(key)
    params = init_params(pkey)
    prep = prepare_params(params)

    # Linear(2304, 512) implies 3x28x28 inputs (28 ->pool 14 ->conv 12 ->pool 6; 64*6*6=2304)
    x = jax.random.normal(xkey, (2, 3, 28, 28), dtype=jnp.float32)

    fwd = jax.jit(functools.partial(cnn_forward, prep))
    embedding, out = fwd(x)
    jax.block_until_ready((embedding, out))

    assert embedding.shape == (2, 128) and embedding.dtype == jnp.float32
    assert out.shape == (2, 6) and out.dtype == jnp.float32
    assert bool(jnp.all(jnp.isfinite(embedding))) and bool(jnp.all(jnp.isfinite(out)))

    # Tolerance check of the bf16-operand kernels against a pure-f32 reference.
    emb_ref, out_ref = jax.jit(functools.partial(cnn_reference, params))(x)
    jax.block_until_ready((emb_ref, out_ref))

    def rel_err(a, b):
        return float(jnp.linalg.norm(a.astype(jnp.float32) - b)
                     / (jnp.linalg.norm(b) + 1e-12))

    assert rel_err(embedding, emb_ref) < 5e-2, rel_err(embedding, emb_ref)
    assert rel_err(out, out_ref) < 5e-2, rel_err(out, out_ref)
    print("KERNEL_OK")
</pallas_src>

<mosaic_0001>
module attributes {stable_mosaic.version = 11 : i64} {
  func.func @_conv_bn_relu_pool_kernel(%arg0: i32, %arg1: memref<4x392x27xbf16, #tpu.memory_space<vmem>>, %arg2: memref<27x32xbf16, #tpu.memory_space<vmem>>, %arg3: memref<1x32xf32, #tpu.memory_space<vmem>>, %arg4: memref<1x32xf32, #tpu.memory_space<vmem>>, %arg5: memref<392x32xbf16, #tpu.memory_space<vmem>>) attributes {dimension_semantics = [#tpu.dimension_semantics<parallel>], iteration_bounds = array<i64: 1>, scalar_prefetch = 0 : i64, scratch_operands = 0 : i64, tpu.core_type = #tpu.core_type<tc>, window_params = [{transform_indices = @transform_0, window_bounds = array<i64: 4, 392, 27>}, {pipeline_mode = #tpu.pipeline_mode<synchronous>, transform_indices = @transform_1, window_bounds = array<i64: 27, 32>}, {pipeline_mode = #tpu.pipeline_mode<synchronous>, transform_indices = @transform_2, window_bounds = array<i64: 1, 32>}, {pipeline_mode = #tpu.pipeline_mode<synchronous>, transform_indices = @transform_3, window_bounds = array<i64: 1, 32>}, {transform_indices = @transform_4, window_bounds = array<i64: 392, 32>}]} {
    %c0 = arith.constant 0 : index
    %c0_0 = arith.constant 0 : index
    %0 = vector.load %arg2[%c0, %c0_0] : memref<27x32xbf16, #tpu.memory_space<vmem>>, vector<27x32xbf16>
    %c0_1 = arith.constant 0 : index
    %c0_2 = arith.constant 0 : index
    %1 = vector.load %arg3[%c0_1, %c0_2] : memref<1x32xf32, #tpu.memory_space<vmem>>, vector<1x32xf32>
    %c0_3 = arith.constant 0 : index
    %c0_4 = arith.constant 0 : index
    %2 = vector.load %arg4[%c0_3, %c0_4] : memref<1x32xf32, #tpu.memory_space<vmem>>, vector<1x32xf32>
    %c0_5 = arith.constant 0 : index
    %c0_6 = arith.constant 0 : index
    %c0_7 = arith.constant 0 : index
    %3 = vector.load %arg1[%c0_5, %c0_6, %c0_7] : memref<4x392x27xbf16, #tpu.memory_space<vmem>>, vector<1x392x27xbf16>
    %4 = vector.shape_cast %3 : vector<1x392x27xbf16> to vector<392x27xbf16>
    %cst = arith.constant dense<0.000000e+00> : vector<392x32xf32>
    %5 = tpu.matmul %4, %0, %cst {dimension_numbers = #tpu.dot_dimension_numbers<[1], [0], [0], [1], [0, 0, 1, 1], [], []>} : vector<392x27xbf16>, vector<27x32xbf16>, vector<392x32xf32> -> vector<392x32xf32>
    %6 = vector.broadcast %1 : vector<1x32xf32> to vector<392x32xf32>
    %7 = arith.mulf %5, %6 : vector<392x32xf32>
    %8 = vector.broadcast %2 : vector<1x32xf32> to vector<392x32xf32>
    %9 = arith.addf %7, %8 : vector<392x32xf32>
    %cst_8 = arith.constant 0.000000e+00 : f32
    %10 = vector.broadcast %cst_8 : f32 to vector<392x32xf32>
    %11 = arith.maximumf %9, %10 : vector<392x32xf32>
    %c1 = arith.constant 1 : index
    %c0_9 = arith.constant 0 : index
    %c0_10 = arith.constant 0 : index
    %12 = vector.load %arg1[%c1, %c0_9, %c0_10] : memref<4x392x27xbf16, #tpu.memory_space<vmem>>, vector<1x392x27xbf16>
    %13 = vector.shape_cast %12 : vector<1x392x27xbf16> to vector<392x27xbf16>
    %cst_11 = arith.constant dense<0.000000e+00> : vector<392x32xf32>
    %14 = tpu.matmul %13, %0, %cst_11 {dimension_numbers = #tpu.dot_dimension_numbers<[1], [0], [0], [1], [0, 0, 1, 1], [], []>} : vector<392x27xbf16>, vector<27x32xbf16>, vector<392x32xf32> -> vector<392x32xf32>
    %15 = vector.broadcast %1 : vector<1x32xf32> to vector<392x32xf32>
    %16 = arith.mulf %14, %15 : vector<392x32xf32>
    %17 = vector.broadcast %2 : vector<1x32xf32> to vector<392x32xf32>
    %18 = arith.addf %16, %17 : vector<392x32xf32>
    %cst_12 = arith.constant 0.000000e+00 : f32
    %19 = vector.broadcast %cst_12 : f32 to vector<392x32xf32>
    %20 = arith.maximumf %18, %19 : vector<392x32xf32>
    %21 = arith.maximumf %11, %20 : vector<392x32xf32>
    %c2 = arith.constant 2 : index
    %c0_13 = arith.constant 0 : index
    %c0_14 = arith.constant 0 : index
    %22 = vector.load %arg1[%c2, %c0_13, %c0_14] : memref<4x392x27xbf16, #tpu.memory_space<vmem>>, vector<1x392x27xbf16>
    %23 = vector.shape_cast %22 : vector<1x392x27xbf16> to vector<392x27xbf16>
    %cst_15 = arith.constant dense<0.000000e+00> : vector<392x32xf32>
    %24 = tpu.matmul %23, %0, %cst_15 {dimension_numbers = #tpu.dot_dimension_numbers<[1], [0], [0], [1], [0, 0, 1, 1], [], []>} : vector<392x27xbf16>, vector<27x32xbf16>, vector<392x32xf32> -> vector<392x32xf32>
    %25 = vector.broadcast %1 : vector<1x32xf32> to vector<392x32xf32>
    %26 = arith.mulf %24, %25 : vector<392x32xf32>
    %27 = vector.broadcast %2 : vector<1x32xf32> to vector<392x32xf32>
    %28 = arith.addf %26, %27 : vector<392x32xf32>
    %cst_16 = arith.constant 0.000000e+00 : f32
    %29 = vector.broadcast %cst_16 : f32 to vector<392x32xf32>
    %30 = arith.maximumf %28, %29 : vector<392x32xf32>
    %c3 = arith.constant 3 : index
    %c0_17 = arith.constant 0 : index
    %c0_18 = arith.constant 0 : index
    %31 = vector.load %arg1[%c3, %c0_17, %c0_18] : memref<4x392x27xbf16, #tpu.memory_space<vmem>>, vector<1x392x27xbf16>
    %32 = vector.shape_cast %31 : vector<1x392x27xbf16> to vector<392x27xbf16>
    %cst_19 = arith.constant dense<0.000000e+00> : vector<392x32xf32>
    %33 = tpu.matmul %32, %0, %cst_19 {dimension_numbers = #tpu.dot_dimension_numbers<[1], [0], [0], [1], [0, 0, 1, 1], [], []>} : vector<392x27xbf16>, vector<27x32xbf16>, vector<392x32xf32> -> vector<392x32xf32>
    %34 = vector.broadcast %1 : vector<1x32xf32> to vector<392x32xf32>
    %35 = arith.mulf %33, %34 : vector<392x32xf32>
    %36 = vector.broadcast %2 : vector<1x32xf32> to vector<392x32xf32>
    %37 = arith.addf %35, %36 : vector<392x32xf32>
    %cst_20 = arith.constant 0.000000e+00 : f32
    %38 = vector.broadcast %cst_20 : f32 to vector<392x32xf32>
    %39 = arith.maximumf %37, %38 : vector<392x32xf32>
    %40 = arith.maximumf %30, %39 : vector<392x32xf32>
    %41 = arith.maximumf %21, %40 : vector<392x32xf32>
    %42 = arith.truncf %41 : vector<392x32xf32> to vector<392x32xbf16>
    %c0_21 = arith.constant 0 : index
    %c0_22 = arith.constant 0 : index
    %43 = vector.load %arg5[%c0_21, %c0_22] : memref<392x32xbf16, #tpu.memory_space<vmem>>, vector<392x32xbf16>
    tpu.vector_store %arg5[%c0_21, %c0_22], %42 {strides = array<i32>} : memref<392x32xbf16, #tpu.memory_space<vmem>>, vector<392x32xbf16>,
    return
  }
  func.func @transform_0(%arg0: i32) -> (i32, i32, i32) {
    %c0_i32 = arith.constant 0 : i32
    %c0_i32_0 = arith.constant 0 : i32
    %c0_i32_1 = arith.constant 0 : i32
    return %c0_i32, %arg0, %c0_i32_0 : i32, i32, i32
  }
  func.func @transform_1(%arg0: i32) -> (i32, i32) {
    %c0_i32 = arith.constant 0 : i32
    %c0_i32_0 = arith.constant 0 : i32
    %c0_i32_1 = arith.constant 0 : i32
    return %c0_i32, %c0_i32_0 : i32, i32
  }
  func.func @transform_2(%arg0: i32) -> (i32, i32) {
    %c0_i32 = arith.constant 0 : i32
    %c0_i32_0 = arith.constant 0 : i32
    %c0_i32_1 = arith.constant 0 : i32
    return %c0_i32, %c0_i32_0 : i32, i32
  }
  func.func @transform_3(%arg0: i32) -> (i32, i32) {
    %c0_i32 = arith.constant 0 : i32
    %c0_i32_0 = arith.constant 0 : i32
    %c0_i32_1 = arith.constant 0 : i32
    return %c0_i32, %c0_i32_0 : i32, i32
  }
  func.func @transform_4(%arg0: i32) -> (i32, i32) {
    %c0_i32 = arith.constant 0 : i32
    %c0_i32_0 = arith.constant 0 : i32
    return %arg0, %c0_i32 : i32, i32
  }
}

module attributes {stable_mosaic.version = 11 : i64} {
  func.func @_conv_bn_relu_pool_kernel(%arg0: i32, %arg1: memref<4x72x288xbf16, #tpu.memory_space<vmem>>, %arg2: memref<288x64xbf16, #tpu.memory_space<vmem>>, %arg3: memref<1x64xf32, #tpu.memory_space<vmem>>, %arg4: memref<1x64xf32, #tpu.memory_space<vmem>>, %arg5: memref<72x64xbf16, #tpu.memory_space<vmem>>) attributes {dimension_semantics = [#tpu.dimension_semantics<parallel>], iteration_bounds = array<i64: 1>, scalar_prefetch = 0 : i64, scratch_operands = 0 : i64, tpu.core_type = #tpu.core_type<tc>, window_params = [{transform_indices = @transform_0, window_bounds = array<i64: 4, 72, 288>}, {pipeline_mode = #tpu.pipeline_mode<synchronous>, transform_indices = @transform_1, window_bounds = array<i64: 288, 64>}, {pipeline_mode = #tpu.pipeline_mode<synchronous>, transform_indices = @transform_2, window_bounds = array<i64: 1, 64>}, {pipeline_mode = #tpu.pipeline_mode<synchronous>, transform_indices = @transform_3, window_bounds = array<i64: 1, 64>}, {transform_indices = @transform_4, window_bounds = array<i64: 72, 64>}]} {
    %c0 = arith.constant 0 : index
    %c0_0 = arith.constant 0 : index
    %0 = vector.load %arg2[%c0, %c0_0] : memref<288x64xbf16, #tpu.memory_space<vmem>>, vector<288x64xbf16>
    %c0_1 = arith.constant 0 : index
    %c0_2 = arith.constant 0 : index
    %1 = vector.load %arg3[%c0_1, %c0_2] : memref<1x64xf32, #tpu.memory_space<vmem>>, vector<1x64xf32>
    %c0_3 = arith.constant 0 : index
    %c0_4 = arith.constant 0 : index
    %2 = vector.load %arg4[%c0_3, %c0_4] : memref<1x64xf32, #tpu.memory_space<vmem>>, vector<1x64xf32>
    %c0_5 = arith.constant 0 : index
    %c0_6 = arith.constant 0 : index
    %c0_7 = arith.constant 0 : index
    %3 = vector.load %arg1[%c0_5, %c0_6, %c0_7] : memref<4x72x288xbf16, #tpu.memory_space<vmem>>, vector<1x72x288xbf16>
    %4 = vector.shape_cast %3 : vector<1x72x288xbf16> to vector<72x288xbf16>
    %cst = arith.constant dense<0.000000e+00> : vector<72x64xf32>
    %5 = tpu.matmul %4, %0, %cst {dimension_numbers = #tpu.dot_dimension_numbers<[1], [0], [0], [1], [0, 0, 1, 1], [], []>} : vector<72x288xbf16>, vector<288x64xbf16>, vector<72x64xf32> -> vector<72x64xf32>
    %6 = vector.broadcast %1 : vector<1x64xf32> to vector<72x64xf32>
    %7 = arith.mulf %5, %6 : vector<72x64xf32>
    %8 = vector.broadcast %2 : vector<1x64xf32> to vector<72x64xf32>
    %9 = arith.addf %7, %8 : vector<72x64xf32>
    %cst_8 = arith.constant 0.000000e+00 : f32
    %10 = vector.broadcast %cst_8 : f32 to vector<72x64xf32>
    %11 = arith.maximumf %9, %10 : vector<72x64xf32>
    %c1 = arith.constant 1 : index
    %c0_9 = arith.constant 0 : index
    %c0_10 = arith.constant 0 : index
    %12 = vector.load %arg1[%c1, %c0_9, %c0_10] : memref<4x72x288xbf16, #tpu.memory_space<vmem>>, vector<1x72x288xbf16>
    %13 = vector.shape_cast %12 : vector<1x72x288xbf16> to vector<72x288xbf16>
    %cst_11 = arith.constant dense<0.000000e+00> : vector<72x64xf32>
    %14 = tpu.matmul %13, %0, %cst_11 {dimension_numbers = #tpu.dot_dimension_numbers<[1], [0], [0], [1], [0, 0, 1, 1], [], []>} : vector<72x288xbf16>, vector<288x64xbf16>, vector<72x64xf32> -> vector<72x64xf32>
    %15 = vector.broadcast %1 : vector<1x64xf32> to vector<72x64xf32>
    %16 = arith.mulf %14, %15 : vector<72x64xf32>
    %17 = vector.broadcast %2 : vector<1x64xf32> to vector<72x64xf32>
    %18 = arith.addf %16, %17 : vector<72x64xf32>
    %cst_12 = arith.constant 0.000000e+00 : f32
    %19 = vector.broadcast %cst_12 : f32 to vector<72x64xf32>
    %20 = arith.maximumf %18, %19 : vector<72x64xf32>
    %21 = arith.maximumf %11, %20 : vector<72x64xf32>
    %c2 = arith.constant 2 : index
    %c0_13 = arith.constant 0 : index
    %c0_14 = arith.constant 0 : index
    %22 = vector.load %arg1[%c2, %c0_13, %c0_14] : memref<4x72x288xbf16, #tpu.memory_space<vmem>>, vector<1x72x288xbf16>
    %23 = vector.shape_cast %22 : vector<1x72x288xbf16> to vector<72x288xbf16>
    %cst_15 = arith.constant dense<0.000000e+00> : vector<72x64xf32>
    %24 = tpu.matmul %23, %0, %cst_15 {dimension_numbers = #tpu.dot_dimension_numbers<[1], [0], [0], [1], [0, 0, 1, 1], [], []>} : vector<72x288xbf16>, vector<288x64xbf16>, vector<72x64xf32> -> vector<72x64xf32>
    %25 = vector.broadcast %1 : vector<1x64xf32> to vector<72x64xf32>
    %26 = arith.mulf %24, %25 : vector<72x64xf32>
    %27 = vector.broadcast %2 : vector<1x64xf32> to vector<72x64xf32>
    %28 = arith.addf %26, %27 : vector<72x64xf32>
    %cst_16 = arith.constant 0.000000e+00 : f32
    %29 = vector.broadcast %cst_16 : f32 to vector<72x64xf32>
    %30 = arith.maximumf %28, %29 : vector<72x64xf32>
    %c3 = arith.constant 3 : index
    %c0_17 = arith.constant 0 : index
    %c0_18 = arith.constant 0 : index
    %31 = vector.load %arg1[%c3, %c0_17, %c0_18] : memref<4x72x288xbf16, #tpu.memory_space<vmem>>, vector<1x72x288xbf16>
    %32 = vector.shape_cast %31 : vector<1x72x288xbf16> to vector<72x288xbf16>
    %cst_19 = arith.constant dense<0.000000e+00> : vector<72x64xf32>
    %33 = tpu.matmul %32, %0, %cst_19 {dimension_numbers = #tpu.dot_dimension_numbers<[1], [0], [0], [1], [0, 0, 1, 1], [], []>} : vector<72x288xbf16>, vector<288x64xbf16>, vector<72x64xf32> -> vector<72x64xf32>
    %34 = vector.broadcast %1 : vector<1x64xf32> to vector<72x64xf32>
    %35 = arith.mulf %33, %34 : vector<72x64xf32>
    %36 = vector.broadcast %2 : vector<1x64xf32> to vector<72x64xf32>
    %37 = arith.addf %35, %36 : vector<72x64xf32>
    %cst_20 = arith.constant 0.000000e+00 : f32
    %38 = vector.broadcast %cst_20 : f32 to vector<72x64xf32>
    %39 = arith.maximumf %37, %38 : vector<72x64xf32>
    %40 = arith.maximumf %30, %39 : vector<72x64xf32>
    %41 = arith.maximumf %21, %40 : vector<72x64xf32>
    %42 = arith.truncf %41 : vector<72x64xf32> to vector<72x64xbf16>
    %c0_21 = arith.constant 0 : index
    %c0_22 = arith.constant 0 : index
    %43 = vector.load %arg5[%c0_21, %c0_22] : memref<72x64xbf16, #tpu.memory_space<vmem>>, vector<72x64xbf16>
    tpu.vector_store %arg5[%c0_21, %c0_22], %42 {strides = array<i32>} : memref<72x64xbf16, #tpu.memory_space<vmem>>, vector<72x64xbf16>,
    return
  }
  func.func @transform_0(%arg0: i32) -> (i32, i32, i32) {
    %c0_i32 = arith.constant 0 : i32
    %c0_i32_0 = arith.constant 0 : i32
    %c0_i32_1 = arith.constant 0 : i32
    return %c0_i32, %arg0, %c0_i32_0 : i32, i32, i32
  }
  func.func @transform_1(%arg0: i32) -> (i32, i32) {
    %c0_i32 = arith.constant 0 : i32
    %c0_i32_0 = arith.constant 0 : i32
    %c0_i32_1 = arith.constant 0 : i32
    return %c0_i32, %c0_i32_0 : i32, i32
  }
  func.func @transform_2(%arg0: i32) -> (i32, i32) {
    %c0_i32 = arith.constant 0 : i32
    %c0_i32_0 = arith.constant 0 : i32
    %c0_i32_1 = arith.constant 0 : i32
    return %c0_i32, %c0_i32_0 : i32, i32
  }
  func.func @transform_3(%arg0: i32) -> (i32, i32) {
    %c0_i32 = arith.constant 0 : i32
    %c0_i32_0 = arith.constant 0 : i32
    %c0_i32_1 = arith.constant 0 : i32
    return %c0_i32, %c0_i32_0 : i32, i32
  }
  func.func @transform_4(%arg0: i32) -> (i32, i32) {
    %c0_i32 = arith.constant 0 : i32
    %c0_i32_0 = arith.constant 0 : i32
    return %arg0, %c0_i32 : i32, i32
  }
}

module attributes {stable_mosaic.version = 11 : i64} {
  func.func @_fc_fused_kernel(%arg0: i32, %arg1: memref<2x2304xbf16, #tpu.memory_space<vmem>>, %arg2: memref<2304x512xbf16, #tpu.memory_space<vmem>>, %arg3: memref<1x512xf32, #tpu.memory_space<vmem>>, %arg4: memref<512x128xbf16, #tpu.memory_space<vmem>>, %arg5: memref<1x128xf32, #tpu.memory_space<vmem>>, %arg6: memref<128x128xbf16, #tpu.memory_space<vmem>>, %arg7: memref<1x128xf32, #tpu.memory_space<vmem>>, %arg8: memref<2x128xf32, #tpu.memory_space<vmem>>, %arg9: memref<2x128xf32, #tpu.memory_space<vmem>>) attributes {dimension_semantics = [#tpu.dimension_semantics<arbitrary>], iteration_bounds = array<i64: 1>, scalar_prefetch = 0 : i64, scratch_operands = 0 : i64, tpu.core_type = #tpu.core_type<tc>, window_params = [{pipeline_mode = #tpu.pipeline_mode<synchronous>, transform_indices = @transform_0, window_bounds = array<i64: 2, 2304>}, {pipeline_mode = #tpu.pipeline_mode<synchronous>, transform_indices = @transform_1, window_bounds = array<i64: 2304, 512>}, {pipeline_mode = #tpu.pipeline_mode<synchronous>, transform_indices = @transform_2, window_bounds = array<i64: 1, 512>}, {pipeline_mode = #tpu.pipeline_mode<synchronous>, transform_indices = @transform_3, window_bounds = array<i64: 512, 128>}, {pipeline_mode = #tpu.pipeline_mode<synchronous>, transform_indices = @transform_4, window_bounds = array<i64: 1, 128>}, {pipeline_mode = #tpu.pipeline_mode<synchronous>, transform_indices = @transform_5, window_bounds = array<i64: 128, 128>}, {pipeline_mode = #tpu.pipeline_mode<synchronous>, transform_indices = @transform_6, window_bounds = array<i64: 1, 128>}, {pipeline_mode = #tpu.pipeline_mode<synchronous>, transform_indices = @transform_7, window_bounds = array<i64: 2, 128>}, {pipeline_mode = #tpu.pipeline_mode<synchronous>, transform_indices = @transform_8, window_bounds = array<i64: 2, 128>}]} {
    %c0 = arith.constant 0 : index
    %c0_0 = arith.constant 0 : index
    %0 = vector.load %arg1[%c0, %c0_0] : memref<2x2304xbf16, #tpu.memory_space<vmem>>, vector<2x2304xbf16>
    %c0_1 = arith.constant 0 : index
    %c0_2 = arith.constant 0 : index
    %1 = vector.load %arg2[%c0_1, %c0_2] : memref<2304x512xbf16, #tpu.memory_space<vmem>>, vector<2304x512xbf16>
    %cst = arith.constant dense<0.000000e+00> : vector<2x512xf32>
    %2 = tpu.matmul %0, %1, %cst {dimension_numbers = #tpu.dot_dimension_numbers<[1], [0], [0], [1], [0, 0, 1, 1], [], []>} : vector<2x2304xbf16>, vector<2304x512xbf16>, vector<2x512xf32> -> vector<2x512xf32>
    %c0_3 = arith.constant 0 : index
    %c0_4 = arith.constant 0 : index
    %3 = vector.load %arg3[%c0_3, %c0_4] : memref<1x512xf32, #tpu.memory_space<vmem>>, vector<1x512xf32>
    %4 = vector.broadcast %3 : vector<1x512xf32> to vector<2x512xf32>
    %5 = arith.addf %2, %4 : vector<2x512xf32>
    %6 = arith.truncf %5 : vector<2x512xf32> to vector<2x512xbf16>
    %c0_5 = arith.constant 0 : index
    %c0_6 = arith.constant 0 : index
    %7 = vector.load %arg4[%c0_5, %c0_6] : memref<512x128xbf16, #tpu.memory_space<vmem>>, vector<512x128xbf16>
    %cst_7 = arith.constant dense<0.000000e+00> : vector<2x128xf32>
    %8 = tpu.matmul %6, %7, %cst_7 {dimension_numbers = #tpu.dot_dimension_numbers<[1], [0], [0], [1], [0, 0, 1, 1], [], []>} : vector<2x512xbf16>, vector<512x128xbf16>, vector<2x128xf32> -> vector<2x128xf32>
    %c0_8 = arith.constant 0 : index
    %c0_9 = arith.constant 0 : index
    %9 = vector.load %arg5[%c0_8, %c0_9] : memref<1x128xf32, #tpu.memory_space<vmem>>, vector<1x128xf32>
    %10 = vector.broadcast %9 : vector<1x128xf32> to vector<2x128xf32>
    %11 = arith.addf %8, %10 : vector<2x128xf32>
    %c0_10 = arith.constant 0 : index
    %c0_11 = arith.constant 0 : index
    %12 = vector.load %arg8[%c0_10, %c0_11] : memref<2x128xf32, #tpu.memory_space<vmem>>, vector<2x128xf32>
    tpu.vector_store %arg8[%c0_10, %c0_11], %11 {strides = array<i32>} : memref<2x128xf32, #tpu.memory_space<vmem>>, vector<2x128xf32>,
    %13 = arith.truncf %11 : vector<2x128xf32> to vector<2x128xbf16>
    %c0_12 = arith.constant 0 : index
    %c0_13 = arith.constant 0 : index
    %14 = vector.load %arg6[%c0_12, %c0_13] : memref<128x128xbf16, #tpu.memory_space<vmem>>, vector<128x128xbf16>
    %cst_14 = arith.constant dense<0.000000e+00> : vector<2x128xf32>
    %15 = tpu.matmul %13, %14, %cst_14 {dimension_numbers = #tpu.dot_dimension_numbers<[1], [0], [0], [1], [0, 0, 1, 1], [], []>} : vector<2x128xbf16>, vector<128x128xbf16>, vector<2x128xf32> -> vector<2x128xf32>
    %c0_15 = arith.constant 0 : index
    %c0_16 = arith.constant 0 : index
    %16 = vector.load %arg7[%c0_15, %c0_16] : memref<1x128xf32, #tpu.memory_space<vmem>>, vector<1x128xf32>
    %17 = vector.broadcast %16 : vector<1x128xf32> to vector<2x128xf32>
    %18 = arith.addf %15, %17 : vector<2x128xf32>
    %c0_17 = arith.constant 0 : index
    %c0_18 = arith.constant 0 : index
    %19 = vector.load %arg9[%c0_17, %c0_18] : memref<2x128xf32, #tpu.memory_space<vmem>>, vector<2x128xf32>
    tpu.vector_store %arg9[%c0_17, %c0_18], %18 {strides = array<i32>} : memref<2x128xf32, #tpu.memory_space<vmem>>, vector<2x128xf32>,
    return
  }
  func.func @transform_0(%arg0: i32) -> (i32, i32) {
    %c0_i32 = arith.constant 0 : i32
    %c0_i32_0 = arith.constant 0 : i32
    %c0_i32_1 = arith.constant 0 : i32
    return %c0_i32, %c0_i32_0 : i32, i32
  }
  func.func @transform_1(%arg0: i32) -> (i32, i32) {
    %c0_i32 = arith.constant 0 : i32
    %c0_i32_0 = arith.constant 0 : i32
    %c0_i32_1 = arith.constant 0 : i32
    return %c0_i32, %c0_i32_0 : i32, i32
  }
  func.func @transform_2(%arg0: i32) -> (i32, i32) {
    %c0_i32 = arith.constant 0 : i32
    %c0_i32_0 = arith.constant 0 : i32
    %c0_i32_1 = arith.constant 0 : i32
    return %c0_i32, %c0_i32_0 : i32, i32
  }
  func.func @transform_3(%arg0: i32) -> (i32, i32) {
    %c0_i32 = arith.constant 0 : i32
    %c0_i32_0 = arith.constant 0 : i32
    %c0_i32_1 = arith.constant 0 : i32
    return %c0_i32, %c0_i32_0 : i32, i32
  }
  func.func @transform_4(%arg0: i32) -> (i32, i32) {
    %c0_i32 = arith.constant 0 : i32
    %c0_i32_0 = arith.constant 0 : i32
    %c0_i32_1 = arith.constant 0 : i32
    return %c0_i32, %c0_i32_0 : i32, i32
  }
  func.func @transform_5(%arg0: i32) -> (i32, i32) {
    %c0_i32 = arith.constant 0 : i32
    %c0_i32_0 = arith.constant 0 : i32
    %c0_i32_1 = arith.constant 0 : i32
    return %c0_i32, %c0_i32_0 : i32, i32
  }
  func.func @transform_6(%arg0: i32) -> (i32, i32) {
    %c0_i32 = arith.constant 0 : i32
    %c0_i32_0 = arith.constant 0 : i32
    %c0_i32_1 = arith.constant 0 : i32
    return %c0_i32, %c0_i32_0 : i32, i32
  }
  func.func @transform_7(%arg0: i32) -> (i32, i32) {
    %c0_i32 = arith.constant 0 : i32
    %c0_i32_0 = arith.constant 0 : i32
    %c0_i32_1 = arith.constant 0 : i32
    return %c0_i32, %c0_i32_0 : i32, i32
  }
  func.func @transform_8(%arg0: i32) -> (i32, i32) {
    %c0_i32 = arith.constant 0 : i32
    %c0_i32_0 = arith.constant 0 : i32
    %c0_i32_1 = arith.constant 0 : i32
    return %c0_i32, %c0_i32_0 : i32, i32
  }
}

</mosaic_0001>

<bundles_post_ra>
// kernel: cnn_forward.4
= control target key start
LH: loop header
LB: loop body
LE: loop exit
PB: predicated region body
PF: predicated region fallthrough
CT: control target
= control target key end

     0   :  { %v1934_v0 = vmov 0.0   ;;  %vm1935_vm0 = vmmov 0   ;;  %vm252_vm1 = vcmask 261120   ;;  %vm1340_vm2 = vcmask 519168   ;;  %s2574_s1 = inlined_call_operand.vmem [shape: bf16[288,64], index: 1, kind: input, shape index: {}]   ;;  %s2575_s0 = inlined_call_operand.vmem [shape: bf16[4,72,288], index: 0, kind: input, shape index: {}]   ;;  %s2576_s2 = inlined_call_operand.vmem [shape: f32[1,64], index: 2, kind: input, shape index: {}]   ;;  %s2577_s3 = inlined_call_operand.vmem [shape: f32[1,64], index: 3, kind: input, shape index: {}]   ;;  %s2578_s4 = inlined_call_operand.vmem [shape: bf16[72,64], index: 4, kind: output, shape index: {}]  }
   0x1   :  { %1738 = vmatprep.subr.bf16.mxu1 %v1934_v0  ;;  %v1965_v1 = vld [vmem:[%s2574_s1 + $0x40] sm:$0xff]   ;;  %1742 = vmatprep.mubr.msk.bf16.mxu1 %vm1935_vm0, %v1934_v0  ;;  %v1984_v4 = vld [vmem:[%s2574_s1 + $0x48] sm:$0xff]   ;;  %v2006_v8 = vld [vmem:[%s2574_s1 + $0x50] sm:$0xff]  }
   0x2   :  { %v1972_v2 = vld [vmem:[%s2574_s1 + $0x80] sm:$0xff]   ;;  %1526 = vmatprep.subr.bf16.mxu0 %v1965_v1  ;;  %v1991_v5 = vld [vmem:[%s2574_s1 + $0x88] sm:$0xff]   ;;  %v2012_v9 = vld [vmem:[%s2574_s1 + $0x10] sm:$0xff]  }
   0x3   :  { %v1978_v3 = vld [vmem:[%s2574_s1] sm:$0xff]   ;;  %1739 = vmatpush3.bf16.msra.mxu1 %v1972_v2  ;;  %v1997_v6 = vld [vmem:[%s2574_s1 + $0x8] sm:$0xff]   ;;  %v2019_v10 = vld [vmem:[%s2574_s1 + $0x58] sm:$0xff]  }
   0x4   :  { %1527 = vmatpush3.bf16.msra.mxu0 %v1978_v3  ;;  %1740 = vmatprep.subr.bf16.mxu1 %v1934_v0  ;;  %v1846_v7 = vld [vmem:[%s2575_s0 + $0x8] ss:$12 sps:$4 sm:$0xff]   ;;  %v2029_v11 = vld [vmem:[%s2574_s1 + $0x18] sm:$0xff]   ;;  %v2036_v12 = vld [vmem:[%s2574_s1 + $0x60] sm:$0xff]  }
   0x5   :  { %1528 = vmatprep.subr.bf16.mxu0 %v1984_v4  ;;  %v1851_v13 = vld [vmem:[%s2575_s0 + $0x20] ss:$12 sps:$4 sm:$0xff]   ;;  %v1856_v17 = vld [vmem:[%s2575_s0 + $0x38] ss:$12 sps:$4 sm:$0xff]   ;;  %v2073_v18 = vld [vmem:[%s2574_s1 + $0x70] sm:$0xff]  }
   0x6   :  { %v2046_v14 = vld [vmem:[%s2574_s1 + $0x20] sm:$0xff]   ;;  %v2053_v15 = vld [vmem:[%s2574_s1 + $0x68] sm:$0xff]   ;;  %v2083_v20 = vld [vmem:[%s2574_s1 + $0x30] sm:$0xff]  }
   0x7   :  { %1741 = vmatpush3.bf16.msra.mxu1 %v1991_v5  ;;  %v2059_v16 = vld [vmem:[%s2574_s1 + $0x28] sm:$0xff]   ;;  %v1863_v19 = vld [vmem:[%s2575_s0 + $0x4] ss:$12 sps:$4 sm:$0xff]   ;;  %v2089_v21 = vld [vmem:[%s2574_s1 + $0x78] sm:$0xff]  }
   0x8   :  { %1529 = vmatpush3.bf16.msra.mxu0 %v1997_v6  ;;  %1579 = vmatprep.subr.bf16.mxu1 %v1965_v1  ;;  %v2100_v22 = vld [vmem:[%s2574_s1 + $0x38] sm:$0xff]   ;;  %v1861_v24 = vld [vmem:[%s2575_s0] ss:$12 sps:$4 sm:$0xff]   ;;  %v1867_v26 = vld [vmem:[%s2575_s0 + $0x68] ss:$0 sps:$4 sm:$0xff]  }
   0x9   :  { %1530 = vmatprep.subr.bf16.mxu0 %v2006_v8  ;;  %300 = vmatprep.mubr.bf16.mxu0 %v1863_v19  ;;  %v1864_v23 = vld [vmem:[%s2575_s0 + $0x50] ss:$12 sps:$4 sm:$0xff]   ;;  %v1868_v27 = vld [vmem:[%s2575_s0 + $0x18] ss:$12 sps:$4 sm:$0xff]   ;;  %v1872_v29 = vld [vmem:[%s2575_s0 + $0x34] ss:$12 sps:$4 sm:$0xff]  }
   0xa   :  { %1743 = vmatmul.mubr.msk.bf16.vlgmr.msra.gmra.mrb[0].mxu1 %vm252_vm1, %v1846_v7  ;;  %v1865_v25 = vld [vmem:[%s2575_s0 + $0x1c] ss:$12 sps:$4 sm:$0xff]   ;;  %v1869_v30 = vld [vmem:[%s2575_s0 + $0x6c] ss:$12 sps:$4 sm:$0xff]   ;;  %v72_v34 = vld [vmem:[%s2575_s0 + $0x60] sm:$0xff] }
   0xb   :  { %1746 = vmatprep.mubr.msk.bf16.mxu1 %vm1935_vm0, %v1934_v0  ;;  %1580 = vmatpush3.bf16.msra.mxu1 %v1978_v3  ;;  %v1871_v28 = vld [vmem:[%s2575_s0 + $0x70] ss:$12 sps:$4 sm:$0xff]   ;;  %v1875_v32 = vld [vmem:[%s2575_s0 + $0x88] ss:$12 sps:$4 sm:$0xff]   ;;  %v1877_v33 = vld [vmem:[%s2575_s0 + $0x4c] ss:$12 sps:$4 sm:$0xff]   ;;  %v1367_v38 = vcombine.high %v72_v34, %v72_v34  ;;  %v1366_v40 = vcombine.low %v72_v34, %v72_v34 }
   0xc   :  { %1531 = vmatpush3.bf16.msra.mxu0 %v2012_v9  ;;  %1581 = vmatprep.subr.bf16.mxu1 %v1984_v4  ;;  %v1874_v31 = vld [vmem:[%s2575_s0 + $0x30] ss:$12 sps:$4 sm:$0xff]   ;;  %v1880_v36 = vld [vmem:[%s2575_s0 + $0x48] ss:$12 sps:$4 sm:$0xff]   ;;  %v1881_v37 = vld [vmem:[%s2575_s0 + $0xa0] ss:$12 sps:$4 sm:$0xff]  }
   0xd   :  { %1532 = vmatprep.subr.bf16.mxu0 %v2019_v10  ;;  %v1879_v35 = vld [vmem:[%s2575_s0 + $0x84] ss:$12 sps:$4 sm:$0xff]   ;;  %v1884_v39 = vld [vmem:[%s2575_s0 + $0x9c] ss:$12 sps:$4 sm:$0xff]   ;;  %v1888_v43 = vld [vmem:[%s2575_s0 + $0xb4] ss:$12 sps:$4 sm:$0xff]  }
   0xe   :  { %v1886_v41 = vld [vmem:[%s2575_s0 + $0xb8] ss:$12 sps:$4 sm:$0xff]   ;;  %v1410_v42 = vld [vmem:[%s2575_s0 + $0xcc] sm:$0xff]  ;;  %v1889_v44 = vld [vmem:[%s2575_s0 + $0x74] ss:$12 sps:$4 sm:$0xff]  }
   0xf   :  { %1582 = vmatpush3.bf16.msra.mxu1 %v1997_v6  ;;  %v1425_v45 = vcombine.high %v1410_v42, %v1410_v42  ;;  %v1424_v46 = vcombine.low %v1410_v42, %v1410_v42  ;;  %v1892_v47 = vld [vmem:[%s2575_s0 + $0x8c] ss:$12 sps:$4 sm:$0xff]   ;;  %v1895_v48 = vld [vmem:[%s2575_s0 + $0xdc] ss:$12 sps:$4 sm:$0xff]   ;;  %v1896_v50 = vld [vmem:[%s2575_s0 + $0xa4] ss:$12 sps:$4 sm:$0xff]  }
  0x10   :  { %1533 = vmatpush3.bf16.msra.mxu0 %v2029_v11  ;;  %1583 = vmatprep.subr.bf16.mxu1 %v2006_v8  ;;  %v1893_v49 = vld [vmem:[%s2575_s0 + $0xd8] ss:$12 sps:$4 sm:$0xff]   ;;  %v1897_v51 = vld [vmem:[%s2575_s0 + $0xf4] ss:$12 sps:$4 sm:$0xff]   ;;  %v1899_v52 = vld [vmem:[%s2575_s0 + $0xf0] ss:$12 sps:$4 sm:$0xff]  }
  0x11   :  { %1534 = vmatprep.subr.bf16.mxu0 %v2036_v12  ;;  %v1900_v53 = vld [vmem:[%s2575_s0 + $0xbc] ss:$12 sps:$4 sm:$0xff]   ;;  %v1901_v54 = vld [vmem:[%s2575_s0 + $0x10c] ss:$12 sps:$4 sm:$0xff]   ;;  %v1904_v56 = vld [vmem:[%s2575_s0 + $0xd4] ss:$0 sps:$4 sm:$0xff]  }
  0x12   :  { %1747 = vmatmul.mubr.msk.bf16.gmra.mrb[4].mxu1 %vm252_vm1, %v1851_v13  ;;  %v1903_v55 = vld [vmem:[%s2575_s0 + $0x108] ss:$12 sps:$4 sm:$0xff]   ;;  %v1905_v57 = vld [vmem:[%s2575_s0 + $0x124] ss:$12 sps:$4 sm:$0xff]   ;;  %v1448_v58 = vld [vmem:[%s2575_s0 + $0x138] sm:$0xff] }
  0x13   :  { %1750 = vmatprep.mubr.msk.bf16.mxu1 %vm1935_vm0, %v1934_v0  ;;  %1584 = vmatpush3.bf16.msra.mxu1 %v2012_v9  ;;  %v1907_v59 = vld [vmem:[%s2575_s0 + $0x120] ss:$12 sps:$4 sm:$0xff]   ;;  %v1463_v61 = vcombine.high %v1448_v58, %v1448_v58  ;;  %v1462_v62 = vcombine.low %v1448_v58, %v1448_v58  ;;  %v1911_v63 = vld [vmem:[%s2575_s0 + $0xf8] ss:$12 sps:$4 sm:$0xff]   ;;  %v1918_v7 = vld [vmem:[%s2575_s0 + $0x15c] ss:$12 sps:$4 sm:$0xff]  }
  0x14   :  { %1535 = vmatpush3.bf16.msra.mxu0 %v2046_v14  ;;  %1585 = vmatprep.subr.bf16.mxu1 %v2019_v10  ;;  %v1908_v60 = vld [vmem:[%s2575_s0 + $0xe0] ss:$12 sps:$4 sm:$0xff]  }
  0x15   :  { %1536 = vmatprep.subr.bf16.mxu0 %v2053_v15  ;;  %v1927_v13 = vld [vmem:[%s2575_s0 + $0x14c] ss:$12 sps:$4 sm:$0xff]   ;;  %v1933_v19 = vld [vmem:[%s2575_s0 + $0x194] ss:$12 sps:$4 sm:$0xff]  }
  0x17   :  { %1586 = vmatpush3.bf16.msra.mxu1 %v2029_v11 }
  0x18   :  { %1537 = vmatpush3.bf16.msra.mxu0 %v2059_v16  ;;  %1587 = vmatprep.subr.bf16.mxu1 %v2036_v12 }
  0x19   :  { %1538 = vmatprep.subr.bf16.mxu0 %v2073_v18 }
  0x1a   :  { %1751 = vmatmul.mubr.msk.bf16.gmra.mrb[8].mxu1 %vm252_vm1, %v1856_v17  ;;  %v1931_v17 = vld [vmem:[%s2575_s0 + $0x1ac] ss:$0 sps:$4 sm:$0xff]  }
  0x1b   :  { %1754 = vmatprep.mubr.msk.bf16.mxu1 %vm1935_vm0, %v1934_v0  ;;  %1588 = vmatpush3.bf16.msra.mxu1 %v2046_v14 }
  0x1c   :  { %1539 = vmatpush3.bf16.msra.mxu0 %v2083_v20  ;;  %1589 = vmatprep.subr.bf16.mxu1 %v2053_v15 }
  0x1d   :  { %1540 = vmatprep.subr.bf16.mxu0 %v2089_v21 }
  0x1f   :  { %1590 = vmatpush3.bf16.msra.mxu1 %v2059_v16 }
  0x20   :  { %1541 = vmatpush3.bf16.msra.mxu0 %v2100_v22  ;;  %1591 = vmatprep.subr.bf16.mxu1 %v2073_v18 }
  0x21   :  { %1762 = vmatprep.subr.bf16.mxu0 %v1934_v0 }
  0x22   :  { %1755 = vmatmul.mubr.msk.bf16.gmra.mrb[12].mxu1 %vm252_vm1, %v1864_v23 }
  0x23   :  { %301 = vmatmul.mubr.bf16.vlgmr.msra.gmra.mrb[0].mxu0 %v1861_v24  ;;  %1758 = vmatprep.mubr.msk.bf16.mxu1 %vm1935_vm0, %v1934_v0 }
  0x24   :  { %1763 = vmatpush3.bf16.msra.mxu0 %v1972_v2  ;;  %308 = vmatprep.mubr.bf16.mxu0 %v1865_v25 }
  0x25   :  { %1592 = vmatpush3.bf16.msra.mxu1 %v2083_v20  ;;  %1764 = vmatprep.subr.bf16.mxu0 %v1934_v0 }
  0x26   :  { %1593 = vmatprep.subr.bf16.mxu1 %v2089_v21 }
  0x28   :  { %1765 = vmatpush3.bf16.msra.mxu0 %v1991_v5 }
  0x29   :  { %1594 = vmatpush3.bf16.msra.mxu1 %v2100_v22  ;;  %1786 = vmatprep.subr.bf16.mxu0 %v1934_v0 }
  0x2a   :  { %1759 = vmatmul.mubr.msk.bf16.gmra.mrb[16].mxu1 %vm252_vm1, %v1867_v26  ;;  %1632 = vmatprep.subr.bf16.mxu1 %v1965_v1 }
  0x2b   :  { %309 = vmatmul.mubr.bf16.gmra.mrb[4].mxu0 %v1868_v27  ;;  %587 = vmatprep.mubr.bf16.mxu1 %v1871_v28 }
  0x2c   :  { %316 = vmatprep.mubr.bf16.mxu0 %v1872_v29 }
  0x32   :  { %588 = vmatmul.mubr.bf16.vlgmr.msra.gmra.mrb[20].mxu1 %v1869_v30 }
  0x33   :  { %317 = vmatmul.mubr.bf16.gmra.mrb[8].mxu0 %v1874_v31  ;;  %595 = vmatprep.mubr.bf16.mxu1 %v1875_v32 }
  0x34   :  { %324 = vmatprep.mubr.bf16.mxu0 %v1877_v33  ;;  %1633 = vmatpush3.bf16.msra.mxu1 %v1978_v3 }
  0x35   :  { %1634 = vmatprep.subr.bf16.mxu1 %v1984_v4 }
  0x38   :  { %1635 = vmatpush3.bf16.msra.mxu1 %v1997_v6 }
  0x39   :  { %1636 = vmatprep.subr.bf16.mxu1 %v2006_v8 }
  0x3a   :  { %596 = vmatmul.mubr.bf16.gmra.mrb[24].mxu1 %v1879_v35 }
  0x3b   :  { %325 = vmatmul.mubr.bf16.gmra.mrb[12].mxu0 %v1880_v36  ;;  %603 = vmatprep.mubr.bf16.mxu1 %v1881_v37 }
  0x3c   :  { %332 = vmatprep.mubr.bf16.mxu0 %v1367_v38  ;;  %1637 = vmatpush3.bf16.msra.mxu1 %v2012_v9 }
  0x3d   :  { %1638 = vmatprep.subr.bf16.mxu1 %v2019_v10 }
  0x40   :  { %1639 = vmatpush3.bf16.msra.mxu1 %v2029_v11 }
  0x41   :  { %1640 = vmatprep.subr.bf16.mxu1 %v2036_v12 }
  0x42   :  { %604 = vmatmul.mubr.bf16.gmra.mrb[28].mxu1 %v1884_v39 }
  0x43   :  { %333 = vmatmul.mubr.bf16.gmra.mrb[16].mxu0 %v1366_v40  ;;  %611 = vmatprep.mubr.bf16.mxu1 %v1886_v41 }
  0x44   :  { %1766 = vmatprep.mubr.msk.bf16.mxu0 %vm1935_vm0, %v1934_v0  ;;  %1641 = vmatpush3.bf16.msra.mxu1 %v2046_v14 }
  0x45   :  { %1642 = vmatprep.subr.bf16.mxu1 %v2053_v15 }
  0x48   :  { %1643 = vmatpush3.bf16.msra.mxu1 %v2059_v16 }
  0x49   :  { %1644 = vmatprep.subr.bf16.mxu1 %v2073_v18 }
  0x4a   :  { %612 = vmatmul.mubr.bf16.gmra.mrb[32].mxu1 %v1888_v43 }
  0x4b   :  { %1767 = vmatmul.mubr.msk.bf16.vlgmr.msra.gmra.mrb[20].mxu0 %vm252_vm1, %v1889_v44  ;;  %619 = vmatprep.mubr.bf16.mxu1 %v1425_v45 }
  0x4c   :  { %1787 = vmatpush3.bf16.msra.mxu0 %v1972_v2  ;;  %1770 = vmatprep.mubr.msk.bf16.mxu0 %vm1935_vm0, %v1934_v0 }
  0x4d   :  { %1645 = vmatpush3.bf16.msra.mxu1 %v2083_v20  ;;  %1788 = vmatprep.subr.bf16.mxu0 %v1934_v0 }
  0x4e   :  { %1646 = vmatprep.subr.bf16.mxu1 %v2089_v21 }
  0x50   :  { %1789 = vmatpush3.bf16.msra.mxu0 %v1991_v5 }
  0x51   :  { %1647 = vmatpush3.bf16.msra.mxu1 %v2100_v22  ;;  %1810 = vmatprep.subr.bf16.mxu0 %v1934_v0 }
  0x52   :  { %620 = vmatmul.mubr.bf16.gmra.mrb[36].mxu1 %v1424_v46  ;;  %1685 = vmatprep.subr.bf16.mxu1 %v1965_v1  ;;  %v1914_v1 = vld [vmem:[%s2575_s0 + $0x148] ss:$12 sps:$4 sm:$0xff]  }
  0x53   :  { %1771 = vmatmul.mubr.msk.bf16.gmra.mrb[24].mxu0 %vm252_vm1, %v1892_v47  ;;  %871 = vmatprep.mubr.bf16.mxu1 %v1895_v48 }
  0x54   :  { %1774 = vmatprep.mubr.msk.bf16.mxu0 %vm1935_vm0, %v1934_v0 }
  0x5a   :  { %872 = vmatmul.mubr.bf16.vlgmr.msra.gmra.mrb[40].mxu1 %v1893_v49 }
  0x5b   :  { %1775 = vmatmul.mubr.msk.bf16.gmra.mrb[28].mxu0 %vm252_vm1, %v1896_v50  ;;  %879 = vmatprep.mubr.bf16.mxu1 %v1897_v51 }
  0x5c   :  { %1778 = vmatprep.mubr.msk.bf16.mxu0 %vm1935_vm0, %v1934_v0  ;;  %1686 = vmatpush3.bf16.msra.mxu1 %v1978_v3  ;;  %v1912_v3 = vld [vmem:[%s2575_s0 + $0x144] ss:$12 sps:$4 sm:$0xff]  }
  0x5d   :  { %1687 = vmatprep.subr.bf16.mxu1 %v1984_v4  ;;  %v1915_v4 = vld [vmem:[%s2575_s0 + $0x110] ss:$12 sps:$4 sm:$0xff]  }
  0x60   :  { %1688 = vmatpush3.bf16.msra.mxu1 %v1997_v6  ;;  %v1916_v6 = vld [vmem:[%s2575_s0 + $0x160] ss:$12 sps:$4 sm:$0xff]  }
  0x61   :  { %1689 = vmatprep.subr.bf16.mxu1 %v2006_v8  ;;  %v1919_v8 = vld [vmem:[%s2575_s0 + $0x128] ss:$12 sps:$4 sm:$0xff]  }
  0x62   :  { %880 = vmatmul.mubr.bf16.gmra.mrb[44].mxu1 %v1899_v52 }
  0x63   :  { %1779 = vmatmul.mubr.msk.bf16.gmra.mrb[32].mxu0 %vm252_vm1, %v1900_v53  ;;  %887 = vmatprep.mubr.bf16.mxu1 %v1901_v54 }
  0x64   :  { %1782 = vmatprep.mubr.msk.bf16.mxu0 %vm1935_vm0, %v1934_v0  ;;  %1690 = vmatpush3.bf16.msra.mxu1 %v2012_v9  ;;  %v1920_v9 = vld [vmem:[%s2575_s0 + $0x178] ss:$12 sps:$4 sm:$0xff]  }
  0x65   :  { %1691 = vmatprep.subr.bf16.mxu1 %v2019_v10  ;;  %v1923_v10 = vld [vmem:[%s2575_s0 + $0x140] ss:$0 sps:$4 sm:$0xff]  }
  0x68   :  { %1692 = vmatpush3.bf16.msra.mxu1 %v2029_v11  ;;  %v1924_v11 = vld [vmem:[%s2575_s0 + $0x190] ss:$12 sps:$4 sm:$0xff]  }
  0x69   :  { %1693 = vmatprep.subr.bf16.mxu1 %v2036_v12  ;;  %v1926_v12 = vld [vmem:[%s2575_s0 + $0x18c] ss:$12 sps:$4 sm:$0xff]  }
  0x6a   :  { %888 = vmatmul.mubr.bf16.gmra.mrb[48].mxu1 %v1903_v55 }
  0x6b   :  { %1783 = vmatmul.mubr.msk.bf16.gmra.mrb[36].mxu0 %vm252_vm1, %v1904_v56  ;;  %895 = vmatprep.mubr.bf16.mxu1 %v1905_v57 }
  0x6c   :  { %1790 = vmatprep.mubr.msk.bf16.mxu0 %vm1935_vm0, %v1934_v0  ;;  %1694 = vmatpush3.bf16.msra.mxu1 %v2046_v14 }
  0x6d   :  { %1695 = vmatprep.subr.bf16.mxu1 %v2053_v15 }
  0x70   :  { %1696 = vmatpush3.bf16.msra.mxu1 %v2059_v16  ;;  %v1930_v16 = vld [vmem:[%s2575_s0 + $0x164] ss:$12 sps:$4 sm:$0xff]  }
  0x71   :  { %1697 = vmatprep.subr.bf16.mxu1 %v2073_v18  ;;  %v1932_v18 = vld [vmem:[%s2575_s0 + $0x17c] ss:$12 sps:$4 sm:$0xff]  }
  0x72   :  { %896 = vmatmul.mubr.bf16.gmra.mrb[52].mxu1 %v1907_v59 }
  0x73   :  { %1791 = vmatmul.mubr.msk.bf16.vlgmr.msra.gmra.mrb[40].mxu0 %vm252_vm1, %v1908_v60  ;;  %903 = vmatprep.mubr.bf16.mxu1 %v1463_v61 }
  0x74   :  { %1811 = vmatpush3.bf16.msra.mxu0 %v1972_v2  ;;  %1794 = vmatprep.mubr.msk.bf16.mxu0 %vm1935_vm0, %v1934_v0 }
  0x75   :  { %1698 = vmatpush3.bf16.msra.mxu1 %v2083_v20  ;;  %1812 = vmatprep.subr.bf16.mxu0 %v1934_v0 }
  0x76   :  { %1699 = vmatprep.subr.bf16.mxu1 %v2089_v21 }
  0x78   :  { %1813 = vmatpush3.bf16.msra.mxu0 %v1991_v5 }
  0x79   :  { %1700 = vmatpush3.bf16.msra.mxu1 %v2100_v22 }
  0x7a   :  { %904 = vmatmul.mubr.bf16.gmra.mrb[56].mxu1 %v1462_v62  ;;  %1834 = vmatprep.subr.bf16.mxu1 %v1934_v0 }
  0x7b   :  { %1795 = vmatmul.mubr.msk.bf16.gmra.mrb[44].mxu0 %vm252_vm1, %v1911_v63  ;;  %1146 = vmatprep.mubr.bf16.mxu1 %v1914_v1 }
  0x7c   :  { %1798 = vmatprep.mubr.msk.bf16.mxu0 %vm1935_vm0, %v1934_v0 }
  0x82   :  { %1147 = vmatmul.mubr.bf16.vlgmr.msra.gmra.mrb[60].mxu1 %v1912_v3 }
  0x83   :  { %1799 = vmatmul.mubr.msk.bf16.gmra.mrb[48].mxu0 %vm252_vm1, %v1915_v4  ;;  %1154 = vmatprep.mubr.bf16.mxu1 %v1916_v6 }
  0x84   :  { %1802 = vmatprep.mubr.msk.bf16.mxu0 %vm1935_vm0, %v1934_v0  ;;  %1836 = vmatpush3.bf16.msra.mxu1 %v1972_v2  ;;  %v1922_v2 = vld [vmem:[%s2575_s0 + $0x174] ss:$12 sps:$4 sm:$0xff]  }
  0x85   :  { %1835 = vmatprep.subr.bf16.mxu1 %v1934_v0 }
  0x88   :  { %1837 = vmatpush3.bf16.msra.mxu1 %v1991_v5  ;;  %v1486_v5 = vld [vmem:[%s2575_s0 + $0x1a4] sm:$0xff] }
  0x89   :  { %v1501_v14 = vcombine.high %v1486_v5, %v1486_v5  ;;  %v1500_v15 = vcombine.low %v1486_v5, %v1486_v5 }
  0x8a   :  { %1155 = vmatmul.mubr.bf16.gmra.mrb[64].mxu1 %v1918_v7 }
  0x8b   :  { %1803 = vmatmul.mubr.msk.bf16.gmra.mrb[52].mxu0 %vm252_vm1, %v1919_v8  ;;  %1162 = vmatprep.mubr.bf16.mxu1 %v1920_v9 }
  0x8c   :  { %1806 = vmatprep.mubr.msk.bf16.mxu0 %vm1935_vm0, %v1934_v0 }
  0x92   :  { %1163 = vmatmul.mubr.bf16.gmra.mrb[68].mxu1 %v1922_v2 }
  0x93   :  { %1807 = vmatmul.mubr.msk.bf16.gmra.mrb[56].mxu0 %vm252_vm1, %v1923_v10  ;;  %1170 = vmatprep.mubr.bf16.mxu1 %v1924_v11 }
  0x94   :  { %1814 = vmatprep.mubr.msk.bf16.mxu0 %vm1935_vm0, %v1934_v0 }
  0x9a   :  { %1171 = vmatmul.mubr.bf16.gmra.mrb[72].mxu1 %v1926_v12 }
  0x9b   :  { %1815 = vmatmul.mubr.msk.bf16.vlgmr.msra.gmra.mrb[60].mxu0 %vm252_vm1, %v1927_v13  ;;  %1178 = vmatprep.mubr.bf16.mxu1 %v1501_v14 }
  0x9c   :  { %1818 = vmatprep.mubr.msk.bf16.mxu0 %vm1935_vm0, %v1934_v0 }
  0xa2   :  { %1179 = vmatmul.mubr.bf16.gmra.mrb[76].mxu1 %v1500_v15 }
  0xa3   :  { %1819 = vmatmul.mubr.msk.bf16.gmra.mrb[64].mxu0 %vm252_vm1, %v1930_v16  ;;  %1830 = vmatprep.mubr.msk.bf16.mxu1 %vm1935_vm0, %v1934_v0 }
  0xa4   :  { %1822 = vmatprep.mubr.msk.bf16.mxu0 %vm1935_vm0, %v1934_v0 }
  0xaa   :  { %1831 = vmatmul.mubr.msk.bf16.vlgmr.msra.gmra.mrb[80].mxu1 %vm252_vm1, %v1931_v17 }
  0xab   :  { %1823 = vmatmul.mubr.msk.bf16.gmra.mrb[68].mxu0 %vm252_vm1, %v1932_v18 }
  0xac   :  { %1826 = vmatprep.mubr.msk.bf16.mxu0 %vm1935_vm0, %v1934_v0 }
  0xb3   :  { %1827 = vmatmul.mubr.msk.bf16.gmra.mrb[72].mxu0 %vm252_vm1, %v1933_v19 }
  0xdd   :  { %v374_v20 = vpop.f32.mrb[0].mxu1 }
  0xde   :  { %v1744_v21 = vpop.f32.mrb[1].mxu1 }
  0xdf   :  { %v377_v22 = vpop.f32.mrb[2].mxu1 }
  0xe0   :  { %v1745_v23 = vpop.f32.mrb[3].mxu1 }
  0xe5   :  { %v382_v24 = vpop.f32.mrb[4].mxu1 }
  0xe6   :  { %v1748_v25 = vpop.f32.mrb[5].mxu1 }
  0xe7   :  { %v385_v26 = vpop.f32.mrb[6].mxu1 }
  0xe8   :  { %v1749_v27 = vpop.f32.mrb[7].mxu1 }
  0xed   :  { %v390_v28 = vpop.f32.mrb[8].mxu1 }
  0xee   :  { %v1752_v29 = vpop.f32.mrb[9].mxu1 }
  0xef   :  { %v393_v30 = vpop.f32.mrb[10].mxu1 }
  0xf0   :  { %v1753_v31 = vpop.f32.mrb[11].mxu1 }
  0xf1   :  { %v2382_v31 = vld [vmem:[%s2576_s2] ss:$0 sm:$0xff] }
  0xf5   :  { %v398_v32 = vpop.f32.mrb[12].mxu1 }
  0xf6   :  { %v1542_v0 = vpop.f32.mrb[0].mxu0  ;;  %v1756_v33 = vpop.f32.mrb[13].mxu1 }
  0xf7   :  { %v1543_v34 = vpop.f32.mrb[1].mxu0  ;;  %v401_v35 = vpop.f32.mrb[14].mxu1 }
  0xf8   :  { %v1544_v36 = vadd.f32 %v1543_v34, %v1542_v0  ;;  %v1545_v37 = vpop.f32.mrb[2].mxu0  ;;  %v1757_v38 = vpop.f32.mrb[15].mxu1  ;;  %v2390_v34 = vld [vmem:[%s2577_s3] ss:$0 sm:$0xff] }
  0xf9   :  { %v1546_v39 = vpop.f32.mrb[3].mxu0 }
  0xfa   :  { %v375_v40 = vadd.f32 %v1544_v36, %v374_v20  ;;  %v1547_v41 = vadd.f32 %v1546_v39, %v1545_v37 }
  0xfc   :  { %v378_v42 = vadd.f32 %v1547_v41, %v377_v22  ;;  %v418_v0 = vmul.f32 %v2382_v31, %v375_v40 }
  0xfd   :  { %v406_v43 = vpop.f32.mrb[16].mxu1 }
  0xfe   :  { %v1548_v44 = vpop.f32.mrb[4].mxu0  ;;  %v1760_v45 = vpop.f32.mrb[17].mxu1 }
  0xff   :  { %v1549_v46 = vpop.f32.mrb[5].mxu0  ;;  %v409_v47 = vpop.f32.mrb[18].mxu1 }
 0x100   :  { %v1550_v48 = vadd.f32 %v1549_v46, %v1548_v44  ;;  %v1551_v49 = vpop.f32.mrb[6].mxu0  ;;  %v1761_v50 = vpop.f32.mrb[19].mxu1  ;;  %v433_v46 = vadd.f32 %v2390_v34, %v418_v0 }
 0x101   :  { %v1552_v51 = vpop.f32.mrb[7].mxu0 }
 0x102   :  { %v2363_v52 = vadd.f32 %v1550_v48, %v382_v24  ;;  %v1553_v53 = vadd.f32 %v1552_v51, %v1551_v49 }
 0x104   :  { %v2365_v54 = vadd.f32 %v1553_v53, %v385_v26  ;;  %v442_v53 = vmax.f32 %v433_v46, 0.0 }
 0x105   :  { %v1595_v55 = vpop.f32.mrb[20].mxu1 }
 0x106   :  { %v1554_v56 = vpop.f32.mrb[8].mxu0  ;;  %v1596_v57 = vpop.f32.mrb[21].mxu1 }
 0x107   :  { %v1555_v58 = vpop.f32.mrb[9].mxu0  ;;  %v1597_v59 = vadd.f32 %v1596_v57, %v1595_v55  ;;  %v1598_v60 = vpop.f32.mrb[22].mxu1  ;;  %v420_v55 = vmul.f32 %v2382_v31, %v2363_v52 }
 0x108   :  { %v1556_v61 = vadd.f32 %v1555_v58, %v1554_v56  ;;  %v1557_v62 = vpop.f32.mrb[10].mxu0  ;;  %v1599_v63 = vpop.f32.mrb[23].mxu1 }
 0x109   :  { %v1558_v1 = vpop.f32.mrb[11].mxu0  ;;  %v1600_v3 = vadd.f32 %v1599_v63, %v1598_v60  ;;  %v421_v60 = vmul.f32 %v2382_v31, %v2365_v54 }
 0x10a   :  { %v2367_v4 = vadd.f32 %v1556_v61, %v390_v28  ;;  %v1559_v6 = vadd.f32 %v1558_v1, %v1557_v62 }
 0x10c   :  { %v2369_v7 = vadd.f32 %v1559_v6, %v393_v30 }
 0x10d   :  { %v1601_v8 = vpop.f32.mrb[24].mxu1 }
 0x10e   :  { %v1560_v9 = vpop.f32.mrb[12].mxu0  ;;  %v1602_v2 = vpop.f32.mrb[25].mxu1 }
 0x10f   :  { %v1561_v10 = vpop.f32.mrb[13].mxu0  ;;  %v1603_v11 = vadd.f32 %v1602_v2, %v1601_v8  ;;  %v1604_v5 = vpop.f32.mrb[26].mxu1 }
 0x110   :  { %v1562_v12 = vadd.f32 %v1561_v10, %v1560_v9  ;;  %v1563_v13 = vpop.f32.mrb[14].mxu0  ;;  %v1605_v14 = vpop.f32.mrb[27].mxu1  ;;  %v435_v10 = vadd.f32 %v2390_v34, %v420_v55 }
 0x111   :  { %v1564_v15 = vpop.f32.mrb[15].mxu0  ;;  %v1606_v16 = vadd.f32 %v1605_v14, %v1604_v5  ;;  %v436_v14 = vadd.f32 %v2390_v34, %v421_v60 }
 0x112   :  { %v2371_v17 = vadd.f32 %v1562_v12, %v398_v32  ;;  %v1565_v18 = vadd.f32 %v1564_v15, %v1563_v13 }
 0x114   :  { %v2373_v19 = vadd.f32 %v1565_v18, %v401_v35  ;;  %v419_v35 = vmul.f32 %v2382_v31, %v378_v42  ;;  %v422_v18 = vmul.f32 %v2382_v31, %v2367_v4 }
 0x115   :  { %v1607_v20 = vpop.f32.mrb[28].mxu1 }
 0x116   :  { %v1566_v21 = vpop.f32.mrb[16].mxu0  ;;  %v1608_v22 = vpop.f32.mrb[29].mxu1  ;;  %v434_v50 = vadd.f32 %v2390_v34, %v419_v35 }
 0x117   :  { %v1567_v23 = vpop.f32.mrb[17].mxu0  ;;  %v2375_v24 = vadd.f32 %v1608_v22, %v1607_v20  ;;  %v1610_v25 = vpop.f32.mrb[30].mxu1  ;;  %v444_v20 = vmax.f32 %v435_v10, 0.0 }
 0x118   :  { %v1568_v26 = vadd.f32 %v1567_v23, %v1566_v21  ;;  %v1569_v27 = vpop.f32.mrb[18].mxu0  ;;  %v1611_v28 = vpop.f32.mrb[31].mxu1 }
 0x119   :  { %v1570_v29 = vpop.f32.mrb[19].mxu0  ;;  %v2377_v30 = vadd.f32 %v1611_v28, %v1610_v25  ;;  %v445_v25 = vmax.f32 %v436_v14, 0.0 }
 0x11a   :  { %v2384_v32 = vadd.f32 %v1568_v26, %v406_v43  ;;  %v423_v26 = vmul.f32 %v2382_v31, %v2369_v7 }
 0x11c   :  { %v438_v46 = vadd.f32 %v2390_v34, %v423_v26 }
 0x11d   :  { %v1613_v33 = vpop.f32.mrb[32].mxu1 }
 0x11e   :  { %v661_v36 = vpop.f32.mrb[20].mxu0  ;;  %v1614_v37 = vpop.f32.mrb[33].mxu1 }
 0x11f   :  { %v662_v38 = vadd.f32 %v1597_v59, %v661_v36  ;;  %v1768_v39 = vpop.f32.mrb[21].mxu0  ;;  %v2393_v41 = vadd.f32 %v1614_v37, %v1613_v33  ;;  %v1616_v44 = vpop.f32.mrb[34].mxu1  ;;  %v443_v59 = vmax.f32 %v434_v50, 0.0  ;;  %v437_v36 = vadd.f32 %v2390_v34, %v422_v18 }
 0x120   :  { %v664_v45 = vpop.f32.mrb[22].mxu0  ;;  %v1617_v43 = vpop.f32.mrb[35].mxu1 }
 0x121   :  { %v699_v40 = vmul.f32 %v2382_v31, %v662_v38  ;;  %v665_v47 = vadd.f32 %v1600_v3, %v664_v45  ;;  %v1769_v48 = vpop.f32.mrb[23].mxu0  ;;  %v2397_v49 = vadd.f32 %v1617_v43, %v1616_v44 }
 0x122   :  { %v446_v48 = vmax.f32 %v437_v36, 0.0 }
 0x123   :  { %v708_v42 = vadd.f32 %v2390_v34, %v699_v40  ;;  %v700_v51 = vmul.f32 %v2382_v31, %v665_v47  ;;  %v424_v47 = vmul.f32 %v2382_v31, %v2371_v17 }
 0x125   :  { %v717_v56 = vmax.f32 %v708_v42, 0.0  ;;  %v709_v57 = vadd.f32 %v2390_v34, %v700_v51  ;;  %v1619_v58 = vpop.f32.mrb[36].mxu1  ;;  %v439_v17 = vadd.f32 %v2390_v34, %v424_v47 }
 0x126   :  { %v669_v61 = vpop.f32.mrb[24].mxu0  ;;  %v1620_v62 = vpop.f32.mrb[37].mxu1 }
 0x127   :  { %v2407_v63 = vmax.f32 %v442_v53, %v717_v56  ;;  %v718_v1 = vmax.f32 %v709_v57, 0.0  ;;  %v670_v3 = vadd.f32 %v1603_v11, %v669_v61  ;;  %v1772_v6 = vpop.f32.mrb[25].mxu0  ;;  %v2409_v8 = vadd.f32 %v1620_v62, %v1619_v58  ;;  %v1622_v9 = vpop.f32.mrb[38].mxu1 }
 0x128   :  { %v672_v2 = vpop.f32.mrb[26].mxu0  ;;  %v1623_v52 = vpop.f32.mrb[39].mxu1  ;;  %v447_v53 = vmax.f32 %v438_v46, 0.0 }
 0x129   :  { %v2412_v5 = vmax.f32 %v443_v59, %v718_v1  ;;  %v701_v12 = vmul.f32 %v2382_v31, %v670_v3  ;;  %v673_v13 = vadd.f32 %v1606_v16, %v672_v2  ;;  %v1773_v54 = vpop.f32.mrb[27].mxu0 }
 0x12a   :  { %v426_v54 = vmul.f32 %v2382_v31, %v2384_v32 }
 0x12b   :  { %v710_v15 = vadd.f32 %v2390_v34, %v701_v12  ;;  %v702_v11 = vmul.f32 %v2382_v31, %v673_v13  ;;  %v448_v13 = vmax.f32 %v439_v17, 0.0 }
 0x12d   :  { %v719_v21 = vmax.f32 %v710_v15, 0.0  ;;  %v711_v22 = vadd.f32 %v2390_v34, %v702_v11  ;;  %v1648_v23 = vpop.f32.mrb[40].mxu1 }
 0x12e   :  { %v677_v16 = vpop.f32.mrb[28].mxu0  ;;  %v1649_v27 = vpop.f32.mrb[41].mxu1 }
 0x12f   :  { %v2423_v28 = vmax.f32 %v444_v20, %v719_v21  ;;  %v720_v29 = vmax.f32 %v711_v22, 0.0  ;;  %v678_v0 = vadd.f32 %v2375_v24, %v677_v16  ;;  %v1776_v33 = vpop.f32.mrb[29].mxu0  ;;  %v2426_v35 = vadd.f32 %v1649_v27, %v1648_v23  ;;  %v1651_v4 = vpop.f32.mrb[42].mxu1 }
 0x130   :  { %v680_v37 = vpop.f32.mrb[30].mxu0  ;;  %v1652_v38 = vpop.f32.mrb[43].mxu1 }
 0x131   :  { %v2429_v39 = vmax.f32 %v445_v25, %v720_v29  ;;  %v703_v44 = vmul.f32 %v2382_v31, %v678_v0  ;;  %v681_v7 = vadd.f32 %v2377_v30, %v680_v37  ;;  %v1777_v45 = vpop.f32.mrb[31].mxu0  ;;  %v2433_v43 = vadd.f32 %v1652_v38, %v1651_v4 }
 0x132   :  { %v425_v30 = vmul.f32 %v2382_v31, %v2373_v19  ;;  %v441_v0 = vadd.f32 %v2390_v34, %v426_v54 }
 0x133   :  { %v712_v24 = vadd.f32 %v2390_v34, %v703_v44  ;;  %v704_v40 = vmul.f32 %v2382_v31, %v681_v7 }
 0x134   :  { %v440_v10 = vadd.f32 %v2390_v34, %v425_v30  ;;  %v450_v38 = vmax.f32 %v441_v0, 0.0 }
 0x135   :  { %v721_v50 = vmax.f32 %v712_v24, 0.0  ;;  %v713_v42 = vadd.f32 %v2390_v34, %v704_v40  ;;  %v1654_v51 = vpop.f32.mrb[44].mxu1 }
 0x136   :  { %v685_v55 = vpop.f32.mrb[32].mxu0  ;;  %v1655_v56 = vpop.f32.mrb[45].mxu1  ;;  %v449_v18 = vmax.f32 %v440_v10, 0.0 }
 0x137   :  { %v2443_v57 = vmax.f32 %v446_v48, %v721_v50  ;;  %v722_v58 = vmax.f32 %v713_v42, 0.0  ;;  %v686_v59 = vadd.f32 %v2393_v41, %v685_v55  ;;  %v1780_v60 = vpop.f32.mrb[33].mxu0  ;;  %v1656_v61 = vadd.f32 %v1655_v56, %v1654_v51  ;;  %v1657_v62 = vpop.f32.mrb[46].mxu1 }
 0x138   :  { %v688_v1 = vpop.f32.mrb[34].mxu0  ;;  %v1658_v3 = vpop.f32.mrb[47].mxu1 }
 0x139   :  { %v2447_v6 = vmax.f32 %v447_v53, %v722_v58  ;;  %v705_v9 = vmul.f32 %v2382_v31, %v686_v59  ;;  %v689_v19 = vadd.f32 %v2397_v49, %v688_v1  ;;  %v1781_v2 = vpop.f32.mrb[35].mxu0  ;;  %v1659_v52 = vadd.f32 %v1658_v3, %v1657_v62 }
 0x13b   :  { %v714_v12 = vadd.f32 %v2390_v34, %v705_v9  ;;  %v706_v41 = vmul.f32 %v2382_v31, %v689_v19 }
 0x13d   :  { %v723_v14 = vmax.f32 %v714_v12, 0.0  ;;  %v715_v15 = vadd.f32 %v2390_v34, %v706_v41  ;;  %v1660_v11 = vpop.f32.mrb[48].mxu1 }
 0x13e   :  { %v693_v20 = vpop.f32.mrb[36].mxu0  ;;  %v1661_v21 = vpop.f32.mrb[49].mxu1 }
 0x13f   :  { %v2457_v49 = vmax.f32 %v448_v13, %v723_v14  ;;  %v724_v22 = vmax.f32 %v715_v15, 0.0  ;;  %v694_v23 = vadd.f32 %v2409_v8, %v693_v20  ;;  %v1784_v25 = vpop.f32.mrb[37].mxu0  ;;  %v1662_v26 = vadd.f32 %v1661_v21, %v1660_v11  ;;  %v1663_v16 = vpop.f32.mrb[50].mxu1 }
 0x140   :  { %v696_v27 = vpop.f32.mrb[38].mxu0  ;;  %v1664_v29 = vpop.f32.mrb[51].mxu1 }
 0x141   :  { %v2461_v32 = vmax.f32 %v449_v18, %v724_v22  ;;  %v707_v33 = vmul.f32 %v2382_v31, %v694_v23  ;;  %v1785_v4 = vpop.f32.mrb[39].mxu0  ;;  %v1665_v36 = vadd.f32 %v1664_v29, %v1663_v16 }
 0x143   :  { %v716_v37 = vadd.f32 %v2390_v34, %v707_v33 }
 0x145   :  { %v725_v44 = vmax.f32 %v716_v37, 0.0  ;;  %v1666_v7 = vpop.f32.mrb[52].mxu1 }
 0x146   :  { %v945_v45 = vpop.f32.mrb[40].mxu0  ;;  %v1667_v8 = vpop.f32.mrb[53].mxu1 }
 0x147   :  { %v2465_v46 = vmax.f32 %v450_v38, %v725_v44  ;;  %v946_v24 = vadd.f32 %v2426_v35, %v945_v45  ;;  %v1792_v40 = vpop.f32.mrb[41].mxu0  ;;  %v1668_v47 = vadd.f32 %v1667_v8, %v1666_v7  ;;  %v1669_v48 = vpop.f32.mrb[54].mxu1 }
 0x148   :  { %v948_v50 = vpop.f32.mrb[42].mxu0  ;;  %v1670_v42 = vpop.f32.mrb[55].mxu1 }
 0x149   :  { %v949_v51 = vadd.f32 %v2433_v43, %v948_v50  ;;  %v1793_v53 = vpop.f32.mrb[43].mxu0  ;;  %v1671_v30 = vadd.f32 %v1670_v42, %v1669_v48  ;;  %v983_v48 = vmul.f32 %v2382_v31, %v946_v24 }
 0x14b   :  { %v984_v42 = vmul.f32 %v2382_v31, %v949_v51 }
 0x14d   :  { %v1672_v55 = vpop.f32.mrb[56].mxu1  ;;  %v993_v24 = vadd.f32 %v2390_v34, %v984_v42 }
 0x14e   :  { %v953_v56 = vpop.f32.mrb[44].mxu0  ;;  %v1673_v58 = vpop.f32.mrb[57].mxu1 }
 0x14f   :  { %v954_v59 = vadd.f32 %v1656_v61, %v953_v56  ;;  %v1796_v60 = vpop.f32.mrb[45].mxu0  ;;  %v1674_v62 = vadd.f32 %v1673_v58, %v1672_v55  ;;  %v1675_v17 = vpop.f32.mrb[58].mxu1 }
 0x150   :  { %v956_v1 = vpop.f32.mrb[46].mxu0  ;;  %v1676_v3 = vpop.f32.mrb[59].mxu1 }
 0x151   :  { %v957_v9 = vadd.f32 %v1659_v52, %v956_v1  ;;  %v1797_v35 = vpop.f32.mrb[47].mxu0  ;;  %v992_v1 = vadd.f32 %v2390_v34, %v983_v48 }
 0x155   :  { %v1701_v19 = vpop.f32.mrb[60].mxu1 }
 0x156   :  { %v961_v2 = vpop.f32.mrb[48].mxu0  ;;  %v1702_v10 = vpop.f32.mrb[61].mxu1 }
 0x157   :  { %v2469_v12 = vadd.f32 %v1662_v26, %v961_v2  ;;  %v1800_v41 = vpop.f32.mrb[49].mxu0  ;;  %v1703_v43 = vadd.f32 %v1702_v10, %v1701_v19  ;;  %v1704_v13 = vpop.f32.mrb[62].mxu1 }
 0x158   :  { %v964_v54 = vpop.f32.mrb[50].mxu0  ;;  %v1705_v14 = vpop.f32.mrb[63].mxu1  ;;  %v985_v41 = vmul.f32 %v2382_v31, %v954_v59 }
 0x159   :  { %v2471_v15 = vadd.f32 %v1665_v36, %v964_v54  ;;  %v1801_v61 = vpop.f32.mrb[51].mxu0  ;;  %v1706_v11 = vadd.f32 %v1705_v14, %v1704_v13  ;;  %v987_v42 = vmul.f32 %v2382_v31, %v2469_v12 }
 0x15a   :  { %v1002_v61 = vmax.f32 %v993_v24, 0.0 }
 0x15b   :  { %v996_v24 = vadd.f32 %v2390_v34, %v987_v42 }
 0x15d   :  { %v1707_v18 = vpop.f32.mrb[64].mxu1 }
 0x15e   :  { %v969_v20 = vpop.f32.mrb[52].mxu0  ;;  %v1708_v21 = vpop.f32.mrb[65].mxu1 }
 0x15f   :  { %v2473_v22 = vadd.f32 %v1668_v47, %v969_v20  ;;  %v1804_v52 = vpop.f32.mrb[53].mxu0  ;;  %v1709_v23 = vadd.f32 %v1708_v21, %v1707_v18  ;;  %v1710_v25 = vpop.f32.mrb[66].mxu1  ;;  %v986_v18 = vmul.f32 %v2382_v31, %v957_v9 }
 0x160   :  { %v972_v16 = vpop.f32.mrb[54].mxu0  ;;  %v1711_v26 = vpop.f32.mrb[67].mxu1 }
 0x161   :  { %v2475_v27 = vadd.f32 %v1671_v30, %v972_v16  ;;  %v1805_v29 = vpop.f32.mrb[55].mxu0  ;;  %v1712_v0 = vadd.f32 %v1711_v26, %v1710_v25  ;;  %v995_v9 = vadd.f32 %v2390_v34, %v986_v18 }
 0x163   :  { %v1004_v12 = vmax.f32 %v995_v9, 0.0 }
 0x165   :  { %v1713_v33 = vpop.f32.mrb[68].mxu1 }
 0x166   :  { %v977_v4 = vpop.f32.mrb[56].mxu0  ;;  %v1714_v36 = vpop.f32.mrb[69].mxu1 }
 0x167   :  { %v978_v37 = vadd.f32 %v1674_v62, %v977_v4  ;;  %v1808_v38 = vpop.f32.mrb[57].mxu0  ;;  %v2477_v44 = vadd.f32 %v1714_v36, %v1713_v33  ;;  %v1716_v7 = vpop.f32.mrb[70].mxu1  ;;  %v994_v33 = vadd.f32 %v2390_v34, %v985_v41 }
 0x168   :  { %v980_v45 = vpop.f32.mrb[58].mxu0  ;;  %v1717_v8 = vpop.f32.mrb[71].mxu1 }
 0x169   :  { %v1809_v40 = vpop.f32.mrb[59].mxu0  ;;  %v2479_v47 = vadd.f32 %v1717_v8, %v1716_v7 }
 0x16d   :  { %v1719_v50 = vpop.f32.mrb[72].mxu1 }
 0x16e   :  { %v1220_v53 = vpop.f32.mrb[60].mxu0  ;;  %v1720_v30 = vpop.f32.mrb[73].mxu1 }
 0x16f   :  { %v1221_v55 = vadd.f32 %v1703_v43, %v1220_v53  ;;  %v1816_v56 = vpop.f32.mrb[61].mxu0  ;;  %v2483_v58 = vadd.f32 %v1720_v30, %v1719_v50  ;;  %v1722_v60 = vpop.f32.mrb[74].mxu1  ;;  %v1001_v43 = vmax.f32 %v992_v1, 0.0  ;;  %v1003_v53 = vmax.f32 %v994_v33, 0.0 }
 0x170   :  { %v1223_v62 = vpop.f32.mrb[62].mxu0  ;;  %v1723_v17 = vpop.f32.mrb[75].mxu1  ;;  %v988_v56 = vmul.f32 %v2382_v31, %v2471_v15 }
 0x171   :  { %v1258_v3 = vmul.f32 %v2382_v31, %v1221_v55  ;;  %v1224_v35 = vadd.f32 %v1706_v11, %v1223_v62  ;;  %v1817_v19 = vpop.f32.mrb[63].mxu0  ;;  %v2487_v2 = vadd.f32 %v1723_v17, %v1722_v60 }
 0x173   :  { %v1267_v51 = vadd.f32 %v2390_v34, %v1258_v3  ;;  %v1259_v10 = vmul.f32 %v2382_v31, %v1224_v35 }
 0x175   :  { %v1276_v13 = vmax.f32 %v1267_v51, 0.0  ;;  %v1268_v54 = vadd.f32 %v2390_v34, %v1259_v10  ;;  %v1725_v14 = vpop.f32.mrb[76].mxu1 }
 0x176   :  { %v1228_v11 = vpop.f32.mrb[64].mxu0  ;;  %v1726_v20 = vpop.f32.mrb[77].mxu1 }
 0x177   :  { %v1285_v21 = vmax.f32 %v1001_v43, %v1276_v13  ;;  %v1277_v52 = vmax.f32 %v1268_v54, 0.0  ;;  %v1229_v25 = vadd.f32 %v1709_v23, %v1228_v11  ;;  %v1820_v16 = vpop.f32.mrb[65].mxu0  ;;  %v1727_v26 = vadd.f32 %v1726_v20, %v1725_v14  ;;  %v1728_v29 = vpop.f32.mrb[78].mxu1 }
 0x178   :  { %v1231_v4 = vpop.f32.mrb[66].mxu0  ;;  %v1729_v59 = vpop.f32.mrb[79].mxu1 }
 0x179   :  { %v1294_v36 = vmax.f32 %v2407_v63, %v1285_v21  ;;  %v1286_v38 = vmax.f32 %v1002_v61, %v1277_v52  ;;  %v1260_v7 = vmul.f32 %v2382_v31, %v1229_v25  ;;  %v1232_v45 = vadd.f32 %v1712_v0, %v1231_v4  ;;  %v1821_v8 = vpop.f32.mrb[67].mxu0 }
 0x17a   :  { %v991_v63 = vmul.f32 %v2382_v31, %v978_v37 }
 0x17b   :  { %v1517_v40 = vpack.c.bf16 %v1294_v36, %v1294_v36  ;;  %v1295_v23 = vmax.f32 %v2412_v5, %v1286_v38  ;;  %v1269_v48 = vadd.f32 %v2390_v34, %v1260_v7  ;;  %v1261_v50 = vmul.f32 %v2382_v31, %v1232_v45 }
 0x17c   :  { %v1000_v51 = vadd.f32 %v2390_v34, %v991_v63 }
 0x17d   :  { %1341 = vst.msk [vmem:[%s2578_s4] sm:$0xf] %vm1340_vm2, %v1517_v40  ;;  %v1518_v0 = vpack.c.bf16 %v1295_v23, %v1295_v23  ;;  %v1278_v30 = vmax.f32 %v1269_v48, 0.0  ;;  %v1270_v55 = vadd.f32 %v2390_v34, %v1261_v50  ;;  %v1252_v5 = vpop.f32.mrb[80].mxu1 }
 0x17e   :  { %v1253_v60 = vadd.f32 %v1727_v26, %v1252_v5  ;;  %v1236_v62 = vpop.f32.mrb[68].mxu0  ;;  %v1832_v17 = vpop.f32.mrb[81].mxu1  ;;  %v1009_v25 = vmax.f32 %v1000_v51, 0.0  ;;  %v1005_v26 = vmax.f32 %v996_v24, 0.0 }
 0x17f   :  { %1342 = vst.msk [vmem:[%s2578_s4 + $0x4] sm:$0xf] %vm1340_vm2, %v1518_v0  ;;  %v1287_v37 = vmax.f32 %v1003_v53, %v1278_v30  ;;  %v1279_v1 = vmax.f32 %v1270_v55, 0.0  ;;  %v1237_v3 = vadd.f32 %v2477_v44, %v1236_v62  ;;  %v1824_v35 = vpop.f32.mrb[69].mxu0  ;;  %v1255_v19 = vpop.f32.mrb[82].mxu1  ;;  %v997_v44 = vadd.f32 %v2390_v34, %v988_v56 }
 0x180   :  { %v1266_v15 = vmul.f32 %v2382_v31, %v1253_v60  ;;  %v1239_v10 = vpop.f32.mrb[70].mxu0  ;;  %v1833_v41 = vpop.f32.mrb[83].mxu1 }
 0x181   :  { %v1296_v43 = vmax.f32 %v2423_v28, %v1287_v37  ;;  %v1288_v13 = vmax.f32 %v1004_v12, %v1279_v1  ;;  %v1262_v54 = vmul.f32 %v2382_v31, %v1237_v3  ;;  %v1240_v14 = vadd.f32 %v2479_v47, %v1239_v10  ;;  %v1825_v61 = vpop.f32.mrb[71].mxu0 }
 0x182   :  { %v1275_v18 = vadd.f32 %v2390_v34, %v1266_v15  ;;  %v989_v28 = vmul.f32 %v2382_v31, %v2473_v22  ;;  %v1006_v36 = vmax.f32 %v997_v44, 0.0 }
 0x183   :  { %v1519_v11 = vpack.c.bf16 %v1296_v43, %v1296_v43  ;;  %v1297_v20 = vmax.f32 %v2429_v39, %v1288_v13  ;;  %v1271_v21 = vadd.f32 %v2390_v34, %v1262_v54  ;;  %v1263_v52 = vmul.f32 %v2382_v31, %v1240_v14 }
 0x184   :  { %v1284_v16 = vmax.f32 %v1275_v18, 0.0  ;;  %v990_v39 = vmul.f32 %v2382_v31, %v2475_v27  ;;  %v998_v8 = vadd.f32 %v2390_v34, %v989_v28 }
 0x185   :  { %1343 = vst.msk [vmem:[%s2578_s4 + $0x8] sm:$0xf] %vm1340_vm2, %v1519_v11  ;;  %v1520_v47 = vpack.c.bf16 %v1297_v20, %v1297_v20  ;;  %v1280_v29 = vmax.f32 %v1271_v21, 0.0  ;;  %v1272_v33 = vadd.f32 %v2390_v34, %v1263_v52 }
 0x186   :  { %v1293_v4 = vmax.f32 %v1009_v25, %v1284_v16  ;;  %v1244_v59 = vpop.f32.mrb[72].mxu0  ;;  %v999_v63 = vadd.f32 %v2390_v34, %v990_v39 }
 0x187   :  { %1344 = vst.msk [vmem:[%s2578_s4 + $0xc] sm:$0xf] %vm1340_vm2, %v1520_v47  ;;  %v1289_v22 = vmax.f32 %v1005_v26, %v1280_v29  ;;  %v1281_v38 = vmax.f32 %v1272_v33, 0.0  ;;  %v1245_v7 = vadd.f32 %v2483_v58, %v1244_v59  ;;  %v1828_v45 = vpop.f32.mrb[73].mxu0 }
 0x188   :  { %v1302_v9 = vmax.f32 %v2465_v46, %v1293_v4  ;;  %v1247_v40 = vpop.f32.mrb[74].mxu0 }
 0x189   :  { %v1298_v27 = vmax.f32 %v2443_v57, %v1289_v22  ;;  %v1290_v23 = vmax.f32 %v1006_v36, %v1281_v38  ;;  %v1264_v48 = vmul.f32 %v2382_v31, %v1245_v7  ;;  %v1248_v50 = vadd.f32 %v2487_v2, %v1247_v40  ;;  %v1829_v42 = vpop.f32.mrb[75].mxu0 }
 0x18a   :  { %v1525_v53 = vpack.c.bf16 %v1302_v9, %v1302_v9  ;;  %v1007_v57 = vmax.f32 %v998_v8, 0.0 }
 0x18b   :  { %v1521_v0 = vpack.c.bf16 %v1298_v27, %v1298_v27  ;;  %v1299_v58 = vmax.f32 %v2447_v6, %v1290_v23  ;;  %v1273_v30 = vadd.f32 %v2390_v34, %v1264_v48  ;;  %v1265_v55 = vmul.f32 %v2382_v31, %v1248_v50 }
 0x18c   :  { %1349 = vst.msk [vmem:[%s2578_s4 + $0x20] sm:$0xf] %vm1340_vm2, %v1525_v53  ;;  %v1008_v6 = vmax.f32 %v999_v63, 0.0 }
 0x18d   :  { %1345 = vst.msk [vmem:[%s2578_s4 + $0x10] sm:$0xf] %vm1340_vm2, %v1521_v0  ;;  %v1522_v46 = vpack.c.bf16 %v1299_v58, %v1299_v58  ;;  %v1282_v2 = vmax.f32 %v1273_v30, 0.0  ;;  %v1274_v5 = vadd.f32 %v2390_v34, %v1265_v55 }
 0x18f   :  { %1346 = vst.msk [vmem:[%s2578_s4 + $0x14] sm:$0xf] %vm1340_vm2, %v1522_v46  ;;  %v1291_v31 = vmax.f32 %v1007_v57, %v1282_v2  ;;  %v1283_v56 = vmax.f32 %v1274_v5, 0.0 }
 0x191   :  { %v1300_v60 = vmax.f32 %v2457_v49, %v1291_v31  ;;  %v1292_v62 = vmax.f32 %v1008_v6, %v1283_v56 }
 0x193   :  { %v1523_v17 = vpack.c.bf16 %v1300_v60, %v1300_v60  ;;  %v1301_v12 = vmax.f32 %v2461_v32, %v1292_v62 }
 0x195   :  { %1347 = vst.msk [vmem:[%s2578_s4 + $0x18] sm:$0xf] %vm1340_vm2, %v1523_v17  ;;  %v1524_v34 = vpack.c.bf16 %v1301_v12, %v1301_v12 }
 0x197   :  { %1348 = vst.msk [vmem:[%s2578_s4 + $0x1c] sm:$0xf] %vm1340_vm2, %v1524_v34 }

// kernel: cnn_forward.3
= control target key start
LH: loop header
LB: loop body
LE: loop exit
PB: predicated region body
PF: predicated region fallthrough
CT: control target
= control target key end

     0   :  { %vm283_vm0 = vcmask 1044480   ;;  %vm284_vm1 = vcmask 1045504   ;;  %v4042_v0 = vmov 0.0   ;;  %v4043_v2 = vmov 65535   ;;  %s5449_s1 = inlined_call_operand.vmem [shape: bf16[27,32], index: 1, kind: input, shape index: {}]   ;;  %s5450_s0 = inlined_call_operand.vmem [shape: bf16[4,392,27], index: 0, kind: input, shape index: {}]   ;;  %s5451_s2 = inlined_call_operand.vmem [shape: f32[1,32], index: 2, kind: input, shape index: {}]   ;;  %s5452_s3 = inlined_call_operand.vmem [shape: f32[1,32], index: 3, kind: input, shape index: {}]   ;;  %s5453_s4 = inlined_call_operand.vmem [shape: bf16[392,32], index: 4, kind: output, shape index: {}]  }
   0x1   :  { %3517 = vmatprep.subr.bf16.mxu0 %v4042_v0  ;;  %3621 = vmatprep.subr.bf16.mxu1 %v4042_v0  ;;  %v3936_v1 = vld [vmem:[%s5449_s1] sm:$0xff]   ;;  %v285_v3 = vsel %vm283_vm0, 4294967295, %v4043_v2  ;;  %v3937_v4 = vld [vmem:[%s5449_s1 + $0x8] sm:$0x3f]   ;;  %vm4044_vm2 = vmmov 0   ;;  %vm207_vm3 = vcmask 220160  }
   0x2   :  { %3518 = vmatpush3.bf16.msra.mxu0 %v3936_v1  ;;  %3622 = vmatpush3.bf16.msra.mxu1 %v3936_v1  ;;  %v286_v5 = vsel %vm284_vm1, %v285_v3, 0  ;;  %v3938_v7 = vld [vmem:[%s5450_s0] sm:$0xff]   ;;  %v3940_v9 = vld [vmem:[%s5450_s0 + $0x8] sm:$0xff]   ;;  %v3942_v11 = vld [vmem:[%s5450_s0 + $0x10] sm:$0xff]   ;;  %vm2906_vm4 = vcmask 257024  }
   0x3   :  { %3519 = vmatprep.subr.bf16.mxu0 %v4042_v0  ;;  %3623 = vmatprep.subr.bf16.mxu1 %v4042_v0  ;;  %v288_v6 = vand.u32 %v3937_v4, %v286_v5  ;;  %v3939_v8 = vld [vmem:[%s5450_s0 + $0xc4] sm:$0xff]   ;;  %v3941_v10 = vld [vmem:[%s5450_s0 + $0xcc] sm:$0xff]   ;;  %v3943_v12 = vld [vmem:[%s5450_s0 + $0xd4] sm:$0xff]  }
   0x4   :  { %3521 = vmatprep.mubr.msk.bf16.mxu0 %vm4044_vm2, %v4042_v0  ;;  %3625 = vmatprep.mubr.msk.bf16.mxu1 %vm4044_vm2, %v4042_v0  ;;  %v3944_v13 = vld [vmem:[%s5450_s0 + $0x18] sm:$0xff]   ;;  %v3946_v15 = vld [vmem:[%s5450_s0 + $0x20] sm:$0xff]   ;;  %v3948_v17 = vld [vmem:[%s5450_s0 + $0x28] sm:$0xff]  }
   0x5   :  { %v3945_v14 = vld [vmem:[%s5450_s0 + $0xdc] sm:$0xff]   ;;  %v3947_v16 = vld [vmem:[%s5450_s0 + $0xe4] sm:$0xff]   ;;  %v3949_v18 = vld [vmem:[%s5450_s0 + $0xec] sm:$0xff]  }
   0x6   :  { %3520 = vmatpush3.bf16.msra.mxu0 %v288_v6  ;;  %3624 = vmatpush3.bf16.msra.mxu1 %v288_v6  ;;  %v3950_v19 = vld [vmem:[%s5450_s0 + $0x30] sm:$0xff]   ;;  %v3952_v21 = vld [vmem:[%s5450_s0 + $0x38] sm:$0xff]   ;;  %v3954_v23 = vld [vmem:[%s5450_s0 + $0x40] sm:$0xff]  }
   0x7   :  { %3725 = vmatprep.subr.bf16.mxu0 %v4042_v0  ;;  %3829 = vmatprep.subr.bf16.mxu1 %v4042_v0  ;;  %v3951_v20 = vld [vmem:[%s5450_s0 + $0xf4] sm:$0xff]   ;;  %v3953_v22 = vld [vmem:[%s5450_s0 + $0xfc] sm:$0xff]   ;;  %v3955_v24 = vld [vmem:[%s5450_s0 + $0x104] sm:$0xff]  }
   0x8   :  { %v3956_v25 = vld [vmem:[%s5450_s0 + $0x48] sm:$0xff]   ;;  %v3958_v27 = vld [vmem:[%s5450_s0 + $0x50] sm:$0xff]   ;;  %v3960_v29 = vld [vmem:[%s5450_s0 + $0x58] sm:$0xff]  }
   0x9   :  { %3522 = vmatmul.mubr.msk.bf16.vlgmr.msra.gmra.mrb[0].mxu0 %vm207_vm3, %v3938_v7  ;;  %3626 = vmatmul.mubr.msk.bf16.vlgmr.msra.gmra.mrb[0].mxu1 %vm207_vm3, %v3939_v8  ;;  %v3957_v26 = vld [vmem:[%s5450_s0 + $0x10c] sm:$0xff]   ;;  %v3959_v28 = vld [vmem:[%s5450_s0 + $0x114] sm:$0xff]   ;;  %v3961_v30 = vld [vmem:[%s5450_s0 + $0x11c] sm:$0xff]  }
   0xa   :  { %3726 = vmatpush3.bf16.msra.mxu0 %v3936_v1  ;;  %3830 = vmatpush3.bf16.msra.mxu1 %v3936_v1  ;;  %v3962_v31 = vld [vmem:[%s5450_s0 + $0x60] sm:$0xff]   ;;  %v3964_v33 = vld [vmem:[%s5450_s0 + $0x68] sm:$0xff]   ;;  %v3966_v35 = vld [vmem:[%s5450_s0 + $0x70] sm:$0xff]  }
   0xb   :  { %3525 = vmatprep.mubr.msk.bf16.mxu0 %vm4044_vm2, %v4042_v0  ;;  %3629 = vmatprep.mubr.msk.bf16.mxu1 %vm4044_vm2, %v4042_v0  ;;  %v3963_v32 = vld [vmem:[%s5450_s0 + $0x124] sm:$0xff]   ;;  %v3965_v34 = vld [vmem:[%s5450_s0 + $0x12c] sm:$0xff]   ;;  %v3967_v36 = vld [vmem:[%s5450_s0 + $0x134] sm:$0xff]  }
   0xc   :  { %3727 = vmatprep.subr.bf16.mxu0 %v4042_v0  ;;  %3831 = vmatprep.subr.bf16.mxu1 %v4042_v0  ;;  %v3968_v37 = vld [vmem:[%s5450_s0 + $0x78] sm:$0xff]   ;;  %v3970_v39 = vld [vmem:[%s5450_s0 + $0x80] sm:$0xff]   ;;  %v3972_v41 = vld [vmem:[%s5450_s0 + $0x88] sm:$0xff]  }
   0xd   :  { %v3969_v38 = vld [vmem:[%s5450_s0 + $0x13c] sm:$0xff]   ;;  %v3971_v40 = vld [vmem:[%s5450_s0 + $0x144] sm:$0xff]   ;;  %v3973_v42 = vld [vmem:[%s5450_s0 + $0x14c] sm:$0xff]  }
   0xe   :  { %3728 = vmatpush3.bf16.msra.mxu0 %v288_v6  ;;  %3832 = vmatpush3.bf16.msra.mxu1 %v288_v6  ;;  %v3974_v43 = vld [vmem:[%s5450_s0 + $0x90] sm:$0xff]   ;;  %v3976_v45 = vld [vmem:[%s5450_s0 + $0x98] sm:$0xff]   ;;  %v3978_v47 = vld [vmem:[%s5450_s0 + $0xa0] sm:$0xff]  }
   0xf   :  { %v3975_v44 = vld [vmem:[%s5450_s0 + $0x154] sm:$0xff]   ;;  %v3977_v46 = vld [vmem:[%s5450_s0 + $0x15c] sm:$0xff]   ;;  %v3979_v48 = vld [vmem:[%s5450_s0 + $0x164] sm:$0xff]  }
  0x10   :  { %v3980_v49 = vld [vmem:[%s5450_s0 + $0xa8] sm:$0xff]   ;;  %v3982_v51 = vld [vmem:[%s5450_s0 + $0xb0] sm:$0xff]   ;;  %v3984_v53 = vld [vmem:[%s5450_s0 + $0xb8] sm:$0xff]  }
  0x11   :  { %3526 = vmatmul.mubr.msk.bf16.gmra.mrb[4].mxu0 %vm207_vm3, %v3940_v9  ;;  %3630 = vmatmul.mubr.msk.bf16.gmra.mrb[4].mxu1 %vm207_vm3, %v3941_v10  ;;  %v3981_v50 = vld [vmem:[%s5450_s0 + $0x16c] sm:$0xff]   ;;  %v3983_v52 = vld [vmem:[%s5450_s0 + $0x174] sm:$0xff]   ;;  %v3985_v54 = vld [vmem:[%s5450_s0 + $0x17c] sm:$0xff]  }
  0x12   :  { %3529 = vmatprep.mubr.msk.bf16.mxu0 %vm4044_vm2, %v4042_v0  ;;  %3633 = vmatprep.mubr.msk.bf16.mxu1 %vm4044_vm2, %v4042_v0  ;;  %v3986_v55 = vld [vmem:[%s5450_s0 + $0xc0] ss:$0 sps:$4 sm:$0xff]   ;;  %v3987_v56 = vld [vmem:[%s5450_s0 + $0x184] ss:$0 sps:$4 sm:$0xff]   ;;  %v3988_v57 = vld [vmem:[%s5450_s0 + $0x188] sm:$0xff]  }
  0x13   :  { %v3989_v58 = vld [vmem:[%s5450_s0 + $0x24c] sm:$0xff]   ;;  %v3991_v60 = vld [vmem:[%s5450_s0 + $0x254] sm:$0xff]   ;;  %v4411_v61 = vld [vmem:[%s5451_s2] ss:$0 sm:$0xff] }
  0x14   :  { %v3990_v59 = vld [vmem:[%s5450_s0 + $0x190] sm:$0xff]   ;;  %v4420_v62 = vld [vmem:[%s5452_s3] ss:$0 sm:$0xff]  ;;  %v3992_v6 = vld [vmem:[%s5450_s0 + $0x198] sm:$0xff]  }
  0x15   :  { %v3993_v7 = vld [vmem:[%s5450_s0 + $0x25c] sm:$0xff]  }
  0x19   :  { %3530 = vmatmul.mubr.msk.bf16.gmra.mrb[8].mxu0 %vm207_vm3, %v3942_v11  ;;  %3634 = vmatmul.mubr.msk.bf16.gmra.mrb[8].mxu1 %vm207_vm3, %v3943_v12 }
  0x1a   :  { %3533 = vmatprep.mubr.msk.bf16.mxu0 %vm4044_vm2, %v4042_v0  ;;  %3637 = vmatprep.mubr.msk.bf16.mxu1 %vm4044_vm2, %v4042_v0 }
  0x21   :  { %3534 = vmatmul.mubr.msk.bf16.gmra.mrb[12].mxu0 %vm207_vm3, %v3944_v13  ;;  %3638 = vmatmul.mubr.msk.bf16.gmra.mrb[12].mxu1 %vm207_vm3, %v3945_v14 }
  0x22   :  { %3537 = vmatprep.mubr.msk.bf16.mxu0 %vm4044_vm2, %v4042_v0  ;;  %3641 = vmatprep.mubr.msk.bf16.mxu1 %vm4044_vm2, %v4042_v0 }
  0x29   :  { %3538 = vmatmul.mubr.msk.bf16.gmra.mrb[16].mxu0 %vm207_vm3, %v3946_v15  ;;  %3642 = vmatmul.mubr.msk.bf16.gmra.mrb[16].mxu1 %vm207_vm3, %v3947_v16 }
  0x2a   :  { %3541 = vmatprep.mubr.msk.bf16.mxu0 %vm4044_vm2, %v4042_v0  ;;  %3645 = vmatprep.mubr.msk.bf16.mxu1 %vm4044_vm2, %v4042_v0 }
  0x31   :  { %3542 = vmatmul.mubr.msk.bf16.gmra.mrb[20].mxu0 %vm207_vm3, %v3948_v17  ;;  %3646 = vmatmul.mubr.msk.bf16.gmra.mrb[20].mxu1 %vm207_vm3, %v3949_v18 }
  0x32   :  { %3545 = vmatprep.mubr.msk.bf16.mxu0 %vm4044_vm2, %v4042_v0  ;;  %3649 = vmatprep.mubr.msk.bf16.mxu1 %vm4044_vm2, %v4042_v0 }
  0x39   :  { %3546 = vmatmul.mubr.msk.bf16.gmra.mrb[24].mxu0 %vm207_vm3, %v3950_v19  ;;  %3650 = vmatmul.mubr.msk.bf16.gmra.mrb[24].mxu1 %vm207_vm3, %v3951_v20 }
  0x3a   :  { %3549 = vmatprep.mubr.msk.bf16.mxu0 %vm4044_vm2, %v4042_v0  ;;  %3653 = vmatprep.mubr.msk.bf16.mxu1 %vm4044_vm2, %v4042_v0 }
  0x41   :  { %3550 = vmatmul.mubr.msk.bf16.gmra.mrb[28].mxu0 %vm207_vm3, %v3952_v21  ;;  %3654 = vmatmul.mubr.msk.bf16.gmra.mrb[28].mxu1 %vm207_vm3, %v3953_v22 }
  0x42   :  { %3553 = vmatprep.mubr.msk.bf16.mxu0 %vm4044_vm2, %v4042_v0  ;;  %3657 = vmatprep.mubr.msk.bf16.mxu1 %vm4044_vm2, %v4042_v0 }
  0x49   :  { %3554 = vmatmul.mubr.msk.bf16.gmra.mrb[32].mxu0 %vm207_vm3, %v3954_v23  ;;  %3658 = vmatmul.mubr.msk.bf16.gmra.mrb[32].mxu1 %vm207_vm3, %v3955_v24 }
  0x4a   :  { %3557 = vmatprep.mubr.msk.bf16.mxu0 %vm4044_vm2, %v4042_v0  ;;  %3661 = vmatprep.mubr.msk.bf16.mxu1 %vm4044_vm2, %v4042_v0 }
  0x51   :  { %3558 = vmatmul.mubr.msk.bf16.gmra.mrb[36].mxu0 %vm207_vm3, %v3956_v25  ;;  %3662 = vmatmul.mubr.msk.bf16.gmra.mrb[36].mxu1 %vm207_vm3, %v3957_v26 }
  0x52   :  { %3561 = vmatprep.mubr.msk.bf16.mxu0 %vm4044_vm2, %v4042_v0  ;;  %3665 = vmatprep.mubr.msk.bf16.mxu1 %vm4044_vm2, %v4042_v0 }
  0x59   :  { %3562 = vmatmul.mubr.msk.bf16.gmra.mrb[40].mxu0 %vm207_vm3, %v3958_v27  ;;  %3666 = vmatmul.mubr.msk.bf16.gmra.mrb[40].mxu1 %vm207_vm3, %v3959_v28 }
  0x5a   :  { %3565 = vmatprep.mubr.msk.bf16.mxu0 %vm4044_vm2, %v4042_v0  ;;  %3669 = vmatprep.mubr.msk.bf16.mxu1 %vm4044_vm2, %v4042_v0 }
  0x61   :  { %3566 = vmatmul.mubr.msk.bf16.gmra.mrb[44].mxu0 %vm207_vm3, %v3960_v29  ;;  %3670 = vmatmul.mubr.msk.bf16.gmra.mrb[44].mxu1 %vm207_vm3, %v3961_v30  ;;  %v3994_v30 = vld [vmem:[%s5450_s0 + $0x1a0] sm:$0xff]  }
  0x62   :  { %3569 = vmatprep.mubr.msk.bf16.mxu0 %vm4044_vm2, %v4042_v0  ;;  %3673 = vmatprep.mubr.msk.bf16.mxu1 %vm4044_vm2, %v4042_v0 }
  0x69   :  { %3570 = vmatmul.mubr.msk.bf16.gmra.mrb[48].mxu0 %vm207_vm3, %v3962_v31  ;;  %3674 = vmatmul.mubr.msk.bf16.gmra.mrb[48].mxu1 %vm207_vm3, %v3963_v32  ;;  %v3995_v31 = vld [vmem:[%s5450_s0 + $0x264] sm:$0xff]  }
  0x6a   :  { %3573 = vmatprep.mubr.msk.bf16.mxu0 %vm4044_vm2, %v4042_v0  ;;  %3677 = vmatprep.mubr.msk.bf16.mxu1 %vm4044_vm2, %v4042_v0 }
  0x71   :  { %3574 = vmatmul.mubr.msk.bf16.gmra.mrb[52].mxu0 %vm207_vm3, %v3964_v33  ;;  %3678 = vmatmul.mubr.msk.bf16.gmra.mrb[52].mxu1 %vm207_vm3, %v3965_v34 }
  0x72   :  { %3577 = vmatprep.mubr.msk.bf16.mxu0 %vm4044_vm2, %v4042_v0  ;;  %3681 = vmatprep.mubr.msk.bf16.mxu1 %vm4044_vm2, %v4042_v0 }
  0x79   :  { %3578 = vmatmul.mubr.msk.bf16.gmra.mrb[56].mxu0 %vm207_vm3, %v3966_v35  ;;  %3682 = vmatmul.mubr.msk.bf16.gmra.mrb[56].mxu1 %vm207_vm3, %v3967_v36 }
  0x7a   :  { %3581 = vmatprep.mubr.msk.bf16.mxu0 %vm4044_vm2, %v4042_v0  ;;  %3685 = vmatprep.mubr.msk.bf16.mxu1 %vm4044_vm2, %v4042_v0 }
  0x81   :  { %3582 = vmatmul.mubr.msk.bf16.gmra.mrb[60].mxu0 %vm207_vm3, %v3968_v37  ;;  %3686 = vmatmul.mubr.msk.bf16.gmra.mrb[60].mxu1 %vm207_vm3, %v3969_v38 }
  0x82   :  { %3585 = vmatprep.mubr.msk.bf16.mxu0 %vm4044_vm2, %v4042_v0  ;;  %3689 = vmatprep.mubr.msk.bf16.mxu1 %vm4044_vm2, %v4042_v0 }
  0x89   :  { %3586 = vmatmul.mubr.msk.bf16.gmra.mrb[64].mxu0 %vm207_vm3, %v3970_v39  ;;  %3690 = vmatmul.mubr.msk.bf16.gmra.mrb[64].mxu1 %vm207_vm3, %v3971_v40 }
  0x8a   :  { %3589 = vmatprep.mubr.msk.bf16.mxu0 %vm4044_vm2, %v4042_v0  ;;  %3693 = vmatprep.mubr.msk.bf16.mxu1 %vm4044_vm2, %v4042_v0 }
  0x91   :  { %3590 = vmatmul.mubr.msk.bf16.gmra.mrb[68].mxu0 %vm207_vm3, %v3972_v41  ;;  %3694 = vmatmul.mubr.msk.bf16.gmra.mrb[68].mxu1 %vm207_vm3, %v3973_v42 }
  0x92   :  { %3593 = vmatprep.mubr.msk.bf16.mxu0 %vm4044_vm2, %v4042_v0  ;;  %3697 = vmatprep.mubr.msk.bf16.mxu1 %vm4044_vm2, %v4042_v0 }
  0x99   :  { %3594 = vmatmul.mubr.msk.bf16.gmra.mrb[72].mxu0 %vm207_vm3, %v3974_v43  ;;  %3698 = vmatmul.mubr.msk.bf16.gmra.mrb[72].mxu1 %vm207_vm3, %v3975_v44 }
  0x9a   :  { %3597 = vmatprep.mubr.msk.bf16.mxu0 %vm4044_vm2, %v4042_v0  ;;  %3701 = vmatprep.mubr.msk.bf16.mxu1 %vm4044_vm2, %v4042_v0 }
  0xa1   :  { %3598 = vmatmul.mubr.msk.bf16.gmra.mrb[76].mxu0 %vm207_vm3, %v3976_v45  ;;  %3702 = vmatmul.mubr.msk.bf16.gmra.mrb[76].mxu1 %vm207_vm3, %v3977_v46 }
  0xa2   :  { %3601 = vmatprep.mubr.msk.bf16.mxu0 %vm4044_vm2, %v4042_v0  ;;  %3705 = vmatprep.mubr.msk.bf16.mxu1 %vm4044_vm2, %v4042_v0 }
  0xa9   :  { %3602 = vmatmul.mubr.msk.bf16.gmra.mrb[80].mxu0 %vm207_vm3, %v3978_v47  ;;  %3706 = vmatmul.mubr.msk.bf16.gmra.mrb[80].mxu1 %vm207_vm3, %v3979_v48 }
  0xaa   :  { %3605 = vmatprep.mubr.msk.bf16.mxu0 %vm4044_vm2, %v4042_v0  ;;  %3709 = vmatprep.mubr.msk.bf16.mxu1 %vm4044_vm2, %v4042_v0 }
  0xb1   :  { %3606 = vmatmul.mubr.msk.bf16.gmra.mrb[84].mxu0 %vm207_vm3, %v3980_v49  ;;  %3710 = vmatmul.mubr.msk.bf16.gmra.mrb[84].mxu1 %vm207_vm3, %v3981_v50 }
  0xb2   :  { %3609 = vmatprep.mubr.msk.bf16.mxu0 %vm4044_vm2, %v4042_v0  ;;  %3713 = vmatprep.mubr.msk.bf16.mxu1 %vm4044_vm2, %v4042_v0 }
  0xb9   :  { %3610 = vmatmul.mubr.msk.bf16.gmra.mrb[88].mxu0 %vm207_vm3, %v3982_v51  ;;  %3714 = vmatmul.mubr.msk.bf16.gmra.mrb[88].mxu1 %vm207_vm3, %v3983_v52 }
  0xba   :  { %3613 = vmatprep.mubr.msk.bf16.mxu0 %vm4044_vm2, %v4042_v0  ;;  %3717 = vmatprep.mubr.msk.bf16.mxu1 %vm4044_vm2, %v4042_v0 }
  0xc1   :  { %3614 = vmatmul.mubr.msk.bf16.gmra.mrb[92].mxu0 %vm207_vm3, %v3984_v53  ;;  %3718 = vmatmul.mubr.msk.bf16.gmra.mrb[92].mxu1 %vm207_vm3, %v3985_v54  ;;  %v3996_v54 = vld [vmem:[%s5450_s0 + $0x1a8] sm:$0xff]  }
  0xc2   :  { %3617 = vmatprep.mubr.msk.bf16.mxu0 %vm4044_vm2, %v4042_v0  ;;  %3721 = vmatprep.mubr.msk.bf16.mxu1 %vm4044_vm2, %v4042_v0 }
  0xc9   :  { %3618 = vmatmul.mubr.msk.bf16.gmra.mrb[96].mxu0 %vm207_vm3, %v3986_v55  ;;  %3722 = vmatmul.mubr.msk.bf16.gmra.mrb[96].mxu1 %vm207_vm3, %v3987_v56  ;;  %v3997_v55 = vld [vmem:[%s5450_s0 + $0x26c] sm:$0xff]  }
  0xca   :  { %3729 = vmatprep.mubr.msk.bf16.mxu0 %vm4044_vm2, %v4042_v0  ;;  %3833 = vmatprep.mubr.msk.bf16.mxu1 %vm4044_vm2, %v4042_v0 }
  0xd1   :  { %3730 = vmatmul.mubr.msk.bf16.vlgmr.msra.gmra.mrb[100].mxu0 %vm207_vm3, %v3988_v57  ;;  %3834 = vmatmul.mubr.msk.bf16.vlgmr.msra.gmra.mrb[100].mxu1 %vm207_vm3, %v3989_v58 }
  0xd2   :  { %3733 = vmatprep.mubr.msk.bf16.mxu0 %vm4044_vm2, %v4042_v0  ;;  %3837 = vmatprep.mubr.msk.bf16.mxu1 %vm4044_vm2, %v4042_v0 }
  0xd9   :  { %3734 = vmatmul.mubr.msk.bf16.gmra.mrb[104].mxu0 %vm207_vm3, %v3990_v59  ;;  %3838 = vmatmul.mubr.msk.bf16.gmra.mrb[104].mxu1 %vm207_vm3, %v3991_v60 }
  0xda   :  { %3737 = vmatprep.mubr.msk.bf16.mxu0 %vm4044_vm2, %v4042_v0  ;;  %3841 = vmatprep.mubr.msk.bf16.mxu1 %vm4044_vm2, %v4042_v0 }
  0xdc   :  { %v324_v63 = vpop.f32.mrb[0].mxu0  ;;  %v963_v1 = vpop.f32.mrb[0].mxu1 }
  0xdd   :  { %v528_v2 = vmul.f32 %v4411_v61, %v324_v63  ;;  %v1161_v3 = vmul.f32 %v4411_v61, %v963_v1  ;;  %v3523_v4 = vpop.f32.mrb[1].mxu0  ;;  %v3627_v5 = vpop.f32.mrb[1].mxu1 }
  0xde   :  { %v327_v8 = vpop.f32.mrb[2].mxu0  ;;  %v966_v9 = vpop.f32.mrb[2].mxu1 }
  0xdf   :  { %v583_v10 = vadd.f32 %v4420_v62, %v528_v2  ;;  %v1210_v11 = vadd.f32 %v4420_v62, %v1161_v3  ;;  %v529_v12 = vmul.f32 %v4411_v61, %v327_v8  ;;  %v1162_v13 = vmul.f32 %v4411_v61, %v966_v9  ;;  %v3524_v14 = vpop.f32.mrb[3].mxu0  ;;  %v3628_v15 = vpop.f32.mrb[3].mxu1 }
  0xe1   :  { %v632_v16 = vmax.f32 %v583_v10, 0.0  ;;  %v1259_v17 = vmax.f32 %v1210_v11, 0.0  ;;  %v584_v18 = vadd.f32 %v4420_v62, %v529_v12  ;;  %v1211_v19 = vadd.f32 %v4420_v62, %v1162_v13  ;;  %3738 = vmatmul.mubr.msk.bf16.gmra.mrb[108].mxu0 %vm207_vm3, %v3992_v6  ;;  %3842 = vmatmul.mubr.msk.bf16.gmra.mrb[108].mxu1 %vm207_vm3, %v3993_v7 }
  0xe2   :  { %3741 = vmatprep.mubr.msk.bf16.mxu0 %vm4044_vm2, %v4042_v0  ;;  %3845 = vmatprep.mubr.msk.bf16.mxu1 %vm4044_vm2, %v4042_v0 }
  0xe3   :  { %v4442_v20 = vmax.f32 %v632_v16, %v1259_v17  ;;  %v633_v21 = vmax.f32 %v584_v18, 0.0  ;;  %v1260_v22 = vmax.f32 %v1211_v19, 0.0  ;;  %v3998_v17 = vld [vmem:[%s5450_s0 + $0x1b0] sm:$0xff]  }
  0xe4   :  { %v332_v23 = vpop.f32.mrb[4].mxu0  ;;  %v971_v24 = vpop.f32.mrb[4].mxu1  ;;  %v3999_v18 = vld [vmem:[%s5450_s0 + $0x274] sm:$0xff]  }
  0xe5   :  { %v4444_v25 = vmax.f32 %v633_v21, %v1260_v22  ;;  %v530_v26 = vmul.f32 %v4411_v61, %v332_v23  ;;  %v1163_v27 = vmul.f32 %v4411_v61, %v971_v24  ;;  %v3527_v28 = vpop.f32.mrb[5].mxu0  ;;  %v3631_v29 = vpop.f32.mrb[5].mxu1 }
  0xe6   :  { %v335_v32 = vpop.f32.mrb[6].mxu0  ;;  %v974_v33 = vpop.f32.mrb[6].mxu1 }
  0xe7   :  { %v585_v34 = vadd.f32 %v4420_v62, %v530_v26  ;;  %v1212_v35 = vadd.f32 %v4420_v62, %v1163_v27  ;;  %v531_v36 = vmul.f32 %v4411_v61, %v335_v32  ;;  %v1164_v37 = vmul.f32 %v4411_v61, %v974_v33  ;;  %v3528_v38 = vpop.f32.mrb[7].mxu0  ;;  %v3632_v39 = vpop.f32.mrb[7].mxu1 }
  0xe9   :  { %v634_v40 = vmax.f32 %v585_v34, 0.0  ;;  %v1261_v41 = vmax.f32 %v1212_v35, 0.0  ;;  %v586_v42 = vadd.f32 %v4420_v62, %v531_v36  ;;  %v1213_v43 = vadd.f32 %v4420_v62, %v1164_v37  ;;  %3742 = vmatmul.mubr.msk.bf16.gmra.mrb[112].mxu0 %vm207_vm3, %v3994_v30  ;;  %3846 = vmatmul.mubr.msk.bf16.gmra.mrb[112].mxu1 %vm207_vm3, %v3995_v31 }
  0xea   :  { %3745 = vmatprep.mubr.msk.bf16.mxu0 %vm4044_vm2, %v4042_v0  ;;  %3849 = vmatprep.mubr.msk.bf16.mxu1 %vm4044_vm2, %v4042_v0 }
  0xeb   :  { %v4466_v44 = vmax.f32 %v634_v40, %v1261_v41  ;;  %v635_v45 = vmax.f32 %v586_v42, 0.0  ;;  %v1262_v46 = vmax.f32 %v1213_v43, 0.0  ;;  %v4000_v43 = vld [vmem:[%s5450_s0 + $0x1b8] sm:$0xff]  }
  0xec   :  { %v340_v47 = vpop.f32.mrb[8].mxu0  ;;  %v979_v48 = vpop.f32.mrb[8].mxu1 }
  0xed   :  { %v4468_v49 = vmax.f32 %v635_v45, %v1262_v46  ;;  %v532_v50 = vmul.f32 %v4411_v61, %v340_v47  ;;  %v1165_v51 = vmul.f32 %v4411_v61, %v979_v48  ;;  %v3531_v52 = vpop.f32.mrb[9].mxu0  ;;  %v3635_v53 = vpop.f32.mrb[9].mxu1  ;;  %v4001_v45 = vld [vmem:[%s5450_s0 + $0x27c] sm:$0xff]  }
  0xee   :  { %v343_v56 = vpop.f32.mrb[10].mxu0  ;;  %v982_v57 = vpop.f32.mrb[10].mxu1 }
  0xef   :  { %v587_v58 = vadd.f32 %v4420_v62, %v532_v50  ;;  %v1214_v59 = vadd.f32 %v4420_v62, %v1165_v51  ;;  %v533_v60 = vmul.f32 %v4411_v61, %v343_v56  ;;  %v1166_v63 = vmul.f32 %v4411_v61, %v982_v57  ;;  %v3532_v1 = vpop.f32.mrb[11].mxu0  ;;  %v3636_v2 = vpop.f32.mrb[11].mxu1 }
  0xf1   :  { %v636_v3 = vmax.f32 %v587_v58, 0.0  ;;  %v1263_v4 = vmax.f32 %v1214_v59, 0.0  ;;  %v588_v5 = vadd.f32 %v4420_v62, %v533_v60  ;;  %v1215_v6 = vadd.f32 %v4420_v62, %v1166_v63  ;;  %3746 = vmatmul.mubr.msk.bf16.gmra.mrb[116].mxu0 %vm207_vm3, %v3996_v54  ;;  %3850 = vmatmul.mubr.msk.bf16.gmra.mrb[116].mxu1 %vm207_vm3, %v3997_v55 }
  0xf2   :  { %3749 = vmatprep.mubr.msk.bf16.mxu0 %vm4044_vm2, %v4042_v0  ;;  %3853 = vmatprep.mubr.msk.bf16.mxu1 %vm4044_vm2, %v4042_v0 }
  0xf3   :  { %v4490_v7 = vmax.f32 %v636_v3, %v1263_v4  ;;  %v637_v8 = vmax.f32 %v588_v5, 0.0  ;;  %v1264_v9 = vmax.f32 %v1215_v6, 0.0 }
  0xf4   :  { %v348_v10 = vpop.f32.mrb[12].mxu0  ;;  %v987_v11 = vpop.f32.mrb[12].mxu1 }
  0xf5   :  { %v4492_v12 = vmax.f32 %v637_v8, %v1264_v9  ;;  %v534_v13 = vmul.f32 %v4411_v61, %v348_v10  ;;  %v1167_v14 = vmul.f32 %v4411_v61, %v987_v11  ;;  %v3535_v15 = vpop.f32.mrb[13].mxu0  ;;  %v3639_v16 = vpop.f32.mrb[13].mxu1  ;;  %v4002_v9 = vld [vmem:[%s5450_s0 + $0x1c0] sm:$0xff]  }
  0xf6   :  { %v351_v19 = vpop.f32.mrb[14].mxu0  ;;  %v990_v21 = vpop.f32.mrb[14].mxu1  ;;  %v4003_v10 = vld [vmem:[%s5450_s0 + $0x284] sm:$0xff]  }
  0xf7   :  { %v589_v22 = vadd.f32 %v4420_v62, %v534_v13  ;;  %v1216_v23 = vadd.f32 %v4420_v62, %v1167_v14  ;;  %v535_v24 = vmul.f32 %v4411_v61, %v351_v19  ;;  %v1168_v26 = vmul.f32 %v4411_v61, %v990_v21  ;;  %v3536_v27 = vpop.f32.mrb[15].mxu0  ;;  %v3640_v28 = vpop.f32.mrb[15].mxu1 }
  0xf9   :  { %v638_v29 = vmax.f32 %v589_v22, 0.0  ;;  %v1265_v30 = vmax.f32 %v1216_v23, 0.0  ;;  %v590_v31 = vadd.f32 %v4420_v62, %v535_v24  ;;  %v1217_v32 = vadd.f32 %v4420_v62, %v1168_v26  ;;  %3750 = vmatmul.mubr.msk.bf16.gmra.mrb[120].mxu0 %vm207_vm3, %v3998_v17  ;;  %3854 = vmatmul.mubr.msk.bf16.gmra.mrb[120].mxu1 %vm207_vm3, %v3999_v18 }
  0xfa   :  { %3753 = vmatprep.mubr.msk.bf16.mxu0 %vm4044_vm2, %v4042_v0  ;;  %3857 = vmatprep.mubr.msk.bf16.mxu1 %vm4044_vm2, %v4042_v0 }
  0xfb   :  { %v4514_v33 = vmax.f32 %v638_v29, %v1265_v30  ;;  %v639_v34 = vmax.f32 %v590_v31, 0.0  ;;  %v1266_v35 = vmax.f32 %v1217_v32, 0.0 }
  0xfc   :  { %v356_v36 = vpop.f32.mrb[16].mxu0  ;;  %v995_v37 = vpop.f32.mrb[16].mxu1 }
  0xfd   :  { %v4516_v38 = vmax.f32 %v639_v34, %v1266_v35  ;;  %v536_v39 = vmul.f32 %v4411_v61, %v356_v36  ;;  %v1169_v40 = vmul.f32 %v4411_v61, %v995_v37  ;;  %v3539_v41 = vpop.f32.mrb[17].mxu0  ;;  %v3643_v42 = vpop.f32.mrb[17].mxu1  ;;  %v4004_v37 = vld [vmem:[%s5450_s0 + $0x1c8] sm:$0xff]  }
  0xfe   :  { %v359_v46 = vpop.f32.mrb[18].mxu0  ;;  %v998_v47 = vpop.f32.mrb[18].mxu1 }
  0xff   :  { %v591_v48 = vadd.f32 %v4420_v62, %v536_v39  ;;  %v1218_v50 = vadd.f32 %v4420_v62, %v1169_v40  ;;  %v537_v51 = vmul.f32 %v4411_v61, %v359_v46  ;;  %v1170_v52 = vmul.f32 %v4411_v61, %v998_v47  ;;  %v3540_v53 = vpop.f32.mrb[19].mxu0  ;;  %v3644_v54 = vpop.f32.mrb[19].mxu1  ;;  %v4005_v39 = vld [vmem:[%s5450_s0 + $0x28c] sm:$0xff]  }
 0x101   :  { %v640_v55 = vmax.f32 %v591_v48, 0.0  ;;  %v1267_v56 = vmax.f32 %v1218_v50, 0.0  ;;  %v592_v57 = vadd.f32 %v4420_v62, %v537_v51  ;;  %v1219_v58 = vadd.f32 %v4420_v62, %v1170_v52  ;;  %3754 = vmatmul.mubr.msk.bf16.gmra.mrb[124].mxu0 %vm207_vm3, %v4000_v43  ;;  %3858 = vmatmul.mubr.msk.bf16.gmra.mrb[124].mxu1 %vm207_vm3, %v4001_v45 }
 0x102   :  { %3757 = vmatprep.mubr.msk.bf16.mxu0 %vm4044_vm2, %v4042_v0  ;;  %3861 = vmatprep.mubr.msk.bf16.mxu1 %vm4044_vm2, %v4042_v0 }
 0x103   :  { %v4538_v59 = vmax.f32 %v640_v55, %v1267_v56  ;;  %v641_v60 = vmax.f32 %v592_v57, 0.0  ;;  %v1268_v63 = vmax.f32 %v1219_v58, 0.0 }
 0x104   :  { %v364_v1 = vpop.f32.mrb[20].mxu0  ;;  %v1003_v2 = vpop.f32.mrb[20].mxu1 }
 0x105   :  { %v4540_v3 = vmax.f32 %v641_v60, %v1268_v63  ;;  %v538_v4 = vmul.f32 %v4411_v61, %v364_v1  ;;  %v1171_v5 = vmul.f32 %v4411_v61, %v1003_v2  ;;  %v3543_v6 = vpop.f32.mrb[21].mxu0  ;;  %v3647_v8 = vpop.f32.mrb[21].mxu1 }
 0x106   :  { %v367_v11 = vpop.f32.mrb[22].mxu0  ;;  %v1006_v13 = vpop.f32.mrb[22].mxu1  ;;  %v4007_v6 = vld [vmem:[%s5450_s0 + $0x294] sm:$0xff]  }
 0x107   :  { %v593_v14 = vadd.f32 %v4420_v62, %v538_v4  ;;  %v1220_v15 = vadd.f32 %v4420_v62, %v1171_v5  ;;  %v539_v16 = vmul.f32 %v4411_v61, %v367_v11  ;;  %v1172_v17 = vmul.f32 %v4411_v61, %v1006_v13  ;;  %v3544_v18 = vpop.f32.mrb[23].mxu0  ;;  %v3648_v19 = vpop.f32.mrb[23].mxu1  ;;  %v4006_v5 = vld [vmem:[%s5450_s0 + $0x1d0] sm:$0xff]  }
 0x109   :  { %v642_v21 = vmax.f32 %v593_v14, 0.0  ;;  %v1269_v22 = vmax.f32 %v1220_v15, 0.0  ;;  %v594_v23 = vadd.f32 %v4420_v62, %v539_v16  ;;  %v1221_v24 = vadd.f32 %v4420_v62, %v1172_v17  ;;  %3758 = vmatmul.mubr.msk.bf16.gmra.mrb[128].mxu0 %vm207_vm3, %v4002_v9  ;;  %3862 = vmatmul.mubr.msk.bf16.gmra.mrb[128].mxu1 %vm207_vm3, %v4003_v10 }
 0x10a   :  { %3761 = vmatprep.mubr.msk.bf16.mxu0 %vm4044_vm2, %v4042_v0  ;;  %3865 = vmatprep.mubr.msk.bf16.mxu1 %vm4044_vm2, %v4042_v0 }
 0x10b   :  { %v4562_v26 = vmax.f32 %v642_v21, %v1269_v22  ;;  %v643_v27 = vmax.f32 %v594_v23, 0.0  ;;  %v1270_v28 = vmax.f32 %v1221_v24, 0.0 }
 0x10c   :  { %v372_v29 = vpop.f32.mrb[24].mxu0  ;;  %v1011_v30 = vpop.f32.mrb[24].mxu1 }
 0x10d   :  { %v4564_v31 = vmax.f32 %v643_v27, %v1270_v28  ;;  %v540_v32 = vmul.f32 %v4411_v61, %v372_v29  ;;  %v1173_v34 = vmul.f32 %v4411_v61, %v1011_v30  ;;  %v3547_v35 = vpop.f32.mrb[25].mxu0  ;;  %v3651_v36 = vpop.f32.mrb[25].mxu1 }
 0x10e   :  { %v375_v40 = vpop.f32.mrb[26].mxu0  ;;  %v1014_v41 = vpop.f32.mrb[26].mxu1  ;;  %v4008_v36 = vld [vmem:[%s5450_s0 + $0x1d8] sm:$0xff]  }
 0x10f   :  { %v595_v42 = vadd.f32 %v4420_v62, %v540_v32  ;;  %v1222_v43 = vadd.f32 %v4420_v62, %v1173_v34  ;;  %v541_v45 = vmul.f32 %v4411_v61, %v375_v40  ;;  %v1174_v46 = vmul.f32 %v4411_v61, %v1014_v41  ;;  %v3548_v47 = vpop.f32.mrb[27].mxu0  ;;  %v3652_v48 = vpop.f32.mrb[27].mxu1 }
 0x111   :  { %v644_v50 = vmax.f32 %v595_v42, 0.0  ;;  %v1271_v51 = vmax.f32 %v1222_v43, 0.0  ;;  %v596_v52 = vadd.f32 %v4420_v62, %v541_v45  ;;  %v1223_v53 = vadd.f32 %v4420_v62, %v1174_v46  ;;  %3762 = vmatmul.mubr.msk.bf16.gmra.mrb[132].mxu0 %vm207_vm3, %v4004_v37  ;;  %3866 = vmatmul.mubr.msk.bf16.gmra.mrb[132].mxu1 %vm207_vm3, %v4005_v39  ;;  %v4009_v37 = vld [vmem:[%s5450_s0 + $0x29c] sm:$0xff]  }
 0x112   :  { %3765 = vmatprep.mubr.msk.bf16.mxu0 %vm4044_vm2, %v4042_v0  ;;  %3869 = vmatprep.mubr.msk.bf16.mxu1 %vm4044_vm2, %v4042_v0 }
 0x113   :  { %v4586_v54 = vmax.f32 %v644_v50, %v1271_v51  ;;  %v645_v55 = vmax.f32 %v596_v52, 0.0  ;;  %v1272_v56 = vmax.f32 %v1223_v53, 0.0 }
 0x114   :  { %v380_v57 = vpop.f32.mrb[28].mxu0  ;;  %v1019_v58 = vpop.f32.mrb[28].mxu1 }
 0x115   :  { %v4588_v60 = vmax.f32 %v645_v55, %v1272_v56  ;;  %v542_v63 = vmul.f32 %v4411_v61, %v380_v57  ;;  %v1175_v1 = vmul.f32 %v4411_v61, %v1019_v58  ;;  %v3551_v2 = vpop.f32.mrb[29].mxu0  ;;  %v3655_v4 = vpop.f32.mrb[29].mxu1 }
 0x116   :  { %v383_v8 = vpop.f32.mrb[30].mxu0  ;;  %v1022_v9 = vpop.f32.mrb[30].mxu1 }
 0x117   :  { %v597_v10 = vadd.f32 %v4420_v62, %v542_v63  ;;  %v1224_v11 = vadd.f32 %v4420_v62, %v1175_v1  ;;  %v543_v13 = vmul.f32 %v4411_v61, %v383_v8  ;;  %v1176_v14 = vmul.f32 %v4411_v61, %v1022_v9  ;;  %v3552_v15 = vpop.f32.mrb[31].mxu0  ;;  %v3656_v16 = vpop.f32.mrb[31].mxu1  ;;  %v4011_v8 = vld [vmem:[%s5450_s0 + $0x2a4] sm:$0xff]  }
 0x119   :  { %v646_v17 = vmax.f32 %v597_v10, 0.0  ;;  %v1273_v18 = vmax.f32 %v1224_v11, 0.0  ;;  %v598_v19 = vadd.f32 %v4420_v62, %v543_v13  ;;  %v1225_v21 = vadd.f32 %v4420_v62, %v1176_v14  ;;  %3766 = vmatmul.mubr.msk.bf16.gmra.mrb[136].mxu0 %vm207_vm3, %v4006_v5  ;;  %3870 = vmatmul.mubr.msk.bf16.gmra.mrb[136].mxu1 %vm207_vm3, %v4007_v6  ;;  %v4010_v6 = vld [vmem:[%s5450_s0 + $0x1e0] sm:$0xff]  }
 0x11a   :  { %3769 = vmatprep.mubr.msk.bf16.mxu0 %vm4044_vm2, %v4042_v0  ;;  %3873 = vmatprep.mubr.msk.bf16.mxu1 %vm4044_vm2, %v4042_v0 }
 0x11b   :  { %v4610_v22 = vmax.f32 %v646_v17, %v1273_v18  ;;  %v647_v23 = vmax.f32 %v598_v19, 0.0  ;;  %v1274_v24 = vmax.f32 %v1225_v21, 0.0 }
 0x11c   :  { %v388_v27 = vpop.f32.mrb[32].mxu0  ;;  %v1027_v28 = vpop.f32.mrb[32].mxu1 }
 0x11d   :  { %v4612_v29 = vmax.f32 %v647_v23, %v1274_v24  ;;  %v544_v30 = vmul.f32 %v4411_v61, %v388_v27  ;;  %v1177_v32 = vmul.f32 %v4411_v61, %v1027_v28  ;;  %v3555_v34 = vpop.f32.mrb[33].mxu0  ;;  %v3659_v35 = vpop.f32.mrb[33].mxu1 }
 0x11e   :  { %v391_v39 = vpop.f32.mrb[34].mxu0  ;;  %v1030_v40 = vpop.f32.mrb[34].mxu1 }
 0x11f   :  { %v599_v41 = vadd.f32 %v4420_v62, %v544_v30  ;;  %v1226_v42 = vadd.f32 %v4420_v62, %v1177_v32  ;;  %v545_v43 = vmul.f32 %v4411_v61, %v391_v39  ;;  %v1178_v45 = vmul.f32 %v4411_v61, %v1030_v40  ;;  %v3556_v46 = vpop.f32.mrb[35].mxu0  ;;  %v3660_v47 = vpop.f32.mrb[35].mxu1  ;;  %v4012_v40 = vld [vmem:[%s5450_s0 + $0x1e8] sm:$0xff]  }
 0x121   :  { %v648_v48 = vmax.f32 %v599_v41, 0.0  ;;  %v1275_v50 = vmax.f32 %v1226_v42, 0.0  ;;  %v600_v51 = vadd.f32 %v4420_v62, %v545_v43  ;;  %v1227_v52 = vadd.f32 %v4420_v62, %v1178_v45  ;;  %3770 = vmatmul.mubr.msk.bf16.gmra.mrb[140].mxu0 %vm207_vm3, %v4008_v36  ;;  %3874 = vmatmul.mubr.msk.bf16.gmra.mrb[140].mxu1 %vm207_vm3, %v4009_v37  ;;  %v4013_v41 = vld [vmem:[%s5450_s0 + $0x2ac] sm:$0xff]  }
 0x122   :  { %3773 = vmatprep.mubr.msk.bf16.mxu0 %vm4044_vm2, %v4042_v0  ;;  %3877 = vmatprep.mubr.msk.bf16.mxu1 %vm4044_vm2, %v4042_v0 }
 0x123   :  { %v4634_v53 = vmax.f32 %v648_v48, %v1275_v50  ;;  %v649_v55 = vmax.f32 %v600_v51, 0.0  ;;  %v1276_v56 = vmax.f32 %v1227_v52, 0.0 }
 0x124   :  { %v396_v57 = vpop.f32.mrb[36].mxu0  ;;  %v1035_v58 = vpop.f32.mrb[36].mxu1 }
 0x125   :  { %v4636_v63 = vmax.f32 %v649_v55, %v1276_v56  ;;  %v546_v1 = vmul.f32 %v4411_v61, %v396_v57  ;;  %v1179_v2 = vmul.f32 %v4411_v61, %v1035_v58  ;;  %v3559_v4 = vpop.f32.mrb[37].mxu0  ;;  %v3663_v5 = vpop.f32.mrb[37].mxu1 }
 0x126   :  { %v399_v9 = vpop.f32.mrb[38].mxu0  ;;  %v1038_v10 = vpop.f32.mrb[38].mxu1 }
 0x127   :  { %v601_v11 = vadd.f32 %v4420_v62, %v546_v1  ;;  %v1228_v13 = vadd.f32 %v4420_v62, %v1179_v2  ;;  %v547_v14 = vmul.f32 %v4411_v61, %v399_v9  ;;  %v1180_v15 = vmul.f32 %v4411_v61, %v1038_v10  ;;  %v3560_v16 = vpop.f32.mrb[39].mxu0  ;;  %v3664_v17 = vpop.f32.mrb[39].mxu1 }
 0x129   :  { %v650_v18 = vmax.f32 %v601_v11, 0.0  ;;  %v1277_v19 = vmax.f32 %v1228_v13, 0.0  ;;  %v602_v21 = vadd.f32 %v4420_v62, %v547_v14  ;;  %v1229_v23 = vadd.f32 %v4420_v62, %v1180_v15  ;;  %3774 = vmatmul.mubr.msk.bf16.gmra.mrb[144].mxu0 %vm207_vm3, %v4010_v6  ;;  %3878 = vmatmul.mubr.msk.bf16.gmra.mrb[144].mxu1 %vm207_vm3, %v4011_v8  ;;  %v4014_v13 = vld [vmem:[%s5450_s0 + $0x1f0] sm:$0xff]  }
 0x12a   :  { %3777 = vmatprep.mubr.msk.bf16.mxu0 %vm4044_vm2, %v4042_v0  ;;  %3881 = vmatprep.mubr.msk.bf16.mxu1 %vm4044_vm2, %v4042_v0  ;;  %v4015_v14 = vld [vmem:[%s5450_s0 + $0x2b4] sm:$0xff]  }
 0x12b   :  { %v4658_v24 = vmax.f32 %v650_v18, %v1277_v19  ;;  %v651_v27 = vmax.f32 %v602_v21, 0.0  ;;  %v1278_v28 = vmax.f32 %v1229_v23, 0.0 }
 0x12c   :  { %v404_v30 = vpop.f32.mrb[40].mxu0  ;;  %v1043_v32 = vpop.f32.mrb[40].mxu1 }
 0x12d   :  { %v4660_v34 = vmax.f32 %v651_v27, %v1278_v28  ;;  %v548_v35 = vmul.f32 %v4411_v61, %v404_v30  ;;  %v1181_v36 = vmul.f32 %v4411_v61, %v1043_v32  ;;  %v3563_v37 = vpop.f32.mrb[41].mxu0  ;;  %v3667_v39 = vpop.f32.mrb[41].mxu1 }
 0x12e   :  { %v407_v42 = vpop.f32.mrb[42].mxu0  ;;  %v1046_v43 = vpop.f32.mrb[42].mxu1 }
 0x12f   :  { %v603_v45 = vadd.f32 %v4420_v62, %v548_v35  ;;  %v1230_v46 = vadd.f32 %v4420_v62, %v1181_v36  ;;  %v549_v47 = vmul.f32 %v4411_v61, %v407_v42  ;;  %v1182_v48 = vmul.f32 %v4411_v61, %v1046_v43  ;;  %v3564_v50 = vpop.f32.mrb[43].mxu0  ;;  %v3668_v51 = vpop.f32.mrb[43].mxu1 }
 0x130   :  { %v4017_v50 = vld [vmem:[%s5450_s0 + $0x2bc] sm:$0xff]  }
 0x131   :  { %v652_v52 = vmax.f32 %v603_v45, 0.0  ;;  %v1279_v55 = vmax.f32 %v1230_v46, 0.0  ;;  %v604_v56 = vadd.f32 %v4420_v62, %v549_v47  ;;  %v1231_v57 = vadd.f32 %v4420_v62, %v1182_v48  ;;  %3778 = vmatmul.mubr.msk.bf16.gmra.mrb[148].mxu0 %vm207_vm3, %v4012_v40  ;;  %3882 = vmatmul.mubr.msk.bf16.gmra.mrb[148].mxu1 %vm207_vm3, %v4013_v41  ;;  %v4016_v48 = vld [vmem:[%s5450_s0 + $0x1f8] sm:$0xff]  }
 0x132   :  { %3781 = vmatprep.mubr.msk.bf16.mxu0 %vm4044_vm2, %v4042_v0  ;;  %3885 = vmatprep.mubr.msk.bf16.mxu1 %vm4044_vm2, %v4042_v0 }
 0x133   :  { %v4682_v58 = vmax.f32 %v652_v52, %v1279_v55  ;;  %v653_v1 = vmax.f32 %v604_v56, 0.0  ;;  %v1280_v2 = vmax.f32 %v1231_v57, 0.0 }
 0x134   :  { %v412_v4 = vpop.f32.mrb[44].mxu0  ;;  %v1051_v5 = vpop.f32.mrb[44].mxu1 }
 0x135   :  { %v4684_v6 = vmax.f32 %v653_v1, %v1280_v2  ;;  %v550_v8 = vmul.f32 %v4411_v61, %v412_v4  ;;  %v1183_v9 = vmul.f32 %v4411_v61, %v1051_v5  ;;  %v3567_v10 = vpop.f32.mrb[45].mxu0  ;;  %v3671_v11 = vpop.f32.mrb[45].mxu1 }
 0x136   :  { %v415_v15 = vpop.f32.mrb[46].mxu0  ;;  %v1054_v16 = vpop.f32.mrb[46].mxu1 }
 0x137   :  { %v605_v17 = vadd.f32 %v4420_v62, %v550_v8  ;;  %v1232_v18 = vadd.f32 %v4420_v62, %v1183_v9  ;;  %v551_v19 = vmul.f32 %v4411_v61, %v415_v15  ;;  %v1184_v21 = vmul.f32 %v4411_v61, %v1054_v16  ;;  %v3568_v23 = vpop.f32.mrb[47].mxu0  ;;  %v3672_v27 = vpop.f32.mrb[47].mxu1 }
 0x138   :  { %v4018_v27 = vld [vmem:[%s5450_s0 + $0x200] sm:$0xff]  }
 0x139   :  { %v654_v28 = vmax.f32 %v605_v17, 0.0  ;;  %v1281_v30 = vmax.f32 %v1232_v18, 0.0  ;;  %v606_v32 = vadd.f32 %v4420_v62, %v551_v19  ;;  %v1233_v35 = vadd.f32 %v4420_v62, %v1184_v21  ;;  %3782 = vmatmul.mubr.msk.bf16.gmra.mrb[152].mxu0 %vm207_vm3, %v4014_v13  ;;  %3886 = vmatmul.mubr.msk.bf16.gmra.mrb[152].mxu1 %vm207_vm3, %v4015_v14 }
 0x13a   :  { %3785 = vmatprep.mubr.msk.bf16.mxu0 %vm4044_vm2, %v4042_v0  ;;  %3889 = vmatprep.mubr.msk.bf16.mxu1 %vm4044_vm2, %v4042_v0 }
 0x13b   :  { %v4706_v36 = vmax.f32 %v654_v28, %v1281_v30  ;;  %v655_v37 = vmax.f32 %v606_v32, 0.0  ;;  %v1282_v39 = vmax.f32 %v1233_v35, 0.0  ;;  %v4019_v28 = vld [vmem:[%s5450_s0 + $0x2c4] sm:$0xff]  }
 0x13c   :  { %v420_v40 = vpop.f32.mrb[48].mxu0  ;;  %v1059_v41 = vpop.f32.mrb[48].mxu1 }
 0x13d   :  { %v4708_v42 = vmax.f32 %v655_v37, %v1282_v39  ;;  %v552_v43 = vmul.f32 %v4411_v61, %v420_v40  ;;  %v1185_v45 = vmul.f32 %v4411_v61, %v1059_v41  ;;  %v3571_v46 = vpop.f32.mrb[49].mxu0  ;;  %v3675_v47 = vpop.f32.mrb[49].mxu1 }
 0x13e   :  { %v423_v51 = vpop.f32.mrb[50].mxu0  ;;  %v1062_v52 = vpop.f32.mrb[50].mxu1 }
 0x13f   :  { %v607_v55 = vadd.f32 %v4420_v62, %v552_v43  ;;  %v1234_v56 = vadd.f32 %v4420_v62, %v1185_v45  ;;  %v553_v57 = vmul.f32 %v4411_v61, %v423_v51  ;;  %v1186_v1 = vmul.f32 %v4411_v61, %v1062_v52  ;;  %v3572_v2 = vpop.f32.mrb[51].mxu0  ;;  %v3676_v4 = vpop.f32.mrb[51].mxu1 }
 0x141   :  { %v656_v5 = vmax.f32 %v607_v55, 0.0  ;;  %v1283_v8 = vmax.f32 %v1234_v56, 0.0  ;;  %v608_v9 = vadd.f32 %v4420_v62, %v553_v57  ;;  %v1235_v10 = vadd.f32 %v4420_v62, %v1186_v1  ;;  %3786 = vmatmul.mubr.msk.bf16.gmra.mrb[156].mxu0 %vm207_vm3, %v4016_v48  ;;  %3890 = vmatmul.mubr.msk.bf16.gmra.mrb[156].mxu1 %vm207_vm3, %v4017_v50 }
 0x142   :  { %3789 = vmatprep.mubr.msk.bf16.mxu0 %vm4044_vm2, %v4042_v0  ;;  %3893 = vmatprep.mubr.msk.bf16.mxu1 %vm4044_vm2, %v4042_v0 }
 0x143   :  { %v4730_v11 = vmax.f32 %v656_v5, %v1283_v8  ;;  %v657_v13 = vmax.f32 %v608_v9, 0.0  ;;  %v1284_v14 = vmax.f32 %v1235_v10, 0.0  ;;  %v4020_v8 = vld [vmem:[%s5450_s0 + $0x208] sm:$0xff]  }
 0x144   :  { %v428_v15 = vpop.f32.mrb[52].mxu0  ;;  %v1067_v16 = vpop.f32.mrb[52].mxu1  ;;  %v4021_v9 = vld [vmem:[%s5450_s0 + $0x2cc] sm:$0xff]  }
 0x145   :  { %v4732_v17 = vmax.f32 %v657_v13, %v1284_v14  ;;  %v554_v18 = vmul.f32 %v4411_v61, %v428_v15  ;;  %v1187_v19 = vmul.f32 %v4411_v61, %v1067_v16  ;;  %v3575_v21 = vpop.f32.mrb[53].mxu0  ;;  %v3679_v23 = vpop.f32.mrb[53].mxu1 }
 0x146   :  { %v431_v30 = vpop.f32.mrb[54].mxu0  ;;  %v1070_v32 = vpop.f32.mrb[54].mxu1 }
 0x147   :  { %v609_v35 = vadd.f32 %v4420_v62, %v554_v18  ;;  %v1236_v37 = vadd.f32 %v4420_v62, %v1187_v19  ;;  %v555_v39 = vmul.f32 %v4411_v61, %v431_v30  ;;  %v1188_v40 = vmul.f32 %v4411_v61, %v1070_v32  ;;  %v3576_v41 = vpop.f32.mrb[55].mxu0  ;;  %v3680_v43 = vpop.f32.mrb[55].mxu1 }
 0x149   :  { %v658_v45 = vmax.f32 %v609_v35, 0.0  ;;  %v1285_v46 = vmax.f32 %v1236_v37, 0.0  ;;  %v610_v47 = vadd.f32 %v4420_v62, %v555_v39  ;;  %v1237_v48 = vadd.f32 %v4420_v62, %v1188_v40  ;;  %3790 = vmatmul.mubr.msk.bf16.gmra.mrb[160].mxu0 %vm207_vm3, %v4018_v27  ;;  %3894 = vmatmul.mubr.msk.bf16.gmra.mrb[160].mxu1 %vm207_vm3, %v4019_v28 }
 0x14a   :  { %3793 = vmatprep.mubr.msk.bf16.mxu0 %vm4044_vm2, %v4042_v0  ;;  %3897 = vmatprep.mubr.msk.bf16.mxu1 %vm4044_vm2, %v4042_v0 }
 0x14b   :  { %v4754_v50 = vmax.f32 %v658_v45, %v1285_v46  ;;  %v659_v51 = vmax.f32 %v610_v47, 0.0  ;;  %v1286_v52 = vmax.f32 %v1237_v48, 0.0  ;;  %v4022_v48 = vld [vmem:[%s5450_s0 + $0x210] sm:$0xff]  }
 0x14c   :  { %v436_v55 = vpop.f32.mrb[56].mxu0  ;;  %v1075_v56 = vpop.f32.mrb[56].mxu1 }
 0x14d   :  { %v4756_v57 = vmax.f32 %v659_v51, %v1286_v52  ;;  %v556_v1 = vmul.f32 %v4411_v61, %v436_v55  ;;  %v1189_v2 = vmul.f32 %v4411_v61, %v1075_v56  ;;  %v3579_v4 = vpop.f32.mrb[57].mxu0  ;;  %v3683_v5 = vpop.f32.mrb[57].mxu1  ;;  %v4023_v51 = vld [vmem:[%s5450_s0 + $0x2d4] sm:$0xff]  }
 0x14e   :  { %v439_v10 = vpop.f32.mrb[58].mxu0  ;;  %v1078_v13 = vpop.f32.mrb[58].mxu1 }
 0x14f   :  { %v611_v14 = vadd.f32 %v4420_v62, %v556_v1  ;;  %v1238_v15 = vadd.f32 %v4420_v62, %v1189_v2  ;;  %v557_v16 = vmul.f32 %v4411_v61, %v439_v10  ;;  %v1190_v18 = vmul.f32 %v4411_v61, %v1078_v13  ;;  %v3580_v19 = vpop.f32.mrb[59].mxu0  ;;  %v3684_v21 = vpop.f32.mrb[59].mxu1 }
 0x151   :  { %v660_v23 = vmax.f32 %v611_v14, 0.0  ;;  %v1287_v27 = vmax.f32 %v1238_v15, 0.0  ;;  %v612_v28 = vadd.f32 %v4420_v62, %v557_v16  ;;  %v1239_v30 = vadd.f32 %v4420_v62, %v1190_v18  ;;  %3794 = vmatmul.mubr.msk.bf16.gmra.mrb[164].mxu0 %vm207_vm3, %v4020_v8  ;;  %3898 = vmatmul.mubr.msk.bf16.gmra.mrb[164].mxu1 %vm207_vm3, %v4021_v9 }
 0x152   :  { %3797 = vmatprep.mubr.msk.bf16.mxu0 %vm4044_vm2, %v4042_v0  ;;  %3901 = vmatprep.mubr.msk.bf16.mxu1 %vm4044_vm2, %v4042_v0 }
 0x153   :  { %v4778_v32 = vmax.f32 %v660_v23, %v1287_v27  ;;  %v661_v35 = vmax.f32 %v612_v28, 0.0  ;;  %v1288_v37 = vmax.f32 %v1239_v30, 0.0 }
 0x154   :  { %v444_v39 = vpop.f32.mrb[60].mxu0  ;;  %v1083_v40 = vpop.f32.mrb[60].mxu1 }
 0x155   :  { %v4780_v41 = vmax.f32 %v661_v35, %v1288_v37  ;;  %v558_v43 = vmul.f32 %v4411_v61, %v444_v39  ;;  %v1191_v45 = vmul.f32 %v4411_v61, %v1083_v40  ;;  %v3583_v46 = vpop.f32.mrb[61].mxu0  ;;  %v3687_v47 = vpop.f32.mrb[61].mxu1  ;;  %v4024_v37 = vld [vmem:[%s5450_s0 + $0x218] sm:$0xff]  }
 0x156   :  { %v447_v52 = vpop.f32.mrb[62].mxu0  ;;  %v1086_v55 = vpop.f32.mrb[62].mxu1  ;;  %v4025_v39 = vld [vmem:[%s5450_s0 + $0x2dc] sm:$0xff]  }
 0x157   :  { %v613_v56 = vadd.f32 %v4420_v62, %v558_v43  ;;  %v1240_v1 = vadd.f32 %v4420_v62, %v1191_v45  ;;  %v559_v2 = vmul.f32 %v4411_v61, %v447_v52  ;;  %v1192_v4 = vmul.f32 %v4411_v61, %v1086_v55  ;;  %v3584_v5 = vpop.f32.mrb[63].mxu0  ;;  %v3688_v8 = vpop.f32.mrb[63].mxu1 }
 0x159   :  { %v662_v9 = vmax.f32 %v613_v56, 0.0  ;;  %v1289_v10 = vmax.f32 %v1240_v1, 0.0  ;;  %v614_v13 = vadd.f32 %v4420_v62, %v559_v2  ;;  %v1241_v14 = vadd.f32 %v4420_v62, %v1192_v4  ;;  %3798 = vmatmul.mubr.msk.bf16.gmra.mrb[168].mxu0 %vm207_vm3, %v4022_v48  ;;  %3902 = vmatmul.mubr.msk.bf16.gmra.mrb[168].mxu1 %vm207_vm3, %v4023_v51 }
 0x15a   :  { %3801 = vmatprep.mubr.msk.bf16.mxu0 %vm4044_vm2, %v4042_v0  ;;  %3905 = vmatprep.mubr.msk.bf16.mxu1 %vm4044_vm2, %v4042_v0 }
 0x15b   :  { %v4802_v15 = vmax.f32 %v662_v9, %v1289_v10  ;;  %v663_v16 = vmax.f32 %v614_v13, 0.0  ;;  %v1290_v18 = vmax.f32 %v1241_v14, 0.0 }
 0x15c   :  { %v452_v19 = vpop.f32.mrb[64].mxu0  ;;  %v1091_v21 = vpop.f32.mrb[64].mxu1 }
 0x15d   :  { %v4804_v23 = vmax.f32 %v663_v16, %v1290_v18  ;;  %v560_v27 = vmul.f32 %v4411_v61, %v452_v19  ;;  %v1193_v28 = vmul.f32 %v4411_v61, %v1091_v21  ;;  %v3587_v30 = vpop.f32.mrb[65].mxu0  ;;  %v3691_v35 = vpop.f32.mrb[65].mxu1  ;;  %v4026_v21 = vld [vmem:[%s5450_s0 + $0x220] sm:$0xff]  }
 0x15e   :  { %v455_v40 = vpop.f32.mrb[66].mxu0  ;;  %v1094_v43 = vpop.f32.mrb[66].mxu1 }
 0x15f   :  { %v615_v45 = vadd.f32 %v4420_v62, %v560_v27  ;;  %v1242_v46 = vadd.f32 %v4420_v62, %v1193_v28  ;;  %v561_v47 = vmul.f32 %v4411_v61, %v455_v40  ;;  %v1194_v48 = vmul.f32 %v4411_v61, %v1094_v43  ;;  %v3588_v51 = vpop.f32.mrb[67].mxu0  ;;  %v3692_v52 = vpop.f32.mrb[67].mxu1  ;;  %v4027_v27 = vld [vmem:[%s5450_s0 + $0x2e4] sm:$0xff]  }
 0x161   :  { %v664_v55 = vmax.f32 %v615_v45, 0.0  ;;  %v1291_v56 = vmax.f32 %v1242_v46, 0.0  ;;  %v616_v1 = vadd.f32 %v4420_v62, %v561_v47  ;;  %v1243_v2 = vadd.f32 %v4420_v62, %v1194_v48  ;;  %3802 = vmatmul.mubr.msk.bf16.gmra.mrb[172].mxu0 %vm207_vm3, %v4024_v37  ;;  %3906 = vmatmul.mubr.msk.bf16.gmra.mrb[172].mxu1 %vm207_vm3, %v4025_v39 }
 0x162   :  { %3805 = vmatprep.mubr.msk.bf16.mxu0 %vm4044_vm2, %v4042_v0  ;;  %3909 = vmatprep.mubr.msk.bf16.mxu1 %vm4044_vm2, %v4042_v0 }
 0x163   :  { %v4826_v4 = vmax.f32 %v664_v55, %v1291_v56  ;;  %v665_v5 = vmax.f32 %v616_v1, 0.0  ;;  %v1292_v8 = vmax.f32 %v1243_v2, 0.0 }
 0x164   :  { %v460_v9 = vpop.f32.mrb[68].mxu0  ;;  %v1099_v10 = vpop.f32.mrb[68].mxu1 }
 0x165   :  { %v4828_v13 = vmax.f32 %v665_v5, %v1292_v8  ;;  %v562_v14 = vmul.f32 %v4411_v61, %v460_v9  ;;  %v1195_v16 = vmul.f32 %v4411_v61, %v1099_v10  ;;  %v3591_v18 = vpop.f32.mrb[69].mxu0  ;;  %v3695_v19 = vpop.f32.mrb[69].mxu1 }
 0x166   :  { %v463_v28 = vpop.f32.mrb[70].mxu0  ;;  %v1102_v30 = vpop.f32.mrb[70].mxu1 }
 0x167   :  { %v617_v35 = vadd.f32 %v4420_v62, %v562_v14  ;;  %v1244_v37 = vadd.f32 %v4420_v62, %v1195_v16  ;;  %v563_v39 = vmul.f32 %v4411_v61, %v463_v28  ;;  %v1196_v40 = vmul.f32 %v4411_v61, %v1102_v30  ;;  %v3592_v43 = vpop.f32.mrb[71].mxu0  ;;  %v3696_v45 = vpop.f32.mrb[71].mxu1  ;;  %v4028_v14 = vld [vmem:[%s5450_s0 + $0x228] sm:$0xff]   ;;  %v4872_v28 = vld [vmem:[%s5451_s2] ss:$0 sm:$0xff] }
 0x168   :  { %v4029_v16 = vld [vmem:[%s5450_s0 + $0x2ec] sm:$0xff]  }
 0x169   :  { %v666_v46 = vmax.f32 %v617_v35, 0.0  ;;  %v1293_v47 = vmax.f32 %v1244_v37, 0.0  ;;  %v618_v48 = vadd.f32 %v4420_v62, %v563_v39  ;;  %v1245_v51 = vadd.f32 %v4420_v62, %v1196_v40  ;;  %3806 = vmatmul.mubr.msk.bf16.gmra.mrb[176].mxu0 %vm207_vm3, %v4026_v21  ;;  %3910 = vmatmul.mubr.msk.bf16.gmra.mrb[176].mxu1 %vm207_vm3, %v4027_v27  ;;  %v4865_v21 = vld [vmem:[%s5452_s3] ss:$0 sm:$0xff] }
 0x16a   :  { %3809 = vmatprep.mubr.msk.bf16.mxu0 %vm4044_vm2, %v4042_v0  ;;  %3913 = vmatprep.mubr.msk.bf16.mxu1 %vm4044_vm2, %v4042_v0 }
 0x16b   :  { %v4850_v52 = vmax.f32 %v666_v46, %v1293_v47  ;;  %v667_v55 = vmax.f32 %v618_v48, 0.0  ;;  %v1294_v56 = vmax.f32 %v1245_v51, 0.0 }
 0x16c   :  { %v468_v1 = vpop.f32.mrb[72].mxu0  ;;  %v1107_v2 = vpop.f32.mrb[72].mxu1 }
 0x16d   :  { %v4852_v5 = vmax.f32 %v667_v55, %v1294_v56  ;;  %v564_v62 = vmul.f32 %v4411_v61, %v468_v1  ;;  %v1197_v8 = vmul.f32 %v4411_v61, %v1107_v2  ;;  %v3595_v9 = vpop.f32.mrb[73].mxu0  ;;  %v3699_v10 = vpop.f32.mrb[73].mxu1 }
 0x16e   :  { %v471_v18 = vpop.f32.mrb[74].mxu0  ;;  %v1110_v19 = vpop.f32.mrb[74].mxu1  ;;  %v4030_v10 = vld [vmem:[%s5450_s0 + $0x230] sm:$0xff]  }
 0x16f   :  { %v619_v27 = vadd.f32 %v4865_v21, %v564_v62  ;;  %v1246_v61 = vadd.f32 %v4865_v21, %v1197_v8  ;;  %v565_v30 = vmul.f32 %v4872_v28, %v471_v18  ;;  %v1198_v35 = vmul.f32 %v4872_v28, %v1110_v19  ;;  %v3596_v37 = vpop.f32.mrb[75].mxu0  ;;  %v3700_v39 = vpop.f32.mrb[75].mxu1 }
 0x171   :  { %v668_v40 = vmax.f32 %v619_v27, 0.0  ;;  %v1295_v43 = vmax.f32 %v1246_v61, 0.0  ;;  %v620_v45 = vadd.f32 %v4865_v21, %v565_v30  ;;  %v1247_v46 = vadd.f32 %v4865_v21, %v1198_v35  ;;  %3810 = vmatmul.mubr.msk.bf16.gmra.mrb[180].mxu0 %vm207_vm3, %v4028_v14  ;;  %3914 = vmatmul.mubr.msk.bf16.gmra.mrb[180].mxu1 %vm207_vm3, %v4029_v16  ;;  %v4031_v14 = vld [vmem:[%s5450_s0 + $0x2f4] sm:$0xff]  }
 0x172   :  { %3813 = vmatprep.mubr.msk.bf16.mxu0 %vm4044_vm2, %v4042_v0  ;;  %3917 = vmatprep.mubr.msk.bf16.mxu1 %vm4044_vm2, %v4042_v0 }
 0x173   :  { %v4884_v47 = vmax.f32 %v668_v40, %v1295_v43  ;;  %v669_v48 = vmax.f32 %v620_v45, 0.0  ;;  %v1296_v51 = vmax.f32 %v1247_v46, 0.0 }
 0x174   :  { %v476_v55 = vpop.f32.mrb[76].mxu0  ;;  %v1115_v56 = vpop.f32.mrb[76].mxu1 }
 0x175   :  { %v4886_v1 = vmax.f32 %v669_v48, %v1296_v51  ;;  %v566_v2 = vmul.f32 %v4872_v28, %v476_v55  ;;  %v1199_v62 = vmul.f32 %v4872_v28, %v1115_v56  ;;  %v3599_v8 = vpop.f32.mrb[77].mxu0  ;;  %v3703_v9 = vpop.f32.mrb[77].mxu1 }
 0x176   :  { %v479_v16 = vpop.f32.mrb[78].mxu0  ;;  %v1118_v18 = vpop.f32.mrb[78].mxu1 }
 0x177   :  { %v621_v19 = vadd.f32 %v4865_v21, %v566_v2  ;;  %v1248_v27 = vadd.f32 %v4865_v21, %v1199_v62  ;;  %v567_v61 = vmul.f32 %v4872_v28, %v479_v16  ;;  %v1200_v30 = vmul.f32 %v4872_v28, %v1118_v18  ;;  %v3600_v35 = vpop.f32.mrb[79].mxu0  ;;  %v3704_v37 = vpop.f32.mrb[79].mxu1  ;;  %v4033_v16 = vld [vmem:[%s5450_s0 + $0x2fc] sm:$0xff]  }
 0x179   :  { %v670_v39 = vmax.f32 %v621_v19, 0.0  ;;  %v1297_v40 = vmax.f32 %v1248_v27, 0.0  ;;  %v622_v43 = vadd.f32 %v4865_v21, %v567_v61  ;;  %v1249_v45 = vadd.f32 %v4865_v21, %v1200_v30  ;;  %3814 = vmatmul.mubr.msk.bf16.gmra.mrb[184].mxu0 %vm207_vm3, %v4030_v10  ;;  %3918 = vmatmul.mubr.msk.bf16.gmra.mrb[184].mxu1 %vm207_vm3, %v4031_v14  ;;  %v4032_v14 = vld [vmem:[%s5450_s0 + $0x238] sm:$0xff]  }
 0x17a   :  { %3817 = vmatprep.mubr.msk.bf16.mxu0 %vm4044_vm2, %v4042_v0  ;;  %3921 = vmatprep.mubr.msk.bf16.mxu1 %vm4044_vm2, %v4042_v0 }
 0x17b   :  { %v4908_v46 = vmax.f32 %v670_v39, %v1297_v40  ;;  %v671_v48 = vmax.f32 %v622_v43, 0.0  ;;  %v1298_v51 = vmax.f32 %v1249_v45, 0.0 }
 0x17c   :  { %v484_v55 = vpop.f32.mrb[80].mxu0  ;;  %v1123_v56 = vpop.f32.mrb[80].mxu1 }
 0x17d   :  { %v4910_v2 = vmax.f32 %v671_v48, %v1298_v51  ;;  %v568_v62 = vmul.f32 %v4872_v28, %v484_v55  ;;  %v1201_v8 = vmul.f32 %v4872_v28, %v1123_v56  ;;  %v3603_v9 = vpop.f32.mrb[81].mxu0  ;;  %v3707_v10 = vpop.f32.mrb[81].mxu1 }
 0x17e   :  { %v487_v18 = vpop.f32.mrb[82].mxu0  ;;  %v1126_v19 = vpop.f32.mrb[82].mxu1 }
 0x17f   :  { %v623_v27 = vadd.f32 %v4865_v21, %v568_v62  ;;  %v1250_v61 = vadd.f32 %v4865_v21, %v1201_v8  ;;  %v569_v30 = vmul.f32 %v4872_v28, %v487_v18  ;;  %v1202_v35 = vmul.f32 %v4872_v28, %v1126_v19  ;;  %v3604_v37 = vpop.f32.mrb[83].mxu0  ;;  %v3708_v39 = vpop.f32.mrb[83].mxu1  ;;  %v4034_v19 = vld [vmem:[%s5450_s0 + $0x240] sm:$0xff]  }
 0x181   :  { %v672_v40 = vmax.f32 %v623_v27, 0.0  ;;  %v1299_v43 = vmax.f32 %v1250_v61, 0.0  ;;  %v624_v45 = vadd.f32 %v4865_v21, %v569_v30  ;;  %v1251_v48 = vadd.f32 %v4865_v21, %v1202_v35  ;;  %3818 = vmatmul.mubr.msk.bf16.gmra.mrb[188].mxu0 %vm207_vm3, %v4032_v14  ;;  %3922 = vmatmul.mubr.msk.bf16.gmra.mrb[188].mxu1 %vm207_vm3, %v4033_v16  ;;  %v4035_v27 = vld [vmem:[%s5450_s0 + $0x304] sm:$0xff]  }
 0x182   :  { %3821 = vmatprep.mubr.msk.bf16.mxu0 %vm4044_vm2, %v4042_v0  ;;  %3925 = vmatprep.mubr.msk.bf16.mxu1 %vm4044_vm2, %v4042_v0 }
 0x183   :  { %v4932_v51 = vmax.f32 %v672_v40, %v1299_v43  ;;  %v673_v55 = vmax.f32 %v624_v45, 0.0  ;;  %v1300_v56 = vmax.f32 %v1251_v48, 0.0 }
 0x184   :  { %v492_v62 = vpop.f32.mrb[84].mxu0  ;;  %v1131_v8 = vpop.f32.mrb[84].mxu1 }
 0x185   :  { %v4934_v9 = vmax.f32 %v673_v55, %v1300_v56  ;;  %v570_v10 = vmul.f32 %v4872_v28, %v492_v62  ;;  %v1203_v14 = vmul.f32 %v4872_v28, %v1131_v8  ;;  %v3607_v18 = vpop.f32.mrb[85].mxu0  ;;  %v3711_v16 = vpop.f32.mrb[85].mxu1 }
 0x186   :  { %v495_v61 = vpop.f32.mrb[86].mxu0  ;;  %v1134_v30 = vpop.f32.mrb[86].mxu1 }
 0x187   :  { %v625_v35 = vadd.f32 %v4865_v21, %v570_v10  ;;  %v1252_v37 = vadd.f32 %v4865_v21, %v1203_v14  ;;  %v571_v39 = vmul.f32 %v4872_v28, %v495_v61  ;;  %v1204_v40 = vmul.f32 %v4872_v28, %v1134_v30  ;;  %v3608_v43 = vpop.f32.mrb[87].mxu0  ;;  %v3712_v45 = vpop.f32.mrb[87].mxu1 }
 0x189   :  { %v674_v48 = vmax.f32 %v625_v35, 0.0  ;;  %v1301_v55 = vmax.f32 %v1252_v37, 0.0  ;;  %v626_v56 = vadd.f32 %v4865_v21, %v571_v39  ;;  %v1253_v62 = vadd.f32 %v4865_v21, %v1204_v40  ;;  %3822 = vmatmul.mubr.msk.bf16.gmra.mrb[192].mxu0 %vm207_vm3, %v4034_v19  ;;  %3926 = vmatmul.mubr.msk.bf16.gmra.mrb[192].mxu1 %vm207_vm3, %v4035_v27  ;;  %v4036_v37 = vld [vmem:[%s5450_s0 + $0x248] ss:$0 sps:$4 sm:$0xff]  }
 0x18a   :  { %3825 = vmatprep.mubr.msk.bf16.mxu0 %vm4044_vm2, %v4042_v0  ;;  %3929 = vmatprep.mubr.msk.bf16.mxu1 %vm4044_vm2, %v4042_v0  ;;  %v4037_v0 = vld [vmem:[%s5450_s0 + $0x30c] ss:$0 sps:$4 sm:$0xff]  }
 0x18b   :  { %v4956_v8 = vmax.f32 %v674_v48, %v1301_v55  ;;  %v675_v10 = vmax.f32 %v626_v56, 0.0  ;;  %v1302_v14 = vmax.f32 %v1253_v62, 0.0 }
 0x18c   :  { %v500_v18 = vpop.f32.mrb[88].mxu0  ;;  %v1139_v16 = vpop.f32.mrb[88].mxu1 }
 0x18d   :  { %v4958_v61 = vmax.f32 %v675_v10, %v1302_v14  ;;  %v572_v30 = vmul.f32 %v4872_v28, %v500_v18  ;;  %v1205_v19 = vmul.f32 %v4872_v28, %v1139_v16  ;;  %v3611_v35 = vpop.f32.mrb[89].mxu0  ;;  %v3715_v27 = vpop.f32.mrb[89].mxu1 }
 0x18e   :  { %v503_v39 = vpop.f32.mrb[90].mxu0  ;;  %v1142_v40 = vpop.f32.mrb[90].mxu1 }
 0x18f   :  { %5454 = vst [vmem:[#allocation2_spill] sm:$0xff] %v4958_v61  ;;  %v627_v43 = vadd.f32 %v4865_v21, %v572_v30  ;;  %v1254_v45 = vadd.f32 %v4865_v21, %v1205_v19  ;;  %v573_v48 = vmul.f32 %v4872_v28, %v503_v39  ;;  %v1206_v55 = vmul.f32 %v4872_v28, %v1142_v40  ;;  %v3612_v56 = vpop.f32.mrb[91].mxu0  ;;  %v3716_v62 = vpop.f32.mrb[91].mxu1 }
 0x191   :  { %v676_v10 = vmax.f32 %v627_v43, 0.0  ;;  %v1303_v14 = vmax.f32 %v1254_v45, 0.0  ;;  %v628_v18 = vadd.f32 %v4865_v21, %v573_v48  ;;  %v1255_v16 = vadd.f32 %v4865_v21, %v1206_v55  ;;  %3826 = vmatmul.mubr.msk.bf16.gmra.mrb[196].mxu0 %vm207_vm3, %v4036_v37  ;;  %3930 = vmatmul.mubr.msk.bf16.gmra.mrb[196].mxu1 %vm207_vm3, %v4037_v0 }
 0x193   :  { %v4976_v35 = vmax.f32 %v676_v10, %v1303_v14  ;;  %v677_v30 = vmax.f32 %v628_v18, 0.0  ;;  %v1304_v19 = vmax.f32 %v1255_v16, 0.0 }
 0x194   :  { %v508_v27 = vpop.f32.mrb[92].mxu0  ;;  %v1147_v39 = vpop.f32.mrb[92].mxu1 }
 0x195   :  { %5455 = vst [vmem:[#allocation3_spill] sm:$0xff] %v4976_v35  ;;  %v4978_v61 = vmax.f32 %v677_v30, %v1304_v19  ;;  %v574_v40 = vmul.f32 %v4872_v28, %v508_v27  ;;  %v1207_v43 = vmul.f32 %v4872_v28, %v1147_v39  ;;  %v3615_v45 = vpop.f32.mrb[93].mxu0  ;;  %v3719_v48 = vpop.f32.mrb[93].mxu1 }
 0x196   :  { %v511_v56 = vpop.f32.mrb[94].mxu0  ;;  %v1150_v55 = vpop.f32.mrb[94].mxu1 }
 0x197   :  { %5456 = vst [vmem:[#allocation4_spill] sm:$0xff] %v4978_v61  ;;  %v629_v37 = vadd.f32 %v4865_v21, %v574_v40  ;;  %v1256_v0 = vadd.f32 %v4865_v21, %v1207_v43  ;;  %v575_v62 = vmul.f32 %v4872_v28, %v511_v56  ;;  %v1208_v10 = vmul.f32 %v4872_v28, %v1150_v55  ;;  %v3616_v14 = vpop.f32.mrb[95].mxu0  ;;  %v3720_v18 = vpop.f32.mrb[95].mxu1 }
 0x199   :  { %v678_v16 = vmax.f32 %v629_v37, 0.0  ;;  %v1305_v30 = vmax.f32 %v1256_v0, 0.0  ;;  %v630_v19 = vadd.f32 %v4865_v21, %v575_v62  ;;  %v1257_v27 = vadd.f32 %v4865_v21, %v1208_v10 }
 0x19b   :  { %v4988_v39 = vmax.f32 %v678_v16, %v1305_v30  ;;  %v679_v45 = vmax.f32 %v630_v19, 0.0  ;;  %v1306_v48 = vmax.f32 %v1257_v27, 0.0 }
 0x19c   :  { %v516_v61 = vpop.f32.mrb[96].mxu0  ;;  %v1155_v40 = vpop.f32.mrb[96].mxu1 }
 0x19d   :  { %5457 = vst [vmem:[#allocation5_spill] sm:$0xff] %v4988_v39  ;;  %v4990_v35 = vmax.f32 %v679_v45, %v1306_v48  ;;  %v576_v43 = vmul.f32 %v4872_v28, %v516_v61  ;;  %v1209_v56 = vmul.f32 %v4872_v28, %v1155_v40  ;;  %v3619_v55 = vpop.f32.mrb[97].mxu0  ;;  %v3723_v14 = vpop.f32.mrb[97].mxu1 }
 0x19e   :  { %v519_v37 = vpop.f32.mrb[98].mxu0  ;;  %v1158_v0 = vpop.f32.mrb[98].mxu1 }
 0x19f   :  { %5458 = vst [vmem:[#allocation6_spill] sm:$0xff] %v4990_v35  ;;  %v631_v62 = vadd.f32 %v4865_v21, %v576_v43  ;;  %v1258_v10 = vadd.f32 %v4865_v21, %v1209_v56  ;;  %v3620_v18 = vpop.f32.mrb[99].mxu0  ;;  %v3724_v16 = vpop.f32.mrb[99].mxu1 }
 0x1a1   :  { %v680_v30 = vmax.f32 %v631_v62, 0.0  ;;  %v1307_v19 = vmax.f32 %v1258_v10, 0.0 }
 0x1a3   :  { %v4996_v27 = vmax.f32 %v680_v30, %v1307_v19 }
 0x1a4   :  { %v1639_v45 = vpop.f32.mrb[100].mxu0  ;;  %v2266_v48 = vpop.f32.mrb[100].mxu1 }
 0x1a5   :  { %5459 = vst [vmem:[#allocation7_spill] sm:$0xff] %v4996_v27  ;;  %v1837_v61 = vmul.f32 %v4872_v28, %v1639_v45  ;;  %v2464_v40 = vmul.f32 %v4872_v28, %v2266_v48  ;;  %v3731_v55 = vpop.f32.mrb[101].mxu0  ;;  %v3835_v14 = vpop.f32.mrb[101].mxu1 }
 0x1a6   :  { %v1642_v37 = vpop.f32.mrb[102].mxu0  ;;  %v2269_v0 = vpop.f32.mrb[102].mxu1 }
 0x1a7   :  { %v1886_v43 = vadd.f32 %v4865_v21, %v1837_v61  ;;  %v2513_v56 = vadd.f32 %v4865_v21, %v2464_v40  ;;  %v1838_v18 = vmul.f32 %v4872_v28, %v1642_v37  ;;  %v2465_v62 = vmul.f32 %v4872_v28, %v2269_v0  ;;  %v3732_v10 = vpop.f32.mrb[103].mxu0  ;;  %v3836_v16 = vpop.f32.mrb[103].mxu1 }
 0x1a9   :  { %v1935_v30 = vmax.f32 %v1886_v43, 0.0  ;;  %v2562_v19 = vmax.f32 %v2513_v56, 0.0  ;;  %v1887_v45 = vadd.f32 %v4865_v21, %v1838_v18  ;;  %v2514_v48 = vadd.f32 %v4865_v21, %v2465_v62 }
 0x1ab   :  { %v2611_v55 = vmax.f32 %v1935_v30, %v2562_v19  ;;  %v1936_v14 = vmax.f32 %v1887_v45, 0.0  ;;  %v2563_v27 = vmax.f32 %v2514_v48, 0.0 }
 0x1ac   :  { %v1647_v35 = vpop.f32.mrb[104].mxu0  ;;  %v2274_v39 = vpop.f32.mrb[104].mxu1 }
 0x1ad   :  { %v2660_v61 = vmax.f32 %v4442_v20, %v2611_v55  ;;  %v2612_v40 = vmax.f32 %v1936_v14, %v2563_v27  ;;  %v1839_v37 = vmul.f32 %v4872_v28, %v1647_v35  ;;  %v2466_v0 = vmul.f32 %v4872_v28, %v2274_v39  ;;  %v3735_v10 = vpop.f32.mrb[105].mxu0  ;;  %v3839_v16 = vpop.f32.mrb[105].mxu1 }
 0x1ae   :  { %v1650_v43 = vpop.f32.mrb[106].mxu0  ;;  %v2277_v56 = vpop.f32.mrb[106].mxu1 }
 0x1af   :  { %v3360_v18 = vpack.c.bf16 %v2660_v61, %v2660_v61  ;;  %v2661_v62 = vmax.f32 %v4444_v25, %v2612_v40  ;;  %v1888_v30 = vadd.f32 %v4865_v21, %v1839_v37  ;;  %v2515_v19 = vadd.f32 %v4865_v21, %v2466_v0  ;;  %v3736_v45 = vpop.f32.mrb[107].mxu0  ;;  %v3840_v48 = vpop.f32.mrb[107].mxu1 }
 0x1b0   :  { %v1840_v20 = vmul.f32 %v4872_v28, %v1650_v43  ;;  %v2467_v35 = vmul.f32 %v4872_v28, %v2277_v56 }
 0x1b1   :  { %2907 = vst.msk [vmem:[%s5453_s4] sm:$0xf] %vm2906_vm4, %v3360_v18  ;;  %v3361_v39 = vpack.c.bf16 %v2661_v62, %v2661_v62  ;;  %v1937_v27 = vmax.f32 %v1888_v30, 0.0  ;;  %v2564_v55 = vmax.f32 %v2515_v19, 0.0 }
 0x1b2   :  { %v1889_v25 = vadd.f32 %v4865_v21, %v1840_v20  ;;  %v2516_v14 = vadd.f32 %v4865_v21, %v2467_v35 }
 0x1b3   :  { %2908 = vst.msk [vmem:[%s5453_s4 + $0x4] sm:$0xf] %vm2906_vm4, %v3361_v39  ;;  %v2613_v61 = vmax.f32 %v1937_v27, %v2564_v55 }
 0x1b4   :  { %v1938_v40 = vmax.f32 %v1889_v25, 0.0  ;;  %v2565_v37 = vmax.f32 %v2516_v14, 0.0  ;;  %v1655_v0 = vpop.f32.mrb[108].mxu0  ;;  %v2282_v10 = vpop.f32.mrb[108].mxu1 }
 0x1b5   :  { %v2662_v16 = vmax.f32 %v4466_v44, %v2613_v61  ;;  %v1841_v43 = vmul.f32 %v4872_v28, %v1655_v0  ;;  %v2468_v56 = vmul.f32 %v4872_v28, %v2282_v10  ;;  %v3739_v18 = vpop.f32.mrb[109].mxu0  ;;  %v3843_v62 = vpop.f32.mrb[109].mxu1 }
 0x1b6   :  { %v2614_v30 = vmax.f32 %v1938_v40, %v2565_v37  ;;  %v1658_v19 = vpop.f32.mrb[110].mxu0  ;;  %v2285_v45 = vpop.f32.mrb[110].mxu1 }
 0x1b7   :  { %v3362_v48 = vpack.c.bf16 %v2662_v16, %v2662_v16  ;;  %v1890_v20 = vadd.f32 %v4865_v21, %v1841_v43  ;;  %v2517_v35 = vadd.f32 %v4865_v21, %v2468_v56  ;;  %v1842_v39 = vmul.f32 %v4872_v28, %v1658_v19  ;;  %v3740_v27 = vpop.f32.mrb[111].mxu0  ;;  %v3844_v55 = vpop.f32.mrb[111].mxu1 }
 0x1b8   :  { %v2663_v44 = vmax.f32 %v4468_v49, %v2614_v30  ;;  %v2469_v25 = vmul.f32 %v4872_v28, %v2285_v45 }
 0x1b9   :  { %2909 = vst.msk [vmem:[%s5453_s4 + $0x8] sm:$0xf] %vm2906_vm4, %v3362_v48  ;;  %v1939_v14 = vmax.f32 %v1890_v20, 0.0  ;;  %v2566_v61 = vmax.f32 %v2517_v35, 0.0  ;;  %v1891_v40 = vadd.f32 %v4865_v21, %v1842_v39 }
 0x1ba   :  { %v3363_v37 = vpack.c.bf16 %v2663_v44, %v2663_v44  ;;  %v2518_v0 = vadd.f32 %v4865_v21, %v2469_v25 }
 0x1bb   :  { %v2615_v10 = vmax.f32 %v1939_v14, %v2566_v61  ;;  %v1940_v16 = vmax.f32 %v1891_v40, 0.0 }
 0x1bc   :  { %2910 = vst.msk [vmem:[%s5453_s4 + $0xc] sm:$0xf] %vm2906_vm4, %v3363_v37  ;;  %v2567_v49 = vmax.f32 %v2518_v0, 0.0  ;;  %v1663_v43 = vpop.f32.mrb[112].mxu0  ;;  %v2290_v56 = vpop.f32.mrb[112].mxu1 }
 0x1bd   :  { %v2664_v18 = vmax.f32 %v4490_v7, %v2615_v10  ;;  %v1843_v62 = vmul.f32 %v4872_v28, %v1663_v43  ;;  %v2470_v30 = vmul.f32 %v4872_v28, %v2290_v56  ;;  %v3743_v19 = vpop.f32.mrb[113].mxu0  ;;  %v3847_v45 = vpop.f32.mrb[113].mxu1 }
 0x1be   :  { %v2616_v48 = vmax.f32 %v1940_v16, %v2567_v49  ;;  %v1666_v20 = vpop.f32.mrb[114].mxu0  ;;  %v2293_v35 = vpop.f32.mrb[114].mxu1 }
 0x1bf   :  { %v3364_v39 = vpack.c.bf16 %v2664_v18, %v2664_v18  ;;  %v1892_v27 = vadd.f32 %v4865_v21, %v1843_v62  ;;  %v2519_v55 = vadd.f32 %v4865_v21, %v2470_v30  ;;  %v1844_v44 = vmul.f32 %v4872_v28, %v1666_v20  ;;  %v3744_v25 = vpop.f32.mrb[115].mxu0  ;;  %v3848_v14 = vpop.f32.mrb[115].mxu1 }
 0x1c0   :  { %v2665_v7 = vmax.f32 %v4492_v12, %v2616_v48  ;;  %v2471_v61 = vmul.f32 %v4872_v28, %v2293_v35 }
 0x1c1   :  { %2911 = vst.msk [vmem:[%s5453_s4 + $0x10] sm:$0xf] %vm2906_vm4, %v3364_v39  ;;  %v1941_v40 = vmax.f32 %v1892_v27, 0.0  ;;  %v2568_v37 = vmax.f32 %v2519_v55, 0.0  ;;  %v1893_v0 = vadd.f32 %v4865_v21, %v1844_v44 }
 0x1c2   :  { %v3365_v10 = vpack.c.bf16 %v2665_v7, %v2665_v7  ;;  %v2520_v16 = vadd.f32 %v4865_v21, %v2471_v61 }
 0x1c3   :  { %v2617_v49 = vmax.f32 %v1941_v40, %v2568_v37  ;;  %v1942_v43 = vmax.f32 %v1893_v0, 0.0 }
 0x1c4   :  { %2912 = vst.msk [vmem:[%s5453_s4 + $0x14] sm:$0xf] %vm2906_vm4, %v3365_v10  ;;  %v2569_v12 = vmax.f32 %v2520_v16, 0.0  ;;  %v1671_v56 = vpop.f32.mrb[116].mxu0  ;;  %v2298_v18 = vpop.f32.mrb[116].mxu1 }
 0x1c5   :  { %v2666_v62 = vmax.f32 %v4514_v33, %v2617_v49  ;;  %v1845_v30 = vmul.f32 %v4872_v28, %v1671_v56  ;;  %v2472_v19 = vmul.f32 %v4872_v28, %v2298_v18  ;;  %v3747_v45 = vpop.f32.mrb[117].mxu0  ;;  %v3851_v48 = vpop.f32.mrb[117].mxu1 }
 0x1c6   :  { %v2618_v20 = vmax.f32 %v1942_v43, %v2569_v12  ;;  %v1674_v35 = vpop.f32.mrb[118].mxu0  ;;  %v2301_v39 = vpop.f32.mrb[118].mxu1 }
 0x1c7   :  { %v3366_v27 = vpack.c.bf16 %v2666_v62, %v2666_v62  ;;  %v1894_v55 = vadd.f32 %v4865_v21, %v1845_v30  ;;  %v2521_v44 = vadd.f32 %v4865_v21, %v2472_v19  ;;  %v1846_v25 = vmul.f32 %v4872_v28, %v1674_v35  ;;  %v3748_v14 = vpop.f32.mrb[119].mxu0  ;;  %v3852_v7 = vpop.f32.mrb[119].mxu1 }
 0x1c8   :  { %v2667_v33 = vmax.f32 %v4516_v38, %v2618_v20  ;;  %v2473_v61 = vmul.f32 %v4872_v28, %v2301_v39 }
 0x1c9   :  { %2913 = vst.msk [vmem:[%s5453_s4 + $0x18] sm:$0xf] %vm2906_vm4, %v3366_v27  ;;  %v1943_v40 = vmax.f32 %v1894_v55, 0.0  ;;  %v2570_v37 = vmax.f32 %v2521_v44, 0.0  ;;  %v1895_v0 = vadd.f32 %v4865_v21, %v1846_v25 }
 0x1ca   :  { %v3367_v10 = vpack.c.bf16 %v2667_v33, %v2667_v33  ;;  %v2522_v16 = vadd.f32 %v4865_v21, %v2473_v61 }
 0x1cb   :  { %v2619_v49 = vmax.f32 %v1943_v40, %v2570_v37  ;;  %v1944_v43 = vmax.f32 %v1895_v0, 0.0 }
 0x1cc   :  { %2914 = vst.msk [vmem:[%s5453_s4 + $0x1c] sm:$0xf] %vm2906_vm4, %v3367_v10  ;;  %v2571_v38 = vmax.f32 %v2522_v16, 0.0  ;;  %v1679_v12 = vpop.f32.mrb[120].mxu0  ;;  %v2306_v56 = vpop.f32.mrb[120].mxu1 }
 0x1cd   :  { %v2668_v18 = vmax.f32 %v4538_v59, %v2619_v49  ;;  %v1847_v62 = vmul.f32 %v4872_v28, %v1679_v12  ;;  %v2474_v30 = vmul.f32 %v4872_v28, %v2306_v56  ;;  %v3751_v19 = vpop.f32.mrb[121].mxu0  ;;  %v3855_v45 = vpop.f32.mrb[121].mxu1 }
 0x1ce   :  { %v2620_v48 = vmax.f32 %v1944_v43, %v2571_v38  ;;  %v1682_v20 = vpop.f32.mrb[122].mxu0  ;;  %v2309_v35 = vpop.f32.mrb[122].mxu1 }
 0x1cf   :  { %v3368_v39 = vpack.c.bf16 %v2668_v18, %v2668_v18  ;;  %v1896_v27 = vadd.f32 %v4865_v21, %v1847_v62  ;;  %v2523_v55 = vadd.f32 %v4865_v21, %v2474_v30  ;;  %v1848_v44 = vmul.f32 %v4872_v28, %v1682_v20  ;;  %v3752_v25 = vpop.f32.mrb[123].mxu0  ;;  %v3856_v14 = vpop.f32.mrb[123].mxu1 }
 0x1d0   :  { %v2669_v59 = vmax.f32 %v4540_v3, %v2620_v48  ;;  %v2475_v7 = vmul.f32 %v4872_v28, %v2309_v35 }
 0x1d1   :  { %2915 = vst.msk [vmem:[%s5453_s4 + $0x20] sm:$0xf] %vm2906_vm4, %v3368_v39  ;;  %v1945_v33 = vmax.f32 %v1896_v27, 0.0  ;;  %v2572_v61 = vmax.f32 %v2523_v55, 0.0  ;;  %v1897_v40 = vadd.f32 %v4865_v21, %v1848_v44 }
 0x1d2   :  { %v3369_v37 = vpack.c.bf16 %v2669_v59, %v2669_v59  ;;  %v2524_v0 = vadd.f32 %v4865_v21, %v2475_v7 }
 0x1d3   :  { %v2621_v10 = vmax.f32 %v1945_v33, %v2572_v61  ;;  %v1946_v16 = vmax.f32 %v1897_v40, 0.0 }
 0x1d4   :  { %2916 = vst.msk [vmem:[%s5453_s4 + $0x24] sm:$0xf] %vm2906_vm4, %v3369_v37  ;;  %v2573_v3 = vmax.f32 %v2524_v0, 0.0  ;;  %v1687_v49 = vpop.f32.mrb[124].mxu0  ;;  %v2314_v43 = vpop.f32.mrb[124].mxu1 }
 0x1d5   :  { %v2670_v38 = vmax.f32 %v4562_v26, %v2621_v10  ;;  %v1849_v12 = vmul.f32 %v4872_v28, %v1687_v49  ;;  %v2476_v56 = vmul.f32 %v4872_v28, %v2314_v43  ;;  %v3755_v18 = vpop.f32.mrb[125].mxu0  ;;  %v3859_v62 = vpop.f32.mrb[125].mxu1 }
 0x1d6   :  { %v2622_v30 = vmax.f32 %v1946_v16, %v2573_v3  ;;  %v1690_v19 = vpop.f32.mrb[126].mxu0  ;;  %v2317_v45 = vpop.f32.mrb[126].mxu1 }
 0x1d7   :  { %v3370_v48 = vpack.c.bf16 %v2670_v38, %v2670_v38  ;;  %v1898_v20 = vadd.f32 %v4865_v21, %v1849_v12  ;;  %v2525_v35 = vadd.f32 %v4865_v21, %v2476_v56  ;;  %v1850_v39 = vmul.f32 %v4872_v28, %v1690_v19  ;;  %v3756_v27 = vpop.f32.mrb[127].mxu0  ;;  %v3860_v55 = vpop.f32.mrb[127].mxu1 }
 0x1d8   :  { %v2671_v26 = vmax.f32 %v4564_v31, %v2622_v30  ;;  %v2477_v44 = vmul.f32 %v4872_v28, %v2317_v45 }
 0x1d9   :  { %2917 = vst.msk [vmem:[%s5453_s4 + $0x28] sm:$0xf] %vm2906_vm4, %v3370_v48  ;;  %v1947_v25 = vmax.f32 %v1898_v20, 0.0  ;;  %v2574_v14 = vmax.f32 %v2525_v35, 0.0  ;;  %v1899_v59 = vadd.f32 %v4865_v21, %v1850_v39 }
 0x1da   :  { %v3371_v7 = vpack.c.bf16 %v2671_v26, %v2671_v26  ;;  %v2526_v33 = vadd.f32 %v4865_v21, %v2477_v44 }
 0x1db   :  { %v2623_v61 = vmax.f32 %v1947_v25, %v2574_v14  ;;  %v1948_v40 = vmax.f32 %v1899_v59, 0.0 }
 0x1dc   :  { %2918 = vst.msk [vmem:[%s5453_s4 + $0x2c] sm:$0xf] %vm2906_vm4, %v3371_v7  ;;  %v2575_v31 = vmax.f32 %v2526_v33, 0.0  ;;  %v1695_v37 = vpop.f32.mrb[128].mxu0  ;;  %v2322_v0 = vpop.f32.mrb[128].mxu1 }
 0x1dd   :  { %v2672_v10 = vmax.f32 %v4586_v54, %v2623_v61  ;;  %v1851_v16 = vmul.f32 %v4872_v28, %v1695_v37  ;;  %v2478_v3 = vmul.f32 %v4872_v28, %v2322_v0  ;;  %v3759_v49 = vpop.f32.mrb[129].mxu0  ;;  %v3863_v43 = vpop.f32.mrb[129].mxu1 }
 0x1de   :  { %v2624_v38 = vmax.f32 %v1948_v40, %v2575_v31  ;;  %v1698_v12 = vpop.f32.mrb[130].mxu0  ;;  %v2325_v56 = vpop.f32.mrb[130].mxu1 }
 0x1df   :  { %v3372_v18 = vpack.c.bf16 %v2672_v10, %v2672_v10  ;;  %v1900_v62 = vadd.f32 %v4865_v21, %v1851_v16  ;;  %v2527_v30 = vadd.f32 %v4865_v21, %v2478_v3  ;;  %v1852_v19 = vmul.f32 %v4872_v28, %v1698_v12  ;;  %v3760_v45 = vpop.f32.mrb[131].mxu0  ;;  %v3864_v48 = vpop.f32.mrb[131].mxu1 }
 0x1e0   :  { %v2673_v54 = vmax.f32 %v4588_v60, %v2624_v38  ;;  %v2479_v20 = vmul.f32 %v4872_v28, %v2325_v56 }
 0x1e1   :  { %2919 = vst.msk [vmem:[%s5453_s4 + $0x30] sm:$0xf] %vm2906_vm4, %v3372_v18  ;;  %v1949_v35 = vmax.f32 %v1900_v62, 0.0  ;;  %v2576_v39 = vmax.f32 %v2527_v30, 0.0  ;;  %v1901_v27 = vadd.f32 %v4865_v21, %v1852_v19 }
 0x1e2   :  { %v3373_v55 = vpack.c.bf16 %v2673_v54, %v2673_v54  ;;  %v2528_v26 = vadd.f32 %v4865_v21, %v2479_v20 }
 0x1e3   :  { %v2625_v44 = vmax.f32 %v1949_v35, %v2576_v39  ;;  %v1950_v25 = vmax.f32 %v1901_v27, 0.0 }
 0x1e4   :  { %2920 = vst.msk [vmem:[%s5453_s4 + $0x34] sm:$0xf] %vm2906_vm4, %v3373_v55  ;;  %v2577_v60 = vmax.f32 %v2528_v26, 0.0  ;;  %v1703_v14 = vpop.f32.mrb[132].mxu0  ;;  %v2330_v59 = vpop.f32.mrb[132].mxu1 }
 0x1e5   :  { %v2674_v7 = vmax.f32 %v4610_v22, %v2625_v44  ;;  %v1853_v33 = vmul.f32 %v4872_v28, %v1703_v14  ;;  %v2480_v61 = vmul.f32 %v4872_v28, %v2330_v59  ;;  %v3763_v40 = vpop.f32.mrb[133].mxu0  ;;  %v3867_v31 = vpop.f32.mrb[133].mxu1 }
 0x1e6   :  { %v2626_v37 = vmax.f32 %v1950_v25, %v2577_v60  ;;  %v1706_v0 = vpop.f32.mrb[134].mxu0  ;;  %v2333_v10 = vpop.f32.mrb[134].mxu1 }
 0x1e7   :  { %v3374_v16 = vpack.c.bf16 %v2674_v7, %v2674_v7  ;;  %v1902_v3 = vadd.f32 %v4865_v21, %v1853_v33  ;;  %v2529_v49 = vadd.f32 %v4865_v21, %v2480_v61  ;;  %v1854_v43 = vmul.f32 %v4872_v28, %v1706_v0  ;;  %v3764_v38 = vpop.f32.mrb[135].mxu0  ;;  %v3868_v12 = vpop.f32.mrb[135].mxu1 }
 0x1e8   :  { %v2675_v22 = vmax.f32 %v4612_v29, %v2626_v37  ;;  %v2481_v56 = vmul.f32 %v4872_v28, %v2333_v10 }
 0x1e9   :  { %2921 = vst.msk [vmem:[%s5453_s4 + $0x38] sm:$0xf] %vm2906_vm4, %v3374_v16  ;;  %v1951_v18 = vmax.f32 %v1902_v3, 0.0  ;;  %v2578_v62 = vmax.f32 %v2529_v49, 0.0  ;;  %v1903_v30 = vadd.f32 %v4865_v21, %v1854_v43 }
 0x1ea   :  { %v3375_v19 = vpack.c.bf16 %v2675_v22, %v2675_v22  ;;  %v2530_v45 = vadd.f32 %v4865_v21, %v2481_v56 }
 0x1eb   :  { %v2627_v48 = vmax.f32 %v1951_v18, %v2578_v62  ;;  %v1952_v54 = vmax.f32 %v1903_v30, 0.0 }
 0x1ec   :  { %2922 = vst.msk [vmem:[%s5453_s4 + $0x3c] sm:$0xf] %vm2906_vm4, %v3375_v19  ;;  %v2579_v29 = vmax.f32 %v2530_v45, 0.0  ;;  %v1711_v20 = vpop.f32.mrb[136].mxu0  ;;  %v2338_v35 = vpop.f32.mrb[136].mxu1 }
 0x1ed   :  { %v2676_v39 = vmax.f32 %v4634_v53, %v2627_v48  ;;  %v1855_v27 = vmul.f32 %v4872_v28, %v1711_v20  ;;  %v2482_v55 = vmul.f32 %v4872_v28, %v2338_v35  ;;  %v3767_v26 = vpop.f32.mrb[137].mxu0  ;;  %v3871_v44 = vpop.f32.mrb[137].mxu1 }
 0x1ee   :  { %v2628_v25 = vmax.f32 %v1952_v54, %v2579_v29  ;;  %v1714_v60 = vpop.f32.mrb[138].mxu0  ;;  %v2341_v14 = vpop.f32.mrb[138].mxu1 }
 0x1ef   :  { %v3376_v59 = vpack.c.bf16 %v2676_v39, %v2676_v39  ;;  %v1904_v7 = vadd.f32 %v4865_v21, %v1855_v27  ;;  %v2531_v33 = vadd.f32 %v4865_v21, %v2482_v55  ;;  %v1856_v61 = vmul.f32 %v4872_v28, %v1714_v60  ;;  %v3768_v40 = vpop.f32.mrb[139].mxu0  ;;  %v3872_v31 = vpop.f32.mrb[139].mxu1 }
 0x1f0   :  { %v2677_v53 = vmax.f32 %v4636_v63, %v2628_v25  ;;  %v2483_v37 = vmul.f32 %v4872_v28, %v2341_v14 }
 0x1f1   :  { %2923 = vst.msk [vmem:[%s5453_s4 + $0x40] sm:$0xf] %vm2906_vm4, %v3376_v59  ;;  %v1953_v0 = vmax.f32 %v1904_v7, 0.0  ;;  %v2580_v10 = vmax.f32 %v2531_v33, 0.0  ;;  %v1905_v16 = vadd.f32 %v4865_v21, %v1856_v61 }
 0x1f2   :  { %v3377_v3 = vpack.c.bf16 %v2677_v53, %v2677_v53  ;;  %v2532_v49 = vadd.f32 %v4865_v21, %v2483_v37 }
 0x1f3   :  { %v2629_v43 = vmax.f32 %v1953_v0, %v2580_v10  ;;  %v1954_v38 = vmax.f32 %v1905_v16, 0.0 }
 0x1f4   :  { %2924 = vst.msk [vmem:[%s5453_s4 + $0x44] sm:$0xf] %vm2906_vm4, %v3377_v3  ;;  %v2581_v63 = vmax.f32 %v2532_v49, 0.0  ;;  %v1719_v12 = vpop.f32.mrb[140].mxu0  ;;  %v2346_v22 = vpop.f32.mrb[140].mxu1 }
 0x1f5   :  { %v2678_v56 = vmax.f32 %v4658_v24, %v2629_v43  ;;  %v1857_v18 = vmul.f32 %v4872_v28, %v1719_v12  ;;  %v2484_v62 = vmul.f32 %v4872_v28, %v2346_v22  ;;  %v3771_v30 = vpop.f32.mrb[141].mxu0  ;;  %v3875_v19 = vpop.f32.mrb[141].mxu1 }
 0x1f6   :  { %v2630_v45 = vmax.f32 %v1954_v38, %v2581_v63  ;;  %v1722_v48 = vpop.f32.mrb[142].mxu0  ;;  %v2349_v54 = vpop.f32.mrb[142].mxu1 }
 0x1f7   :  { %v3378_v29 = vpack.c.bf16 %v2678_v56, %v2678_v56  ;;  %v1906_v20 = vadd.f32 %v4865_v21, %v1857_v18  ;;  %v2533_v35 = vadd.f32 %v4865_v21, %v2484_v62  ;;  %v1858_v39 = vmul.f32 %v4872_v28, %v1722_v48  ;;  %v3772_v27 = vpop.f32.mrb[143].mxu0  ;;  %v3876_v55 = vpop.f32.mrb[143].mxu1 }
 0x1f8   :  { %v2679_v24 = vmax.f32 %v4660_v34, %v2630_v45  ;;  %v2485_v26 = vmul.f32 %v4872_v28, %v2349_v54 }
 0x1f9   :  { %2925 = vst.msk [vmem:[%s5453_s4 + $0x48] sm:$0xf] %vm2906_vm4, %v3378_v29  ;;  %v1955_v44 = vmax.f32 %v1906_v20, 0.0  ;;  %v2582_v25 = vmax.f32 %v2533_v35, 0.0  ;;  %v1907_v60 = vadd.f32 %v4865_v21, %v1858_v39 }
 0x1fa   :  { %v3379_v14 = vpack.c.bf16 %v2679_v24, %v2679_v24  ;;  %v2534_v59 = vadd.f32 %v4865_v21, %v2485_v26 }
 0x1fb   :  { %v2631_v7 = vmax.f32 %v1955_v44, %v2582_v25  ;;  %v1956_v33 = vmax.f32 %v1907_v60, 0.0 }
 0x1fc   :  { %2926 = vst.msk [vmem:[%s5453_s4 + $0x4c] sm:$0xf] %vm2906_vm4, %v3379_v14  ;;  %v2583_v34 = vmax.f32 %v2534_v59, 0.0  ;;  %v1727_v61 = vpop.f32.mrb[144].mxu0  ;;  %v2354_v40 = vpop.f32.mrb[144].mxu1 }
 0x1fd   :  { %v2680_v31 = vmax.f32 %v4682_v58, %v2631_v7  ;;  %v1859_v53 = vmul.f32 %v4872_v28, %v1727_v61  ;;  %v2486_v37 = vmul.f32 %v4872_v28, %v2354_v40  ;;  %v3775_v0 = vpop.f32.mrb[145].mxu0  ;;  %v3879_v10 = vpop.f32.mrb[145].mxu1 }
 0x1fe   :  { %v2632_v16 = vmax.f32 %v1956_v33, %v2583_v34  ;;  %v1730_v3 = vpop.f32.mrb[146].mxu0  ;;  %v2357_v49 = vpop.f32.mrb[146].mxu1 }
 0x1ff   :  { %v3380_v43 = vpack.c.bf16 %v2680_v31, %v2680_v31  ;;  %v1908_v38 = vadd.f32 %v4865_v21, %v1859_v53  ;;  %v2535_v63 = vadd.f32 %v4865_v21, %v2486_v37  ;;  %v1860_v12 = vmul.f32 %v4872_v28, %v1730_v3  ;;  %v3776_v22 = vpop.f32.mrb[147].mxu0  ;;  %v3880_v56 = vpop.f32.mrb[147].mxu1  ;;  %v5219_v37 = vld [vmem:[%s5452_s3] ss:$0 sm:$0xff] }
 0x200   :  { %v2681_v58 = vmax.f32 %v4684_v6, %v2632_v16  ;;  %v2487_v18 = vmul.f32 %v4872_v28, %v2357_v49 }
 0x201   :  { %2927 = vst.msk [vmem:[%s5453_s4 + $0x50] sm:$0xf] %vm2906_vm4, %v3380_v43  ;;  %v1957_v62 = vmax.f32 %v1908_v38, 0.0  ;;  %v2584_v30 = vmax.f32 %v2535_v63, 0.0  ;;  %v1909_v19 = vadd.f32 %v4865_v21, %v1860_v12  ;;  %v5231_v38 = vld [vmem:[%s5451_s2] ss:$0 sm:$0xff] }
 0x202   :  { %v3381_v45 = vpack.c.bf16 %v2681_v58, %v2681_v58  ;;  %v2536_v48 = vadd.f32 %v4865_v21, %v2487_v18 }
 0x203   :  { %v2633_v54 = vmax.f32 %v1957_v62, %v2584_v30  ;;  %v1958_v29 = vmax.f32 %v1909_v19, 0.0 }
 0x204   :  { %2928 = vst.msk [vmem:[%s5453_s4 + $0x54] sm:$0xf] %vm2906_vm4, %v3381_v45  ;;  %v2585_v6 = vmax.f32 %v2536_v48, 0.0  ;;  %v1735_v20 = vpop.f32.mrb[148].mxu0  ;;  %v2362_v35 = vpop.f32.mrb[148].mxu1 }
 0x205   :  { %v2682_v39 = vmax.f32 %v4706_v36, %v2633_v54  ;;  %v1861_v27 = vmul.f32 %v4872_v28, %v1735_v20  ;;  %v2488_v55 = vmul.f32 %v4872_v28, %v2362_v35  ;;  %v3779_v24 = vpop.f32.mrb[149].mxu0  ;;  %v3883_v26 = vpop.f32.mrb[149].mxu1 }
 0x206   :  { %v2634_v44 = vmax.f32 %v1958_v29, %v2585_v6  ;;  %v1738_v25 = vpop.f32.mrb[150].mxu0  ;;  %v2365_v60 = vpop.f32.mrb[150].mxu1 }
 0x207   :  { %v3382_v14 = vpack.c.bf16 %v2682_v39, %v2682_v39  ;;  %v1910_v59 = vadd.f32 %v4865_v21, %v1861_v27  ;;  %v2537_v7 = vadd.f32 %v4865_v21, %v2488_v55  ;;  %v1862_v33 = vmul.f32 %v4872_v28, %v1738_v25  ;;  %v3780_v34 = vpop.f32.mrb[151].mxu0  ;;  %v3884_v61 = vpop.f32.mrb[151].mxu1 }
 0x208   :  { %v2683_v36 = vmax.f32 %v4708_v42, %v2634_v44  ;;  %v2489_v40 = vmul.f32 %v4872_v28, %v2365_v60 }
 0x209   :  { %2929 = vst.msk [vmem:[%s5453_s4 + $0x58] sm:$0xf] %vm2906_vm4, %v3382_v14  ;;  %v1959_v31 = vmax.f32 %v1910_v59, 0.0  ;;  %v2586_v53 = vmax.f32 %v2537_v7, 0.0  ;;  %v1911_v21 = vadd.f32 %v5219_v37, %v1862_v33 }
 0x20a   :  { %v3383_v0 = vpack.c.bf16 %v2683_v36, %v2683_v36  ;;  %v2538_v10 = vadd.f32 %v5219_v37, %v2489_v40 }
 0x20b   :  { %v2635_v42 = vmax.f32 %v1959_v31, %v2586_v53  ;;  %v1960_v16 = vmax.f32 %v1911_v21, 0.0 }
 0x20c   :  { %2930 = vst.msk [vmem:[%s5453_s4 + $0x5c] sm:$0xf] %vm2906_vm4, %v3383_v0  ;;  %v2587_v28 = vmax.f32 %v2538_v10, 0.0  ;;  %v1743_v3 = vpop.f32.mrb[152].mxu0  ;;  %v2370_v49 = vpop.f32.mrb[152].mxu1 }
 0x20d   :  { %v2684_v43 = vmax.f32 %v4730_v11, %v2635_v42  ;;  %v1863_v63 = vmul.f32 %v5231_v38, %v1743_v3  ;;  %v2490_v12 = vmul.f32 %v5231_v38, %v2370_v49  ;;  %v3783_v22 = vpop.f32.mrb[153].mxu0  ;;  %v3887_v56 = vpop.f32.mrb[153].mxu1 }
 0x20e   :  { %v2636_v58 = vmax.f32 %v1960_v16, %v2587_v28  ;;  %v1746_v18 = vpop.f32.mrb[154].mxu0  ;;  %v2373_v62 = vpop.f32.mrb[154].mxu1 }
 0x20f   :  { %v3384_v30 = vpack.c.bf16 %v2684_v43, %v2684_v43  ;;  %v1912_v19 = vadd.f32 %v5219_v37, %v1863_v63  ;;  %v2539_v45 = vadd.f32 %v5219_v37, %v2490_v12  ;;  %v1864_v11 = vmul.f32 %v5231_v38, %v1746_v18  ;;  %v3784_v48 = vpop.f32.mrb[155].mxu0  ;;  %v3888_v54 = vpop.f32.mrb[155].mxu1 }
 0x210   :  { %v2685_v29 = vmax.f32 %v4732_v17, %v2636_v58  ;;  %v2491_v6 = vmul.f32 %v5231_v38, %v2373_v62 }
 0x211   :  { %2931 = vst.msk [vmem:[%s5453_s4 + $0x60] sm:$0xf] %vm2906_vm4, %v3384_v30  ;;  %v1961_v20 = vmax.f32 %v1912_v19, 0.0  ;;  %v2588_v35 = vmax.f32 %v2539_v45, 0.0  ;;  %v1913_v39 = vadd.f32 %v5219_v37, %v1864_v11 }
 0x212   :  { %v3385_v27 = vpack.c.bf16 %v2685_v29, %v2685_v29  ;;  %v2540_v55 = vadd.f32 %v5219_v37, %v2491_v6 }
 0x213   :  { %v2637_v24 = vmax.f32 %v1961_v20, %v2588_v35  ;;  %v1962_v26 = vmax.f32 %v1913_v39, 0.0 }
 0x214   :  { %2932 = vst.msk [vmem:[%s5453_s4 + $0x64] sm:$0xf] %vm2906_vm4, %v3385_v27  ;;  %v2589_v17 = vmax.f32 %v2540_v55, 0.0  ;;  %v1751_v44 = vpop.f32.mrb[156].mxu0  ;;  %v2378_v25 = vpop.f32.mrb[156].mxu1 }
 0x215   :  { %v2686_v60 = vmax.f32 %v4754_v50, %v2637_v24  ;;  %v1865_v14 = vmul.f32 %v5231_v38, %v1751_v44  ;;  %v2492_v59 = vmul.f32 %v5231_v38, %v2378_v25  ;;  %v3787_v7 = vpop.f32.mrb[157].mxu0  ;;  %v3891_v33 = vpop.f32.mrb[157].mxu1 }
 0x216   :  { %v2638_v34 = vmax.f32 %v1962_v26, %v2589_v17  ;;  %v1754_v61 = vpop.f32.mrb[158].mxu0  ;;  %v2381_v36 = vpop.f32.mrb[158].mxu1 }
 0x217   :  { %v3386_v40 = vpack.c.bf16 %v2686_v60, %v2686_v60  ;;  %v1914_v31 = vadd.f32 %v5219_v37, %v1865_v14  ;;  %v2541_v53 = vadd.f32 %v5219_v37, %v2492_v59  ;;  %v1866_v21 = vmul.f32 %v5231_v38, %v1754_v61  ;;  %v3788_v0 = vpop.f32.mrb[159].mxu0  ;;  %v3892_v10 = vpop.f32.mrb[159].mxu1 }
 0x218   :  { %v2687_v50 = vmax.f32 %v4756_v57, %v2638_v34  ;;  %v2493_v42 = vmul.f32 %v5231_v38, %v2381_v36 }
 0x219   :  { %2933 = vst.msk [vmem:[%s5453_s4 + $0x68] sm:$0xf] %vm2906_vm4, %v3386_v40  ;;  %v1963_v16 = vmax.f32 %v1914_v31, 0.0  ;;  %v2590_v28 = vmax.f32 %v2541_v53, 0.0  ;;  %v1915_v3 = vadd.f32 %v5219_v37, %v1866_v21 }
 0x21a   :  { %v3387_v49 = vpack.c.bf16 %v2687_v50, %v2687_v50  ;;  %v2542_v43 = vadd.f32 %v5219_v37, %v2493_v42 }
 0x21b   :  { %v2639_v63 = vmax.f32 %v1963_v16, %v2590_v28  ;;  %v1964_v12 = vmax.f32 %v1915_v3, 0.0 }
 0x21c   :  { %2934 = vst.msk [vmem:[%s5453_s4 + $0x6c] sm:$0xf] %vm2906_vm4, %v3387_v49  ;;  %v2591_v57 = vmax.f32 %v2542_v43, 0.0  ;;  %v1759_v22 = vpop.f32.mrb[160].mxu0  ;;  %v2386_v56 = vpop.f32.mrb[160].mxu1 }
 0x21d   :  { %v2688_v58 = vmax.f32 %v4778_v32, %v2639_v63  ;;  %v1867_v18 = vmul.f32 %v5231_v38, %v1759_v22  ;;  %v2494_v62 = vmul.f32 %v5231_v38, %v2386_v56  ;;  %v3791_v30 = vpop.f32.mrb[161].mxu0  ;;  %v3895_v19 = vpop.f32.mrb[161].mxu1 }
 0x21e   :  { %v2640_v45 = vmax.f32 %v1964_v12, %v2591_v57  ;;  %v1762_v11 = vpop.f32.mrb[162].mxu0  ;;  %v2389_v48 = vpop.f32.mrb[162].mxu1 }
 0x21f   :  { %v3388_v54 = vpack.c.bf16 %v2688_v58, %v2688_v58  ;;  %v1916_v29 = vadd.f32 %v5219_v37, %v1867_v18  ;;  %v2543_v6 = vadd.f32 %v5219_v37, %v2494_v62  ;;  %v1868_v20 = vmul.f32 %v5231_v38, %v1762_v11  ;;  %v3792_v35 = vpop.f32.mrb[163].mxu0  ;;  %v3896_v39 = vpop.f32.mrb[163].mxu1 }
 0x220   :  { %v2689_v32 = vmax.f32 %v4780_v41, %v2640_v45  ;;  %v2495_v27 = vmul.f32 %v5231_v38, %v2389_v48 }
 0x221   :  { %2935 = vst.msk [vmem:[%s5453_s4 + $0x70] sm:$0xf] %vm2906_vm4, %v3388_v54  ;;  %v1965_v55 = vmax.f32 %v1916_v29, 0.0  ;;  %v2592_v24 = vmax.f32 %v2543_v6, 0.0  ;;  %v1917_v26 = vadd.f32 %v5219_v37, %v1868_v20 }
 0x222   :  { %v3389_v17 = vpack.c.bf16 %v2689_v32, %v2689_v32  ;;  %v2544_v44 = vadd.f32 %v5219_v37, %v2495_v27 }
 0x223   :  { %v2641_v25 = vmax.f32 %v1965_v55, %v2592_v24  ;;  %v1966_v60 = vmax.f32 %v1917_v26, 0.0 }
 0x224   :  { %2936 = vst.msk [vmem:[%s5453_s4 + $0x74] sm:$0xf] %vm2906_vm4, %v3389_v17  ;;  %v2593_v41 = vmax.f32 %v2544_v44, 0.0  ;;  %v1767_v14 = vpop.f32.mrb[164].mxu0  ;;  %v2394_v59 = vpop.f32.mrb[164].mxu1 }
 0x225   :  { %v2690_v7 = vmax.f32 %v4802_v15, %v2641_v25  ;;  %v1869_v33 = vmul.f32 %v5231_v38, %v1767_v14  ;;  %v2496_v34 = vmul.f32 %v5231_v38, %v2394_v59  ;;  %v3795_v61 = vpop.f32.mrb[165].mxu0  ;;  %v3899_v36 = vpop.f32.mrb[165].mxu1 }
 0x226   :  { %v2642_v40 = vmax.f32 %v1966_v60, %v2593_v41  ;;  %v1770_v31 = vpop.f32.mrb[166].mxu0  ;;  %v2397_v53 = vpop.f32.mrb[166].mxu1 }
 0x227   :  { %v3390_v21 = vpack.c.bf16 %v2690_v7, %v2690_v7  ;;  %v1918_v0 = vadd.f32 %v5219_v37, %v1869_v33  ;;  %v2545_v10 = vadd.f32 %v5219_v37, %v2496_v34  ;;  %v1870_v50 = vmul.f32 %v5231_v38, %v1770_v31  ;;  %v3796_v42 = vpop.f32.mrb[167].mxu0  ;;  %v3900_v16 = vpop.f32.mrb[167].mxu1 }
 0x228   :  { %v2691_v15 = vmax.f32 %v4804_v23, %v2642_v40  ;;  %v2497_v28 = vmul.f32 %v5231_v38, %v2397_v53 }
 0x229   :  { %2937 = vst.msk [vmem:[%s5453_s4 + $0x78] sm:$0xf] %vm2906_vm4, %v3390_v21  ;;  %v1967_v3 = vmax.f32 %v1918_v0, 0.0  ;;  %v2594_v49 = vmax.f32 %v2545_v10, 0.0  ;;  %v1919_v43 = vadd.f32 %v5219_v37, %v1870_v50 }
 0x22a   :  { %v3391_v63 = vpack.c.bf16 %v2691_v15, %v2691_v15  ;;  %v2546_v12 = vadd.f32 %v5219_v37, %v2497_v28 }
 0x22b   :  { %v2643_v57 = vmax.f32 %v1967_v3, %v2594_v49  ;;  %v1968_v22 = vmax.f32 %v1919_v43, 0.0 }
 0x22c   :  { %2938 = vst.msk [vmem:[%s5453_s4 + $0x7c] sm:$0xf] %vm2906_vm4, %v3391_v63  ;;  %v2595_v23 = vmax.f32 %v2546_v12, 0.0  ;;  %v1775_v56 = vpop.f32.mrb[168].mxu0  ;;  %v2402_v58 = vpop.f32.mrb[168].mxu1 }
 0x22d   :  { %v2692_v18 = vmax.f32 %v4826_v4, %v2643_v57  ;;  %v1871_v62 = vmul.f32 %v5231_v38, %v1775_v56  ;;  %v2498_v30 = vmul.f32 %v5231_v38, %v2402_v58  ;;  %v3799_v19 = vpop.f32.mrb[169].mxu0  ;;  %v3903_v45 = vpop.f32.mrb[169].mxu1 }
 0x22e   :  { %v2644_v11 = vmax.f32 %v1968_v22, %v2595_v23  ;;  %v1778_v48 = vpop.f32.mrb[170].mxu0  ;;  %v2405_v54 = vpop.f32.mrb[170].mxu1 }
 0x22f   :  { %v3392_v29 = vpack.c.bf16 %v2692_v18, %v2692_v18  ;;  %v1920_v6 = vadd.f32 %v5219_v37, %v1871_v62  ;;  %v2547_v20 = vadd.f32 %v5219_v37, %v2498_v30  ;;  %v1872_v35 = vmul.f32 %v5231_v38, %v1778_v48  ;;  %v3800_v39 = vpop.f32.mrb[171].mxu0  ;;  %v3904_v32 = vpop.f32.mrb[171].mxu1 }
 0x230   :  { %v2693_v4 = vmax.f32 %v4828_v13, %v2644_v11  ;;  %v2499_v27 = vmul.f32 %v5231_v38, %v2405_v54 }
 0x231   :  { %2939 = vst.msk [vmem:[%s5453_s4 + $0x80] sm:$0xf] %vm2906_vm4, %v3392_v29  ;;  %v1969_v55 = vmax.f32 %v1920_v6, 0.0  ;;  %v2596_v24 = vmax.f32 %v2547_v20, 0.0  ;;  %v1921_v26 = vadd.f32 %v5219_v37, %v1872_v35 }
 0x232   :  { %v3393_v17 = vpack.c.bf16 %v2693_v4, %v2693_v4  ;;  %v2548_v44 = vadd.f32 %v5219_v37, %v2499_v27 }
 0x233   :  { %v2645_v25 = vmax.f32 %v1969_v55, %v2596_v24  ;;  %v1970_v60 = vmax.f32 %v1921_v26, 0.0 }
 0x234   :  { %2940 = vst.msk [vmem:[%s5453_s4 + $0x84] sm:$0xf] %vm2906_vm4, %v3393_v17  ;;  %v2597_v13 = vmax.f32 %v2548_v44, 0.0  ;;  %v1783_v41 = vpop.f32.mrb[172].mxu0  ;;  %v2410_v14 = vpop.f32.mrb[172].mxu1 }
 0x235   :  { %v2694_v59 = vmax.f32 %v4850_v52, %v2645_v25  ;;  %v1873_v7 = vmul.f32 %v5231_v38, %v1783_v41  ;;  %v2500_v33 = vmul.f32 %v5231_v38, %v2410_v14  ;;  %v3803_v34 = vpop.f32.mrb[173].mxu0  ;;  %v3907_v61 = vpop.f32.mrb[173].mxu1 }
 0x236   :  { %v2646_v36 = vmax.f32 %v1970_v60, %v2597_v13  ;;  %v1786_v40 = vpop.f32.mrb[174].mxu0  ;;  %v2413_v31 = vpop.f32.mrb[174].mxu1 }
 0x237   :  { %v3394_v53 = vpack.c.bf16 %v2694_v59, %v2694_v59  ;;  %v1922_v21 = vadd.f32 %v5219_v37, %v1873_v7  ;;  %v2549_v0 = vadd.f32 %v5219_v37, %v2500_v33  ;;  %v1874_v10 = vmul.f32 %v5231_v38, %v1786_v40  ;;  %v3804_v50 = vpop.f32.mrb[175].mxu0  ;;  %v3908_v42 = vpop.f32.mrb[175].mxu1 }
 0x238   :  { %v2695_v52 = vmax.f32 %v4852_v5, %v2646_v36  ;;  %v2501_v16 = vmul.f32 %v5231_v38, %v2413_v31 }
 0x239   :  { %2941 = vst.msk [vmem:[%s5453_s4 + $0x88] sm:$0xf] %vm2906_vm4, %v3394_v53  ;;  %v1971_v15 = vmax.f32 %v1922_v21, 0.0  ;;  %v2598_v28 = vmax.f32 %v2549_v0, 0.0  ;;  %v1923_v3 = vadd.f32 %v5219_v37, %v1874_v10 }
 0x23a   :  { %v3395_v49 = vpack.c.bf16 %v2695_v52, %v2695_v52  ;;  %v2550_v43 = vadd.f32 %v5219_v37, %v2501_v16 }
 0x23b   :  { %v2647_v63 = vmax.f32 %v1971_v15, %v2598_v28  ;;  %v1972_v12 = vmax.f32 %v1923_v3, 0.0 }
 0x23c   :  { %2942 = vst.msk [vmem:[%s5453_s4 + $0x8c] sm:$0xf] %vm2906_vm4, %v3395_v49  ;;  %v2599_v5 = vmax.f32 %v2550_v43, 0.0  ;;  %v1791_v57 = vpop.f32.mrb[176].mxu0  ;;  %v2418_v22 = vpop.f32.mrb[176].mxu1 }
 0x23d   :  { %v2696_v23 = vmax.f32 %v4884_v47, %v2647_v63  ;;  %v1875_v56 = vmul.f32 %v5231_v38, %v1791_v57  ;;  %v2502_v58 = vmul.f32 %v5231_v38, %v2418_v22  ;;  %v3807_v18 = vpop.f32.mrb[177].mxu0  ;;  %v3911_v62 = vpop.f32.mrb[177].mxu1 }
 0x23e   :  { %v2648_v30 = vmax.f32 %v1972_v12, %v2599_v5  ;;  %v1794_v19 = vpop.f32.mrb[178].mxu0  ;;  %v2421_v45 = vpop.f32.mrb[178].mxu1 }
 0x23f   :  { %v3396_v11 = vpack.c.bf16 %v2696_v23, %v2696_v23  ;;  %v1924_v48 = vadd.f32 %v5219_v37, %v1875_v56  ;;  %v2551_v54 = vadd.f32 %v5219_v37, %v2502_v58  ;;  %v1876_v29 = vmul.f32 %v5231_v38, %v1794_v19  ;;  %v3808_v6 = vpop.f32.mrb[179].mxu0  ;;  %v3912_v20 = vpop.f32.mrb[179].mxu1 }
 0x240   :  { %v2697_v47 = vmax.f32 %v4886_v1, %v2648_v30  ;;  %v2503_v35 = vmul.f32 %v5231_v38, %v2421_v45 }
 0x241   :  { %2943 = vst.msk [vmem:[%s5453_s4 + $0x90] sm:$0xf] %vm2906_vm4, %v3396_v11  ;;  %v1973_v39 = vmax.f32 %v1924_v48, 0.0  ;;  %v2600_v32 = vmax.f32 %v2551_v54, 0.0  ;;  %v1925_v4 = vadd.f32 %v5219_v37, %v1876_v29 }
 0x242   :  { %v3397_v27 = vpack.c.bf16 %v2697_v47, %v2697_v47  ;;  %v2552_v55 = vadd.f32 %v5219_v37, %v2503_v35 }
 0x243   :  { %v2649_v24 = vmax.f32 %v1973_v39, %v2600_v32  ;;  %v1974_v26 = vmax.f32 %v1925_v4, 0.0 }
 0x244   :  { %2944 = vst.msk [vmem:[%s5453_s4 + $0x94] sm:$0xf] %vm2906_vm4, %v3397_v27  ;;  %v2601_v1 = vmax.f32 %v2552_v55, 0.0  ;;  %v1799_v17 = vpop.f32.mrb[180].mxu0  ;;  %v2426_v44 = vpop.f32.mrb[180].mxu1 }
 0x245   :  { %v2698_v25 = vmax.f32 %v4908_v46, %v2649_v24  ;;  %v1877_v60 = vmul.f32 %v5231_v38, %v1799_v17  ;;  %v2504_v13 = vmul.f32 %v5231_v38, %v2426_v44  ;;  %v3811_v41 = vpop.f32.mrb[181].mxu0  ;;  %v3915_v14 = vpop.f32.mrb[181].mxu1 }
 0x246   :  { %v2650_v59 = vmax.f32 %v1974_v26, %v2601_v1  ;;  %v1802_v7 = vpop.f32.mrb[182].mxu0  ;;  %v2429_v33 = vpop.f32.mrb[182].mxu1 }
 0x247   :  { %v3398_v34 = vpack.c.bf16 %v2698_v25, %v2698_v25  ;;  %v1926_v61 = vadd.f32 %v5219_v37, %v1877_v60  ;;  %v2553_v36 = vadd.f32 %v5219_v37, %v2504_v13  ;;  %v1878_v40 = vmul.f32 %v5231_v38, %v1802_v7  ;;  %v3812_v31 = vpop.f32.mrb[183].mxu0  ;;  %v3916_v53 = vpop.f32.mrb[183].mxu1 }
 0x248   :  { %v2699_v46 = vmax.f32 %v4910_v2, %v2650_v59  ;;  %v2505_v21 = vmul.f32 %v5231_v38, %v2429_v33  ;;  %v5460_v59 = vld [vmem:[#allocation2_spill] sm:$0xff] }
 0x249   :  { %2945 = vst.msk [vmem:[%s5453_s4 + $0x98] sm:$0xf] %vm2906_vm4, %v3398_v34  ;;  %v1975_v0 = vmax.f32 %v1926_v61, 0.0  ;;  %v2602_v10 = vmax.f32 %v2553_v36, 0.0  ;;  %v1927_v50 = vadd.f32 %v5219_v37, %v1878_v40 }
 0x24a   :  { %v3399_v42 = vpack.c.bf16 %v2699_v46, %v2699_v46  ;;  %v2554_v52 = vadd.f32 %v5219_v37, %v2505_v21 }
 0x24b   :  { %v2651_v16 = vmax.f32 %v1975_v0, %v2602_v10  ;;  %v1976_v15 = vmax.f32 %v1927_v50, 0.0  ;;  %v5461_v10 = vld [vmem:[#allocation3_spill] sm:$0xff] }
 0x24c   :  { %2946 = vst.msk [vmem:[%s5453_s4 + $0x9c] sm:$0xf] %vm2906_vm4, %v3399_v42  ;;  %v2603_v2 = vmax.f32 %v2554_v52, 0.0  ;;  %v1807_v28 = vpop.f32.mrb[184].mxu0  ;;  %v2434_v3 = vpop.f32.mrb[184].mxu1 }
 0x24d   :  { %v2700_v49 = vmax.f32 %v4932_v51, %v2651_v16  ;;  %v1879_v43 = vmul.f32 %v5231_v38, %v1807_v28  ;;  %v2506_v63 = vmul.f32 %v5231_v38, %v2434_v3  ;;  %v3815_v12 = vpop.f32.mrb[185].mxu0  ;;  %v3919_v5 = vpop.f32.mrb[185].mxu1 }
 0x24e   :  { %v2652_v57 = vmax.f32 %v1976_v15, %v2603_v2  ;;  %v1810_v22 = vpop.f32.mrb[186].mxu0  ;;  %v2437_v23 = vpop.f32.mrb[186].mxu1 }
 0x24f   :  { %v3400_v56 = vpack.c.bf16 %v2700_v49, %v2700_v49  ;;  %v1928_v58 = vadd.f32 %v5219_v37, %v1879_v43  ;;  %v2555_v18 = vadd.f32 %v5219_v37, %v2506_v63  ;;  %v1880_v62 = vmul.f32 %v5231_v38, %v1810_v22  ;;  %v3816_v30 = vpop.f32.mrb[187].mxu0  ;;  %v3920_v19 = vpop.f32.mrb[187].mxu1  ;;  %v5462_v22 = vld [vmem:[#allocation4_spill] sm:$0xff] }
 0x250   :  { %v2701_v51 = vmax.f32 %v4934_v9, %v2652_v57  ;;  %v2507_v45 = vmul.f32 %v5231_v38, %v2437_v23 }
 0x251   :  { %2947 = vst.msk [vmem:[%s5453_s4 + $0xa0] sm:$0xf] %vm2906_vm4, %v3400_v56  ;;  %v1977_v11 = vmax.f32 %v1928_v58, 0.0  ;;  %v2604_v48 = vmax.f32 %v2555_v18, 0.0  ;;  %v1929_v54 = vadd.f32 %v5219_v37, %v1880_v62 }
 0x252   :  { %v3401_v29 = vpack.c.bf16 %v2701_v51, %v2701_v51  ;;  %v2556_v6 = vadd.f32 %v5219_v37, %v2507_v45 }
 0x253   :  { %v2653_v20 = vmax.f32 %v1977_v11, %v2604_v48  ;;  %v1978_v47 = vmax.f32 %v1929_v54, 0.0 }
 0x254   :  { %2948 = vst.msk [vmem:[%s5453_s4 + $0xa4] sm:$0xf] %vm2906_vm4, %v3401_v29  ;;  %v2605_v9 = vmax.f32 %v2556_v6, 0.0  ;;  %v1815_v35 = vpop.f32.mrb[188].mxu0  ;;  %v2442_v39 = vpop.f32.mrb[188].mxu1  ;;  %v5463_v29 = vld [vmem:[#allocation5_spill] sm:$0xff] }
 0x255   :  { %v2702_v32 = vmax.f32 %v4956_v8, %v2653_v20  ;;  %v1881_v4 = vmul.f32 %v5231_v38, %v1815_v35  ;;  %v2508_v27 = vmul.f32 %v5231_v38, %v2442_v39  ;;  %v3819_v55 = vpop.f32.mrb[189].mxu0  ;;  %v3923_v24 = vpop.f32.mrb[189].mxu1 }
 0x256   :  { %v2654_v26 = vmax.f32 %v1978_v47, %v2605_v9  ;;  %v1818_v1 = vpop.f32.mrb[190].mxu0  ;;  %v2445_v17 = vpop.f32.mrb[190].mxu1 }
 0x257   :  { %v3402_v44 = vpack.c.bf16 %v2702_v32, %v2702_v32  ;;  %v1930_v25 = vadd.f32 %v5219_v37, %v1881_v4  ;;  %v2557_v60 = vadd.f32 %v5219_v37, %v2508_v27  ;;  %v1882_v13 = vmul.f32 %v5231_v38, %v1818_v1  ;;  %v3820_v41 = vpop.f32.mrb[191].mxu0  ;;  %v3924_v14 = vpop.f32.mrb[191].mxu1 }
 0x258   :  { %v2703_v8 = vmax.f32 %v5460_v59, %v2654_v26  ;;  %v2509_v7 = vmul.f32 %v5231_v38, %v2445_v17  ;;  %v5464_v17 = vld [vmem:[#allocation6_spill] sm:$0xff]  ;;  %v5465_v41 = vld [vmem:[#allocation7_spill] sm:$0xff] }
 0x259   :  { %2949 = vst.msk [vmem:[%s5453_s4 + $0xa8] sm:$0xf] %vm2906_vm4, %v3402_v44  ;;  %v1979_v33 = vmax.f32 %v1930_v25, 0.0  ;;  %v2606_v34 = vmax.f32 %v2557_v60, 0.0  ;;  %v1931_v61 = vadd.f32 %v5219_v37, %v1882_v13 }
 0x25a   :  { %v3403_v36 = vpack.c.bf16 %v2703_v8, %v2703_v8  ;;  %v2558_v40 = vadd.f32 %v5219_v37, %v2509_v7 }
 0x25b   :  { %v2655_v31 = vmax.f32 %v1979_v33, %v2606_v34  ;;  %v1980_v53 = vmax.f32 %v1931_v61, 0.0 }
 0x25c   :  { %2950 = vst.msk [vmem:[%s5453_s4 + $0xac] sm:$0xf] %vm2906_vm4, %v3403_v36  ;;  %v2607_v46 = vmax.f32 %v2558_v40, 0.0  ;;  %v1823_v21 = vpop.f32.mrb[192].mxu0  ;;  %v2450_v0 = vpop.f32.mrb[192].mxu1 }
 0x25d   :  { %v2704_v50 = vmax.f32 %v5461_v10, %v2655_v31  ;;  %v1883_v42 = vmul.f32 %v5231_v38, %v1823_v21  ;;  %v2510_v52 = vmul.f32 %v5231_v38, %v2450_v0  ;;  %v3823_v16 = vpop.f32.mrb[193].mxu0  ;;  %v3927_v15 = vpop.f32.mrb[193].mxu1 }
 0x25e   :  { %v2656_v2 = vmax.f32 %v1980_v53, %v2607_v46  ;;  %v1826_v28 = vpop.f32.mrb[194].mxu0  ;;  %v2453_v3 = vpop.f32.mrb[194].mxu1 }
 0x25f   :  { %v3404_v49 = vpack.c.bf16 %v2704_v50, %v2704_v50  ;;  %v1932_v43 = vadd.f32 %v5219_v37, %v1883_v42  ;;  %v2559_v63 = vadd.f32 %v5219_v37, %v2510_v52  ;;  %v1884_v12 = vmul.f32 %v5231_v38, %v1826_v28  ;;  %v3824_v5 = vpop.f32.mrb[195].mxu0  ;;  %v3928_v57 = vpop.f32.mrb[195].mxu1 }
 0x260   :  { %v2705_v23 = vmax.f32 %v5462_v22, %v2656_v2  ;;  %v2511_v56 = vmul.f32 %v5231_v38, %v2453_v3 }
 0x261   :  { %2951 = vst.msk [vmem:[%s5453_s4 + $0xb0] sm:$0xf] %vm2906_vm4, %v3404_v49  ;;  %v1981_v58 = vmax.f32 %v1932_v43, 0.0  ;;  %v2608_v18 = vmax.f32 %v2559_v63, 0.0  ;;  %v1933_v62 = vadd.f32 %v5219_v37, %v1884_v12 }
 0x262   :  { %v3405_v30 = vpack.c.bf16 %v2705_v23, %v2705_v23  ;;  %v2560_v19 = vadd.f32 %v5219_v37, %v2511_v56 }
 0x263   :  { %v2657_v51 = vmax.f32 %v1981_v58, %v2608_v18  ;;  %v1982_v45 = vmax.f32 %v1933_v62, 0.0 }
 0x264   :  { %2952 = vst.msk [vmem:[%s5453_s4 + $0xb4] sm:$0xf] %vm2906_vm4, %v3405_v30  ;;  %v2609_v11 = vmax.f32 %v2560_v19, 0.0  ;;  %v1831_v48 = vpop.f32.mrb[196].mxu0  ;;  %v2458_v54 = vpop.f32.mrb[196].mxu1 }
 0x265   :  { %v2706_v6 = vmax.f32 %v5463_v29, %v2657_v51  ;;  %v1885_v20 = vmul.f32 %v5231_v38, %v1831_v48  ;;  %v2512_v47 = vmul.f32 %v5231_v38, %v2458_v54  ;;  %v3827_v9 = vpop.f32.mrb[197].mxu0  ;;  %v3931_v35 = vpop.f32.mrb[197].mxu1 }
 0x266   :  { %v2658_v39 = vmax.f32 %v1982_v45, %v2609_v11  ;;  %v1834_v32 = vpop.f32.mrb[198].mxu0  ;;  %v2461_v4 = vpop.f32.mrb[198].mxu1 }
 0x267   :  { %v3406_v27 = vpack.c.bf16 %v2706_v6, %v2706_v6  ;;  %v1934_v55 = vadd.f32 %v5219_v37, %v1885_v20  ;;  %v2561_v24 = vadd.f32 %v5219_v37, %v2512_v47  ;;  %v3828_v26 = vpop.f32.mrb[199].mxu0  ;;  %v3932_v1 = vpop.f32.mrb[199].mxu1 }
 0x268   :  { %v2707_v44 = vmax.f32 %v5464_v17, %v2658_v39 }
 0x269   :  { %2953 = vst.msk [vmem:[%s5453_s4 + $0xb8] sm:$0xf] %vm2906_vm4, %v3406_v27  ;;  %v1983_v38 = vmax.f32 %v1934_v55, 0.0  ;;  %v2610_v25 = vmax.f32 %v2561_v24, 0.0 }
 0x26a   :  { %v3407_v60 = vpack.c.bf16 %v2707_v44, %v2707_v44 }
 0x26b   :  { %v2659_v13 = vmax.f32 %v1983_v38, %v2610_v25 }
 0x26c   :  { %2954 = vst.msk [vmem:[%s5453_s4 + $0xbc] sm:$0xf] %vm2906_vm4, %v3407_v60 }
 0x26d   :  { %v2708_v37 = vmax.f32 %v5465_v41, %v2659_v13 }
 0x26f   :  { %v3408_v14 = vpack.c.bf16 %v2708_v37, %v2708_v37 }
 0x271   :  { %2955 = vst.msk [vmem:[%s5453_s4 + $0xc0] sm:$0xf] %vm2906_vm4, %v3408_v14 }

// kernel: cnn_forward.5
= control target key start
LH: loop header
LB: loop body
LE: loop exit
PB: predicated region body
PF: predicated region fallthrough
CT: control target
= control target key end

     0   :  { %14 = vsyncpa [#allocation3], 0  ;;  %v612_v36 = vlaneseq  ;;  %v6601_v37 = vmov 1966171168   ;;  %s8633_s0 = inlined_call_operand.vmem [shape: bf16[2,2304], index: 0, kind: input, shape index: {}]   ;;  %s8634_s1 = inlined_call_operand.vmem [shape: bf16[2304,512], index: 1, kind: input, shape index: {}]   ;;  %s8635_s2 = inlined_call_operand.vmem [shape: f32[1,512], index: 2, kind: input, shape index: {}]   ;;  %s8636_s3 = inlined_call_operand.vmem [shape: bf16[512,128], index: 3, kind: input, shape index: {}]   ;;  %s8637_s4 = inlined_call_operand.vmem [shape: f32[1,128], index: 4, kind: input, shape index: {}]   ;;  %s8638_s5 = inlined_call_operand.vmem [shape: bf16[128,128], index: 5, kind: input, shape index: {}]   ;;  %s8639_s6 = inlined_call_operand.vmem [shape: f32[1,128], index: 6, kind: input, shape index: {}]   ;;  %s8640_s7 = inlined_call_operand.hbm [shape: f32[2,128], index: 7, kind: output, shape index: {0}]   ;;  %s8641_s8 = inlined_call_operand.hbm [shape: f32[2,128], index: 8, kind: output, shape index: {1}]  }
   0x1   :  { %v5645_v0 = vld [vmem:[%s8634_s1 + $0x4] ss:$16 sps:$4 sm:$0xff]   ;;  %v5647_v1 = vld [vmem:[%s8634_s1 + $0xc] ss:$16 sps:$4 sm:$0xff]   ;;  %v5649_v2 = vld [vmem:[%s8634_s1] ss:$16 sps:$4 sm:$0xff]   ;;  %v637_v38 = vunpack.c.l.s4 %v6601_v37 }
   0x2   :  { %3653 = vmatprep.subr.bf16.mxu0 %v5645_v0  ;;  %v5650_v3 = vld [vmem:[%s8634_s1 + $0x8] ss:$16 sps:$4 sm:$0xff]   ;;  %4022 = vmatprep.subr.bf16.mxu1 %v5647_v1  ;;  %v5651_v4 = vld [vmem:[%s8634_s1 + $0x24] ss:$16 sps:$4 sm:$0xff]   ;;  %v5653_v5 = vld [vmem:[%s8634_s1 + $0x2c] ss:$16 sps:$4 sm:$0xff]  }
   0x3   :  { %3654 = vmatpush1.bf16.msra.mxu0 %v5649_v2  ;;  %4023 = vmatpush1.bf16.msra.mxu1 %v5650_v3  ;;  %v5655_v6 = vld [vmem:[%s8634_s1 + $0x20] ss:$16 sps:$4 sm:$0xff]   ;;  %v5656_v7 = vld [vmem:[%s8634_s1 + $0x28] ss:$16 sps:$4 sm:$0xff]   ;;  %v5657_v8 = vld [vmem:[%s8634_s1 + $0x44] ss:$16 sps:$4 sm:$0xff]   ;;  %v638_v43 = vunpack.c.0.s8 %v637_v38 }
   0x4   :  { %3655 = vmatprep.subr.bf16.mxu0 %v5651_v4  ;;  %4024 = vmatprep.subr.bf16.mxu1 %v5653_v5  ;;  %v5659_v9 = vld [vmem:[%s8634_s1 + $0x4c] ss:$16 sps:$4 sm:$0xff]   ;;  %v5661_v10 = vld [vmem:[%s8634_s1 + $0x40] ss:$16 sps:$4 sm:$0xff]   ;;  %v5662_v11 = vld [vmem:[%s8634_s1 + $0x48] ss:$16 sps:$4 sm:$0xff]  }
   0x5   :  { %v5663_v12 = vld [vmem:[%s8634_s1 + $0x64] ss:$16 sps:$4 sm:$0xff]   ;;  %v5665_v13 = vld [vmem:[%s8634_s1 + $0x6c] ss:$16 sps:$4 sm:$0xff]   ;;  %v5667_v14 = vld [vmem:[%s8634_s1 + $0x60] ss:$16 sps:$4 sm:$0xff]  }
   0x6   :  { %v5668_v15 = vld [vmem:[%s8634_s1 + $0x68] ss:$16 sps:$4 sm:$0xff]   ;;  %v5669_v16 = vld [vmem:[%s8634_s1 + $0x84] ss:$16 sps:$4 sm:$0xff]   ;;  %v5671_v17 = vld [vmem:[%s8634_s1 + $0x8c] ss:$16 sps:$4 sm:$0xff]  }
   0x7   :  { %3656 = vmatpush1.bf16.msra.mxu0 %v5655_v6  ;;  %4025 = vmatpush1.bf16.msra.mxu1 %v5656_v7  ;;  %v5673_v18 = vld [vmem:[%s8634_s1 + $0x80] ss:$16 sps:$4 sm:$0xff]   ;;  %v5674_v19 = vld [vmem:[%s8634_s1 + $0x88] ss:$16 sps:$4 sm:$0xff]   ;;  %v5675_v20 = vld [vmem:[%s8634_s1 + $0xa4] ss:$16 sps:$4 sm:$0xff]  }
   0x8   :  { %3657 = vmatprep.subr.bf16.mxu0 %v5657_v8  ;;  %4026 = vmatprep.subr.bf16.mxu1 %v5659_v9  ;;  %v5677_v21 = vld [vmem:[%s8634_s1 + $0xac] ss:$16 sps:$4 sm:$0xff]   ;;  %v5679_v22 = vld [vmem:[%s8634_s1 + $0xa0] ss:$16 sps:$4 sm:$0xff]   ;;  %v5680_v23 = vld [vmem:[%s8634_s1 + $0xa8] ss:$16 sps:$4 sm:$0xff]  }
   0x9   :  { %v5681_v24 = vld [vmem:[%s8634_s1 + $0xc4] ss:$16 sps:$4 sm:$0xff]   ;;  %v5683_v25 = vld [vmem:[%s8634_s1 + $0xcc] ss:$16 sps:$4 sm:$0xff]   ;;  %v5685_v26 = vld [vmem:[%s8634_s1 + $0xc0] ss:$16 sps:$4 sm:$0xff]  }
   0xa   :  { %v5686_v27 = vld [vmem:[%s8634_s1 + $0xc8] ss:$16 sps:$4 sm:$0xff]   ;;  %v5687_v28 = vld [vmem:[%s8634_s1 + $0xe4] ss:$16 sps:$4 sm:$0xff]   ;;  %v5689_v29 = vld [vmem:[%s8634_s1 + $0xec] ss:$16 sps:$4 sm:$0xff]  }
   0xb   :  { %3658 = vmatpush1.bf16.msra.mxu0 %v5661_v10  ;;  %4027 = vmatpush1.bf16.msra.mxu1 %v5662_v11  ;;  %v5691_v30 = vld [vmem:[%s8634_s1 + $0xe0] ss:$16 sps:$4 sm:$0xff]   ;;  %v5692_v31 = vld [vmem:[%s8634_s1 + $0xe8] ss:$16 sps:$4 sm:$0xff]   ;;  %v5693_v32 = vld [vmem:[%s8634_s1 + $0x104] ss:$16 sps:$4 sm:$0xff]  }
   0xc   :  { %3659 = vmatprep.subr.bf16.mxu0 %v5663_v12  ;;  %4028 = vmatprep.subr.bf16.mxu1 %v5665_v13  ;;  %v5695_v33 = vld [vmem:[%s8634_s1 + $0x10c] ss:$16 sps:$4 sm:$0xff]   ;;  %v5697_v34 = vld [vmem:[%s8634_s1 + $0x100] ss:$16 sps:$4 sm:$0xff]   ;;  %v5698_v35 = vld [vmem:[%s8634_s1 + $0x108] ss:$16 sps:$4 sm:$0xff]  }
   0xd   :  { %v5699_v39 = vld [vmem:[%s8634_s1 + $0x124] ss:$16 sps:$4 sm:$0xff]   ;;  %v5701_v40 = vld [vmem:[%s8634_s1 + $0x12c] ss:$16 sps:$4 sm:$0xff]   ;;  %v5703_v41 = vld [vmem:[%s8634_s1 + $0x120] ss:$16 sps:$4 sm:$0xff]  }
   0xe   :  { %v6768_v42 = vshrl.u32 %v612_v36, 7  ;;  %v5704_v44 = vld [vmem:[%s8634_s1 + $0x128] ss:$16 sps:$4 sm:$0xff]   ;;  %v5705_v45 = vld [vmem:[%s8634_s1 + $0x144] ss:$16 sps:$4 sm:$0xff]  }
   0xf   :  { %3660 = vmatpush1.bf16.msra.mxu0 %v5667_v14  ;;  %4029 = vmatpush1.bf16.msra.mxu1 %v5668_v15  ;;  %v5707_v46 = vld [vmem:[%s8634_s1 + $0x14c] ss:$16 sps:$4 sm:$0xff]   ;;  %v5709_v47 = vld [vmem:[%s8634_s1 + $0x140] ss:$16 sps:$4 sm:$0xff]   ;;  %v5710_v48 = vld [vmem:[%s8634_s1 + $0x148] ss:$16 sps:$4 sm:$0xff]  }
  0x10   :  { %3661 = vmatprep.subr.bf16.mxu0 %v5669_v16  ;;  %4030 = vmatprep.subr.bf16.mxu1 %v5671_v17  ;;  %v6786_v49 = vsub.s32 %v638_v43, %v6768_v42  ;;  %v5711_v50 = vld [vmem:[%s8634_s1 + $0x164] ss:$16 sps:$4 sm:$0xff]   ;;  %v5713_v51 = vld [vmem:[%s8634_s1 + $0x16c] ss:$16 sps:$4 sm:$0xff]   ;;  %v5715_v53 = vld [vmem:[%s8634_s1 + $0x160] ss:$16 sps:$4 sm:$0xff]  }
  0x11   :  { %v6797_v52 = vld [vmem:[%s8633_s0] sm:$0xff]  ;;  %v5716_v55 = vld [vmem:[%s8634_s1 + $0x168] ss:$16 sps:$4 sm:$0xff]   ;;  %v5719_v57 = vld [vmem:[%s8634_s1 + $0x18c] ss:$16 sps:$4 sm:$0xff]  }
  0x12   :  { %v642_v54 = vrot.slane %v6797_v52, %v6786_v49  ;;  %v5717_v56 = vld [vmem:[%s8634_s1 + $0x184] ss:$16 sps:$4 sm:$0xff]   ;;  %v5721_v59 = vld [vmem:[%s8634_s1 + $0x180] ss:$16 sps:$4 sm:$0xff]   ;;  %v5722_v61 = vld [vmem:[%s8634_s1 + $0x188] ss:$16 sps:$4 sm:$0xff]  }
  0x13   :  { %3662 = vmatpush1.bf16.msra.mxu0 %v5673_v18  ;;  %4031 = vmatpush1.bf16.msra.mxu1 %v5674_v19  ;;  %v5723_v62 = vld [vmem:[%s8634_s1 + $0x1a4] ss:$16 sps:$4 sm:$0xff]   ;;  %v5725_v63 = vld [vmem:[%s8634_s1 + $0x1ac] ss:$16 sps:$4 sm:$0xff]   ;;  %v5727_v0 = vld [vmem:[%s8634_s1 + $0x1a0] ss:$16 sps:$4 sm:$0xff]  }
  0x14   :  { %3663 = vmatprep.subr.bf16.mxu0 %v5675_v20  ;;  %4032 = vmatprep.subr.bf16.mxu1 %v5677_v21  ;;  %v650_v58 = vcombine.high %v642_v54, %v642_v54  ;;  %v5728_v1 = vld [vmem:[%s8634_s1 + $0x1a8] ss:$16 sps:$4 sm:$0xff]   ;;  %v5729_v2 = vld [vmem:[%s8634_s1 + $0x1c4] ss:$16 sps:$4 sm:$0xff]   ;;  %v5731_v3 = vld [vmem:[%s8634_s1 + $0x1cc] ss:$16 sps:$4 sm:$0xff]   ;;  %v6866_v13 = vrot.slane %v642_v54, %v6786_v49 }
  0x15   :  { %v5733_v4 = vld [vmem:[%s8634_s1 + $0x1c0] ss:$16 sps:$4 sm:$0xff]   ;;  %v5734_v5 = vld [vmem:[%s8634_s1 + $0x1c8] ss:$16 sps:$4 sm:$0xff]   ;;  %v5735_v6 = vld [vmem:[%s8634_s1 + $0x1e4] ss:$16 sps:$4 sm:$0xff]  }
  0x16   :  { %v672_v60 = vrot.slane %v650_v58, %v6786_v49  ;;  %v5737_v7 = vld [vmem:[%s8634_s1 + $0x1ec] ss:$16 sps:$4 sm:$0xff]   ;;  %v5739_v8 = vld [vmem:[%s8634_s1 + $0x1e0] ss:$16 sps:$4 sm:$0xff]   ;;  %v5740_v9 = vld [vmem:[%s8634_s1 + $0x1e8] ss:$16 sps:$4 sm:$0xff]  }
  0x17   :  { %3664 = vmatpush1.bf16.msra.mxu0 %v5679_v22  ;;  %4033 = vmatpush1.bf16.msra.mxu1 %v5680_v23  ;;  %v5743_v10 = vld [vmem:[%s8634_s1 + $0x204] ss:$16 sps:$4 sm:$0xff]   ;;  %v5746_v11 = vld [vmem:[%s8634_s1 + $0x20c] ss:$16 sps:$4 sm:$0xff]   ;;  %v5741_v12 = vld [vmem:[%s8634_s1 + $0x200] ss:$16 sps:$4 sm:$0xff]  }
  0x18   :  { %3665 = vmatprep.subr.bf16.mxu0 %v5681_v24  ;;  %4034 = vmatprep.subr.bf16.mxu1 %v5683_v25  ;;  %v5744_v14 = vld [vmem:[%s8634_s1 + $0x208] ss:$16 sps:$4 sm:$0xff]   ;;  %v5749_v15 = vld [vmem:[%s8634_s1 + $0x224] ss:$16 sps:$4 sm:$0xff]   ;;  %v5752_v16 = vld [vmem:[%s8634_s1 + $0x22c] ss:$16 sps:$4 sm:$0xff]   ;;  %v682_v17 = vcombine.high %v672_v60, %v672_v60 }
  0x19   :  { %3685 = vmatprep.mubr.bf16.mxu0 %v672_v60  ;;  %4054 = vmatprep.mubr.bf16.mxu1 %v672_v60  ;;  %v5747_v18 = vld [vmem:[%s8634_s1 + $0x220] ss:$16 sps:$4 sm:$0xff]   ;;  %v5750_v19 = vld [vmem:[%s8634_s1 + $0x228] ss:$16 sps:$4 sm:$0xff]   ;;  %v5755_v20 = vld [vmem:[%s8634_s1 + $0x244] ss:$16 sps:$4 sm:$0xff]  }
  0x1a   :  { %v5758_v21 = vld [vmem:[%s8634_s1 + $0x24c] ss:$16 sps:$4 sm:$0xff]   ;;  %v5753_v22 = vld [vmem:[%s8634_s1 + $0x240] ss:$16 sps:$4 sm:$0xff]   ;;  %v5756_v23 = vld [vmem:[%s8634_s1 + $0x248] ss:$16 sps:$4 sm:$0xff]  }
  0x1b   :  { %3666 = vmatpush1.bf16.msra.mxu0 %v5685_v26  ;;  %4035 = vmatpush1.bf16.msra.mxu1 %v5686_v27  ;;  %v5761_v24 = vld [vmem:[%s8634_s1 + $0x264] ss:$16 sps:$4 sm:$0xff]   ;;  %v5764_v25 = vld [vmem:[%s8634_s1 + $0x26c] ss:$16 sps:$4 sm:$0xff]   ;;  %v5759_v26 = vld [vmem:[%s8634_s1 + $0x260] ss:$16 sps:$4 sm:$0xff]  }
  0x1c   :  { %3667 = vmatprep.subr.bf16.mxu0 %v5687_v28  ;;  %4036 = vmatprep.subr.bf16.mxu1 %v5689_v29  ;;  %v5762_v27 = vld [vmem:[%s8634_s1 + $0x268] ss:$16 sps:$4 sm:$0xff]   ;;  %v5767_v28 = vld [vmem:[%s8634_s1 + $0x284] ss:$16 sps:$4 sm:$0xff]   ;;  %v5770_v29 = vld [vmem:[%s8634_s1 + $0x28c] ss:$16 sps:$4 sm:$0xff]  }
  0x1d   :  { %v5779_v36 = vld [vmem:[%s8634_s1 + $0x2c4] ss:$16 sps:$4 sm:$0xff]   ;;  %v5782_v37 = vld [vmem:[%s8634_s1 + $0x2cc] ss:$16 sps:$4 sm:$0xff]   ;;  %v5777_v38 = vld [vmem:[%s8634_s1 + $0x2c0] ss:$16 sps:$4 sm:$0xff]  }
  0x1e   :  { %v5783_v43 = vld [vmem:[%s8634_s1 + $0x2e0] ss:$16 sps:$4 sm:$0xff]   ;;  %v5798_v54 = vld [vmem:[%s8634_s1 + $0x328] ss:$16 sps:$4 sm:$0xff]   ;;  %v5812_v60 = vld [vmem:[%s8634_s1 + $0x36c] ss:$16 sps:$4 sm:$0xff]  }
  0x1f   :  { %3668 = vmatpush1.bf16.msra.mxu0 %v5691_v30  ;;  %4037 = vmatpush1.bf16.msra.mxu1 %v5692_v31  ;;  %v5765_v30 = vld [vmem:[%s8634_s1 + $0x280] ss:$16 sps:$4 sm:$0xff]   ;;  %v5768_v31 = vld [vmem:[%s8634_s1 + $0x288] ss:$16 sps:$4 sm:$0xff]  }
  0x20   :  { %3669 = vmatprep.subr.bf16.mxu0 %v5693_v32  ;;  %4038 = vmatprep.subr.bf16.mxu1 %v5695_v33  ;;  %v5773_v32 = vld [vmem:[%s8634_s1 + $0x2a4] ss:$16 sps:$4 sm:$0xff]   ;;  %v5776_v33 = vld [vmem:[%s8634_s1 + $0x2ac] ss:$16 sps:$4 sm:$0xff]   ;;  %v5804_v58 = vld [vmem:[%s8634_s1 + $0x348] ss:$16 sps:$4 sm:$0xff]  }
  0x23   :  { %3670 = vmatpush1.bf16.msra.mxu0 %v5697_v34  ;;  %4039 = vmatpush1.bf16.msra.mxu1 %v5698_v35  ;;  %v5771_v34 = vld [vmem:[%s8634_s1 + $0x2a0] ss:$16 sps:$4 sm:$0xff]   ;;  %v5774_v35 = vld [vmem:[%s8634_s1 + $0x2a8] ss:$16 sps:$4 sm:$0xff]  }
  0x24   :  { %3671 = vmatprep.subr.bf16.mxu0 %v5699_v39  ;;  %4040 = vmatprep.subr.bf16.mxu1 %v5701_v40  ;;  %v5780_v39 = vld [vmem:[%s8634_s1 + $0x2c8] ss:$16 sps:$4 sm:$0xff]   ;;  %v5785_v40 = vld [vmem:[%s8634_s1 + $0x2e4] ss:$16 sps:$4 sm:$0xff]  }
  0x27   :  { %3672 = vmatpush1.bf16.msra.mxu0 %v5703_v41  ;;  %4041 = vmatpush1.bf16.msra.mxu1 %v5704_v44  ;;  %v5788_v41 = vld [vmem:[%s8634_s1 + $0x2ec] ss:$16 sps:$4 sm:$0xff]   ;;  %v5786_v44 = vld [vmem:[%s8634_s1 + $0x2e8] ss:$16 sps:$4 sm:$0xff]  }
  0x28   :  { %3673 = vmatprep.subr.bf16.mxu0 %v5705_v45  ;;  %4042 = vmatprep.subr.bf16.mxu1 %v5707_v46  ;;  %v5791_v45 = vld [vmem:[%s8634_s1 + $0x304] ss:$16 sps:$4 sm:$0xff]   ;;  %v5794_v46 = vld [vmem:[%s8634_s1 + $0x30c] ss:$16 sps:$4 sm:$0xff]  }
  0x2b   :  { %3674 = vmatpush1.bf16.msra.mxu0 %v5709_v47  ;;  %4043 = vmatpush1.bf16.msra.mxu1 %v5710_v48  ;;  %v5789_v47 = vld [vmem:[%s8634_s1 + $0x300] ss:$16 sps:$4 sm:$0xff]   ;;  %v5792_v48 = vld [vmem:[%s8634_s1 + $0x308] ss:$16 sps:$4 sm:$0xff]  }
  0x2c   :  { %3675 = vmatprep.subr.bf16.mxu0 %v5711_v50  ;;  %4044 = vmatprep.subr.bf16.mxu1 %v5713_v51  ;;  %v5797_v50 = vld [vmem:[%s8634_s1 + $0x324] ss:$16 sps:$4 sm:$0xff]   ;;  %v5800_v51 = vld [vmem:[%s8634_s1 + $0x32c] ss:$16 sps:$4 sm:$0xff]  }
  0x2f   :  { %3676 = vmatpush1.bf16.msra.mxu0 %v5715_v53  ;;  %4045 = vmatpush1.bf16.msra.mxu1 %v5716_v55  ;;  %v5795_v53 = vld [vmem:[%s8634_s1 + $0x320] ss:$16 sps:$4 sm:$0xff]   ;;  %v5803_v55 = vld [vmem:[%s8634_s1 + $0x344] ss:$16 sps:$4 sm:$0xff]  }
  0x30   :  { %3677 = vmatprep.subr.bf16.mxu0 %v5717_v56  ;;  %4046 = vmatprep.subr.bf16.mxu1 %v5719_v57  ;;  %v5806_v56 = vld [vmem:[%s8634_s1 + $0x34c] ss:$16 sps:$4 sm:$0xff]   ;;  %v5801_v57 = vld [vmem:[%s8634_s1 + $0x340] ss:$16 sps:$4 sm:$0xff]  }
  0x33   :  { %3678 = vmatpush1.bf16.msra.mxu0 %v5721_v59  ;;  %4047 = vmatpush1.bf16.msra.mxu1 %v5722_v61  ;;  %v5809_v59 = vld [vmem:[%s8634_s1 + $0x364] ss:$16 sps:$4 sm:$0xff]   ;;  %v5807_v61 = vld [vmem:[%s8634_s1 + $0x360] ss:$16 sps:$4 sm:$0xff]  }
  0x34   :  { %3679 = vmatprep.subr.bf16.mxu0 %v5723_v62  ;;  %4048 = vmatprep.subr.bf16.mxu1 %v5725_v63  ;;  %v5810_v62 = vld [vmem:[%s8634_s1 + $0x368] ss:$16 sps:$4 sm:$0xff]   ;;  %v5815_v63 = vld [vmem:[%s8634_s1 + $0x384] ss:$16 sps:$4 sm:$0xff]  }
  0x37   :  { %3680 = vmatpush1.bf16.msra.mxu0 %v5727_v0  ;;  %4049 = vmatpush1.bf16.msra.mxu1 %v5728_v1  ;;  %v5818_v0 = vld [vmem:[%s8634_s1 + $0x38c] ss:$16 sps:$4 sm:$0xff]   ;;  %v5813_v1 = vld [vmem:[%s8634_s1 + $0x380] ss:$16 sps:$4 sm:$0xff]  }
  0x38   :  { %3681 = vmatprep.subr.bf16.mxu0 %v5729_v2  ;;  %4050 = vmatprep.subr.bf16.mxu1 %v5731_v3  ;;  %v5816_v2 = vld [vmem:[%s8634_s1 + $0x388] ss:$16 sps:$4 sm:$0xff]   ;;  %v5821_v3 = vld [vmem:[%s8634_s1 + $0x3a4] ss:$16 sps:$4 sm:$0xff]  }
  0x3b   :  { %3682 = vmatpush1.bf16.msra.mxu0 %v5733_v4  ;;  %4051 = vmatpush1.bf16.msra.mxu1 %v5734_v5  ;;  %v5824_v4 = vld [vmem:[%s8634_s1 + $0x3ac] ss:$16 sps:$4 sm:$0xff]   ;;  %v5819_v5 = vld [vmem:[%s8634_s1 + $0x3a0] ss:$16 sps:$4 sm:$0xff]  }
  0x3c   :  { %3683 = vmatprep.subr.bf16.mxu0 %v5735_v6  ;;  %4052 = vmatprep.subr.bf16.mxu1 %v5737_v7  ;;  %v5822_v6 = vld [vmem:[%s8634_s1 + $0x3a8] ss:$16 sps:$4 sm:$0xff]   ;;  %v5827_v7 = vld [vmem:[%s8634_s1 + $0x3c4] ss:$16 sps:$4 sm:$0xff]  }
  0x3f   :  { %3684 = vmatpush1.bf16.msra.mxu0 %v5739_v8  ;;  %4053 = vmatpush1.bf16.msra.mxu1 %v5740_v9  ;;  %v5830_v8 = vld [vmem:[%s8634_s1 + $0x3cc] ss:$16 sps:$4 sm:$0xff]   ;;  %v635_v9 = vcombine.high %v6797_v52, %v6797_v52 }
  0x40   :  { %3694 = vmatprep.subr.bf16.mxu0 %v5743_v10  ;;  %4063 = vmatprep.subr.bf16.mxu1 %v5746_v11  ;;  %v5825_v10 = vld [vmem:[%s8634_s1 + $0x3c0] ss:$16 sps:$4 sm:$0xff]   ;;  %v5828_v11 = vld [vmem:[%s8634_s1 + $0x3c8] ss:$16 sps:$4 sm:$0xff]   ;;  %v5836_v52 = vld [vmem:[%s8634_s1 + $0x3ec] ss:$16 sps:$4 sm:$0xff]  }
  0x42   :  { %3686 = vmatmul.mubr.bf16.vlgmr.msra.gmra.mrb[0].mxu0 %v6866_v13  ;;  %4055 = vmatmul.mubr.bf16.vlgmr.msra.gmra.mrb[0].mxu1 %v6866_v13 }
  0x43   :  { %3695 = vmatpush1.bf16.msra.mxu0 %v5741_v12  ;;  %4064 = vmatpush1.bf16.msra.mxu1 %v5744_v14  ;;  %v5833_v12 = vld [vmem:[%s8634_s1 + $0x3e4] ss:$16 sps:$4 sm:$0xff]   ;;  %v7050_v14 = vrot.slane %v635_v9, %v6786_v49  ;;  %v5912_v9 = vld [vmem:[%s8634_s1 + $0x588] ss:$16 sps:$4 sm:$0xff]  }
  0x44   :  { %3696 = vmatprep.subr.bf16.mxu0 %v5749_v15  ;;  %4065 = vmatprep.subr.bf16.mxu1 %v5752_v16  ;;  %v5831_v15 = vld [vmem:[%s8634_s1 + $0x3e0] ss:$16 sps:$4 sm:$0xff]   ;;  %v5834_v16 = vld [vmem:[%s8634_s1 + $0x3e8] ss:$16 sps:$4 sm:$0xff]  }
  0x45   :  { %3726 = vmatprep.mubr.bf16.mxu0 %v682_v17  ;;  %4095 = vmatprep.mubr.bf16.mxu1 %v682_v17  ;;  %v5839_v17 = vld [vmem:[%s8634_s1 + $0x404] ss:$16 sps:$4 sm:$0xff]  }
  0x47   :  { %3697 = vmatpush1.bf16.msra.mxu0 %v5747_v18  ;;  %4066 = vmatpush1.bf16.msra.mxu1 %v5750_v19  ;;  %v5842_v18 = vld [vmem:[%s8634_s1 + $0x40c] ss:$16 sps:$4 sm:$0xff]   ;;  %v651_v19 = vcombine.high %v7050_v14, %v7050_v14 }
  0x48   :  { %3698 = vmatprep.subr.bf16.mxu0 %v5755_v20  ;;  %4067 = vmatprep.subr.bf16.mxu1 %v5758_v21  ;;  %v5837_v20 = vld [vmem:[%s8634_s1 + $0x400] ss:$16 sps:$4 sm:$0xff]   ;;  %v680_v21 = vcombine.high %v6866_v13, %v6866_v13 }
  0x49   :  { %v5843_v13 = vld [vmem:[%s8634_s1 + $0x420] ss:$16 sps:$4 sm:$0xff]  }
  0x4b   :  { %3699 = vmatpush1.bf16.msra.mxu0 %v5753_v22  ;;  %4068 = vmatpush1.bf16.msra.mxu1 %v5756_v23  ;;  %v5840_v22 = vld [vmem:[%s8634_s1 + $0x408] ss:$16 sps:$4 sm:$0xff]   ;;  %v5845_v23 = vld [vmem:[%s8634_s1 + $0x424] ss:$16 sps:$4 sm:$0xff]  }
  0x4c   :  { %3700 = vmatprep.subr.bf16.mxu0 %v5761_v24  ;;  %4069 = vmatprep.subr.bf16.mxu1 %v5764_v25  ;;  %v5848_v24 = vld [vmem:[%s8634_s1 + $0x42c] ss:$16 sps:$4 sm:$0xff]   ;;  %v7081_v25 = vrot.slane %v651_v19, %v6786_v49  ;;  %v5929_v19 = vld [vmem:[%s8634_s1 + $0x5e4] ss:$16 sps:$4 sm:$0xff]  }
  0x4f   :  { %3701 = vmatpush1.bf16.msra.mxu0 %v5759_v26  ;;  %4070 = vmatpush1.bf16.msra.mxu1 %v5762_v27  ;;  %v5846_v26 = vld [vmem:[%s8634_s1 + $0x428] ss:$16 sps:$4 sm:$0xff]   ;;  %v5851_v27 = vld [vmem:[%s8634_s1 + $0x444] ss:$16 sps:$4 sm:$0xff]  }
  0x50   :  { %3702 = vmatprep.subr.bf16.mxu0 %v5767_v28  ;;  %4071 = vmatprep.subr.bf16.mxu1 %v5770_v29  ;;  %v5854_v28 = vld [vmem:[%s8634_s1 + $0x44c] ss:$16 sps:$4 sm:$0xff]   ;;  %v5849_v29 = vld [vmem:[%s8634_s1 + $0x440] ss:$16 sps:$4 sm:$0xff]  }
  0x53   :  { %3703 = vmatpush1.bf16.msra.mxu0 %v5765_v30  ;;  %4072 = vmatpush1.bf16.msra.mxu1 %v5768_v31  ;;  %v5852_v30 = vld [vmem:[%s8634_s1 + $0x448] ss:$16 sps:$4 sm:$0xff]   ;;  %v5857_v31 = vld [vmem:[%s8634_s1 + $0x464] ss:$16 sps:$4 sm:$0xff]  }
  0x54   :  { %3704 = vmatprep.subr.bf16.mxu0 %v5773_v32  ;;  %4073 = vmatprep.subr.bf16.mxu1 %v5776_v33  ;;  %v5860_v32 = vld [vmem:[%s8634_s1 + $0x46c] ss:$16 sps:$4 sm:$0xff]   ;;  %v5855_v33 = vld [vmem:[%s8634_s1 + $0x460] ss:$16 sps:$4 sm:$0xff]  }
  0x57   :  { %3705 = vmatpush1.bf16.msra.mxu0 %v5771_v34  ;;  %4074 = vmatpush1.bf16.msra.mxu1 %v5774_v35  ;;  %v5858_v34 = vld [vmem:[%s8634_s1 + $0x468] ss:$16 sps:$4 sm:$0xff]   ;;  %v5863_v35 = vld [vmem:[%s8634_s1 + $0x484] ss:$16 sps:$4 sm:$0xff]  }
  0x58   :  { %3706 = vmatprep.subr.bf16.mxu0 %v5779_v36  ;;  %4075 = vmatprep.subr.bf16.mxu1 %v5782_v37  ;;  %v5866_v36 = vld [vmem:[%s8634_s1 + $0x48c] ss:$16 sps:$4 sm:$0xff]   ;;  %v5861_v37 = vld [vmem:[%s8634_s1 + $0x480] ss:$16 sps:$4 sm:$0xff]  }
  0x5b   :  { %3707 = vmatpush1.bf16.msra.mxu0 %v5777_v38  ;;  %4076 = vmatpush1.bf16.msra.mxu1 %v5780_v39  ;;  %v5864_v38 = vld [vmem:[%s8634_s1 + $0x488] ss:$16 sps:$4 sm:$0xff]   ;;  %v5869_v39 = vld [vmem:[%s8634_s1 + $0x4a4] ss:$16 sps:$4 sm:$0xff]  }
  0x5c   :  { %3708 = vmatprep.subr.bf16.mxu0 %v5785_v40  ;;  %4077 = vmatprep.subr.bf16.mxu1 %v5788_v41  ;;  %v5872_v40 = vld [vmem:[%s8634_s1 + $0x4ac] ss:$16 sps:$4 sm:$0xff]   ;;  %v5867_v41 = vld [vmem:[%s8634_s1 + $0x4a0] ss:$16 sps:$4 sm:$0xff]  }
  0x5f   :  { %3709 = vmatpush1.bf16.msra.mxu0 %v5783_v43  ;;  %4078 = vmatpush1.bf16.msra.mxu1 %v5786_v44  ;;  %v5870_v43 = vld [vmem:[%s8634_s1 + $0x4a8] ss:$16 sps:$4 sm:$0xff]   ;;  %v5875_v44 = vld [vmem:[%s8634_s1 + $0x4c4] ss:$16 sps:$4 sm:$0xff]  }
  0x60   :  { %3710 = vmatprep.subr.bf16.mxu0 %v5791_v45  ;;  %4079 = vmatprep.subr.bf16.mxu1 %v5794_v46  ;;  %v5878_v45 = vld [vmem:[%s8634_s1 + $0x4cc] ss:$16 sps:$4 sm:$0xff]   ;;  %v5873_v46 = vld [vmem:[%s8634_s1 + $0x4c0] ss:$16 sps:$4 sm:$0xff]  }
  0x63   :  { %3711 = vmatpush1.bf16.msra.mxu0 %v5789_v47  ;;  %4080 = vmatpush1.bf16.msra.mxu1 %v5792_v48  ;;  %v5876_v47 = vld [vmem:[%s8634_s1 + $0x4c8] ss:$16 sps:$4 sm:$0xff]   ;;  %v5881_v48 = vld [vmem:[%s8634_s1 + $0x4e4] ss:$16 sps:$4 sm:$0xff]  }
  0x64   :  { %3712 = vmatprep.subr.bf16.mxu0 %v5797_v50  ;;  %4081 = vmatprep.subr.bf16.mxu1 %v5800_v51  ;;  %v5884_v50 = vld [vmem:[%s8634_s1 + $0x4ec] ss:$16 sps:$4 sm:$0xff]   ;;  %v5879_v51 = vld [vmem:[%s8634_s1 + $0x4e0] ss:$16 sps:$4 sm:$0xff]  }
  0x67   :  { %3713 = vmatpush1.bf16.msra.mxu0 %v5795_v53  ;;  %4082 = vmatpush1.bf16.msra.mxu1 %v5798_v54  ;;  %v5882_v53 = vld [vmem:[%s8634_s1 + $0x4e8] ss:$16 sps:$4 sm:$0xff]   ;;  %v5887_v54 = vld [vmem:[%s8634_s1 + $0x504] ss:$16 sps:$4 sm:$0xff]  }
  0x68   :  { %3714 = vmatprep.subr.bf16.mxu0 %v5803_v55  ;;  %4083 = vmatprep.subr.bf16.mxu1 %v5806_v56  ;;  %v5890_v55 = vld [vmem:[%s8634_s1 + $0x50c] ss:$16 sps:$4 sm:$0xff]   ;;  %v5885_v56 = vld [vmem:[%s8634_s1 + $0x500] ss:$16 sps:$4 sm:$0xff]  }
  0x6b   :  { %3715 = vmatpush1.bf16.msra.mxu0 %v5801_v57  ;;  %4084 = vmatpush1.bf16.msra.mxu1 %v5804_v58  ;;  %v5888_v57 = vld [vmem:[%s8634_s1 + $0x508] ss:$16 sps:$4 sm:$0xff]   ;;  %v5893_v58 = vld [vmem:[%s8634_s1 + $0x524] ss:$16 sps:$4 sm:$0xff]  }
  0x6c   :  { %3716 = vmatprep.subr.bf16.mxu0 %v5809_v59  ;;  %4085 = vmatprep.subr.bf16.mxu1 %v5812_v60  ;;  %v5896_v59 = vld [vmem:[%s8634_s1 + $0x52c] ss:$16 sps:$4 sm:$0xff]   ;;  %v5891_v60 = vld [vmem:[%s8634_s1 + $0x520] ss:$16 sps:$4 sm:$0xff]  }
  0x6f   :  { %3717 = vmatpush1.bf16.msra.mxu0 %v5807_v61  ;;  %4086 = vmatpush1.bf16.msra.mxu1 %v5810_v62  ;;  %v5894_v61 = vld [vmem:[%s8634_s1 + $0x528] ss:$16 sps:$4 sm:$0xff]   ;;  %v5899_v62 = vld [vmem:[%s8634_s1 + $0x544] ss:$16 sps:$4 sm:$0xff]  }
  0x70   :  { %3718 = vmatprep.subr.bf16.mxu0 %v5815_v63  ;;  %4087 = vmatprep.subr.bf16.mxu1 %v5818_v0  ;;  %v5902_v63 = vld [vmem:[%s8634_s1 + $0x54c] ss:$16 sps:$4 sm:$0xff]   ;;  %v5897_v0 = vld [vmem:[%s8634_s1 + $0x540] ss:$16 sps:$4 sm:$0xff]  }
  0x73   :  { %3719 = vmatpush1.bf16.msra.mxu0 %v5813_v1  ;;  %4088 = vmatpush1.bf16.msra.mxu1 %v5816_v2  ;;  %v5900_v1 = vld [vmem:[%s8634_s1 + $0x548] ss:$16 sps:$4 sm:$0xff]   ;;  %v5905_v2 = vld [vmem:[%s8634_s1 + $0x564] ss:$16 sps:$4 sm:$0xff]  }
  0x74   :  { %3720 = vmatprep.subr.bf16.mxu0 %v5821_v3  ;;  %4089 = vmatprep.subr.bf16.mxu1 %v5824_v4  ;;  %v5908_v3 = vld [vmem:[%s8634_s1 + $0x56c] ss:$16 sps:$4 sm:$0xff]   ;;  %v5903_v4 = vld [vmem:[%s8634_s1 + $0x560] ss:$16 sps:$4 sm:$0xff]  }
  0x77   :  { %3721 = vmatpush1.bf16.msra.mxu0 %v5819_v5  ;;  %4090 = vmatpush1.bf16.msra.mxu1 %v5822_v6  ;;  %v5906_v5 = vld [vmem:[%s8634_s1 + $0x568] ss:$16 sps:$4 sm:$0xff]   ;;  %v5911_v6 = vld [vmem:[%s8634_s1 + $0x584] ss:$16 sps:$4 sm:$0xff]  }
  0x78   :  { %3722 = vmatprep.subr.bf16.mxu0 %v5827_v7  ;;  %4091 = vmatprep.subr.bf16.mxu1 %v5830_v8  ;;  %v5914_v7 = vld [vmem:[%s8634_s1 + $0x58c] ss:$16 sps:$4 sm:$0xff]   ;;  %v5909_v8 = vld [vmem:[%s8634_s1 + $0x580] ss:$16 sps:$4 sm:$0xff]  }
  0x7b   :  { %3723 = vmatpush1.bf16.msra.mxu0 %v5825_v10  ;;  %4092 = vmatpush1.bf16.msra.mxu1 %v5828_v11  ;;  %v5917_v10 = vld [vmem:[%s8634_s1 + $0x5a4] ss:$16 sps:$4 sm:$0xff]   ;;  %v5920_v11 = vld [vmem:[%s8634_s1 + $0x5ac] ss:$16 sps:$4 sm:$0xff]  }
  0x7c   :  { %3724 = vmatprep.subr.bf16.mxu0 %v5833_v12  ;;  %4093 = vmatprep.subr.bf16.mxu1 %v5836_v52  ;;  %v5915_v12 = vld [vmem:[%s8634_s1 + $0x5a0] ss:$16 sps:$4 sm:$0xff]   ;;  %v5918_v52 = vld [vmem:[%s8634_s1 + $0x5a8] ss:$16 sps:$4 sm:$0xff]  }
  0x7f   :  { %3725 = vmatpush1.bf16.msra.mxu0 %v5831_v15  ;;  %4094 = vmatpush1.bf16.msra.mxu1 %v5834_v16  ;;  %v5923_v15 = vld [vmem:[%s8634_s1 + $0x5c4] ss:$16 sps:$4 sm:$0xff]   ;;  %v5926_v16 = vld [vmem:[%s8634_s1 + $0x5cc] ss:$16 sps:$4 sm:$0xff]  }
  0x80   :  { %3735 = vmatprep.subr.bf16.mxu0 %v5839_v17  ;;  %4104 = vmatprep.subr.bf16.mxu1 %v5842_v18  ;;  %v5921_v17 = vld [vmem:[%s8634_s1 + $0x5c0] ss:$16 sps:$4 sm:$0xff]   ;;  %v5924_v18 = vld [vmem:[%s8634_s1 + $0x5c8] ss:$16 sps:$4 sm:$0xff]  }
  0x82   :  { %3727 = vmatmul.mubr.bf16.vlgmr.msra.gmra.mrb[0].mxu0 %v680_v21  ;;  %4096 = vmatmul.mubr.bf16.vlgmr.msra.gmra.mrb[0].mxu1 %v680_v21  ;;  %v5927_v21 = vld [vmem:[%s8634_s1 + $0x5e0] ss:$16 sps:$4 sm:$0xff]  }
  0x83   :  { %3736 = vmatpush1.bf16.msra.mxu0 %v5837_v20  ;;  %4105 = vmatpush1.bf16.msra.mxu1 %v5840_v22  ;;  %v5932_v20 = vld [vmem:[%s8634_s1 + $0x5ec] ss:$16 sps:$4 sm:$0xff]   ;;  %v5930_v22 = vld [vmem:[%s8634_s1 + $0x5e8] ss:$16 sps:$4 sm:$0xff]  }
  0x84   :  { %3737 = vmatprep.subr.bf16.mxu0 %v5845_v23  ;;  %4106 = vmatprep.subr.bf16.mxu1 %v5848_v24  ;;  %v5936_v23 = vld [vmem:[%s8634_s1 + $0x604] ss:$16 sps:$4 sm:$0xff]   ;;  %v5939_v24 = vld [vmem:[%s8634_s1 + $0x60c] ss:$16 sps:$4 sm:$0xff]  }
  0x85   :  { %3767 = vmatprep.mubr.bf16.mxu0 %v7081_v25  ;;  %4136 = vmatprep.mubr.bf16.mxu1 %v7081_v25 }
  0x87   :  { %3738 = vmatpush1.bf16.msra.mxu0 %v5843_v13  ;;  %4107 = vmatpush1.bf16.msra.mxu1 %v5846_v26  ;;  %v5934_v13 = vld [vmem:[%s8634_s1 + $0x600] ss:$16 sps:$4 sm:$0xff]   ;;  %v7270_v26 = vrot.slane %v7050_v14, %v6786_v49  ;;  %v683_v14 = vcombine.high %v7081_v25, %v7081_v25  ;;  %v5948_v25 = vld [vmem:[%s8634_s1 + $0x644] ss:$16 sps:$4 sm:$0xff]  }
  0x88   :  { %3739 = vmatprep.subr.bf16.mxu0 %v5851_v27  ;;  %4108 = vmatprep.subr.bf16.mxu1 %v5854_v28  ;;  %v5937_v27 = vld [vmem:[%s8634_s1 + $0x608] ss:$16 sps:$4 sm:$0xff]   ;;  %v5942_v28 = vld [vmem:[%s8634_s1 + $0x624] ss:$16 sps:$4 sm:$0xff]  }
  0x8b   :  { %3740 = vmatpush1.bf16.msra.mxu0 %v5849_v29  ;;  %4109 = vmatpush1.bf16.msra.mxu1 %v5852_v30  ;;  %v5945_v29 = vld [vmem:[%s8634_s1 + $0x62c] ss:$16 sps:$4 sm:$0xff]   ;;  %v5940_v30 = vld [vmem:[%s8634_s1 + $0x620] ss:$16 sps:$4 sm:$0xff]  }
  0x8c   :  { %3741 = vmatprep.subr.bf16.mxu0 %v5857_v31  ;;  %4110 = vmatprep.subr.bf16.mxu1 %v5860_v32  ;;  %v5943_v31 = vld [vmem:[%s8634_s1 + $0x628] ss:$16 sps:$4 sm:$0xff]   ;;  %v5951_v32 = vld [vmem:[%s8634_s1 + $0x64c] ss:$16 sps:$4 sm:$0xff]  }
  0x8f   :  { %3742 = vmatpush1.bf16.msra.mxu0 %v5855_v33  ;;  %4111 = vmatpush1.bf16.msra.mxu1 %v5858_v34  ;;  %v5946_v33 = vld [vmem:[%s8634_s1 + $0x640] ss:$16 sps:$4 sm:$0xff]   ;;  %v5949_v34 = vld [vmem:[%s8634_s1 + $0x648] ss:$16 sps:$4 sm:$0xff]  }
  0x90   :  { %3743 = vmatprep.subr.bf16.mxu0 %v5863_v35  ;;  %4112 = vmatprep.subr.bf16.mxu1 %v5866_v36  ;;  %v5954_v35 = vld [vmem:[%s8634_s1 + $0x664] ss:$16 sps:$4 sm:$0xff]   ;;  %v5957_v36 = vld [vmem:[%s8634_s1 + $0x66c] ss:$16 sps:$4 sm:$0xff]  }
  0x93   :  { %3744 = vmatpush1.bf16.msra.mxu0 %v5861_v37  ;;  %4113 = vmatpush1.bf16.msra.mxu1 %v5864_v38  ;;  %v5952_v37 = vld [vmem:[%s8634_s1 + $0x660] ss:$16 sps:$4 sm:$0xff]   ;;  %v5955_v38 = vld [vmem:[%s8634_s1 + $0x668] ss:$16 sps:$4 sm:$0xff]  }
  0x94   :  { %3745 = vmatprep.subr.bf16.mxu0 %v5869_v39  ;;  %4114 = vmatprep.subr.bf16.mxu1 %v5872_v40  ;;  %v5960_v39 = vld [vmem:[%s8634_s1 + $0x684] ss:$16 sps:$4 sm:$0xff]   ;;  %v5963_v40 = vld [vmem:[%s8634_s1 + $0x68c] ss:$16 sps:$4 sm:$0xff]  }
  0x97   :  { %3746 = vmatpush1.bf16.msra.mxu0 %v5867_v41  ;;  %4115 = vmatpush1.bf16.msra.mxu1 %v5870_v43  ;;  %v5958_v41 = vld [vmem:[%s8634_s1 + $0x680] ss:$16 sps:$4 sm:$0xff]   ;;  %v5961_v43 = vld [vmem:[%s8634_s1 + $0x688] ss:$16 sps:$4 sm:$0xff]  }
  0x98   :  { %3747 = vmatprep.subr.bf16.mxu0 %v5875_v44  ;;  %4116 = vmatprep.subr.bf16.mxu1 %v5878_v45  ;;  %v5966_v44 = vld [vmem:[%s8634_s1 + $0x6a4] ss:$16 sps:$4 sm:$0xff]   ;;  %v5969_v45 = vld [vmem:[%s8634_s1 + $0x6ac] ss:$16 sps:$4 sm:$0xff]  }
  0x9b   :  { %3748 = vmatpush1.bf16.msra.mxu0 %v5873_v46  ;;  %4117 = vmatpush1.bf16.msra.mxu1 %v5876_v47  ;;  %v5964_v46 = vld [vmem:[%s8634_s1 + $0x6a0] ss:$16 sps:$4 sm:$0xff]   ;;  %v5967_v47 = vld [vmem:[%s8634_s1 + $0x6a8] ss:$16 sps:$4 sm:$0xff]  }
  0x9c   :  { %3749 = vmatprep.subr.bf16.mxu0 %v5881_v48  ;;  %4118 = vmatprep.subr.bf16.mxu1 %v5884_v50  ;;  %v5972_v48 = vld [vmem:[%s8634_s1 + $0x6c4] ss:$16 sps:$4 sm:$0xff]   ;;  %v5975_v50 = vld [vmem:[%s8634_s1 + $0x6cc] ss:$16 sps:$4 sm:$0xff]  }
  0x9f   :  { %3750 = vmatpush1.bf16.msra.mxu0 %v5879_v51  ;;  %4119 = vmatpush1.bf16.msra.mxu1 %v5882_v53  ;;  %v5970_v51 = vld [vmem:[%s8634_s1 + $0x6c0] ss:$16 sps:$4 sm:$0xff]   ;;  %v5973_v53 = vld [vmem:[%s8634_s1 + $0x6c8] ss:$16 sps:$4 sm:$0xff]  }
  0xa0   :  { %3751 = vmatprep.subr.bf16.mxu0 %v5887_v54  ;;  %4120 = vmatprep.subr.bf16.mxu1 %v5890_v55  ;;  %v5978_v54 = vld [vmem:[%s8634_s1 + $0x6e4] ss:$16 sps:$4 sm:$0xff]   ;;  %v5981_v55 = vld [vmem:[%s8634_s1 + $0x6ec] ss:$16 sps:$4 sm:$0xff]  }
  0xa3   :  { %3752 = vmatpush1.bf16.msra.mxu0 %v5885_v56  ;;  %4121 = vmatpush1.bf16.msra.mxu1 %v5888_v57  ;;  %v5976_v56 = vld [vmem:[%s8634_s1 + $0x6e0] ss:$16 sps:$4 sm:$0xff]   ;;  %v5979_v57 = vld [vmem:[%s8634_s1 + $0x6e8] ss:$16 sps:$4 sm:$0xff]  }
  0xa4   :  { %3753 = vmatprep.subr.bf16.mxu0 %v5893_v58  ;;  %4122 = vmatprep.subr.bf16.mxu1 %v5896_v59  ;;  %v5984_v58 = vld [vmem:[%s8634_s1 + $0x704] ss:$16 sps:$4 sm:$0xff]   ;;  %v5987_v59 = vld [vmem:[%s8634_s1 + $0x70c] ss:$16 sps:$4 sm:$0xff]  }
  0xa7   :  { %3754 = vmatpush1.bf16.msra.mxu0 %v5891_v60  ;;  %4123 = vmatpush1.bf16.msra.mxu1 %v5894_v61  ;;  %v5982_v60 = vld [vmem:[%s8634_s1 + $0x700] ss:$16 sps:$4 sm:$0xff]   ;;  %v5985_v61 = vld [vmem:[%s8634_s1 + $0x708] ss:$16 sps:$4 sm:$0xff]  }
  0xa8   :  { %3755 = vmatprep.subr.bf16.mxu0 %v5899_v62  ;;  %4124 = vmatprep.subr.bf16.mxu1 %v5902_v63  ;;  %v5990_v62 = vld [vmem:[%s8634_s1 + $0x724] ss:$16 sps:$4 sm:$0xff]   ;;  %v5993_v63 = vld [vmem:[%s8634_s1 + $0x72c] ss:$16 sps:$4 sm:$0xff]  }
  0xab   :  { %3756 = vmatpush1.bf16.msra.mxu0 %v5897_v0  ;;  %4125 = vmatpush1.bf16.msra.mxu1 %v5900_v1  ;;  %v5988_v0 = vld [vmem:[%s8634_s1 + $0x720] ss:$16 sps:$4 sm:$0xff]   ;;  %v5991_v1 = vld [vmem:[%s8634_s1 + $0x728] ss:$16 sps:$4 sm:$0xff]  }
  0xac   :  { %3757 = vmatprep.subr.bf16.mxu0 %v5905_v2  ;;  %4126 = vmatprep.subr.bf16.mxu1 %v5908_v3  ;;  %v5996_v2 = vld [vmem:[%s8634_s1 + $0x744] ss:$16 sps:$4 sm:$0xff]   ;;  %v5999_v3 = vld [vmem:[%s8634_s1 + $0x74c] ss:$16 sps:$4 sm:$0xff]  }
  0xaf   :  { %3758 = vmatpush1.bf16.msra.mxu0 %v5903_v4  ;;  %4127 = vmatpush1.bf16.msra.mxu1 %v5906_v5  ;;  %v5994_v4 = vld [vmem:[%s8634_s1 + $0x740] ss:$16 sps:$4 sm:$0xff]   ;;  %v5997_v5 = vld [vmem:[%s8634_s1 + $0x748] ss:$16 sps:$4 sm:$0xff]  }
  0xb0   :  { %3759 = vmatprep.subr.bf16.mxu0 %v5911_v6  ;;  %4128 = vmatprep.subr.bf16.mxu1 %v5914_v7  ;;  %v6002_v6 = vld [vmem:[%s8634_s1 + $0x764] ss:$16 sps:$4 sm:$0xff]   ;;  %v6005_v7 = vld [vmem:[%s8634_s1 + $0x76c] ss:$16 sps:$4 sm:$0xff]  }
  0xb3   :  { %3760 = vmatpush1.bf16.msra.mxu0 %v5909_v8  ;;  %4129 = vmatpush1.bf16.msra.mxu1 %v5912_v9  ;;  %v6000_v8 = vld [vmem:[%s8634_s1 + $0x760] ss:$16 sps:$4 sm:$0xff]   ;;  %v6003_v9 = vld [vmem:[%s8634_s1 + $0x768] ss:$16 sps:$4 sm:$0xff]  }
  0xb4   :  { %3761 = vmatprep.subr.bf16.mxu0 %v5917_v10  ;;  %4130 = vmatprep.subr.bf16.mxu1 %v5920_v11  ;;  %v6008_v10 = vld [vmem:[%s8634_s1 + $0x784] ss:$16 sps:$4 sm:$0xff]   ;;  %v6011_v11 = vld [vmem:[%s8634_s1 + $0x78c] ss:$16 sps:$4 sm:$0xff]  }
  0xb7   :  { %3762 = vmatpush1.bf16.msra.mxu0 %v5915_v12  ;;  %4131 = vmatpush1.bf16.msra.mxu1 %v5918_v52  ;;  %v6006_v12 = vld [vmem:[%s8634_s1 + $0x780] ss:$16 sps:$4 sm:$0xff]   ;;  %v6009_v52 = vld [vmem:[%s8634_s1 + $0x788] ss:$16 sps:$4 sm:$0xff]  }
  0xb8   :  { %3763 = vmatprep.subr.bf16.mxu0 %v5923_v15  ;;  %4132 = vmatprep.subr.bf16.mxu1 %v5926_v16  ;;  %v6014_v15 = vld [vmem:[%s8634_s1 + $0x7a4] ss:$16 sps:$4 sm:$0xff]   ;;  %v6017_v16 = vld [vmem:[%s8634_s1 + $0x7ac] ss:$16 sps:$4 sm:$0xff]  }
  0xbb   :  { %3764 = vmatpush1.bf16.msra.mxu0 %v5921_v17  ;;  %4133 = vmatpush1.bf16.msra.mxu1 %v5924_v18  ;;  %v6012_v17 = vld [vmem:[%s8634_s1 + $0x7a0] ss:$16 sps:$4 sm:$0xff]   ;;  %v6015_v18 = vld [vmem:[%s8634_s1 + $0x7a8] ss:$16 sps:$4 sm:$0xff]  }
  0xbc   :  { %3765 = vmatprep.subr.bf16.mxu0 %v5929_v19  ;;  %4134 = vmatprep.subr.bf16.mxu1 %v5932_v20  ;;  %v6020_v19 = vld [vmem:[%s8634_s1 + $0x7c4] ss:$16 sps:$4 sm:$0xff]   ;;  %v6023_v20 = vld [vmem:[%s8634_s1 + $0x7cc] ss:$16 sps:$4 sm:$0xff]  }
  0xbf   :  { %3766 = vmatpush1.bf16.msra.mxu0 %v5927_v21  ;;  %4135 = vmatpush1.bf16.msra.mxu1 %v5930_v22  ;;  %v7444_v21 = vld.sshfl [vmem:[%s8633_s0 + $0x8] sm:$0xff pattern:$0x75316420]  ;;  %v6018_v22 = vld [vmem:[%s8634_s1 + $0x7c0] ss:$16 sps:$4 sm:$0xff]  }
  0xc0   :  { %3776 = vmatprep.subr.bf16.mxu0 %v5936_v23  ;;  %4145 = vmatprep.subr.bf16.mxu1 %v5939_v24  ;;  %v6021_v23 = vld [vmem:[%s8634_s1 + $0x7c8] ss:$16 sps:$4 sm:$0xff]   ;;  %v6026_v24 = vld [vmem:[%s8634_s1 + $0x7e4] ss:$16 sps:$4 sm:$0xff]  }
  0xc2   :  { %3768 = vmatmul.mubr.bf16.vlgmr.msra.gmra.mrb[0].mxu0 %v7270_v26  ;;  %4137 = vmatmul.mubr.bf16.vlgmr.msra.gmra.mrb[0].mxu1 %v7270_v26 }
  0xc3   :  { %3777 = vmatpush1.bf16.msra.mxu0 %v5934_v13  ;;  %4146 = vmatpush1.bf16.msra.mxu1 %v5937_v27  ;;  %v6029_v13 = vld [vmem:[%s8634_s1 + $0x7ec] ss:$16 sps:$4 sm:$0xff]   ;;  %v6024_v27 = vld [vmem:[%s8634_s1 + $0x7e0] ss:$16 sps:$4 sm:$0xff]  }
  0xc4   :  { %3778 = vmatprep.subr.bf16.mxu0 %v5942_v28  ;;  %4147 = vmatprep.subr.bf16.mxu1 %v5945_v29  ;;  %v6027_v28 = vld [vmem:[%s8634_s1 + $0x7e8] ss:$16 sps:$4 sm:$0xff]   ;;  %v6032_v29 = vld [vmem:[%s8634_s1 + $0x804] ss:$16 sps:$4 sm:$0xff]  }
  0xc5   :  { %3808 = vmatprep.mubr.bf16.mxu0 %v683_v14  ;;  %4177 = vmatprep.mubr.bf16.mxu1 %v683_v14  ;;  %v6035_v14 = vld [vmem:[%s8634_s1 + $0x80c] ss:$16 sps:$4 sm:$0xff]  }
  0xc7   :  { %3779 = vmatpush1.bf16.msra.mxu0 %v5940_v30  ;;  %4148 = vmatpush1.bf16.msra.mxu1 %v5943_v31  ;;  %v699_v30 = vcombine.high %v7444_v21, %v7444_v21  ;;  %v681_v31 = vcombine.high %v7270_v26, %v7270_v26  ;;  %v6041_v26 = vld [vmem:[%s8634_s1 + $0x82c] ss:$16 sps:$4 sm:$0xff]  }
  0xc8   :  { %3780 = vmatprep.subr.bf16.mxu0 %v5948_v25  ;;  %4149 = vmatprep.subr.bf16.mxu1 %v5951_v32  ;;  %v6030_v25 = vld [vmem:[%s8634_s1 + $0x800] ss:$16 sps:$4 sm:$0xff]   ;;  %v6033_v32 = vld [vmem:[%s8634_s1 + $0x808] ss:$16 sps:$4 sm:$0xff]  }
  0xcb   :  { %3781 = vmatpush1.bf16.msra.mxu0 %v5946_v33  ;;  %4150 = vmatpush1.bf16.msra.mxu1 %v5949_v34  ;;  %v6038_v33 = vld [vmem:[%s8634_s1 + $0x824] ss:$16 sps:$4 sm:$0xff]   ;;  %v7487_v34 = vrot.slane %v699_v30, %v6786_v49 }
  0xcc   :  { %3782 = vmatprep.subr.bf16.mxu0 %v5954_v35  ;;  %4151 = vmatprep.subr.bf16.mxu1 %v5957_v36  ;;  %v6036_v35 = vld [vmem:[%s8634_s1 + $0x820] ss:$16 sps:$4 sm:$0xff]   ;;  %v6039_v36 = vld [vmem:[%s8634_s1 + $0x828] ss:$16 sps:$4 sm:$0xff]   ;;  %v6122_v30 = vld [vmem:[%s8634_s1 + $0x9e4] ss:$16 sps:$4 sm:$0xff]  }
  0xcf   :  { %3783 = vmatpush1.bf16.msra.mxu0 %v5952_v37  ;;  %4152 = vmatpush1.bf16.msra.mxu1 %v5955_v38  ;;  %v6044_v37 = vld [vmem:[%s8634_s1 + $0x844] ss:$16 sps:$4 sm:$0xff]   ;;  %v6047_v38 = vld [vmem:[%s8634_s1 + $0x84c] ss:$16 sps:$4 sm:$0xff]  }
  0xd0   :  { %3784 = vmatprep.subr.bf16.mxu0 %v5960_v39  ;;  %4153 = vmatprep.subr.bf16.mxu1 %v5963_v40  ;;  %v6042_v39 = vld [vmem:[%s8634_s1 + $0x840] ss:$16 sps:$4 sm:$0xff]   ;;  %v6045_v40 = vld [vmem:[%s8634_s1 + $0x848] ss:$16 sps:$4 sm:$0xff]  }
  0xd3   :  { %3785 = vmatpush1.bf16.msra.mxu0 %v5958_v41  ;;  %4154 = vmatpush1.bf16.msra.mxu1 %v5961_v43  ;;  %v6050_v41 = vld [vmem:[%s8634_s1 + $0x864] ss:$16 sps:$4 sm:$0xff]   ;;  %v6053_v43 = vld [vmem:[%s8634_s1 + $0x86c] ss:$16 sps:$4 sm:$0xff]  }
  0xd4   :  { %3786 = vmatprep.subr.bf16.mxu0 %v5966_v44  ;;  %4155 = vmatprep.subr.bf16.mxu1 %v5969_v45  ;;  %v6048_v44 = vld [vmem:[%s8634_s1 + $0x860] ss:$16 sps:$4 sm:$0xff]   ;;  %v6051_v45 = vld [vmem:[%s8634_s1 + $0x868] ss:$16 sps:$4 sm:$0xff]  }
  0xd7   :  { %3787 = vmatpush1.bf16.msra.mxu0 %v5964_v46  ;;  %4156 = vmatpush1.bf16.msra.mxu1 %v5967_v47  ;;  %v6056_v46 = vld [vmem:[%s8634_s1 + $0x884] ss:$16 sps:$4 sm:$0xff]   ;;  %v6059_v47 = vld [vmem:[%s8634_s1 + $0x88c] ss:$16 sps:$4 sm:$0xff]  }
  0xd8   :  { %3788 = vmatprep.subr.bf16.mxu0 %v5972_v48  ;;  %4157 = vmatprep.subr.bf16.mxu1 %v5975_v50  ;;  %v6054_v48 = vld [vmem:[%s8634_s1 + $0x880] ss:$16 sps:$4 sm:$0xff]   ;;  %v6057_v50 = vld [vmem:[%s8634_s1 + $0x888] ss:$16 sps:$4 sm:$0xff]  }
  0xdb   :  { %3789 = vmatpush1.bf16.msra.mxu0 %v5970_v51  ;;  %4158 = vmatpush1.bf16.msra.mxu1 %v5973_v53  ;;  %v6062_v51 = vld [vmem:[%s8634_s1 + $0x8a4] ss:$16 sps:$4 sm:$0xff]   ;;  %v6065_v53 = vld [vmem:[%s8634_s1 + $0x8ac] ss:$16 sps:$4 sm:$0xff]  }
  0xdc   :  { %3790 = vmatprep.subr.bf16.mxu0 %v5978_v54  ;;  %4159 = vmatprep.subr.bf16.mxu1 %v5981_v55  ;;  %v6060_v54 = vld [vmem:[%s8634_s1 + $0x8a0] ss:$16 sps:$4 sm:$0xff]   ;;  %v6063_v55 = vld [vmem:[%s8634_s1 + $0x8a8] ss:$16 sps:$4 sm:$0xff]  }
  0xdf   :  { %3791 = vmatpush1.bf16.msra.mxu0 %v5976_v56  ;;  %4160 = vmatpush1.bf16.msra.mxu1 %v5979_v57  ;;  %v6068_v56 = vld [vmem:[%s8634_s1 + $0x8c4] ss:$16 sps:$4 sm:$0xff]   ;;  %v6071_v57 = vld [vmem:[%s8634_s1 + $0x8cc] ss:$16 sps:$4 sm:$0xff]  }
  0xe0   :  { %3792 = vmatprep.subr.bf16.mxu0 %v5984_v58  ;;  %4161 = vmatprep.subr.bf16.mxu1 %v5987_v59  ;;  %v6066_v58 = vld [vmem:[%s8634_s1 + $0x8c0] ss:$16 sps:$4 sm:$0xff]   ;;  %v6069_v59 = vld [vmem:[%s8634_s1 + $0x8c8] ss:$16 sps:$4 sm:$0xff]  }
  0xe3   :  { %3793 = vmatpush1.bf16.msra.mxu0 %v5982_v60  ;;  %4162 = vmatpush1.bf16.msra.mxu1 %v5985_v61  ;;  %v6074_v60 = vld [vmem:[%s8634_s1 + $0x8e4] ss:$16 sps:$4 sm:$0xff]   ;;  %v6077_v61 = vld [vmem:[%s8634_s1 + $0x8ec] ss:$16 sps:$4 sm:$0xff]  }
  0xe4   :  { %3794 = vmatprep.subr.bf16.mxu0 %v5990_v62  ;;  %4163 = vmatprep.subr.bf16.mxu1 %v5993_v63  ;;  %v6072_v62 = vld [vmem:[%s8634_s1 + $0x8e0] ss:$16 sps:$4 sm:$0xff]   ;;  %v6075_v63 = vld [vmem:[%s8634_s1 + $0x8e8] ss:$16 sps:$4 sm:$0xff]  }
  0xe7   :  { %3795 = vmatpush1.bf16.msra.mxu0 %v5988_v0  ;;  %4164 = vmatpush1.bf16.msra.mxu1 %v5991_v1  ;;  %v6080_v0 = vld [vmem:[%s8634_s1 + $0x904] ss:$16 sps:$4 sm:$0xff]   ;;  %v6083_v1 = vld [vmem:[%s8634_s1 + $0x90c] ss:$16 sps:$4 sm:$0xff]  }
  0xe8   :  { %3796 = vmatprep.subr.bf16.mxu0 %v5996_v2  ;;  %4165 = vmatprep.subr.bf16.mxu1 %v5999_v3  ;;  %v6078_v2 = vld [vmem:[%s8634_s1 + $0x900] ss:$16 sps:$4 sm:$0xff]   ;;  %v6081_v3 = vld [vmem:[%s8634_s1 + $0x908] ss:$16 sps:$4 sm:$0xff]  }
  0xeb   :  { %3797 = vmatpush1.bf16.msra.mxu0 %v5994_v4  ;;  %4166 = vmatpush1.bf16.msra.mxu1 %v5997_v5  ;;  %v6086_v4 = vld [vmem:[%s8634_s1 + $0x924] ss:$16 sps:$4 sm:$0xff]   ;;  %v6089_v5 = vld [vmem:[%s8634_s1 + $0x92c] ss:$16 sps:$4 sm:$0xff]  }
  0xec   :  { %3798 = vmatprep.subr.bf16.mxu0 %v6002_v6  ;;  %4167 = vmatprep.subr.bf16.mxu1 %v6005_v7  ;;  %v6084_v6 = vld [vmem:[%s8634_s1 + $0x920] ss:$16 sps:$4 sm:$0xff]   ;;  %v6087_v7 = vld [vmem:[%s8634_s1 + $0x928] ss:$16 sps:$4 sm:$0xff]  }
  0xef   :  { %3799 = vmatpush1.bf16.msra.mxu0 %v6000_v8  ;;  %4168 = vmatpush1.bf16.msra.mxu1 %v6003_v9  ;;  %v6092_v8 = vld [vmem:[%s8634_s1 + $0x944] ss:$16 sps:$4 sm:$0xff]   ;;  %v6095_v9 = vld [vmem:[%s8634_s1 + $0x94c] ss:$16 sps:$4 sm:$0xff]  }
  0xf0   :  { %3800 = vmatprep.subr.bf16.mxu0 %v6008_v10  ;;  %4169 = vmatprep.subr.bf16.mxu1 %v6011_v11  ;;  %v6090_v10 = vld [vmem:[%s8634_s1 + $0x940] ss:$16 sps:$4 sm:$0xff]   ;;  %v6093_v11 = vld [vmem:[%s8634_s1 + $0x948] ss:$16 sps:$4 sm:$0xff]  }
  0xf3   :  { %3801 = vmatpush1.bf16.msra.mxu0 %v6006_v12  ;;  %4170 = vmatpush1.bf16.msra.mxu1 %v6009_v52  ;;  %v6098_v12 = vld [vmem:[%s8634_s1 + $0x964] ss:$16 sps:$4 sm:$0xff]   ;;  %v6101_v52 = vld [vmem:[%s8634_s1 + $0x96c] ss:$16 sps:$4 sm:$0xff]  }
  0xf4   :  { %3802 = vmatprep.subr.bf16.mxu0 %v6014_v15  ;;  %4171 = vmatprep.subr.bf16.mxu1 %v6017_v16  ;;  %v6096_v15 = vld [vmem:[%s8634_s1 + $0x960] ss:$16 sps:$4 sm:$0xff]   ;;  %v6099_v16 = vld [vmem:[%s8634_s1 + $0x968] ss:$16 sps:$4 sm:$0xff]  }
  0xf7   :  { %3803 = vmatpush1.bf16.msra.mxu0 %v6012_v17  ;;  %4172 = vmatpush1.bf16.msra.mxu1 %v6015_v18  ;;  %v6104_v17 = vld [vmem:[%s8634_s1 + $0x984] ss:$16 sps:$4 sm:$0xff]   ;;  %v6107_v18 = vld [vmem:[%s8634_s1 + $0x98c] ss:$16 sps:$4 sm:$0xff]  }
  0xf8   :  { %3804 = vmatprep.subr.bf16.mxu0 %v6020_v19  ;;  %4173 = vmatprep.subr.bf16.mxu1 %v6023_v20  ;;  %v6102_v19 = vld [vmem:[%s8634_s1 + $0x980] ss:$16 sps:$4 sm:$0xff]   ;;  %v6105_v20 = vld [vmem:[%s8634_s1 + $0x988] ss:$16 sps:$4 sm:$0xff]  }
  0xfb   :  { %3805 = vmatpush1.bf16.msra.mxu0 %v6018_v22  ;;  %4174 = vmatpush1.bf16.msra.mxu1 %v6021_v23  ;;  %v6110_v22 = vld [vmem:[%s8634_s1 + $0x9a4] ss:$16 sps:$4 sm:$0xff]   ;;  %v6113_v23 = vld [vmem:[%s8634_s1 + $0x9ac] ss:$16 sps:$4 sm:$0xff]  }
  0xfc   :  { %3806 = vmatprep.subr.bf16.mxu0 %v6026_v24  ;;  %4175 = vmatprep.subr.bf16.mxu1 %v6029_v13  ;;  %v6108_v24 = vld [vmem:[%s8634_s1 + $0x9a0] ss:$16 sps:$4 sm:$0xff]   ;;  %v6111_v13 = vld [vmem:[%s8634_s1 + $0x9a8] ss:$16 sps:$4 sm:$0xff]  }
  0xff   :  { %3807 = vmatpush1.bf16.msra.mxu0 %v6024_v27  ;;  %4176 = vmatpush1.bf16.msra.mxu1 %v6027_v28  ;;  %v6116_v27 = vld [vmem:[%s8634_s1 + $0x9c4] ss:$16 sps:$4 sm:$0xff]   ;;  %v6119_v28 = vld [vmem:[%s8634_s1 + $0x9cc] ss:$16 sps:$4 sm:$0xff]  }
 0x100   :  { %3817 = vmatprep.subr.bf16.mxu0 %v6032_v29  ;;  %4186 = vmatprep.subr.bf16.mxu1 %v6035_v14  ;;  %v6114_v29 = vld [vmem:[%s8634_s1 + $0x9c0] ss:$16 sps:$4 sm:$0xff]   ;;  %v6117_v14 = vld [vmem:[%s8634_s1 + $0x9c8] ss:$16 sps:$4 sm:$0xff]  }
 0x102   :  { %3809 = vmatmul.mubr.bf16.vlgmr.msra.gmra.mrb[0].mxu0 %v681_v31  ;;  %4178 = vmatmul.mubr.bf16.vlgmr.msra.gmra.mrb[0].mxu1 %v681_v31  ;;  %v6125_v31 = vld [vmem:[%s8634_s1 + $0x9ec] ss:$16 sps:$4 sm:$0xff]  }
 0x103   :  { %3818 = vmatpush1.bf16.msra.mxu0 %v6030_v25  ;;  %4187 = vmatpush1.bf16.msra.mxu1 %v6033_v32  ;;  %v6120_v25 = vld [vmem:[%s8634_s1 + $0x9e0] ss:$16 sps:$4 sm:$0xff]   ;;  %v6123_v32 = vld [vmem:[%s8634_s1 + $0x9e8] ss:$16 sps:$4 sm:$0xff]  }
 0x104   :  { %3819 = vmatprep.subr.bf16.mxu0 %v6038_v33  ;;  %4188 = vmatprep.subr.bf16.mxu1 %v6041_v26  ;;  %v6128_v33 = vld [vmem:[%s8634_s1 + $0xa04] ss:$16 sps:$4 sm:$0xff]   ;;  %v6131_v26 = vld [vmem:[%s8634_s1 + $0xa0c] ss:$16 sps:$4 sm:$0xff]  }
 0x105   :  { %3849 = vmatprep.mubr.bf16.mxu0 %v7487_v34  ;;  %4218 = vmatprep.mubr.bf16.mxu1 %v7487_v34 }
 0x107   :  { %3820 = vmatpush1.bf16.msra.mxu0 %v6036_v35  ;;  %4189 = vmatpush1.bf16.msra.mxu1 %v6039_v36  ;;  %v7673_v35 = vrot.slane %v7444_v21, %v6786_v49  ;;  %v6126_v36 = vld [vmem:[%s8634_s1 + $0xa00] ss:$16 sps:$4 sm:$0xff]   ;;  %v6137_v21 = vld [vmem:[%s8634_s1 + $0xa2c] ss:$16 sps:$4 sm:$0xff]  }
 0x108   :  { %3821 = vmatprep.subr.bf16.mxu0 %v6044_v37  ;;  %4190 = vmatprep.subr.bf16.mxu1 %v6047_v38  ;;  %v6129_v37 = vld [vmem:[%s8634_s1 + $0xa08] ss:$16 sps:$4 sm:$0xff]   ;;  %v6134_v38 = vld [vmem:[%s8634_s1 + $0xa24] ss:$16 sps:$4 sm:$0xff]  }
 0x10b   :  { %3822 = vmatpush1.bf16.msra.mxu0 %v6042_v39  ;;  %4191 = vmatpush1.bf16.msra.mxu1 %v6045_v40  ;;  %v731_v39 = vcombine.high %v7487_v34, %v7487_v34  ;;  %v6132_v40 = vld [vmem:[%s8634_s1 + $0xa20] ss:$16 sps:$4 sm:$0xff]   ;;  %v6140_v34 = vld [vmem:[%s8634_s1 + $0xa44] ss:$16 sps:$4 sm:$0xff]  }
 0x10c   :  { %3823 = vmatprep.subr.bf16.mxu0 %v6050_v41  ;;  %4192 = vmatprep.subr.bf16.mxu1 %v6053_v43  ;;  %v6135_v41 = vld [vmem:[%s8634_s1 + $0xa28] ss:$16 sps:$4 sm:$0xff]   ;;  %v6143_v43 = vld [vmem:[%s8634_s1 + $0xa4c] ss:$16 sps:$4 sm:$0xff]  }
 0x10f   :  { %3824 = vmatpush1.bf16.msra.mxu0 %v6048_v44  ;;  %4193 = vmatpush1.bf16.msra.mxu1 %v6051_v45  ;;  %v6138_v44 = vld [vmem:[%s8634_s1 + $0xa40] ss:$16 sps:$4 sm:$0xff]   ;;  %v6141_v45 = vld [vmem:[%s8634_s1 + $0xa48] ss:$16 sps:$4 sm:$0xff]  }
 0x110   :  { %3825 = vmatprep.subr.bf16.mxu0 %v6056_v46  ;;  %4194 = vmatprep.subr.bf16.mxu1 %v6059_v47  ;;  %v6146_v46 = vld [vmem:[%s8634_s1 + $0xa64] ss:$16 sps:$4 sm:$0xff]   ;;  %v6149_v47 = vld [vmem:[%s8634_s1 + $0xa6c] ss:$16 sps:$4 sm:$0xff]  }
 0x113   :  { %3826 = vmatpush1.bf16.msra.mxu0 %v6054_v48  ;;  %4195 = vmatpush1.bf16.msra.mxu1 %v6057_v50  ;;  %v6144_v48 = vld [vmem:[%s8634_s1 + $0xa60] ss:$16 sps:$4 sm:$0xff]   ;;  %v6147_v50 = vld [vmem:[%s8634_s1 + $0xa68] ss:$16 sps:$4 sm:$0xff]  }
 0x114   :  { %3827 = vmatprep.subr.bf16.mxu0 %v6062_v51  ;;  %4196 = vmatprep.subr.bf16.mxu1 %v6065_v53  ;;  %v6152_v51 = vld [vmem:[%s8634_s1 + $0xa84] ss:$16 sps:$4 sm:$0xff]   ;;  %v6155_v53 = vld [vmem:[%s8634_s1 + $0xa8c] ss:$16 sps:$4 sm:$0xff]  }
 0x117   :  { %3828 = vmatpush1.bf16.msra.mxu0 %v6060_v54  ;;  %4197 = vmatpush1.bf16.msra.mxu1 %v6063_v55  ;;  %v6150_v54 = vld [vmem:[%s8634_s1 + $0xa80] ss:$16 sps:$4 sm:$0xff]   ;;  %v6153_v55 = vld [vmem:[%s8634_s1 + $0xa88] ss:$16 sps:$4 sm:$0xff]  }
 0x118   :  { %3829 = vmatprep.subr.bf16.mxu0 %v6068_v56  ;;  %4198 = vmatprep.subr.bf16.mxu1 %v6071_v57  ;;  %v6158_v56 = vld [vmem:[%s8634_s1 + $0xaa4] ss:$16 sps:$4 sm:$0xff]   ;;  %v6161_v57 = vld [vmem:[%s8634_s1 + $0xaac] ss:$16 sps:$4 sm:$0xff]  }
 0x11b   :  { %3830 = vmatpush1.bf16.msra.mxu0 %v6066_v58  ;;  %4199 = vmatpush1.bf16.msra.mxu1 %v6069_v59  ;;  %v6156_v58 = vld [vmem:[%s8634_s1 + $0xaa0] ss:$16 sps:$4 sm:$0xff]   ;;  %v6159_v59 = vld [vmem:[%s8634_s1 + $0xaa8] ss:$16 sps:$4 sm:$0xff]  }
 0x11c   :  { %3831 = vmatprep.subr.bf16.mxu0 %v6074_v60  ;;  %4200 = vmatprep.subr.bf16.mxu1 %v6077_v61  ;;  %v6164_v60 = vld [vmem:[%s8634_s1 + $0xac4] ss:$16 sps:$4 sm:$0xff]   ;;  %v6167_v61 = vld [vmem:[%s8634_s1 + $0xacc] ss:$16 sps:$4 sm:$0xff]  }
 0x11f   :  { %3832 = vmatpush1.bf16.msra.mxu0 %v6072_v62  ;;  %4201 = vmatpush1.bf16.msra.mxu1 %v6075_v63  ;;  %v6162_v62 = vld [vmem:[%s8634_s1 + $0xac0] ss:$16 sps:$4 sm:$0xff]   ;;  %v6165_v63 = vld [vmem:[%s8634_s1 + $0xac8] ss:$16 sps:$4 sm:$0xff]  }
 0x120   :  { %3833 = vmatprep.subr.bf16.mxu0 %v6080_v0  ;;  %4202 = vmatprep.subr.bf16.mxu1 %v6083_v1  ;;  %v6170_v0 = vld [vmem:[%s8634_s1 + $0xae4] ss:$16 sps:$4 sm:$0xff]   ;;  %v6173_v1 = vld [vmem:[%s8634_s1 + $0xaec] ss:$16 sps:$4 sm:$0xff]  }
 0x123   :  { %3834 = vmatpush1.bf16.msra.mxu0 %v6078_v2  ;;  %4203 = vmatpush1.bf16.msra.mxu1 %v6081_v3  ;;  %v6168_v2 = vld [vmem:[%s8634_s1 + $0xae0] ss:$16 sps:$4 sm:$0xff]   ;;  %v6171_v3 = vld [vmem:[%s8634_s1 + $0xae8] ss:$16 sps:$4 sm:$0xff]  }
 0x124   :  { %3835 = vmatprep.subr.bf16.mxu0 %v6086_v4  ;;  %4204 = vmatprep.subr.bf16.mxu1 %v6089_v5  ;;  %v6176_v4 = vld [vmem:[%s8634_s1 + $0xb04] ss:$16 sps:$4 sm:$0xff]   ;;  %v6179_v5 = vld [vmem:[%s8634_s1 + $0xb0c] ss:$16 sps:$4 sm:$0xff]  }
 0x127   :  { %3836 = vmatpush1.bf16.msra.mxu0 %v6084_v6  ;;  %4205 = vmatpush1.bf16.msra.mxu1 %v6087_v7  ;;  %v6174_v6 = vld [vmem:[%s8634_s1 + $0xb00] ss:$16 sps:$4 sm:$0xff]   ;;  %v6177_v7 = vld [vmem:[%s8634_s1 + $0xb08] ss:$16 sps:$4 sm:$0xff]  }
 0x128   :  { %3837 = vmatprep.subr.bf16.mxu0 %v6092_v8  ;;  %4206 = vmatprep.subr.bf16.mxu1 %v6095_v9  ;;  %v6182_v8 = vld [vmem:[%s8634_s1 + $0xb24] ss:$16 sps:$4 sm:$0xff]   ;;  %v6185_v9 = vld [vmem:[%s8634_s1 + $0xb2c] ss:$16 sps:$4 sm:$0xff]  }
 0x12b   :  { %3838 = vmatpush1.bf16.msra.mxu0 %v6090_v10  ;;  %4207 = vmatpush1.bf16.msra.mxu1 %v6093_v11  ;;  %v6180_v10 = vld [vmem:[%s8634_s1 + $0xb20] ss:$16 sps:$4 sm:$0xff]   ;;  %v6183_v11 = vld [vmem:[%s8634_s1 + $0xb28] ss:$16 sps:$4 sm:$0xff]  }
 0x12c   :  { %3839 = vmatprep.subr.bf16.mxu0 %v6098_v12  ;;  %4208 = vmatprep.subr.bf16.mxu1 %v6101_v52  ;;  %v6188_v12 = vld [vmem:[%s8634_s1 + $0xb44] ss:$16 sps:$4 sm:$0xff]   ;;  %v6191_v52 = vld [vmem:[%s8634_s1 + $0xb4c] ss:$16 sps:$4 sm:$0xff]  }
 0x12f   :  { %3840 = vmatpush1.bf16.msra.mxu0 %v6096_v15  ;;  %4209 = vmatpush1.bf16.msra.mxu1 %v6099_v16  ;;  %v6186_v15 = vld [vmem:[%s8634_s1 + $0xb40] ss:$16 sps:$4 sm:$0xff]   ;;  %v6189_v16 = vld [vmem:[%s8634_s1 + $0xb48] ss:$16 sps:$4 sm:$0xff]  }
 0x130   :  { %3841 = vmatprep.subr.bf16.mxu0 %v6104_v17  ;;  %4210 = vmatprep.subr.bf16.mxu1 %v6107_v18  ;;  %v6194_v17 = vld [vmem:[%s8634_s1 + $0xb64] ss:$16 sps:$4 sm:$0xff]   ;;  %v6197_v18 = vld [vmem:[%s8634_s1 + $0xb6c] ss:$16 sps:$4 sm:$0xff]  }
 0x133   :  { %3842 = vmatpush1.bf16.msra.mxu0 %v6102_v19  ;;  %4211 = vmatpush1.bf16.msra.mxu1 %v6105_v20  ;;  %v6192_v19 = vld [vmem:[%s8634_s1 + $0xb60] ss:$16 sps:$4 sm:$0xff]   ;;  %v6195_v20 = vld [vmem:[%s8634_s1 + $0xb68] ss:$16 sps:$4 sm:$0xff]  }
 0x134   :  { %3843 = vmatprep.subr.bf16.mxu0 %v6110_v22  ;;  %4212 = vmatprep.subr.bf16.mxu1 %v6113_v23  ;;  %v6200_v22 = vld [vmem:[%s8634_s1 + $0xb84] ss:$16 sps:$4 sm:$0xff]   ;;  %v6203_v23 = vld [vmem:[%s8634_s1 + $0xb8c] ss:$16 sps:$4 sm:$0xff]  }
 0x137   :  { %3844 = vmatpush1.bf16.msra.mxu0 %v6108_v24  ;;  %4213 = vmatpush1.bf16.msra.mxu1 %v6111_v13  ;;  %v6198_v24 = vld [vmem:[%s8634_s1 + $0xb80] ss:$16 sps:$4 sm:$0xff]   ;;  %v6201_v13 = vld [vmem:[%s8634_s1 + $0xb88] ss:$16 sps:$4 sm:$0xff]  }
 0x138   :  { %3845 = vmatprep.subr.bf16.mxu0 %v6116_v27  ;;  %4214 = vmatprep.subr.bf16.mxu1 %v6119_v28  ;;  %v6206_v27 = vld [vmem:[%s8634_s1 + $0xba4] ss:$16 sps:$4 sm:$0xff]   ;;  %v6209_v28 = vld [vmem:[%s8634_s1 + $0xbac] ss:$16 sps:$4 sm:$0xff]  }
 0x13b   :  { %3846 = vmatpush1.bf16.msra.mxu0 %v6114_v29  ;;  %4215 = vmatpush1.bf16.msra.mxu1 %v6117_v14  ;;  %v6204_v29 = vld [vmem:[%s8634_s1 + $0xba0] ss:$16 sps:$4 sm:$0xff]   ;;  %v6207_v14 = vld [vmem:[%s8634_s1 + $0xba8] ss:$16 sps:$4 sm:$0xff]  }
 0x13c   :  { %3847 = vmatprep.subr.bf16.mxu0 %v6122_v30  ;;  %4216 = vmatprep.subr.bf16.mxu1 %v6125_v31  ;;  %v6212_v30 = vld [vmem:[%s8634_s1 + $0xbc4] ss:$16 sps:$4 sm:$0xff]   ;;  %v6215_v31 = vld [vmem:[%s8634_s1 + $0xbcc] ss:$16 sps:$4 sm:$0xff]  }
 0x13f   :  { %3848 = vmatpush1.bf16.msra.mxu0 %v6120_v25  ;;  %4217 = vmatpush1.bf16.msra.mxu1 %v6123_v32  ;;  %v6551_v25 = vld [vmem:[%s8633_s0 + $0x8] sm:$0xff] }
 0x140   :  { %3858 = vmatprep.subr.bf16.mxu0 %v6128_v33  ;;  %4227 = vmatprep.subr.bf16.mxu1 %v6131_v26  ;;  %v684_v32 = vcombine.high %v6551_v25, %v6551_v25  ;;  %v6210_v33 = vld [vmem:[%s8634_s1 + $0xbc0] ss:$16 sps:$4 sm:$0xff]   ;;  %v6213_v26 = vld [vmem:[%s8634_s1 + $0xbc8] ss:$16 sps:$4 sm:$0xff]  }
 0x142   :  { %3850 = vmatmul.mubr.bf16.vlgmr.msra.gmra.mrb[0].mxu0 %v7673_v35  ;;  %4219 = vmatmul.mubr.bf16.vlgmr.msra.gmra.mrb[0].mxu1 %v7673_v35 }
 0x143   :  { %3859 = vmatpush1.bf16.msra.mxu0 %v6126_v36  ;;  %4228 = vmatpush1.bf16.msra.mxu1 %v6129_v37  ;;  %v6218_v36 = vld [vmem:[%s8634_s1 + $0xbe4] ss:$16 sps:$4 sm:$0xff]   ;;  %v6221_v37 = vld [vmem:[%s8634_s1 + $0xbec] ss:$16 sps:$4 sm:$0xff]  }
 0x144   :  { %3860 = vmatprep.subr.bf16.mxu0 %v6134_v38  ;;  %4229 = vmatprep.subr.bf16.mxu1 %v6137_v21  ;;  %v7863_v38 = vrot.slane %v684_v32, %v6786_v49  ;;  %v6216_v21 = vld [vmem:[%s8634_s1 + $0xbe0] ss:$16 sps:$4 sm:$0xff]  }
 0x145   :  { %3890 = vmatprep.mubr.bf16.mxu0 %v731_v39  ;;  %4259 = vmatprep.mubr.bf16.mxu1 %v731_v39  ;;  %v6219_v39 = vld [vmem:[%s8634_s1 + $0xbe8] ss:$16 sps:$4 sm:$0xff]  }
 0x147   :  { %3861 = vmatpush1.bf16.msra.mxu0 %v6132_v40  ;;  %4230 = vmatpush1.bf16.msra.mxu1 %v6135_v41  ;;  %v6224_v40 = vld [vmem:[%s8634_s1 + $0xc04] ss:$16 sps:$4 sm:$0xff]   ;;  %v6227_v41 = vld [vmem:[%s8634_s1 + $0xc0c] ss:$16 sps:$4 sm:$0xff]  }
 0x148   :  { %3862 = vmatprep.subr.bf16.mxu0 %v6140_v34  ;;  %4231 = vmatprep.subr.bf16.mxu1 %v6143_v43  ;;  %v700_v34 = vcombine.high %v7863_v38, %v7863_v38  ;;  %v729_v43 = vcombine.high %v7673_v35, %v7673_v35  ;;  %v6233_v35 = vld [vmem:[%s8634_s1 + $0xc2c] ss:$16 sps:$4 sm:$0xff]  }
 0x14b   :  { %3863 = vmatpush1.bf16.msra.mxu0 %v6138_v44  ;;  %4232 = vmatpush1.bf16.msra.mxu1 %v6141_v45  ;;  %v6222_v44 = vld [vmem:[%s8634_s1 + $0xc00] ss:$16 sps:$4 sm:$0xff]   ;;  %v6225_v45 = vld [vmem:[%s8634_s1 + $0xc08] ss:$16 sps:$4 sm:$0xff]  }
 0x14c   :  { %3864 = vmatprep.subr.bf16.mxu0 %v6146_v46  ;;  %4233 = vmatprep.subr.bf16.mxu1 %v6149_v47  ;;  %v6230_v46 = vld [vmem:[%s8634_s1 + $0xc24] ss:$16 sps:$4 sm:$0xff]   ;;  %v7894_v47 = vrot.slane %v700_v34, %v6786_v49 }
 0x14f   :  { %3865 = vmatpush1.bf16.msra.mxu0 %v6144_v48  ;;  %4234 = vmatpush1.bf16.msra.mxu1 %v6147_v50  ;;  %v6228_v48 = vld [vmem:[%s8634_s1 + $0xc20] ss:$16 sps:$4 sm:$0xff]   ;;  %v6231_v50 = vld [vmem:[%s8634_s1 + $0xc28] ss:$16 sps:$4 sm:$0xff]  }
 0x150   :  { %3866 = vmatprep.subr.bf16.mxu0 %v6152_v51  ;;  %4235 = vmatprep.subr.bf16.mxu1 %v6155_v53  ;;  %v6236_v51 = vld [vmem:[%s8634_s1 + $0xc44] ss:$16 sps:$4 sm:$0xff]   ;;  %v6239_v53 = vld [vmem:[%s8634_s1 + $0xc4c] ss:$16 sps:$4 sm:$0xff]  }
 0x153   :  { %3867 = vmatpush1.bf16.msra.mxu0 %v6150_v54  ;;  %4236 = vmatpush1.bf16.msra.mxu1 %v6153_v55  ;;  %v6234_v54 = vld [vmem:[%s8634_s1 + $0xc40] ss:$16 sps:$4 sm:$0xff]   ;;  %v6237_v55 = vld [vmem:[%s8634_s1 + $0xc48] ss:$16 sps:$4 sm:$0xff]  }
 0x154   :  { %3868 = vmatprep.subr.bf16.mxu0 %v6158_v56  ;;  %4237 = vmatprep.subr.bf16.mxu1 %v6161_v57  ;;  %v6242_v56 = vld [vmem:[%s8634_s1 + $0xc64] ss:$16 sps:$4 sm:$0xff]   ;;  %v6245_v57 = vld [vmem:[%s8634_s1 + $0xc6c] ss:$16 sps:$4 sm:$0xff]  }
 0x157   :  { %3869 = vmatpush1.bf16.msra.mxu0 %v6156_v58  ;;  %4238 = vmatpush1.bf16.msra.mxu1 %v6159_v59 }
 0x158   :  { %3870 = vmatprep.subr.bf16.mxu0 %v6164_v60  ;;  %4239 = vmatprep.subr.bf16.mxu1 %v6167_v61 }
 0x15b   :  { %3871 = vmatpush1.bf16.msra.mxu0 %v6162_v62  ;;  %4240 = vmatpush1.bf16.msra.mxu1 %v6165_v63 }
 0x15c   :  { %3872 = vmatprep.subr.bf16.mxu0 %v6170_v0  ;;  %4241 = vmatprep.subr.bf16.mxu1 %v6173_v1 }
 0x15f   :  { %3873 = vmatpush1.bf16.msra.mxu0 %v6168_v2  ;;  %4242 = vmatpush1.bf16.msra.mxu1 %v6171_v3 }
 0x160   :  { %3874 = vmatprep.subr.bf16.mxu0 %v6176_v4  ;;  %4243 = vmatprep.subr.bf16.mxu1 %v6179_v5 }
 0x163   :  { %3875 = vmatpush1.bf16.msra.mxu0 %v6174_v6  ;;  %4244 = vmatpush1.bf16.msra.mxu1 %v6177_v7 }
 0x164   :  { %3876 = vmatprep.subr.bf16.mxu0 %v6182_v8  ;;  %4245 = vmatprep.subr.bf16.mxu1 %v6185_v9 }
 0x167   :  { %3877 = vmatpush1.bf16.msra.mxu0 %v6180_v10  ;;  %4246 = vmatpush1.bf16.msra.mxu1 %v6183_v11 }
 0x168   :  { %3878 = vmatprep.subr.bf16.mxu0 %v6188_v12  ;;  %4247 = vmatprep.subr.bf16.mxu1 %v6191_v52 }
 0x16b   :  { %3879 = vmatpush1.bf16.msra.mxu0 %v6186_v15  ;;  %4248 = vmatpush1.bf16.msra.mxu1 %v6189_v16 }
 0x16c   :  { %3880 = vmatprep.subr.bf16.mxu0 %v6194_v17  ;;  %4249 = vmatprep.subr.bf16.mxu1 %v6197_v18 }
 0x16f   :  { %3881 = vmatpush1.bf16.msra.mxu0 %v6192_v19  ;;  %4250 = vmatpush1.bf16.msra.mxu1 %v6195_v20 }
 0x170   :  { %3882 = vmatprep.subr.bf16.mxu0 %v6200_v22  ;;  %4251 = vmatprep.subr.bf16.mxu1 %v6203_v23 }
 0x173   :  { %3883 = vmatpush1.bf16.msra.mxu0 %v6198_v24  ;;  %4252 = vmatpush1.bf16.msra.mxu1 %v6201_v13 }
 0x174   :  { %3884 = vmatprep.subr.bf16.mxu0 %v6206_v27  ;;  %4253 = vmatprep.subr.bf16.mxu1 %v6209_v28 }
 0x177   :  { %3885 = vmatpush1.bf16.msra.mxu0 %v6204_v29  ;;  %4254 = vmatpush1.bf16.msra.mxu1 %v6207_v14 }
 0x178   :  { %3886 = vmatprep.subr.bf16.mxu0 %v6212_v30  ;;  %4255 = vmatprep.subr.bf16.mxu1 %v6215_v31 }
 0x17b   :  { %3887 = vmatpush1.bf16.msra.mxu0 %v6210_v33  ;;  %4256 = vmatpush1.bf16.msra.mxu1 %v6213_v26 }
 0x17c   :  { %3888 = vmatprep.subr.bf16.mxu0 %v6218_v36  ;;  %4257 = vmatprep.subr.bf16.mxu1 %v6221_v37 }
 0x17f   :  { %3889 = vmatpush1.bf16.msra.mxu0 %v6216_v21  ;;  %4258 = vmatpush1.bf16.msra.mxu1 %v6219_v39 }
 0x180   :  { %3899 = vmatprep.subr.bf16.mxu0 %v6224_v40  ;;  %4268 = vmatprep.subr.bf16.mxu1 %v6227_v41 }
 0x182   :  { %3891 = vmatmul.mubr.bf16.vlgmr.msra.gmra.mrb[0].mxu0 %v729_v43  ;;  %4260 = vmatmul.mubr.bf16.vlgmr.msra.gmra.mrb[0].mxu1 %v729_v43 }
 0x183   :  { %3900 = vmatpush1.bf16.msra.mxu0 %v6222_v44  ;;  %4269 = vmatpush1.bf16.msra.mxu1 %v6225_v45 }
 0x184   :  { %3901 = vmatprep.subr.bf16.mxu0 %v6230_v46  ;;  %4270 = vmatprep.subr.bf16.mxu1 %v6233_v35 }
 0x185   :  { %3931 = vmatprep.mubr.bf16.mxu0 %v7894_v47  ;;  %4300 = vmatprep.mubr.bf16.mxu1 %v7894_v47 }
 0x187   :  { %3902 = vmatpush1.bf16.msra.mxu0 %v6228_v48  ;;  %4271 = vmatpush1.bf16.msra.mxu1 %v6231_v50 }
 0x188   :  { %3903 = vmatprep.subr.bf16.mxu0 %v6236_v51  ;;  %4272 = vmatprep.subr.bf16.mxu1 %v6239_v53 }
 0x189   :  { %15 = vsyncpa [#allocation5], 0  ;;  %v6240_v58 = vld [vmem:[%s8634_s1 + $0xc60] ss:$16 sps:$4 sm:$0xff]   ;;  %v6243_v59 = vld [vmem:[%s8634_s1 + $0xc68] ss:$16 sps:$4 sm:$0xff]   ;;  %v8080_v48 = vrot.slane %v7863_v38, %v6786_v49 }
 0x18a   :  { %v6248_v60 = vld [vmem:[%s8634_s1 + $0xc84] ss:$16 sps:$4 sm:$0xff]   ;;  %v6251_v61 = vld [vmem:[%s8634_s1 + $0xc8c] ss:$16 sps:$4 sm:$0xff]   ;;  %v6246_v62 = vld [vmem:[%s8634_s1 + $0xc80] ss:$16 sps:$4 sm:$0xff]  }
 0x18b   :  { %3904 = vmatpush1.bf16.msra.mxu0 %v6234_v54  ;;  %4273 = vmatpush1.bf16.msra.mxu1 %v6237_v55  ;;  %v6249_v63 = vld [vmem:[%s8634_s1 + $0xc88] ss:$16 sps:$4 sm:$0xff]   ;;  %v6254_v0 = vld [vmem:[%s8634_s1 + $0xca4] ss:$16 sps:$4 sm:$0xff]   ;;  %v6257_v1 = vld [vmem:[%s8634_s1 + $0xcac] ss:$16 sps:$4 sm:$0xff]   ;;  %v732_v54 = vcombine.high %v7894_v47, %v7894_v47 }
 0x18c   :  { %3905 = vmatprep.subr.bf16.mxu0 %v6242_v56  ;;  %4274 = vmatprep.subr.bf16.mxu1 %v6245_v57  ;;  %v6252_v2 = vld [vmem:[%s8634_s1 + $0xca0] ss:$16 sps:$4 sm:$0xff]   ;;  %v6255_v3 = vld [vmem:[%s8634_s1 + $0xca8] ss:$16 sps:$4 sm:$0xff]   ;;  %v6260_v4 = vld [vmem:[%s8634_s1 + $0xcc4] ss:$16 sps:$4 sm:$0xff]  }
 0x18d   :  { %v6263_v5 = vld [vmem:[%s8634_s1 + $0xccc] ss:$16 sps:$4 sm:$0xff]   ;;  %v6258_v6 = vld [vmem:[%s8634_s1 + $0xcc0] ss:$16 sps:$4 sm:$0xff]   ;;  %v6261_v7 = vld [vmem:[%s8634_s1 + $0xcc8] ss:$16 sps:$4 sm:$0xff]  }
 0x18e   :  { %v6266_v8 = vld [vmem:[%s8634_s1 + $0xce4] ss:$16 sps:$4 sm:$0xff]   ;;  %v6269_v9 = vld [vmem:[%s8634_s1 + $0xcec] ss:$16 sps:$4 sm:$0xff]   ;;  %v6264_v10 = vld [vmem:[%s8634_s1 + $0xce0] ss:$16 sps:$4 sm:$0xff]  }
 0x18f   :  { %3906 = vmatpush1.bf16.msra.mxu0 %v6240_v58  ;;  %4275 = vmatpush1.bf16.msra.mxu1 %v6243_v59  ;;  %v6267_v11 = vld [vmem:[%s8634_s1 + $0xce8] ss:$16 sps:$4 sm:$0xff]   ;;  %v6272_v12 = vld [vmem:[%s8634_s1 + $0xd04] ss:$16 sps:$4 sm:$0xff]   ;;  %v6275_v52 = vld [vmem:[%s8634_s1 + $0xd0c] ss:$16 sps:$4 sm:$0xff]  }
 0x190   :  { %3907 = vmatprep.subr.bf16.mxu0 %v6248_v60  ;;  %4276 = vmatprep.subr.bf16.mxu1 %v6251_v61  ;;  %v6270_v15 = vld [vmem:[%s8634_s1 + $0xd00] ss:$16 sps:$4 sm:$0xff]   ;;  %v6273_v16 = vld [vmem:[%s8634_s1 + $0xd08] ss:$16 sps:$4 sm:$0xff]   ;;  %v6278_v17 = vld [vmem:[%s8634_s1 + $0xd24] ss:$16 sps:$4 sm:$0xff]  }
 0x191   :  { %v6281_v18 = vld [vmem:[%s8634_s1 + $0xd2c] ss:$16 sps:$4 sm:$0xff]   ;;  %v6276_v19 = vld [vmem:[%s8634_s1 + $0xd20] ss:$16 sps:$4 sm:$0xff]   ;;  %v6279_v20 = vld [vmem:[%s8634_s1 + $0xd28] ss:$16 sps:$4 sm:$0xff]  }
 0x192   :  { %v6284_v22 = vld [vmem:[%s8634_s1 + $0xd44] ss:$16 sps:$4 sm:$0xff]   ;;  %v6287_v23 = vld [vmem:[%s8634_s1 + $0xd4c] ss:$16 sps:$4 sm:$0xff]   ;;  %v6282_v24 = vld [vmem:[%s8634_s1 + $0xd40] ss:$16 sps:$4 sm:$0xff]  }
 0x193   :  { %3908 = vmatpush1.bf16.msra.mxu0 %v6246_v62  ;;  %4277 = vmatpush1.bf16.msra.mxu1 %v6249_v63  ;;  %v6285_v13 = vld [vmem:[%s8634_s1 + $0xd48] ss:$16 sps:$4 sm:$0xff]   ;;  %v6290_v27 = vld [vmem:[%s8634_s1 + $0xd64] ss:$16 sps:$4 sm:$0xff]   ;;  %v6293_v28 = vld [vmem:[%s8634_s1 + $0xd6c] ss:$16 sps:$4 sm:$0xff]  }
 0x194   :  { %3909 = vmatprep.subr.bf16.mxu0 %v6254_v0  ;;  %4278 = vmatprep.subr.bf16.mxu1 %v6257_v1  ;;  %v6288_v29 = vld [vmem:[%s8634_s1 + $0xd60] ss:$16 sps:$4 sm:$0xff]   ;;  %v6291_v14 = vld [vmem:[%s8634_s1 + $0xd68] ss:$16 sps:$4 sm:$0xff]   ;;  %v6296_v30 = vld [vmem:[%s8634_s1 + $0xd84] ss:$16 sps:$4 sm:$0xff]  }
 0x195   :  { %v6299_v31 = vld [vmem:[%s8634_s1 + $0xd8c] ss:$16 sps:$4 sm:$0xff]   ;;  %v6294_v25 = vld [vmem:[%s8634_s1 + $0xd80] ss:$16 sps:$4 sm:$0xff]   ;;  %v6297_v32 = vld [vmem:[%s8634_s1 + $0xd88] ss:$16 sps:$4 sm:$0xff]  }
 0x196   :  { %v6302_v33 = vld [vmem:[%s8634_s1 + $0xda4] ss:$16 sps:$4 sm:$0xff]   ;;  %v6305_v26 = vld [vmem:[%s8634_s1 + $0xdac] ss:$16 sps:$4 sm:$0xff]   ;;  %v6300_v36 = vld [vmem:[%s8634_s1 + $0xda0] ss:$16 sps:$4 sm:$0xff]  }
 0x197   :  { %3910 = vmatpush1.bf16.msra.mxu0 %v6252_v2  ;;  %4279 = vmatpush1.bf16.msra.mxu1 %v6255_v3  ;;  %v6303_v37 = vld [vmem:[%s8634_s1 + $0xda8] ss:$16 sps:$4 sm:$0xff]   ;;  %v6308_v21 = vld [vmem:[%s8634_s1 + $0xdc4] ss:$16 sps:$4 sm:$0xff]   ;;  %v6311_v39 = vld [vmem:[%s8634_s1 + $0xdcc] ss:$16 sps:$4 sm:$0xff]  }
 0x198   :  { %3911 = vmatprep.subr.bf16.mxu0 %v6260_v4  ;;  %4280 = vmatprep.subr.bf16.mxu1 %v6263_v5  ;;  %v6306_v40 = vld [vmem:[%s8634_s1 + $0xdc0] ss:$16 sps:$4 sm:$0xff]   ;;  %v6309_v41 = vld [vmem:[%s8634_s1 + $0xdc8] ss:$16 sps:$4 sm:$0xff]   ;;  %v6314_v34 = vld [vmem:[%s8634_s1 + $0xde4] ss:$16 sps:$4 sm:$0xff]  }
 0x199   :  { %v6317_v43 = vld [vmem:[%s8634_s1 + $0xdec] ss:$16 sps:$4 sm:$0xff]   ;;  %v6312_v44 = vld [vmem:[%s8634_s1 + $0xde0] ss:$16 sps:$4 sm:$0xff]   ;;  %v6315_v45 = vld [vmem:[%s8634_s1 + $0xde8] ss:$16 sps:$4 sm:$0xff]  }
 0x19a   :  { %v6321_v46 = vld [vmem:[%s8634_s1 + $0xe04] ss:$16 sps:$4 sm:$0xff]   ;;  %v6324_v35 = vld [vmem:[%s8634_s1 + $0xe0c] ss:$16 sps:$4 sm:$0xff]   ;;  %v6319_v50 = vld [vmem:[%s8634_s1 + $0xe00] ss:$16 sps:$4 sm:$0xff]  }
 0x19b   :  { %3912 = vmatpush1.bf16.msra.mxu0 %v6258_v6  ;;  %4281 = vmatpush1.bf16.msra.mxu1 %v6261_v7  ;;  %v6322_v51 = vld [vmem:[%s8634_s1 + $0xe08] ss:$16 sps:$4 sm:$0xff]   ;;  %v6327_v53 = vld [vmem:[%s8634_s1 + $0xe24] ss:$16 sps:$4 sm:$0xff]   ;;  %v6330_v38 = vld [vmem:[%s8634_s1 + $0xe2c] ss:$16 sps:$4 sm:$0xff]  }
 0x19c   :  { %3913 = vmatprep.subr.bf16.mxu0 %v6266_v8  ;;  %4282 = vmatprep.subr.bf16.mxu1 %v6269_v9  ;;  %v6325_v55 = vld [vmem:[%s8634_s1 + $0xe20] ss:$16 sps:$4 sm:$0xff]   ;;  %v6328_v56 = vld [vmem:[%s8634_s1 + $0xe28] ss:$16 sps:$4 sm:$0xff]   ;;  %v6333_v47 = vld [vmem:[%s8634_s1 + $0xe44] ss:$16 sps:$4 sm:$0xff]  }
 0x19d   :  { %v6336_v57 = vld [vmem:[%s8634_s1 + $0xe4c] ss:$16 sps:$4 sm:$0xff]   ;;  %v6331_v58 = vld [vmem:[%s8634_s1 + $0xe40] ss:$16 sps:$4 sm:$0xff]   ;;  %v6334_v59 = vld [vmem:[%s8634_s1 + $0xe48] ss:$16 sps:$4 sm:$0xff]  }
 0x19e   :  { %v6339_v60 = vld [vmem:[%s8634_s1 + $0xe64] ss:$16 sps:$4 sm:$0xff]   ;;  %v6342_v61 = vld [vmem:[%s8634_s1 + $0xe6c] ss:$16 sps:$4 sm:$0xff]   ;;  %v6337_v62 = vld [vmem:[%s8634_s1 + $0xe60] ss:$16 sps:$4 sm:$0xff]  }
 0x19f   :  { %3914 = vmatpush1.bf16.msra.mxu0 %v6264_v10  ;;  %4283 = vmatpush1.bf16.msra.mxu1 %v6267_v11  ;;  %v6340_v63 = vld [vmem:[%s8634_s1 + $0xe68] ss:$16 sps:$4 sm:$0xff]   ;;  %v6345_v0 = vld [vmem:[%s8634_s1 + $0xe84] ss:$16 sps:$4 sm:$0xff]   ;;  %v6348_v1 = vld [vmem:[%s8634_s1 + $0xe8c] ss:$16 sps:$4 sm:$0xff]  }
 0x1a0   :  { %3915 = vmatprep.subr.bf16.mxu0 %v6272_v12  ;;  %4284 = vmatprep.subr.bf16.mxu1 %v6275_v52  ;;  %v6343_v2 = vld [vmem:[%s8634_s1 + $0xe80] ss:$16 sps:$4 sm:$0xff]   ;;  %v6346_v3 = vld [vmem:[%s8634_s1 + $0xe88] ss:$16 sps:$4 sm:$0xff]   ;;  %v6351_v4 = vld [vmem:[%s8634_s1 + $0xea4] ss:$16 sps:$4 sm:$0xff]  }
 0x1a1   :  { %v6354_v5 = vld [vmem:[%s8634_s1 + $0xeac] ss:$16 sps:$4 sm:$0xff]   ;;  %v6349_v6 = vld [vmem:[%s8634_s1 + $0xea0] ss:$16 sps:$4 sm:$0xff]   ;;  %v6352_v7 = vld [vmem:[%s8634_s1 + $0xea8] ss:$16 sps:$4 sm:$0xff]  }
 0x1a2   :  { %v6357_v8 = vld [vmem:[%s8634_s1 + $0xec4] ss:$16 sps:$4 sm:$0xff]   ;;  %v6360_v9 = vld [vmem:[%s8634_s1 + $0xecc] ss:$16 sps:$4 sm:$0xff]   ;;  %v6355_v10 = vld [vmem:[%s8634_s1 + $0xec0] ss:$16 sps:$4 sm:$0xff]  }
 0x1a3   :  { %3916 = vmatpush1.bf16.msra.mxu0 %v6270_v15  ;;  %4285 = vmatpush1.bf16.msra.mxu1 %v6273_v16  ;;  %v6358_v11 = vld [vmem:[%s8634_s1 + $0xec8] ss:$16 sps:$4 sm:$0xff]   ;;  %v6363_v12 = vld [vmem:[%s8634_s1 + $0xee4] ss:$16 sps:$4 sm:$0xff]   ;;  %v6366_v52 = vld [vmem:[%s8634_s1 + $0xeec] ss:$16 sps:$4 sm:$0xff]  }
 0x1a4   :  { %3917 = vmatprep.subr.bf16.mxu0 %v6278_v17  ;;  %4286 = vmatprep.subr.bf16.mxu1 %v6281_v18  ;;  %v6361_v15 = vld [vmem:[%s8634_s1 + $0xee0] ss:$16 sps:$4 sm:$0xff]   ;;  %v6364_v16 = vld [vmem:[%s8634_s1 + $0xee8] ss:$16 sps:$4 sm:$0xff]   ;;  %v6369_v17 = vld [vmem:[%s8634_s1 + $0xf04] ss:$16 sps:$4 sm:$0xff]  }
 0x1a5   :  { %v6372_v18 = vld [vmem:[%s8634_s1 + $0xf0c] ss:$16 sps:$4 sm:$0xff]   ;;  %vm6603_vm0 = vmmov 0  }
 0x1a7   :  { %3918 = vmatpush1.bf16.msra.mxu0 %v6276_v19  ;;  %4287 = vmatpush1.bf16.msra.mxu1 %v6279_v20  ;;  %v6367_v19 = vld [vmem:[%s8634_s1 + $0xf00] ss:$16 sps:$4 sm:$0xff]   ;;  %v6370_v20 = vld [vmem:[%s8634_s1 + $0xf08] ss:$16 sps:$4 sm:$0xff]  }
 0x1a8   :  { %3919 = vmatprep.subr.bf16.mxu0 %v6284_v22  ;;  %4288 = vmatprep.subr.bf16.mxu1 %v6287_v23  ;;  %v6375_v22 = vld [vmem:[%s8634_s1 + $0xf24] ss:$16 sps:$4 sm:$0xff]   ;;  %v6378_v23 = vld [vmem:[%s8634_s1 + $0xf2c] ss:$16 sps:$4 sm:$0xff]  }
 0x1ab   :  { %3920 = vmatpush1.bf16.msra.mxu0 %v6282_v24  ;;  %4289 = vmatpush1.bf16.msra.mxu1 %v6285_v13  ;;  %v6373_v24 = vld [vmem:[%s8634_s1 + $0xf20] ss:$16 sps:$4 sm:$0xff]   ;;  %v6376_v13 = vld [vmem:[%s8634_s1 + $0xf28] ss:$16 sps:$4 sm:$0xff]  }
 0x1ac   :  { %3921 = vmatprep.subr.bf16.mxu0 %v6290_v27  ;;  %4290 = vmatprep.subr.bf16.mxu1 %v6293_v28  ;;  %v6381_v27 = vld [vmem:[%s8634_s1 + $0xf44] ss:$16 sps:$4 sm:$0xff]   ;;  %v6384_v28 = vld [vmem:[%s8634_s1 + $0xf4c] ss:$16 sps:$4 sm:$0xff]  }
 0x1af   :  { %3922 = vmatpush1.bf16.msra.mxu0 %v6288_v29  ;;  %4291 = vmatpush1.bf16.msra.mxu1 %v6291_v14  ;;  %v6379_v29 = vld [vmem:[%s8634_s1 + $0xf40] ss:$16 sps:$4 sm:$0xff]   ;;  %v6382_v14 = vld [vmem:[%s8634_s1 + $0xf48] ss:$16 sps:$4 sm:$0xff]  }
 0x1b0   :  { %3923 = vmatprep.subr.bf16.mxu0 %v6296_v30  ;;  %4292 = vmatprep.subr.bf16.mxu1 %v6299_v31  ;;  %v6387_v30 = vld [vmem:[%s8634_s1 + $0xf64] ss:$16 sps:$4 sm:$0xff]   ;;  %v6390_v31 = vld [vmem:[%s8634_s1 + $0xf6c] ss:$16 sps:$4 sm:$0xff]  }
 0x1b3   :  { %3924 = vmatpush1.bf16.msra.mxu0 %v6294_v25  ;;  %4293 = vmatpush1.bf16.msra.mxu1 %v6297_v32  ;;  %v6385_v25 = vld [vmem:[%s8634_s1 + $0xf60] ss:$16 sps:$4 sm:$0xff]   ;;  %v6388_v32 = vld [vmem:[%s8634_s1 + $0xf68] ss:$16 sps:$4 sm:$0xff]  }
 0x1b4   :  { %3925 = vmatprep.subr.bf16.mxu0 %v6302_v33  ;;  %4294 = vmatprep.subr.bf16.mxu1 %v6305_v26  ;;  %v6393_v33 = vld [vmem:[%s8634_s1 + $0xf84] ss:$16 sps:$4 sm:$0xff]   ;;  %v6396_v26 = vld [vmem:[%s8634_s1 + $0xf8c] ss:$16 sps:$4 sm:$0xff]  }
 0x1b7   :  { %3926 = vmatpush1.bf16.msra.mxu0 %v6300_v36  ;;  %4295 = vmatpush1.bf16.msra.mxu1 %v6303_v37  ;;  %v6391_v36 = vld [vmem:[%s8634_s1 + $0xf80] ss:$16 sps:$4 sm:$0xff]   ;;  %v6394_v37 = vld [vmem:[%s8634_s1 + $0xf88] ss:$16 sps:$4 sm:$0xff]  }
 0x1b8   :  { %3927 = vmatprep.subr.bf16.mxu0 %v6308_v21  ;;  %4296 = vmatprep.subr.bf16.mxu1 %v6311_v39  ;;  %v6399_v21 = vld [vmem:[%s8634_s1 + $0xfa4] ss:$16 sps:$4 sm:$0xff]   ;;  %v6402_v39 = vld [vmem:[%s8634_s1 + $0xfac] ss:$16 sps:$4 sm:$0xff]  }
 0x1bb   :  { %3928 = vmatpush1.bf16.msra.mxu0 %v6306_v40  ;;  %4297 = vmatpush1.bf16.msra.mxu1 %v6309_v41  ;;  %v6397_v40 = vld [vmem:[%s8634_s1 + $0xfa0] ss:$16 sps:$4 sm:$0xff]   ;;  %v6400_v41 = vld [vmem:[%s8634_s1 + $0xfa8] ss:$16 sps:$4 sm:$0xff]  }
 0x1bc   :  { %3929 = vmatprep.subr.bf16.mxu0 %v6314_v34  ;;  %4298 = vmatprep.subr.bf16.mxu1 %v6317_v43  ;;  %v6405_v34 = vld [vmem:[%s8634_s1 + $0xfc4] ss:$16 sps:$4 sm:$0xff]   ;;  %v6408_v43 = vld [vmem:[%s8634_s1 + $0xfcc] ss:$16 sps:$4 sm:$0xff]  }
 0x1bf   :  { %3930 = vmatpush1.bf16.msra.mxu0 %v6312_v44  ;;  %4299 = vmatpush1.bf16.msra.mxu1 %v6315_v45  ;;  %v6403_v44 = vld [vmem:[%s8634_s1 + $0xfc0] ss:$16 sps:$4 sm:$0xff]   ;;  %v6406_v45 = vld [vmem:[%s8634_s1 + $0xfc8] ss:$16 sps:$4 sm:$0xff]  }
 0x1c0   :  { %3940 = vmatprep.subr.bf16.mxu0 %v6321_v46  ;;  %4309 = vmatprep.subr.bf16.mxu1 %v6324_v35  ;;  %v6411_v46 = vld [vmem:[%s8634_s1 + $0xfe4] ss:$16 sps:$4 sm:$0xff]   ;;  %v6414_v35 = vld [vmem:[%s8634_s1 + $0xfec] ss:$16 sps:$4 sm:$0xff]  }
 0x1c2   :  { %3932 = vmatmul.mubr.bf16.vlgmr.msra.gmra.mrb[0].mxu0 %v8080_v48  ;;  %4301 = vmatmul.mubr.bf16.vlgmr.msra.gmra.mrb[0].mxu1 %v8080_v48 }
 0x1c3   :  { %3941 = vmatpush1.bf16.msra.mxu0 %v6319_v50  ;;  %4310 = vmatpush1.bf16.msra.mxu1 %v6322_v51  ;;  %v8269_v50 = vld.sshfl [vmem:[%s8633_s0 + $0x10] sm:$0x11 pattern:$0x75316420] }
 0x1c4   :  { %3942 = vmatprep.subr.bf16.mxu0 %v6327_v53  ;;  %4311 = vmatprep.subr.bf16.mxu1 %v6330_v38  ;;  %v6409_v51 = vld [vmem:[%s8634_s1 + $0xfe0] ss:$16 sps:$4 sm:$0xff]   ;;  %v6412_v53 = vld [vmem:[%s8634_s1 + $0xfe8] ss:$16 sps:$4 sm:$0xff]   ;;  %v6417_v38 = vld [vmem:[%s8634_s1 + $0x1004] ss:$16 sps:$4 sm:$0xff]  }
 0x1c5   :  { %3972 = vmatprep.mubr.bf16.mxu0 %v732_v54  ;;  %4341 = vmatprep.mubr.bf16.mxu1 %v732_v54  ;;  %v6420_v54 = vld [vmem:[%s8634_s1 + $0x100c] ss:$16 sps:$4 sm:$0xff]  }
 0x1c7   :  { %3943 = vmatpush1.bf16.msra.mxu0 %v6325_v55  ;;  %4312 = vmatpush1.bf16.msra.mxu1 %v6328_v56  ;;  %v740_v55 = vcombine.high %v8269_v50, %v8269_v50  ;;  %v730_v56 = vcombine.high %v8080_v48, %v8080_v48  ;;  %v6426_v48 = vld [vmem:[%s8634_s1 + $0x102c] ss:$16 sps:$4 sm:$0xff]  }
 0x1c8   :  { %3944 = vmatprep.subr.bf16.mxu0 %v6333_v47  ;;  %4313 = vmatprep.subr.bf16.mxu1 %v6336_v57  ;;  %v6415_v47 = vld [vmem:[%s8634_s1 + $0x1000] ss:$16 sps:$4 sm:$0xff]   ;;  %v6418_v57 = vld [vmem:[%s8634_s1 + $0x1008] ss:$16 sps:$4 sm:$0xff]  }
 0x1cb   :  { %3945 = vmatpush1.bf16.msra.mxu0 %v6331_v58  ;;  %4314 = vmatpush1.bf16.msra.mxu1 %v6334_v59  ;;  %v6423_v58 = vld [vmem:[%s8634_s1 + $0x1024] ss:$16 sps:$4 sm:$0xff]   ;;  %v754_v59 = vrot.slane %v740_v55, %v6786_v49 }
 0x1cc   :  { %3946 = vmatprep.subr.bf16.mxu0 %v6339_v60  ;;  %4315 = vmatprep.subr.bf16.mxu1 %v6342_v61  ;;  %v6421_v60 = vld [vmem:[%s8634_s1 + $0x1020] ss:$16 sps:$4 sm:$0xff]   ;;  %v6424_v61 = vld [vmem:[%s8634_s1 + $0x1028] ss:$16 sps:$4 sm:$0xff]   ;;  %v6507_v55 = vld [vmem:[%s8634_s1 + $0x11e4] ss:$16 sps:$4 sm:$0xff]  }
 0x1cf   :  { %3947 = vmatpush1.bf16.msra.mxu0 %v6337_v62  ;;  %4316 = vmatpush1.bf16.msra.mxu1 %v6340_v63  ;;  %v6429_v62 = vld [vmem:[%s8634_s1 + $0x1044] ss:$16 sps:$4 sm:$0xff]   ;;  %v6432_v63 = vld [vmem:[%s8634_s1 + $0x104c] ss:$16 sps:$4 sm:$0xff]  }
 0x1d0   :  { %3948 = vmatprep.subr.bf16.mxu0 %v6345_v0  ;;  %4317 = vmatprep.subr.bf16.mxu1 %v6348_v1  ;;  %v6427_v0 = vld [vmem:[%s8634_s1 + $0x1040] ss:$16 sps:$4 sm:$0xff]   ;;  %v6430_v1 = vld [vmem:[%s8634_s1 + $0x1048] ss:$16 sps:$4 sm:$0xff]  }
 0x1d3   :  { %3949 = vmatpush1.bf16.msra.mxu0 %v6343_v2  ;;  %4318 = vmatpush1.bf16.msra.mxu1 %v6346_v3  ;;  %v6435_v2 = vld [vmem:[%s8634_s1 + $0x1064] ss:$16 sps:$4 sm:$0xff]   ;;  %v6438_v3 = vld [vmem:[%s8634_s1 + $0x106c] ss:$16 sps:$4 sm:$0xff]  }
 0x1d4   :  { %3950 = vmatprep.subr.bf16.mxu0 %v6351_v4  ;;  %4319 = vmatprep.subr.bf16.mxu1 %v6354_v5  ;;  %v6433_v4 = vld [vmem:[%s8634_s1 + $0x1060] ss:$16 sps:$4 sm:$0xff]   ;;  %v6436_v5 = vld [vmem:[%s8634_s1 + $0x1068] ss:$16 sps:$4 sm:$0xff]  }
 0x1d7   :  { %3951 = vmatpush1.bf16.msra.mxu0 %v6349_v6  ;;  %4320 = vmatpush1.bf16.msra.mxu1 %v6352_v7  ;;  %v6441_v6 = vld [vmem:[%s8634_s1 + $0x1084] ss:$16 sps:$4 sm:$0xff]   ;;  %v6444_v7 = vld [vmem:[%s8634_s1 + $0x108c] ss:$16 sps:$4 sm:$0xff]  }
 0x1d8   :  { %3952 = vmatprep.subr.bf16.mxu0 %v6357_v8  ;;  %4321 = vmatprep.subr.bf16.mxu1 %v6360_v9  ;;  %v6439_v8 = vld [vmem:[%s8634_s1 + $0x1080] ss:$16 sps:$4 sm:$0xff]   ;;  %v6442_v9 = vld [vmem:[%s8634_s1 + $0x1088] ss:$16 sps:$4 sm:$0xff]  }
 0x1db   :  { %3953 = vmatpush1.bf16.msra.mxu0 %v6355_v10  ;;  %4322 = vmatpush1.bf16.msra.mxu1 %v6358_v11  ;;  %v6447_v10 = vld [vmem:[%s8634_s1 + $0x10a4] ss:$16 sps:$4 sm:$0xff]   ;;  %v6450_v11 = vld [vmem:[%s8634_s1 + $0x10ac] ss:$16 sps:$4 sm:$0xff]  }
 0x1dc   :  { %3954 = vmatprep.subr.bf16.mxu0 %v6363_v12  ;;  %4323 = vmatprep.subr.bf16.mxu1 %v6366_v52  ;;  %v6445_v12 = vld [vmem:[%s8634_s1 + $0x10a0] ss:$16 sps:$4 sm:$0xff]   ;;  %v6448_v52 = vld [vmem:[%s8634_s1 + $0x10a8] ss:$16 sps:$4 sm:$0xff]  }
 0x1df   :  { %3955 = vmatpush1.bf16.msra.mxu0 %v6361_v15  ;;  %4324 = vmatpush1.bf16.msra.mxu1 %v6364_v16  ;;  %v6453_v15 = vld [vmem:[%s8634_s1 + $0x10c4] ss:$16 sps:$4 sm:$0xff]   ;;  %v6456_v16 = vld [vmem:[%s8634_s1 + $0x10cc] ss:$16 sps:$4 sm:$0xff]  }
 0x1e0   :  { %3956 = vmatprep.subr.bf16.mxu0 %v6369_v17  ;;  %4325 = vmatprep.subr.bf16.mxu1 %v6372_v18  ;;  %v6451_v17 = vld [vmem:[%s8634_s1 + $0x10c0] ss:$16 sps:$4 sm:$0xff]   ;;  %v6454_v18 = vld [vmem:[%s8634_s1 + $0x10c8] ss:$16 sps:$4 sm:$0xff]  }
 0x1e3   :  { %3957 = vmatpush1.bf16.msra.mxu0 %v6367_v19  ;;  %4326 = vmatpush1.bf16.msra.mxu1 %v6370_v20  ;;  %v6459_v19 = vld [vmem:[%s8634_s1 + $0x10e4] ss:$16 sps:$4 sm:$0xff]   ;;  %v6462_v20 = vld [vmem:[%s8634_s1 + $0x10ec] ss:$16 sps:$4 sm:$0xff]  }
 0x1e4   :  { %3958 = vmatprep.subr.bf16.mxu0 %v6375_v22  ;;  %4327 = vmatprep.subr.bf16.mxu1 %v6378_v23  ;;  %v6457_v22 = vld [vmem:[%s8634_s1 + $0x10e0] ss:$16 sps:$4 sm:$0xff]   ;;  %v6460_v23 = vld [vmem:[%s8634_s1 + $0x10e8] ss:$16 sps:$4 sm:$0xff]  }
 0x1e7   :  { %3959 = vmatpush1.bf16.msra.mxu0 %v6373_v24  ;;  %4328 = vmatpush1.bf16.msra.mxu1 %v6376_v13  ;;  %v6465_v24 = vld [vmem:[%s8634_s1 + $0x1104] ss:$16 sps:$4 sm:$0xff]   ;;  %v6468_v13 = vld [vmem:[%s8634_s1 + $0x110c] ss:$16 sps:$4 sm:$0xff]  }
 0x1e8   :  { %3960 = vmatprep.subr.bf16.mxu0 %v6381_v27  ;;  %4329 = vmatprep.subr.bf16.mxu1 %v6384_v28  ;;  %v6463_v27 = vld [vmem:[%s8634_s1 + $0x1100] ss:$16 sps:$4 sm:$0xff]   ;;  %v6466_v28 = vld [vmem:[%s8634_s1 + $0x1108] ss:$16 sps:$4 sm:$0xff]  }
 0x1eb   :  { %3961 = vmatpush1.bf16.msra.mxu0 %v6379_v29  ;;  %4330 = vmatpush1.bf16.msra.mxu1 %v6382_v14  ;;  %v6471_v29 = vld [vmem:[%s8634_s1 + $0x1124] ss:$16 sps:$4 sm:$0xff]   ;;  %v6474_v14 = vld [vmem:[%s8634_s1 + $0x112c] ss:$16 sps:$4 sm:$0xff]  }
 0x1ec   :  { %3962 = vmatprep.subr.bf16.mxu0 %v6387_v30  ;;  %4331 = vmatprep.subr.bf16.mxu1 %v6390_v31  ;;  %v6469_v30 = vld [vmem:[%s8634_s1 + $0x1120] ss:$16 sps:$4 sm:$0xff]   ;;  %v6472_v31 = vld [vmem:[%s8634_s1 + $0x1128] ss:$16 sps:$4 sm:$0xff]  }
 0x1ef   :  { %3963 = vmatpush1.bf16.msra.mxu0 %v6385_v25  ;;  %4332 = vmatpush1.bf16.msra.mxu1 %v6388_v32  ;;  %v6477_v25 = vld [vmem:[%s8634_s1 + $0x1144] ss:$16 sps:$4 sm:$0xff]   ;;  %v6480_v32 = vld [vmem:[%s8634_s1 + $0x114c] ss:$16 sps:$4 sm:$0xff]  }
 0x1f0   :  { %3964 = vmatprep.subr.bf16.mxu0 %v6393_v33  ;;  %4333 = vmatprep.subr.bf16.mxu1 %v6396_v26  ;;  %v6475_v33 = vld [vmem:[%s8634_s1 + $0x1140] ss:$16 sps:$4 sm:$0xff]   ;;  %v6478_v26 = vld [vmem:[%s8634_s1 + $0x1148] ss:$16 sps:$4 sm:$0xff]  }
 0x1f3   :  { %3965 = vmatpush1.bf16.msra.mxu0 %v6391_v36  ;;  %4334 = vmatpush1.bf16.msra.mxu1 %v6394_v37  ;;  %v6483_v36 = vld [vmem:[%s8634_s1 + $0x1164] ss:$16 sps:$4 sm:$0xff]   ;;  %v6486_v37 = vld [vmem:[%s8634_s1 + $0x116c] ss:$16 sps:$4 sm:$0xff]  }
 0x1f4   :  { %3966 = vmatprep.subr.bf16.mxu0 %v6399_v21  ;;  %4335 = vmatprep.subr.bf16.mxu1 %v6402_v39  ;;  %v6481_v21 = vld [vmem:[%s8634_s1 + $0x1160] ss:$16 sps:$4 sm:$0xff]   ;;  %v6484_v39 = vld [vmem:[%s8634_s1 + $0x1168] ss:$16 sps:$4 sm:$0xff]  }
 0x1f7   :  { %3967 = vmatpush1.bf16.msra.mxu0 %v6397_v40  ;;  %4336 = vmatpush1.bf16.msra.mxu1 %v6400_v41  ;;  %v6489_v40 = vld [vmem:[%s8634_s1 + $0x1184] ss:$16 sps:$4 sm:$0xff]   ;;  %v6492_v41 = vld [vmem:[%s8634_s1 + $0x118c] ss:$16 sps:$4 sm:$0xff]  }
 0x1f8   :  { %3968 = vmatprep.subr.bf16.mxu0 %v6405_v34  ;;  %4337 = vmatprep.subr.bf16.mxu1 %v6408_v43  ;;  %v6487_v34 = vld [vmem:[%s8634_s1 + $0x1180] ss:$16 sps:$4 sm:$0xff]   ;;  %v6490_v43 = vld [vmem:[%s8634_s1 + $0x1188] ss:$16 sps:$4 sm:$0xff]  }
 0x1fb   :  { %3969 = vmatpush1.bf16.msra.mxu0 %v6403_v44  ;;  %4338 = vmatpush1.bf16.msra.mxu1 %v6406_v45  ;;  %v6495_v44 = vld [vmem:[%s8634_s1 + $0x11a4] ss:$16 sps:$4 sm:$0xff]   ;;  %v6498_v45 = vld [vmem:[%s8634_s1 + $0x11ac] ss:$16 sps:$4 sm:$0xff]  }
 0x1fc   :  { %3970 = vmatprep.subr.bf16.mxu0 %v6411_v46  ;;  %4339 = vmatprep.subr.bf16.mxu1 %v6414_v35  ;;  %v6493_v46 = vld [vmem:[%s8634_s1 + $0x11a0] ss:$16 sps:$4 sm:$0xff]   ;;  %v6496_v35 = vld [vmem:[%s8634_s1 + $0x11a8] ss:$16 sps:$4 sm:$0xff]  }
 0x1ff   :  { %3971 = vmatpush1.bf16.msra.mxu0 %v6409_v51  ;;  %4340 = vmatpush1.bf16.msra.mxu1 %v6412_v53  ;;  %v6501_v51 = vld [vmem:[%s8634_s1 + $0x11c4] ss:$16 sps:$4 sm:$0xff]   ;;  %v6504_v53 = vld [vmem:[%s8634_s1 + $0x11cc] ss:$16 sps:$4 sm:$0xff]  }
 0x200   :  { %3981 = vmatprep.subr.bf16.mxu0 %v6417_v38  ;;  %4350 = vmatprep.subr.bf16.mxu1 %v6420_v54  ;;  %v6499_v38 = vld [vmem:[%s8634_s1 + $0x11c0] ss:$16 sps:$4 sm:$0xff]   ;;  %v6502_v54 = vld [vmem:[%s8634_s1 + $0x11c8] ss:$16 sps:$4 sm:$0xff]  }
 0x202   :  { %3973 = vmatmul.mubr.bf16.vlgmr.msra.gmra.mrb[0].mxu0 %v730_v56  ;;  %4342 = vmatmul.mubr.bf16.vlgmr.msra.gmra.mrb[0].mxu1 %v730_v56  ;;  %v6510_v56 = vld [vmem:[%s8634_s1 + $0x11ec] ss:$16 sps:$4 sm:$0xff]  }
 0x203   :  { %3982 = vmatpush1.bf16.msra.mxu0 %v6415_v47  ;;  %4351 = vmatpush1.bf16.msra.mxu1 %v6418_v57  ;;  %v6505_v47 = vld [vmem:[%s8634_s1 + $0x11e0] ss:$16 sps:$4 sm:$0xff]   ;;  %v6508_v57 = vld [vmem:[%s8634_s1 + $0x11e8] ss:$16 sps:$4 sm:$0xff]  }
 0x204   :  { %3983 = vmatprep.subr.bf16.mxu0 %v6423_v58  ;;  %4352 = vmatprep.subr.bf16.mxu1 %v6426_v48  ;;  %v6511_v58 = vld [vmem:[%s8636_s3 + $0x40] sm:$0xff]  }
 0x205   :  { %4013 = vmatprep.mubr.bf16.mxu0 %v754_v59  ;;  %4382 = vmatprep.mubr.bf16.mxu1 %v754_v59  ;;  %v6512_v48 = vld [vmem:[%s8636_s3 + $0xc0] sm:$0xff]   ;;  %v747_v59 = vrot.slane %v8269_v50, %v6786_v49  ;;  %v6516_v49 = vld [vmem:[%s8636_s3 + $0xc8] sm:$0xff]  }
 0x206   :  { %v6517_v50 = vld [vmem:[%s8636_s3 + $0x8] sm:$0xff]  }
 0x207   :  { %3984 = vmatpush1.bf16.msra.mxu0 %v6421_v60  ;;  %4353 = vmatpush1.bf16.msra.mxu1 %v6424_v61  ;;  %v6513_v60 = vld [vmem:[%s8636_s3] sm:$0xff]  }
 0x208   :  { %3985 = vmatprep.subr.bf16.mxu0 %v6429_v62  ;;  %4354 = vmatprep.subr.bf16.mxu1 %v6432_v63  ;;  %v6514_v61 = vld [vmem:[%s8636_s3 + $0x80] sm:$0xff]   ;;  %v6515_v62 = vld [vmem:[%s8636_s3 + $0x48] sm:$0xff]  }
 0x209   :  { %v6518_v63 = vld [vmem:[%s8636_s3 + $0x88] sm:$0xff]  }
 0x20b   :  { %3986 = vmatpush1.bf16.msra.mxu0 %v6427_v0  ;;  %4355 = vmatpush1.bf16.msra.mxu1 %v6430_v1  ;;  %v6519_v0 = vld [vmem:[%s8636_s3 + $0x50] sm:$0xff]  }
 0x20c   :  { %3987 = vmatprep.subr.bf16.mxu0 %v6435_v2  ;;  %4356 = vmatprep.subr.bf16.mxu1 %v6438_v3  ;;  %v6520_v1 = vld [vmem:[%s8636_s3 + $0xd0] sm:$0xff]  }
 0x20d   :  { %v6521_v2 = vld [vmem:[%s8636_s3 + $0x10] sm:$0xff]  }
 0x20e   :  { %v6522_v3 = vld [vmem:[%s8636_s3 + $0x90] sm:$0xff]  }
 0x20f   :  { %3988 = vmatpush1.bf16.msra.mxu0 %v6433_v4  ;;  %4357 = vmatpush1.bf16.msra.mxu1 %v6436_v5  ;;  %v6523_v4 = vld [vmem:[%s8636_s3 + $0x58] sm:$0xff]  }
 0x210   :  { %3989 = vmatprep.subr.bf16.mxu0 %v6441_v6  ;;  %4358 = vmatprep.subr.bf16.mxu1 %v6444_v7  ;;  %v6524_v5 = vld [vmem:[%s8636_s3 + $0xd8] sm:$0xff]  }
 0x211   :  { %v6525_v6 = vld [vmem:[%s8636_s3 + $0x18] sm:$0xff]  }
 0x212   :  { %v6526_v7 = vld [vmem:[%s8636_s3 + $0x98] sm:$0xff]  }
 0x213   :  { %3990 = vmatpush1.bf16.msra.mxu0 %v6439_v8  ;;  %4359 = vmatpush1.bf16.msra.mxu1 %v6442_v9  ;;  %v6527_v8 = vld [vmem:[%s8636_s3 + $0x60] sm:$0xff]  }
 0x214   :  { %3991 = vmatprep.subr.bf16.mxu0 %v6447_v10  ;;  %4360 = vmatprep.subr.bf16.mxu1 %v6450_v11  ;;  %v6528_v9 = vld [vmem:[%s8636_s3 + $0xe0] sm:$0xff]  }
 0x215   :  { %v6529_v10 = vld [vmem:[%s8636_s3 + $0x20] sm:$0xff]  }
 0x216   :  { %v6530_v11 = vld [vmem:[%s8636_s3 + $0xa0] sm:$0xff]  }
 0x217   :  { %3992 = vmatpush1.bf16.msra.mxu0 %v6445_v12  ;;  %4361 = vmatpush1.bf16.msra.mxu1 %v6448_v52  ;;  %v6531_v12 = vld [vmem:[%s8636_s3 + $0x68] sm:$0xff]  }
 0x218   :  { %3993 = vmatprep.subr.bf16.mxu0 %v6453_v15  ;;  %4362 = vmatprep.subr.bf16.mxu1 %v6456_v16  ;;  %v6532_v52 = vld [vmem:[%s8636_s3 + $0xe8] sm:$0xff]  }
 0x219   :  { %v6533_v15 = vld [vmem:[%s8636_s3 + $0x28] sm:$0xff]  }
 0x21a   :  { %v6534_v16 = vld [vmem:[%s8636_s3 + $0xa8] sm:$0xff]  }
 0x21b   :  { %3994 = vmatpush1.bf16.msra.mxu0 %v6451_v17  ;;  %4363 = vmatpush1.bf16.msra.mxu1 %v6454_v18  ;;  %v6535_v17 = vld [vmem:[%s8636_s3 + $0x70] sm:$0xff]  }
 0x21c   :  { %3995 = vmatprep.subr.bf16.mxu0 %v6459_v19  ;;  %4364 = vmatprep.subr.bf16.mxu1 %v6462_v20  ;;  %v6536_v18 = vld [vmem:[%s8636_s3 + $0xf0] sm:$0xff]  }
 0x21d   :  { %v6537_v19 = vld [vmem:[%s8636_s3 + $0x30] sm:$0xff]  }
 0x21e   :  { %v6538_v20 = vld [vmem:[%s8636_s3 + $0xb0] sm:$0xff]  }
 0x21f   :  { %3996 = vmatpush1.bf16.msra.mxu0 %v6457_v22  ;;  %4365 = vmatpush1.bf16.msra.mxu1 %v6460_v23  ;;  %v6539_v22 = vld [vmem:[%s8636_s3 + $0x78] sm:$0xff]  }
 0x220   :  { %3997 = vmatprep.subr.bf16.mxu0 %v6465_v24  ;;  %4366 = vmatprep.subr.bf16.mxu1 %v6468_v13  ;;  %v6540_v23 = vld [vmem:[%s8636_s3 + $0xf8] sm:$0xff]  }
 0x221   :  { %v6541_v24 = vld [vmem:[%s8636_s3 + $0x38] sm:$0xff]  }
 0x222   :  { %v6542_v13 = vld [vmem:[%s8636_s3 + $0xb8] sm:$0xff]  }
 0x223   :  { %3998 = vmatpush1.bf16.msra.mxu0 %v6463_v27  ;;  %4367 = vmatpush1.bf16.msra.mxu1 %v6466_v28  ;;  %v6602_v27 = vmov 0.0   ;;  %v614_v28 = vsub.s32 0, %v6768_v42 }
 0x224   :  { %3999 = vmatprep.subr.bf16.mxu0 %v6471_v29  ;;  %4368 = vmatprep.subr.bf16.mxu1 %v6474_v14  ;;  %v622_v29 = vsub.s32 2, %v6768_v42  ;;  %v610_v14 = vld [vmem:[%s8635_s2] sm:$0xf] }
 0x227   :  { %4000 = vmatpush1.bf16.msra.mxu0 %v6469_v30  ;;  %4369 = vmatpush1.bf16.msra.mxu1 %v6472_v31  ;;  %v618_v30 = vsub.s32 1, %v6768_v42  ;;  %v626_v31 = vsub.s32 3, %v6768_v42  ;;  %v6543_v42 = vld [vmem:[%s8638_s5] sm:$0xff]  }
 0x228   :  { %4001 = vmatprep.subr.bf16.mxu0 %v6477_v25  ;;  %4370 = vmatprep.subr.bf16.mxu1 %v6480_v32  ;;  %v615_v25 = vrot.slane %v610_v14, %v614_v28  ;;  %v623_v32 = vrot.slane %v610_v14, %v622_v29 }
 0x22b   :  { %4002 = vmatpush1.bf16.msra.mxu0 %v6475_v33  ;;  %4371 = vmatpush1.bf16.msra.mxu1 %v6478_v26  ;;  %v619_v33 = vrot.slane %v610_v14, %v618_v30  ;;  %v627_v26 = vrot.slane %v610_v14, %v626_v31 }
 0x22c   :  { %4003 = vmatprep.subr.bf16.mxu0 %v6483_v36  ;;  %4372 = vmatprep.subr.bf16.mxu1 %v6486_v37 }
 0x22f   :  { %4004 = vmatpush1.bf16.msra.mxu0 %v6481_v21  ;;  %4373 = vmatpush1.bf16.msra.mxu1 %v6484_v39 }
 0x230   :  { %4005 = vmatprep.subr.bf16.mxu0 %v6489_v40  ;;  %4374 = vmatprep.subr.bf16.mxu1 %v6492_v41 }
 0x233   :  { %4006 = vmatpush1.bf16.msra.mxu0 %v6487_v34  ;;  %4375 = vmatpush1.bf16.msra.mxu1 %v6490_v43 }
 0x234   :  { %4007 = vmatprep.subr.bf16.mxu0 %v6495_v44  ;;  %4376 = vmatprep.subr.bf16.mxu1 %v6498_v45 }
 0x237   :  { %4008 = vmatpush1.bf16.msra.mxu0 %v6493_v46  ;;  %4377 = vmatpush1.bf16.msra.mxu1 %v6496_v35 }
 0x238   :  { %4009 = vmatprep.subr.bf16.mxu0 %v6501_v51  ;;  %4378 = vmatprep.subr.bf16.mxu1 %v6504_v53 }
 0x23b   :  { %4010 = vmatpush1.bf16.msra.mxu0 %v6499_v38  ;;  %4379 = vmatpush1.bf16.msra.mxu1 %v6502_v54 }
 0x23c   :  { %4011 = vmatprep.subr.bf16.mxu0 %v6507_v55  ;;  %4380 = vmatprep.subr.bf16.mxu1 %v6510_v56  ;;  %v6544_v55 = vld [vmem:[%s8638_s5 + $0x8] sm:$0xff]   ;;  %v6545_v56 = vld [vmem:[%s8638_s5 + $0x10] sm:$0xff]  }
 0x23f   :  { %4012 = vmatpush1.bf16.msra.mxu0 %v6505_v47  ;;  %4381 = vmatpush1.bf16.msra.mxu1 %v6508_v57  ;;  %v6546_v47 = vld [vmem:[%s8638_s5 + $0x18] sm:$0xff]   ;;  %v6547_v57 = vld [vmem:[%s8638_s5 + $0x20] sm:$0xff]  }
 0x240   :  { %5499 = vmatprep.subr.bf16.mxu0 %v6511_v58  ;;  %5521 = vmatprep.subr.bf16.mxu1 %v6512_v48  ;;  %v6548_v58 = vld [vmem:[%s8638_s5 + $0x28] sm:$0xff]   ;;  %v6549_v48 = vld [vmem:[%s8638_s5 + $0x30] sm:$0xff]  }
 0x242   :  { %4014 = vmatmul.mubr.bf16.vlgmr.msra.gmra.mrb[0].mxu0 %v747_v59  ;;  %4383 = vmatmul.mubr.bf16.vlgmr.msra.gmra.mrb[0].mxu1 %v747_v59  ;;  %v6550_v59 = vld [vmem:[%s8638_s5 + $0x38] sm:$0xff]   ;;  %s6604_s5 = smov [#allocation2]  }
 0x243   :  { %5500 = vmatpush3.bf16.msra.mxu0 %v6513_v60  ;;  %5522 = vmatpush3.bf16.msra.mxu1 %v6514_v61  ;;  %s4858_s24 = sshll.u32 %s6604_s5, 4  ;;  %s4859_s24 = int_to_ptr.vmem [resolvable:$true] %s4858_s24 }
 0x244   :  { %5501 = vmatprep.subr.bf16.mxu0 %v6515_v62  ;;  %5523 = vmatprep.subr.bf16.mxu1 %v6516_v49  ;;  %v5457_v62 = vld [vmem:[%s8637_s4] ss:$0 sm:$0xff]  ;;  %s6553_s25 = scalar_lea.vmem %s4859_s24, 32  ;;  %p6558_p1 = scmp.lt.s32.totalorder %s4859_s24, %s4859_s24 }
 0x245   :  { %p6554_p0 = scmp.ne.s32.totalorder %s4859_s24, %s6553_s25  ;;  %p6559_p2 = scmp.lt.s32.totalorder %s6553_s25, %s6553_s25 }
 0x247   :  { %5502 = vmatpush3.bf16.msra.mxu0 %v6517_v50  ;;  %5524 = vmatpush3.bf16.msra.mxu1 %v6518_v63  ;;  %p6560_p3 = por %p6559_p2, %p6558_p1 }
 0x248   :  { %5503 = vmatprep.subr.bf16.mxu0 %v6519_v0  ;;  %5525 = vmatprep.subr.bf16.mxu1 %v6520_v1 }
 0x249   :  { %p6561_p4 = pnand %p6560_p3, %p6554_p0 }
 0x24b   :  { %5504 = vmatpush3.bf16.msra.mxu0 %v6521_v2  ;;  %5526 = vmatpush3.bf16.msra.mxu1 %v6522_v3 }
 0x24c   :  { %5505 = vmatprep.subr.bf16.mxu0 %v6523_v4  ;;  %5527 = vmatprep.subr.bf16.mxu1 %v6524_v5 }
 0x24f   :  { %5506 = vmatpush3.bf16.msra.mxu0 %v6525_v6  ;;  %5528 = vmatpush3.bf16.msra.mxu1 %v6526_v7 }
 0x250   :  { %5507 = vmatprep.subr.bf16.mxu0 %v6527_v8  ;;  %5529 = vmatprep.subr.bf16.mxu1 %v6528_v9 }
 0x253   :  { %5508 = vmatpush3.bf16.msra.mxu0 %v6529_v10  ;;  %5530 = vmatpush3.bf16.msra.mxu1 %v6530_v11 }
 0x254   :  { %5509 = vmatprep.subr.bf16.mxu0 %v6531_v12  ;;  %5531 = vmatprep.subr.bf16.mxu1 %v6532_v52 }
 0x257   :  { %5510 = vmatpush3.bf16.msra.mxu0 %v6533_v15  ;;  %5532 = vmatpush3.bf16.msra.mxu1 %v6534_v16 }
 0x258   :  { %5511 = vmatprep.subr.bf16.mxu0 %v6535_v17  ;;  %5533 = vmatprep.subr.bf16.mxu1 %v6536_v18 }
 0x25b   :  { %5512 = vmatpush3.bf16.msra.mxu0 %v6537_v19  ;;  %5534 = vmatpush3.bf16.msra.mxu1 %v6538_v20 }
 0x25c   :  { %5513 = vmatprep.subr.bf16.mxu0 %v6539_v22  ;;  %5535 = vmatprep.subr.bf16.mxu1 %v6540_v23 }
 0x25f   :  { %5514 = vmatpush3.bf16.msra.mxu0 %v6541_v24  ;;  %5536 = vmatpush3.bf16.msra.mxu1 %v6542_v13 }
 0x260   :  { %5552 = vmatprep.subr.bf16.mxu0 %v6602_v27 }
 0x315   :  { %v4015_v36 = vpop.f32.mrb[0].mxu0  ;;  %v4384_v37 = vpop.f32.mrb[0].mxu1 }
 0x316   :  { %v5572_v21 = vadd.f32 %v4015_v36, %v615_v25  ;;  %v5574_v39 = vadd.f32 %v4384_v37, %v623_v32  ;;  %v4017_v40 = vpop.f32.mrb[1].mxu0  ;;  %v4386_v41 = vpop.f32.mrb[1].mxu1 }
 0x317   :  { %v5573_v34 = vadd.f32 %v4017_v40, %v619_v33  ;;  %v5575_v43 = vadd.f32 %v4386_v41, %v627_v26  ;;  %v4019_v44 = vpop.f32.mrb[2].mxu0  ;;  %v4388_v45 = vpop.f32.mrb[2].mxu1 }
 0x318   :  { %v4020_v46 = vpop.f32.mrb[3].mxu0  ;;  %v4389_v35 = vpop.f32.mrb[3].mxu1  ;;  %v4391_v38 = vpack.c.bf16 %v5572_v21, %v5572_v21  ;;  %v4393_v54 = vpack.c.bf16 %v5574_v39, %v5574_v39 }
 0x319   :  { %v4392_v51 = vpack.c.bf16 %v5573_v34, %v5573_v34  ;;  %v4394_v53 = vpack.c.bf16 %v5575_v43, %v5575_v43 }
 0x31b   :  { %4690 = vmatprep.mubr.bf16.mxu0 %v4392_v51  ;;  %4730 = vmatprep.mubr.bf16.mxu1 %v4394_v53 }
 0x31c   :  { %4691 = vmatmul.mubr.bf16.vlgmr.msra.gmra.mrb[4].mxu0 %v4391_v38  ;;  %4731 = vmatmul.mubr.bf16.vlgmr.msra.gmra.mrb[4].mxu1 %v4393_v54 }
 0x31d   :  { %5553 = vmatpush3.bf16.msra.mxu0 %v6543_v42  ;;  %5568 = vmatprep.mubr.msk.bf16.mxu0 %vm6603_vm0, %v6602_v27 }
 0x31e   :  { %5554 = vmatprep.subr.bf16.mxu0 %v6602_v27 }
 0x321   :  { %5555 = vmatpush3.bf16.msra.mxu0 %v6544_v55 }
 0x322   :  { %5556 = vmatprep.subr.bf16.mxu0 %v6602_v27 }
 0x325   :  { %5557 = vmatpush3.bf16.msra.mxu0 %v6545_v56 }
 0x326   :  { %5558 = vmatprep.subr.bf16.mxu0 %v6602_v27 }
 0x329   :  { %5559 = vmatpush3.bf16.msra.mxu0 %v6546_v47 }
 0x32a   :  { %5560 = vmatprep.subr.bf16.mxu0 %v6602_v27 }
 0x32d   :  { %5561 = vmatpush3.bf16.msra.mxu0 %v6547_v57 }
 0x32e   :  { %5562 = vmatprep.subr.bf16.mxu0 %v6602_v27 }
 0x331   :  { %5563 = vmatpush3.bf16.msra.mxu0 %v6548_v58 }
 0x332   :  { %5564 = vmatprep.subr.bf16.mxu0 %v6602_v27 }
 0x335   :  { %5565 = vmatpush3.bf16.msra.mxu0 %v6549_v48 }
 0x336   :  { %5566 = vmatprep.subr.bf16.mxu0 %v6602_v27 }
 0x339   :  { %5567 = vmatpush3.bf16.msra.mxu0 %v6550_v59 }
 0x3ef   :  { %v5515_v60 = vpop.f32.mrb[4].mxu0  ;;  %v5537_v61 = vpop.f32.mrb[4].mxu1 }
 0x3f0   :  { %v5516_v49 = vpop.f32.mrb[5].mxu0  ;;  %v5538_v50 = vpop.f32.mrb[5].mxu1 }
 0x3f1   :  { %v5517_v63 = vadd.f32 %v5516_v49, %v5515_v60  ;;  %v5539_v0 = vadd.f32 %v5538_v50, %v5537_v61  ;;  %v5518_v1 = vpop.f32.mrb[6].mxu0  ;;  %v5540_v2 = vpop.f32.mrb[6].mxu1 }
 0x3f2   :  { %v5519_v3 = vpop.f32.mrb[7].mxu0  ;;  %v5541_v4 = vpop.f32.mrb[7].mxu1 }
 0x3f3   :  { %v4693_v5 = vadd.f32 %v5517_v63, %v5457_v62 }
 0x3f5   :  { %v4733_v6 = vadd.f32 %v5539_v0, %v4693_v5 }
 0x3f7   :  { %v4739_v7 = vpack.c.bf16 %v4733_v6, %v4733_v6  ;;  %4738 = vst [vmem:[#allocation2] sm:$0x3] %v4733_v6 }
 0x3f9   :  { %5569 = vmatmul.mubr.bf16.vlgmr.msra.gmra.mrb[8].mxu0 %v4739_v7 }
 0x3fa   :  { %6564 = shalt.err (!%p6561_p4)
}
 0x3fb   :  { %s6565_s27 = scalar_lea.hbm %s8640_s7, 32 }
 0x3fc   :  { %p6566_p5 = scmp.ne.s32.totalorder %s8640_s7, %s6565_s27  ;;  %p6569_p6 = scmp.lt.u32.totalorder %s6565_s27, %s8640_s7 }
 0x3fe   :  { %p6571_p7 = pnand %p6569_p6, %p6566_p5 }
 0x400   :  { %6574 = shalt.err (!%p6571_p7)
}
 0x401   :  { %4861 = dma.vmem_to_hbm [thread:$0]  %s4859_s24, 32, %s8640_s7, [#allocation3]   ;;  %v5490_v8 = vld [vmem:[%s8639_s6] ss:$0 sm:$0xff] }
 0x402   :  { %s6605_s11 = smov [#allocation4]  }
 0x403   :  { %s4868_s12 = sshll.u32 %s6605_s11, 4  ;;  %s4869_s12 = int_to_ptr.vmem [resolvable:$true] %s4868_s12 }
 0x404   :  { %s6575_s13 = scalar_lea.vmem %s4869_s12, 32  ;;  %p6580_p9 = scmp.lt.s32.totalorder %s4869_s12, %s4869_s12 }
 0x405   :  { %p6576_p8 = scmp.ne.s32.totalorder %s4869_s12, %s6575_s13  ;;  %p6581_p10 = scmp.lt.s32.totalorder %s6575_s13, %s6575_s13 }
 0x407   :  { %p6582_p11 = por %p6581_p10, %p6580_p9 }
 0x409   :  { %p6583_p12 = pnand %p6582_p11, %p6576_p8 }
 0x4cc   :  { %v4845_v9 = vpop.f32.mrb[8].mxu0 }
 0x4cd   :  { %v4846_v10 = vadd.f32 %v5490_v8, %v4845_v9  ;;  %v5570_v11 = vpop.f32.mrb[9].mxu0 }
 0x4ce   :  { %v4848_v12 = vpop.f32.mrb[10].mxu0 }
 0x4cf   :  { %4851 = vst [vmem:[#allocation4] sm:$0x3] %v4846_v10  ;;  %v5571_v52 = vpop.f32.mrb[11].mxu0 }
 0x4d0   :  { %6586 = shalt.err (!%p6583_p12)
}
 0x4d1   :  { %s6587_s6 = scalar_lea.hbm %s8641_s8, 32 }
 0x4d2   :  { %p6588_p13 = scmp.ne.s32.totalorder %s8641_s8, %s6587_s6  ;;  %p6591_p0 = scmp.lt.u32.totalorder %s6587_s6, %s8641_s8 }
 0x4d4   :  { %p6593_p1 = pnand %p6591_p0, %p6588_p13 }
 0x4d6   :  { %6596 = shalt.err (!%p6593_p1)
}
 0x4d7   :  { %4871 = dma.vmem_to_hbm [thread:$0]  %s4869_s12, 32, %s8641_s8, [#allocation5]  }
 0x4d8   :  { %6597 = dma.done.wait [#allocation3], 32  }
 0x4d9   :  { %6598 = vsyncadd [#allocation3], 4294967264 }
 0x4da   :  { %6599 = dma.done.wait [#allocation5], 32  }
 0x4db   :  { %6600 = vsyncadd [#allocation5], 4294967264 }
 0x4dc   :  { %4878 = vsyncpa [#allocation3], 1 }
 0x4dd   :  { %4879 = vsyncpa [#allocation5], 1 }

</bundles_post_ra>
